<compile_context>
chip_gen: v6e
topology: v6e:2x2x1
jax: 0.10.0
libtpu: 0.0.40
codegen_flags: <defaults>
</compile_context>

<pallas_src>
import math
import jax
import jax.numpy as jnp
from jax import lax
from jax.experimental import pallas as pl
from jax.experimental.pallas import tpu as pltpu

K = 11          # cubic kernel size
PAD = 5         # ConvTranspose3d padding (equivalent conv padding = K-1-PAD = 5)
NEG_SLOPE = 0.04
COUT_PAD = 128  # lane-dense padded output channel count


def _round_up(x, m):
    return (x + m - 1) // m * m


def _make_kernel(D, H, W, KCp, Cp):
    DHW = D * H * W

    def kernel(x_ref, w_ref, o_ref, acc_ref):
        # x_ref  : (1, D+K-1, H+K-1, W, KCp)  bf16  zero-padded + kx-im2col'd batch
        # w_ref  : (1, K, KCp, Cp)            bf16  one kz slice of the weight
        # o_ref  : (1, DHW, Cp)               f32
        # acc_ref: (DHW, Cp)                  f32 VMEM scratch, resident across kz
        kz = pl.program_id(1)

        @pl.when(kz == 0)
        def _():
            acc_ref[...] = jnp.zeros_like(acc_ref)

        # D folded into M: one (DHW, KCp) x (KCp, Cp) matmul per ky, ky unrolled.
        for ky in range(K):
            slab = x_ref[0, pl.ds(kz, D), pl.ds(ky, H), :, :]   # (D, H, W, KCp)
            acc_ref[...] += jnp.dot(slab.reshape(DHW, KCp), w_ref[0, ky],
                                    preferred_element_type=jnp.float32)

        @pl.when(kz == K - 1)
        def _():
            a = acc_ref[...]
            # fused elementwise epilogue: torch.where(v > 0, v, 0.04 * v)
            o_ref[0, :, :] = jnp.where(a > 0, a, a * NEG_SLOPE).astype(o_ref.dtype)

    return kernel


def _to_conv_weight(w_t):
    # ConvTranspose3d weight (Cin, Cout, kz, ky, kx) -> conv weight (kz, ky, kx, Cin, Cout)
    # with spatial flip:  Wc[kz,ky,kx,ci,co] = Wt[ci,co,K-1-kz,K-1-ky,K-1-kx]
    return jnp.transpose(jnp.flip(w_t, axis=(2, 3, 4)), (2, 3, 4, 0, 1))


def conv_transpose3d_leaky(x_ncdhw, w_t):
    """x_ncdhw: (N, Cin, D, H, W), w_t: (Cin, Cout, K, K, K) -> (N, Cout, D, H, W)."""
    N, Cin, D, H, W = x_ncdhw.shape
    Cout = w_t.shape[1]
    KC = K * Cin
    KCp = _round_up(KC, 128)          # contraction dim padded to a lane multiple
    Cp = COUT_PAD
    DHW = D * H * W

    # channels-last, bf16, zero pad, kx im2col:
    #   x_col[n, dz, hy, w, kx*Cin + ci] = x_pad[n, dz, hy, w + kx, ci]
    x = jnp.transpose(x_ncdhw, (0, 2, 3, 4, 1)).astype(jnp.bfloat16)
    x_pad = jnp.pad(x, ((0, 0), (PAD, PAD), (PAD, PAD), (PAD, PAD), (0, 0)))
    x_col = jnp.concatenate(
        [x_pad[:, :, :, kx:kx + W, :] for kx in range(K)], axis=-1)
    x_col = jnp.pad(x_col, ((0, 0),) * 4 + ((0, KCp - KC),))

    # weight in exact RHS matmul layout [kz, ky, kx*Cin+ci, co], zero-padded, bf16
    w4 = _to_conv_weight(w_t).reshape(K, K, KC, Cout)
    w4 = jnp.pad(w4, ((0, 0), (0, 0), (0, KCp - KC), (0, Cp - Cout)))
    w4 = w4.astype(jnp.bfloat16)

    kernel = _make_kernel(D, H, W, KCp, Cp)

    out = pl.pallas_call(
        kernel,
        out_shape=jax.ShapeDtypeStruct((N, DHW, Cp), jnp.float32),
        grid_spec=pltpu.PrefetchScalarGridSpec(
            num_scalar_prefetch=0,
            grid=(N, K),                                   # kz = reduction axis (last)
            in_specs=[
                pl.BlockSpec((1, D + K - 1, H + K - 1, W, KCp),
                             lambda n, kz: (n, 0, 0, 0, 0)),   # fetched once per n
                pl.BlockSpec((1, K, KCp, Cp),
                             lambda n, kz: (kz, 0, 0, 0)),     # streamed over kz
            ],
            out_specs=pl.BlockSpec((1, DHW, Cp), lambda n, kz: (n, 0, 0)),
            scratch_shapes=[pltpu.VMEM((DHW, Cp), jnp.float32)],
        ),
        compiler_params=pltpu.CompilerParams(
            dimension_semantics=("parallel", "arbitrary"),
            vmem_limit_bytes=32 << 20,
        ),
    )(x_col, w4)

    out = out[:, :, :Cout].reshape(N, D, H, W, Cout)
    return jnp.transpose(out, (0, 4, 1, 2, 3))               # back to NCDHW


if __name__ == "__main__":
    key = jax.random.PRNGKey(0)
    k_x, k_w = jax.random.split(key)

    # Small shapes consistent with the module (channels fixed by the layer: 20 -> 34).
    N, Cin, Cout, D, H, W = 2, 20, 34, 8, 8, 8
    x = jax.random.normal(k_x, (N, Cin, D, H, W), jnp.float32)
    w_t = jax.random.normal(k_w, (Cin, Cout, K, K, K), jnp.float32) * (
        1.0 / math.sqrt(Cin * K ** 3))

    out = jax.block_until_ready(conv_transpose3d_leaky(x, w_t))
    assert out.shape == (N, Cout, D, H, W)

    # Pure-JAX reference: same bf16-rounded inputs, f32 accumulation (matches kernel).
    # (bf16 inputs are an intentional precision tradeoff vs. the f32 PyTorch module.)
    x_nd = jnp.transpose(x, (0, 2, 3, 4, 1)).astype(jnp.bfloat16)
    wc = _to_conv_weight(w_t).astype(jnp.bfloat16)
    ref = lax.conv_general_dilated(
        x_nd, wc, (1, 1, 1), [(PAD, PAD)] * 3,
        dimension_numbers=("NDHWC", "DHWIO", "NDHWC"),
        preferred_element_type=jnp.float32)
    ref = jnp.where(ref > 0, ref, ref * NEG_SLOPE)
    ref = jnp.transpose(ref, (0, 4, 1, 2, 3))

    err = float(jnp.max(jnp.abs(out - ref)))
    assert jnp.allclose(out, ref, atol=2e-3, rtol=2e-3), err
    print("KERNEL_OK")
</pallas_src>

<mosaic_0001>
module attributes {stable_mosaic.version = 11 : i64} {
  func.func @kernel(%arg0: i32, %arg1: i32, %arg2: memref<1x18x18x8x256xbf16, #tpu.memory_space<vmem>>, %arg3: memref<1x11x256x128xbf16, #tpu.memory_space<vmem>>, %arg4: memref<1x512x128xf32, #tpu.memory_space<vmem>>, %arg5: memref<512x128xf32, #tpu.memory_space<vmem>>) attributes {dimension_semantics = [#tpu.dimension_semantics<parallel>, #tpu.dimension_semantics<arbitrary>], iteration_bounds = array<i64: 2, 11>, scalar_prefetch = 0 : i64, scratch_operands = 1 : i64, tpu.core_type = #tpu.core_type<tc>, window_params = [{transform_indices = @transform_0, window_bounds = array<i64: 1, 18, 18, 8, 256>}, {transform_indices = @transform_1, window_bounds = array<i64: 1, 11, 256, 128>}, {transform_indices = @transform_2, window_bounds = array<i64: 1, 512, 128>}]} {
    %c0_i32 = arith.constant 0 : i32
    %0 = arith.cmpi eq, %arg1, %c0_i32 : i32
    %1 = arith.extui %0 : i1 to i32
    %c0_i32_0 = arith.constant 0 : i32
    %2 = arith.cmpi ne, %1, %c0_i32_0 : i32
    scf.if %2 {
      %cst_133 = arith.constant 0.000000e+00 : f32
      %116 = vector.broadcast %cst_133 : f32 to vector<512x128xf32>
      %c0_134 = arith.constant 0 : index
      %c0_135 = arith.constant 0 : index
      %117 = vector.load %arg5[%c0_134, %c0_135] : memref<512x128xf32, #tpu.memory_space<vmem>>, vector<512x128xf32>
      tpu.vector_store %arg5[%c0_134, %c0_135], %116 {strides = array<i32>} : memref<512x128xf32, #tpu.memory_space<vmem>>, vector<512x128xf32>,
    } else {
    }
    %c0 = arith.constant 0 : index
    %3 = arith.index_cast %arg1 : i32 to index
    %c0_1 = arith.constant 0 : index
    %c0_2 = arith.constant 0 : index
    %c0_3 = arith.constant 0 : index
    %4 = vector.load %arg2[%c0, %3, %c0_1, %c0_2, %c0_3] : memref<1x18x18x8x256xbf16, #tpu.memory_space<vmem>>, vector<1x8x8x8x256xbf16>
    %5 = vector.shape_cast %4 : vector<1x8x8x8x256xbf16> to vector<8x8x8x256xbf16>
    %c0_4 = arith.constant 0 : index
    %c0_5 = arith.constant 0 : index
    %6 = vector.load %arg5[%c0_4, %c0_5] : memref<512x128xf32, #tpu.memory_space<vmem>>, vector<512x128xf32>
    %7 = vector.shape_cast %5 : vector<8x8x8x256xbf16> to vector<512x256xbf16>
    %c0_6 = arith.constant 0 : index
    %c0_7 = arith.constant 0 : index
    %c0_8 = arith.constant 0 : index
    %c0_9 = arith.constant 0 : index
    %8 = vector.load %arg3[%c0_6, %c0_7, %c0_8, %c0_9] : memref<1x11x256x128xbf16, #tpu.memory_space<vmem>>, vector<1x1x256x128xbf16>
    %9 = vector.shape_cast %8 : vector<1x1x256x128xbf16> to vector<256x128xbf16>
    %cst = arith.constant dense<0.000000e+00> : vector<512x128xf32>
    %10 = tpu.matmul %7, %9, %cst {dimension_numbers = #tpu.dot_dimension_numbers<[1], [0], [0], [1], [0, 0, 1, 1], [], []>} : vector<512x256xbf16>, vector<256x128xbf16>, vector<512x128xf32> -> vector<512x128xf32>
    %11 = arith.addf %6, %10 : vector<512x128xf32>
    %c0_10 = arith.constant 0 : index
    %c0_11 = arith.constant 0 : index
    %12 = vector.load %arg5[%c0_10, %c0_11] : memref<512x128xf32, #tpu.memory_space<vmem>>, vector<512x128xf32>
    tpu.vector_store %arg5[%c0_10, %c0_11], %11 {strides = array<i32>} : memref<512x128xf32, #tpu.memory_space<vmem>>, vector<512x128xf32>,
    %c0_12 = arith.constant 0 : index
    %13 = arith.index_cast %arg1 : i32 to index
    %c1 = arith.constant 1 : index
    %c0_13 = arith.constant 0 : index
    %c0_14 = arith.constant 0 : index
    %14 = vector.load %arg2[%c0_12, %13, %c1, %c0_13, %c0_14] : memref<1x18x18x8x256xbf16, #tpu.memory_space<vmem>>, vector<1x8x8x8x256xbf16>
    %15 = vector.shape_cast %14 : vector<1x8x8x8x256xbf16> to vector<8x8x8x256xbf16>
    %c0_15 = arith.constant 0 : index
    %c0_16 = arith.constant 0 : index
    %16 = vector.load %arg5[%c0_15, %c0_16] : memref<512x128xf32, #tpu.memory_space<vmem>>, vector<512x128xf32>
    %17 = vector.shape_cast %15 : vector<8x8x8x256xbf16> to vector<512x256xbf16>
    %c0_17 = arith.constant 0 : index
    %c1_18 = arith.constant 1 : index
    %c0_19 = arith.constant 0 : index
    %c0_20 = arith.constant 0 : index
    %18 = vector.load %arg3[%c0_17, %c1_18, %c0_19, %c0_20] : memref<1x11x256x128xbf16, #tpu.memory_space<vmem>>, vector<1x1x256x128xbf16>
    %19 = vector.shape_cast %18 : vector<1x1x256x128xbf16> to vector<256x128xbf16>
    %cst_21 = arith.constant dense<0.000000e+00> : vector<512x128xf32>
    %20 = tpu.matmul %17, %19, %cst_21 {dimension_numbers = #tpu.dot_dimension_numbers<[1], [0], [0], [1], [0, 0, 1, 1], [], []>} : vector<512x256xbf16>, vector<256x128xbf16>, vector<512x128xf32> -> vector<512x128xf32>
    %21 = arith.addf %16, %20 : vector<512x128xf32>
    %c0_22 = arith.constant 0 : index
    %c0_23 = arith.constant 0 : index
    %22 = vector.load %arg5[%c0_22, %c0_23] : memref<512x128xf32, #tpu.memory_space<vmem>>, vector<512x128xf32>
    tpu.vector_store %arg5[%c0_22, %c0_23], %21 {strides = array<i32>} : memref<512x128xf32, #tpu.memory_space<vmem>>, vector<512x128xf32>,
    %c0_24 = arith.constant 0 : index
    %23 = arith.index_cast %arg1 : i32 to index
    %c2 = arith.constant 2 : index
    %c0_25 = arith.constant 0 : index
    %c0_26 = arith.constant 0 : index
    %24 = vector.load %arg2[%c0_24, %23, %c2, %c0_25, %c0_26] : memref<1x18x18x8x256xbf16, #tpu.memory_space<vmem>>, vector<1x8x8x8x256xbf16>
    %25 = vector.shape_cast %24 : vector<1x8x8x8x256xbf16> to vector<8x8x8x256xbf16>
    %c0_27 = arith.constant 0 : index
    %c0_28 = arith.constant 0 : index
    %26 = vector.load %arg5[%c0_27, %c0_28] : memref<512x128xf32, #tpu.memory_space<vmem>>, vector<512x128xf32>
    %27 = vector.shape_cast %25 : vector<8x8x8x256xbf16> to vector<512x256xbf16>
    %c0_29 = arith.constant 0 : index
    %c2_30 = arith.constant 2 : index
    %c0_31 = arith.constant 0 : index
    %c0_32 = arith.constant 0 : index
    %28 = vector.load %arg3[%c0_29, %c2_30, %c0_31, %c0_32] : memref<1x11x256x128xbf16, #tpu.memory_space<vmem>>, vector<1x1x256x128xbf16>
    %29 = vector.shape_cast %28 : vector<1x1x256x128xbf16> to vector<256x128xbf16>
    %cst_33 = arith.constant dense<0.000000e+00> : vector<512x128xf32>
    %30 = tpu.matmul %27, %29, %cst_33 {dimension_numbers = #tpu.dot_dimension_numbers<[1], [0], [0], [1], [0, 0, 1, 1], [], []>} : vector<512x256xbf16>, vector<256x128xbf16>, vector<512x128xf32> -> vector<512x128xf32>
    %31 = arith.addf %26, %30 : vector<512x128xf32>
    %c0_34 = arith.constant 0 : index
    %c0_35 = arith.constant 0 : index
    %32 = vector.load %arg5[%c0_34, %c0_35] : memref<512x128xf32, #tpu.memory_space<vmem>>, vector<512x128xf32>
    tpu.vector_store %arg5[%c0_34, %c0_35], %31 {strides = array<i32>} : memref<512x128xf32, #tpu.memory_space<vmem>>, vector<512x128xf32>,
    %c0_36 = arith.constant 0 : index
    %33 = arith.index_cast %arg1 : i32 to index
    %c3 = arith.constant 3 : index
    %c0_37 = arith.constant 0 : index
    %c0_38 = arith.constant 0 : index
    %34 = vector.load %arg2[%c0_36, %33, %c3, %c0_37, %c0_38] : memref<1x18x18x8x256xbf16, #tpu.memory_space<vmem>>, vector<1x8x8x8x256xbf16>
    %35 = vector.shape_cast %34 : vector<1x8x8x8x256xbf16> to vector<8x8x8x256xbf16>
    %c0_39 = arith.constant 0 : index
    %c0_40 = arith.constant 0 : index
    %36 = vector.load %arg5[%c0_39, %c0_40] : memref<512x128xf32, #tpu.memory_space<vmem>>, vector<512x128xf32>
    %37 = vector.shape_cast %35 : vector<8x8x8x256xbf16> to vector<512x256xbf16>
    %c0_41 = arith.constant 0 : index
    %c3_42 = arith.constant 3 : index
    %c0_43 = arith.constant 0 : index
    %c0_44 = arith.constant 0 : index
    %38 = vector.load %arg3[%c0_41, %c3_42, %c0_43, %c0_44] : memref<1x11x256x128xbf16, #tpu.memory_space<vmem>>, vector<1x1x256x128xbf16>
    %39 = vector.shape_cast %38 : vector<1x1x256x128xbf16> to vector<256x128xbf16>
    %cst_45 = arith.constant dense<0.000000e+00> : vector<512x128xf32>
    %40 = tpu.matmul %37, %39, %cst_45 {dimension_numbers = #tpu.dot_dimension_numbers<[1], [0], [0], [1], [0, 0, 1, 1], [], []>} : vector<512x256xbf16>, vector<256x128xbf16>, vector<512x128xf32> -> vector<512x128xf32>
    %41 = arith.addf %36, %40 : vector<512x128xf32>
    %c0_46 = arith.constant 0 : index
    %c0_47 = arith.constant 0 : index
    %42 = vector.load %arg5[%c0_46, %c0_47] : memref<512x128xf32, #tpu.memory_space<vmem>>, vector<512x128xf32>
    tpu.vector_store %arg5[%c0_46, %c0_47], %41 {strides = array<i32>} : memref<512x128xf32, #tpu.memory_space<vmem>>, vector<512x128xf32>,
    %c0_48 = arith.constant 0 : index
    %43 = arith.index_cast %arg1 : i32 to index
    %c4 = arith.constant 4 : index
    %c0_49 = arith.constant 0 : index
    %c0_50 = arith.constant 0 : index
    %44 = vector.load %arg2[%c0_48, %43, %c4, %c0_49, %c0_50] : memref<1x18x18x8x256xbf16, #tpu.memory_space<vmem>>, vector<1x8x8x8x256xbf16>
    %45 = vector.shape_cast %44 : vector<1x8x8x8x256xbf16> to vector<8x8x8x256xbf16>
    %c0_51 = arith.constant 0 : index
    %c0_52 = arith.constant 0 : index
    %46 = vector.load %arg5[%c0_51, %c0_52] : memref<512x128xf32, #tpu.memory_space<vmem>>, vector<512x128xf32>
    %47 = vector.shape_cast %45 : vector<8x8x8x256xbf16> to vector<512x256xbf16>
    %c0_53 = arith.constant 0 : index
    %c4_54 = arith.constant 4 : index
    %c0_55 = arith.constant 0 : index
    %c0_56 = arith.constant 0 : index
    %48 = vector.load %arg3[%c0_53, %c4_54, %c0_55, %c0_56] : memref<1x11x256x128xbf16, #tpu.memory_space<vmem>>, vector<1x1x256x128xbf16>
    %49 = vector.shape_cast %48 : vector<1x1x256x128xbf16> to vector<256x128xbf16>
    %cst_57 = arith.constant dense<0.000000e+00> : vector<512x128xf32>
    %50 = tpu.matmul %47, %49, %cst_57 {dimension_numbers = #tpu.dot_dimension_numbers<[1], [0], [0], [1], [0, 0, 1, 1], [], []>} : vector<512x256xbf16>, vector<256x128xbf16>, vector<512x128xf32> -> vector<512x128xf32>
    %51 = arith.addf %46, %50 : vector<512x128xf32>
    %c0_58 = arith.constant 0 : index
    %c0_59 = arith.constant 0 : index
    %52 = vector.load %arg5[%c0_58, %c0_59] : memref<512x128xf32, #tpu.memory_space<vmem>>, vector<512x128xf32>
    tpu.vector_store %arg5[%c0_58, %c0_59], %51 {strides = array<i32>} : memref<512x128xf32, #tpu.memory_space<vmem>>, vector<512x128xf32>,
    %c0_60 = arith.constant 0 : index
    %53 = arith.index_cast %arg1 : i32 to index
    %c5 = arith.constant 5 : index
    %c0_61 = arith.constant 0 : index
    %c0_62 = arith.constant 0 : index
    %54 = vector.load %arg2[%c0_60, %53, %c5, %c0_61, %c0_62] : memref<1x18x18x8x256xbf16, #tpu.memory_space<vmem>>, vector<1x8x8x8x256xbf16>
    %55 = vector.shape_cast %54 : vector<1x8x8x8x256xbf16> to vector<8x8x8x256xbf16>
    %c0_63 = arith.constant 0 : index
    %c0_64 = arith.constant 0 : index
    %56 = vector.load %arg5[%c0_63, %c0_64] : memref<512x128xf32, #tpu.memory_space<vmem>>, vector<512x128xf32>
    %57 = vector.shape_cast %55 : vector<8x8x8x256xbf16> to vector<512x256xbf16>
    %c0_65 = arith.constant 0 : index
    %c5_66 = arith.constant 5 : index
    %c0_67 = arith.constant 0 : index
    %c0_68 = arith.constant 0 : index
    %58 = vector.load %arg3[%c0_65, %c5_66, %c0_67, %c0_68] : memref<1x11x256x128xbf16, #tpu.memory_space<vmem>>, vector<1x1x256x128xbf16>
    %59 = vector.shape_cast %58 : vector<1x1x256x128xbf16> to vector<256x128xbf16>
    %cst_69 = arith.constant dense<0.000000e+00> : vector<512x128xf32>
    %60 = tpu.matmul %57, %59, %cst_69 {dimension_numbers = #tpu.dot_dimension_numbers<[1], [0], [0], [1], [0, 0, 1, 1], [], []>} : vector<512x256xbf16>, vector<256x128xbf16>, vector<512x128xf32> -> vector<512x128xf32>
    %61 = arith.addf %56, %60 : vector<512x128xf32>
    %c0_70 = arith.constant 0 : index
    %c0_71 = arith.constant 0 : index
    %62 = vector.load %arg5[%c0_70, %c0_71] : memref<512x128xf32, #tpu.memory_space<vmem>>, vector<512x128xf32>
    tpu.vector_store %arg5[%c0_70, %c0_71], %61 {strides = array<i32>} : memref<512x128xf32, #tpu.memory_space<vmem>>, vector<512x128xf32>,
    %c0_72 = arith.constant 0 : index
    %63 = arith.index_cast %arg1 : i32 to index
    %c6 = arith.constant 6 : index
    %c0_73 = arith.constant 0 : index
    %c0_74 = arith.constant 0 : index
    %64 = vector.load %arg2[%c0_72, %63, %c6, %c0_73, %c0_74] : memref<1x18x18x8x256xbf16, #tpu.memory_space<vmem>>, vector<1x8x8x8x256xbf16>
    %65 = vector.shape_cast %64 : vector<1x8x8x8x256xbf16> to vector<8x8x8x256xbf16>
    %c0_75 = arith.constant 0 : index
    %c0_76 = arith.constant 0 : index
    %66 = vector.load %arg5[%c0_75, %c0_76] : memref<512x128xf32, #tpu.memory_space<vmem>>, vector<512x128xf32>
    %67 = vector.shape_cast %65 : vector<8x8x8x256xbf16> to vector<512x256xbf16>
    %c0_77 = arith.constant 0 : index
    %c6_78 = arith.constant 6 : index
    %c0_79 = arith.constant 0 : index
    %c0_80 = arith.constant 0 : index
    %68 = vector.load %arg3[%c0_77, %c6_78, %c0_79, %c0_80] : memref<1x11x256x128xbf16, #tpu.memory_space<vmem>>, vector<1x1x256x128xbf16>
    %69 = vector.shape_cast %68 : vector<1x1x256x128xbf16> to vector<256x128xbf16>
    %cst_81 = arith.constant dense<0.000000e+00> : vector<512x128xf32>
    %70 = tpu.matmul %67, %69, %cst_81 {dimension_numbers = #tpu.dot_dimension_numbers<[1], [0], [0], [1], [0, 0, 1, 1], [], []>} : vector<512x256xbf16>, vector<256x128xbf16>, vector<512x128xf32> -> vector<512x128xf32>
    %71 = arith.addf %66, %70 : vector<512x128xf32>
    %c0_82 = arith.constant 0 : index
    %c0_83 = arith.constant 0 : index
    %72 = vector.load %arg5[%c0_82, %c0_83] : memref<512x128xf32, #tpu.memory_space<vmem>>, vector<512x128xf32>
    tpu.vector_store %arg5[%c0_82, %c0_83], %71 {strides = array<i32>} : memref<512x128xf32, #tpu.memory_space<vmem>>, vector<512x128xf32>,
    %c0_84 = arith.constant 0 : index
    %73 = arith.index_cast %arg1 : i32 to index
    %c7 = arith.constant 7 : index
    %c0_85 = arith.constant 0 : index
    %c0_86 = arith.constant 0 : index
    %74 = vector.load %arg2[%c0_84, %73, %c7, %c0_85, %c0_86] : memref<1x18x18x8x256xbf16, #tpu.memory_space<vmem>>, vector<1x8x8x8x256xbf16>
    %75 = vector.shape_cast %74 : vector<1x8x8x8x256xbf16> to vector<8x8x8x256xbf16>
    %c0_87 = arith.constant 0 : index
    %c0_88 = arith.constant 0 : index
    %76 = vector.load %arg5[%c0_87, %c0_88] : memref<512x128xf32, #tpu.memory_space<vmem>>, vector<512x128xf32>
    %77 = vector.shape_cast %75 : vector<8x8x8x256xbf16> to vector<512x256xbf16>
    %c0_89 = arith.constant 0 : index
    %c7_90 = arith.constant 7 : index
    %c0_91 = arith.constant 0 : index
    %c0_92 = arith.constant 0 : index
    %78 = vector.load %arg3[%c0_89, %c7_90, %c0_91, %c0_92] : memref<1x11x256x128xbf16, #tpu.memory_space<vmem>>, vector<1x1x256x128xbf16>
    %79 = vector.shape_cast %78 : vector<1x1x256x128xbf16> to vector<256x128xbf16>
    %cst_93 = arith.constant dense<0.000000e+00> : vector<512x128xf32>
    %80 = tpu.matmul %77, %79, %cst_93 {dimension_numbers = #tpu.dot_dimension_numbers<[1], [0], [0], [1], [0, 0, 1, 1], [], []>} : vector<512x256xbf16>, vector<256x128xbf16>, vector<512x128xf32> -> vector<512x128xf32>
    %81 = arith.addf %76, %80 : vector<512x128xf32>
    %c0_94 = arith.constant 0 : index
    %c0_95 = arith.constant 0 : index
    %82 = vector.load %arg5[%c0_94, %c0_95] : memref<512x128xf32, #tpu.memory_space<vmem>>, vector<512x128xf32>
    tpu.vector_store %arg5[%c0_94, %c0_95], %81 {strides = array<i32>} : memref<512x128xf32, #tpu.memory_space<vmem>>, vector<512x128xf32>,
    %c0_96 = arith.constant 0 : index
    %83 = arith.index_cast %arg1 : i32 to index
    %c8 = arith.constant 8 : index
    %c0_97 = arith.constant 0 : index
    %c0_98 = arith.constant 0 : index
    %84 = vector.load %arg2[%c0_96, %83, %c8, %c0_97, %c0_98] : memref<1x18x18x8x256xbf16, #tpu.memory_space<vmem>>, vector<1x8x8x8x256xbf16>
    %85 = vector.shape_cast %84 : vector<1x8x8x8x256xbf16> to vector<8x8x8x256xbf16>
    %c0_99 = arith.constant 0 : index
    %c0_100 = arith.constant 0 : index
    %86 = vector.load %arg5[%c0_99, %c0_100] : memref<512x128xf32, #tpu.memory_space<vmem>>, vector<512x128xf32>
    %87 = vector.shape_cast %85 : vector<8x8x8x256xbf16> to vector<512x256xbf16>
    %c0_101 = arith.constant 0 : index
    %c8_102 = arith.constant 8 : index
    %c0_103 = arith.constant 0 : index
    %c0_104 = arith.constant 0 : index
    %88 = vector.load %arg3[%c0_101, %c8_102, %c0_103, %c0_104] : memref<1x11x256x128xbf16, #tpu.memory_space<vmem>>, vector<1x1x256x128xbf16>
    %89 = vector.shape_cast %88 : vector<1x1x256x128xbf16> to vector<256x128xbf16>
    %cst_105 = arith.constant dense<0.000000e+00> : vector<512x128xf32>
    %90 = tpu.matmul %87, %89, %cst_105 {dimension_numbers = #tpu.dot_dimension_numbers<[1], [0], [0], [1], [0, 0, 1, 1], [], []>} : vector<512x256xbf16>, vector<256x128xbf16>, vector<512x128xf32> -> vector<512x128xf32>
    %91 = arith.addf %86, %90 : vector<512x128xf32>
    %c0_106 = arith.constant 0 : index
    %c0_107 = arith.constant 0 : index
    %92 = vector.load %arg5[%c0_106, %c0_107] : memref<512x128xf32, #tpu.memory_space<vmem>>, vector<512x128xf32>
    tpu.vector_store %arg5[%c0_106, %c0_107], %91 {strides = array<i32>} : memref<512x128xf32, #tpu.memory_space<vmem>>, vector<512x128xf32>,
    %c0_108 = arith.constant 0 : index
    %93 = arith.index_cast %arg1 : i32 to index
    %c9 = arith.constant 9 : index
    %c0_109 = arith.constant 0 : index
    %c0_110 = arith.constant 0 : index
    %94 = vector.load %arg2[%c0_108, %93, %c9, %c0_109, %c0_110] : memref<1x18x18x8x256xbf16, #tpu.memory_space<vmem>>, vector<1x8x8x8x256xbf16>
    %95 = vector.shape_cast %94 : vector<1x8x8x8x256xbf16> to vector<8x8x8x256xbf16>
    %c0_111 = arith.constant 0 : index
    %c0_112 = arith.constant 0 : index
    %96 = vector.load %arg5[%c0_111, %c0_112] : memref<512x128xf32, #tpu.memory_space<vmem>>, vector<512x128xf32>
    %97 = vector.shape_cast %95 : vector<8x8x8x256xbf16> to vector<512x256xbf16>
    %c0_113 = arith.constant 0 : index
    %c9_114 = arith.constant 9 : index
    %c0_115 = arith.constant 0 : index
    %c0_116 = arith.constant 0 : index
    %98 = vector.load %arg3[%c0_113, %c9_114, %c0_115, %c0_116] : memref<1x11x256x128xbf16, #tpu.memory_space<vmem>>, vector<1x1x256x128xbf16>
    %99 = vector.shape_cast %98 : vector<1x1x256x128xbf16> to vector<256x128xbf16>
    %cst_117 = arith.constant dense<0.000000e+00> : vector<512x128xf32>
    %100 = tpu.matmul %97, %99, %cst_117 {dimension_numbers = #tpu.dot_dimension_numbers<[1], [0], [0], [1], [0, 0, 1, 1], [], []>} : vector<512x256xbf16>, vector<256x128xbf16>, vector<512x128xf32> -> vector<512x128xf32>
    %101 = arith.addf %96, %100 : vector<512x128xf32>
    %c0_118 = arith.constant 0 : index
    %c0_119 = arith.constant 0 : index
    %102 = vector.load %arg5[%c0_118, %c0_119] : memref<512x128xf32, #tpu.memory_space<vmem>>, vector<512x128xf32>
    tpu.vector_store %arg5[%c0_118, %c0_119], %101 {strides = array<i32>} : memref<512x128xf32, #tpu.memory_space<vmem>>, vector<512x128xf32>,
    %c0_120 = arith.constant 0 : index
    %103 = arith.index_cast %arg1 : i32 to index
    %c10 = arith.constant 10 : index
    %c0_121 = arith.constant 0 : index
    %c0_122 = arith.constant 0 : index
    %104 = vector.load %arg2[%c0_120, %103, %c10, %c0_121, %c0_122] : memref<1x18x18x8x256xbf16, #tpu.memory_space<vmem>>, vector<1x8x8x8x256xbf16>
    %105 = vector.shape_cast %104 : vector<1x8x8x8x256xbf16> to vector<8x8x8x256xbf16>
    %c0_123 = arith.constant 0 : index
    %c0_124 = arith.constant 0 : index
    %106 = vector.load %arg5[%c0_123, %c0_124] : memref<512x128xf32, #tpu.memory_space<vmem>>, vector<512x128xf32>
    %107 = vector.shape_cast %105 : vector<8x8x8x256xbf16> to vector<512x256xbf16>
    %c0_125 = arith.constant 0 : index
    %c10_126 = arith.constant 10 : index
    %c0_127 = arith.constant 0 : index
    %c0_128 = arith.constant 0 : index
    %108 = vector.load %arg3[%c0_125, %c10_126, %c0_127, %c0_128] : memref<1x11x256x128xbf16, #tpu.memory_space<vmem>>, vector<1x1x256x128xbf16>
    %109 = vector.shape_cast %108 : vector<1x1x256x128xbf16> to vector<256x128xbf16>
    %cst_129 = arith.constant dense<0.000000e+00> : vector<512x128xf32>
    %110 = tpu.matmul %107, %109, %cst_129 {dimension_numbers = #tpu.dot_dimension_numbers<[1], [0], [0], [1], [0, 0, 1, 1], [], []>} : vector<512x256xbf16>, vector<256x128xbf16>, vector<512x128xf32> -> vector<512x128xf32>
    %111 = arith.addf %106, %110 : vector<512x128xf32>
    %c0_130 = arith.constant 0 : index
    %c0_131 = arith.constant 0 : index
    %112 = vector.load %arg5[%c0_130, %c0_131] : memref<512x128xf32, #tpu.memory_space<vmem>>, vector<512x128xf32>
    tpu.vector_store %arg5[%c0_130, %c0_131], %111 {strides = array<i32>} : memref<512x128xf32, #tpu.memory_space<vmem>>, vector<512x128xf32>,
    %c10_i32 = arith.constant 10 : i32
    %113 = arith.cmpi eq, %arg1, %c10_i32 : i32
    %114 = arith.extui %113 : i1 to i32
    %c0_i32_132 = arith.constant 0 : i32
    %115 = arith.cmpi ne, %114, %c0_i32_132 : i32
    scf.if %115 {
      %c0_133 = arith.constant 0 : index
      %c0_134 = arith.constant 0 : index
      %116 = vector.load %arg5[%c0_133, %c0_134] : memref<512x128xf32, #tpu.memory_space<vmem>>, vector<512x128xf32>
      %cst_135 = arith.constant 0.000000e+00 : f32
      %117 = vector.broadcast %cst_135 : f32 to vector<512x128xf32>
      %118 = arith.cmpf ogt, %116, %117 : vector<512x128xf32>
      %cst_136 = arith.constant 4.000000e-02 : f32
      %119 = vector.broadcast %cst_136 : f32 to vector<512x128xf32>
      %120 = arith.mulf %116, %119 : vector<512x128xf32>
      %121 = arith.select %118, %116, %120 : vector<512x128xi1>, vector<512x128xf32>
      %c0_137 = arith.constant 0 : index
      %c0_138 = arith.constant 0 : index
      %c0_139 = arith.constant 0 : index
      %122 = vector.load %arg4[%c0_137, %c0_138, %c0_139] : memref<1x512x128xf32, #tpu.memory_space<vmem>>, vector<1x512x128xf32>
      %123 = vector.shape_cast %122 : vector<1x512x128xf32> to vector<512x128xf32>
      %124 = vector.shape_cast %121 : vector<512x128xf32> to vector<1x512x128xf32>
      tpu.vector_store %arg4[%c0_137, %c0_138, %c0_139], %124 {strides = array<i32>} : memref<1x512x128xf32, #tpu.memory_space<vmem>>, vector<1x512x128xf32>,
    } else {
    }
    return
  }
  func.func @transform_0(%arg0: i32, %arg1: i32) -> (i32, i32, i32, i32, i32) {
    %c0_i32 = arith.constant 0 : i32
    %c0_i32_0 = arith.constant 0 : i32
    %c0_i32_1 = arith.constant 0 : i32
    %c0_i32_2 = arith.constant 0 : i32
    %c0_i32_3 = arith.constant 0 : i32
    return %arg0, %c0_i32, %c0_i32_0, %c0_i32_1, %c0_i32_2 : i32, i32, i32, i32, i32
  }
  func.func @transform_1(%arg0: i32, %arg1: i32) -> (i32, i32, i32, i32) {
    %c0_i32 = arith.constant 0 : i32
    %c0_i32_0 = arith.constant 0 : i32
    %c0_i32_1 = arith.constant 0 : i32
    %c0_i32_2 = arith.constant 0 : i32
    return %arg1, %c0_i32, %c0_i32_0, %c0_i32_1 : i32, i32, i32, i32
  }
  func.func @transform_2(%arg0: i32, %arg1: i32) -> (i32, i32, i32) {
    %c0_i32 = arith.constant 0 : i32
    %c0_i32_0 = arith.constant 0 : i32
    %c0_i32_1 = arith.constant 0 : i32
    return %arg0, %c0_i32, %c0_i32_0 : i32, i32, i32
  }
}

</mosaic_0001>

<bundles_post_ra>
// kernel: tpu_custom_call.1
= control target key start
LH: loop header
LB: loop body
LE: loop exit
PB: predicated region body
PF: predicated region fallthrough
CT: control target
= control target key end

     0   :  { %s17070_s0 = inlined_call_operand.hbm [shape: bf16[2,18,18,8,256], index: 0, kind: input, shape index: {}]   ;;  %s17071_s1 = inlined_call_operand.hbm [shape: bf16[11,11,256,128], index: 1, kind: input, shape index: {}]   ;;  %s17072_s2 = inlined_call_operand.hbm [shape: f32[2,512,128], index: 2, kind: output, shape index: {}]  }
   0x1   :  { %17078 = sst [smem:[#allocation17_spill]] %s17070_s0 }
   0x2   :  { %7 = vsyncpa [#allocation4], 0 }
   0x3   :  { %9 = vsyncpa [#allocation4 + $0x1], 0 }
   0x4   :  { %10 = vsyncpa [#allocation7], 0 }
   0x5   :  { %12 = vsyncpa [#allocation7 + $0x1], 0 }
   0x6   :  { %13 = vsyncpa [#allocation5], 0 }
   0x7   :  { %15 = vsyncpa [#allocation5 + $0x1], 0  ;;  %s14838_s9 = smov 0   ;;  %s14840_s10 = smov 0  }
   0x8   :  { %s14842_s11 = smov 0   ;;  %s14844_s12 = smov 0  }
   0x9   :  { %s14846_s13 = smov 0   ;;  %s14848_s14 = smov 0  }
   0xa   :  { %s14850_s15 = smov 0   ;;  %s14852_s16 = smov 0  }
   0xb   :  { %s14854_s17 = smov 0   ;;  %s14856_s18 = smov 0  }
   0xc   :  { %s14858_s19 = smov 0  }
   0xd LB: > { %17079 = sst [smem:[#allocation12_spill]] %s14802_s17  ;;  %s11736_s20 = sadd.s32 4294967295, %s14810_s19   ;;  %s14810_s19 = sphi %s14858_s19, %s21_s19   ;;  %s14806_s18 = sphi %s14856_s18, %s17104_s18   ;;  %s14802_s17 = sphi %s14854_s17, %s17103_s17   ;;  %s14798_s16 = sphi %s14852_s16, %s17102_s16   ;;  %s14794_s15 = sphi %s14850_s15, %s17101_s15   ;;  %s14790_s14 = sphi %s14848_s14, %s17110_s14   ;;  %s14786_s13 = sphi %s14846_s13, %s17109_s13   ;;  %s14782_s12 = sphi %s14844_s12, %s17108_s12   ;;  %s14778_s11 = sphi %s14842_s11, %s17107_s11   ;;  %s14774_s10 = sphi %s14840_s10, %s17106_s10   ;;  %s14770_s9 = sphi %s14838_s9, %s17105_s9  }
   0xe   : > { %17080 = sst [smem:[#allocation13_spill]] %s14806_s18  ;;  %s11737_s21 = sadd.s32 4294967294, %s14810_s19  }
   0xf   : > { %p47_p0 = scmp.ne.s32.totalorder %s14790_s14, %s14786_s13  ;;  %p48_p1 = scmp.eq.s32.totalorder %s14810_s19, 0 }
  0x10   : > { %p53_p2 = scmp.ne.s32.totalorder %s14786_s13, %s14782_s12  ;;  %p14902_p3 = scmp.eq.s32.totalorder %s11736_s20, 0 }
  0x11   : > { %p49_p4 = por %p48_p1, %p47_p0  ;;  %p103_p5 = scmp.eq.s32.totalorder %s11736_s20, 21 }
  0x12   : > { %p14910_p6 = por %p14902_p3, %p53_p2  ;;  %p109_p7 = scmp.eq.s32.totalorder %s11737_s21, 21 }
  0x13   : > { %p14914_p8 = por %p103_p5, %p47_p0  ;;  %p17073_p10 = scmp.lt.s32.totalorder %s14810_s19, 22 }
  0x14   : > { %p14918_p9 = por %p109_p7, %p53_p2  ;;  %s129_s28 = sand.u32 1, %s14790_s14  }
  0x15   : > { %s13637_s29 = smul.u32 41472, %s14806_s18  ;;  %s17085_s0 = sld [smem:[#allocation17_spill]] }
  0x16   : > { %s17084_s27 = scalar_select %p14918_p9, 1, 0 }
  0x17   : > { %s13636_s30 = smul.u32 2592, %s129_s28  ;;  %p14930_p11 = pnand %p17073_p10, %p49_p4 }
  0x18   : > { %s130_s20 = scalar_lea.sflag [#allocation4], %s129_s28  ;;  %s14812_s23 = smov [#allocation3]  }
  0x19   : > { %s133_s7 = scalar_lea.vmem [#allocation3], %s13636_s30  ;;  %p14632_p12 = pneg %p14930_p11 }
  0x1a   : > { %s140_s8 = sshll.u32 %s133_s7, 4  ;;  %s14648_s22 = sshll.u32 %s14812_s23, 4  ;;  %s141_s8 = int_to_ptr.vmem [resolvable:$true] %s140_s8  ;;  %s14649_s22 = int_to_ptr.vmem [resolvable:$false] %s14648_s22 }
  0x1b   : > { %s139_s5 = scalar_lea.hbm %s17085_s0, %s13637_s29  ;;  %s14643_s21 = scalar_lea.vmem %s141_s8, 41472 }
  0x1c   : > { %p14644_p13 = scmp.ne.s32.totalorder %s141_s8, %s14643_s21  ;;  %s14650_s29 = scalar_lea.vmem %s14649_s22, 82944 }
  0x1d   : > { %p14651_p5 = scmp.lt.s32.totalorder %s141_s8, %s14649_s22  ;;  %p14652_p4 = scmp.lt.s32.totalorder %s14650_s29, %s14643_s21 }
  0x1e   : > { %p14646_p0 = pnand %p14644_p13, %p14632_p12 }
  0x1f   : > { %p14653_p7 = por %p14652_p4, %p14651_p5 }
  0x20   : > { %p14647_p2 = pneg %p14646_p0 }
  0x22   : > { %p14654_p10 = pnand %p14653_p7, %p14647_p2 }
  0x24   : > { %14657 = shalt.err (!%p14654_p10)
}
  0x25   : > { %s14813_s3 = smov 128   ;;  %s14814_s23 = smov 8  }
  0x26   : > { %13651 = dma.hbm_to_vmem [thread:$0]  (!%p14930_p11), %s139_s5, 41472, %s141_s8, %s130_s20, %s14813_s3, %s14813_s3, %s14814_s23  }
  0x27   : > { %p11742_p10 = scmp.ge.s32.totalorder %s14810_s19, 1  ;;  %p169_p12 = scmp.lt.s32.totalorder %s14810_s19, 23 }
  0x28   : > { %s30_s28 = sadd.s32 1, %s14802_s17  ;;  %s66_s30 = sadd.s32 1, %s14778_s11 }
  0x29   : > { %p14940_p13 = pnand %p11742_p10, %p169_p12  ;;  %p31_p0 = scmp.ge.s32.totalorder %s30_s28, 11 }
  0x2a   : > { %p73_p2 = scmp.ne.s32.totalorder %s14778_s11, %s14774_s10  ;;  %p79_p5 = scmp.ne.s32.totalorder %s14774_s10, %s14770_s9 }
  0x2b   : > { %s17112_s28 = smov (%p31_p0, %s30_s28), 0  ;;  %s17089_s4 = sadd.s32 1, %s14806_s18 }
  0x2c   : > { %17088 = sst [smem:[#allocation14_spill]] %s17112_s28  ;;  %s17114_s4 = smov (!%p31_p0, %s17089_s4), %s14806_s18 }
  0x2d   : > { %s63_s5 = ssub.s32 %s14802_s17, %s17112_s28  ;;  %p75_p11 = por %p73_p2, %p48_p1 }
  0x2e   : > { %p35_p4 = scmp.ge.s32.totalorder %s17114_s4, 2  ;;  %p64_p7 = scmp.eq.s32.totalorder %s63_s5, 0 }
  0x2f   : > { %p14961_p10 = por %p79_p5, %p14902_p3  ;;  %s150_s7 = sand.u32 1, %s14778_s11  }
  0x30   : > { %s17116_s4 = smov (%p35_p4, %s17114_s4), 0  ;;  %s13638_s20 = smul.u32 1408, %s150_s7 }
  0x31   : > { %17091 = sst [smem:[#allocation15_spill]] %s17116_s4  ;;  %s37_s8 = ssub.s32 %s14806_s18, %s17116_s4 }
  0x32   : > { %s14969_s9 = scalar_select %p64_p7, %s14778_s11, %s66_s30  }
  0x33   : > { %p38_p12 = scmp.eq.s32.totalorder %s37_s8, 0  ;;  %s13639_s21 = smul.u32 22528, %s14802_s17 }
  0x34   : > { %17092 = sst [smem:[#allocation16_spill]] %s14969_s9  ;;  %p17093_p0 = scmp.lt.s32.totalorder %s14810_s19, 22 }
  0x35   : > { %s17095_s24 = sadd.s32 1, %s14790_s14  ;;  %s160_s0 = scalar_lea.hbm %s17071_s1, %s13639_s21 }
  0x36   : > { %p14976_p9 = pnand %p17093_p0, %p75_p11  ;;  %s154_s28 = scalar_lea.vmem [#allocation6], %s13638_s20 }
  0x37   : > { %s14983_s3 = scalar_select %p38_p12, %s14790_s14, %s17095_s24  }
  0x38   : > { %s161_s30 = sshll.u32 %s154_s28, 4  ;;  %s151_s4 = scalar_lea.sflag [#allocation7], %s150_s7  ;;  %s162_s30 = int_to_ptr.vmem [resolvable:$true] %s161_s30 }
  0x39   : > { %p14660_p1 = pneg %p14976_p9  ;;  %s14671_s8 = scalar_lea.vmem %s162_s30, 22528 }
  0x3a   : > { %p14672_p3 = scmp.ne.s32.totalorder %s162_s30, %s14671_s8  ;;  %s14815_s18 = smov [#allocation6]  }
  0x3b   : > { %s14676_s17 = sshll.u32 %s14815_s18, 4  ;;  %s14677_s17 = int_to_ptr.vmem [resolvable:$false] %s14676_s17 }
  0x3c   : > { %p14674_p2 = pnand %p14672_p3, %p14660_p1  ;;  %s14678_s9 = scalar_lea.vmem %s14677_s17, 45056 }
  0x3d   : > { %p14679_p11 = scmp.lt.s32.totalorder %s162_s30, %s14677_s17  ;;  %p14680_p4 = scmp.lt.s32.totalorder %s14678_s9, %s14671_s8 }
  0x3e   : > { %p14675_p5 = pneg %p14674_p2 }
  0x3f   : > { %p14681_p7 = por %p14680_p4, %p14679_p11 }
  0x41   : > { %p14682_p12 = pnand %p14681_p7, %p14675_p5 }
  0x43   : > { %14685 = shalt.err (!%p14682_p12)
}
  0x44   : > { %s14816_s21 = smov 64   ;;  %s14817_s28 = smov 4  }
  0x45   : > { %13654 = dma.hbm_to_vmem [thread:$0]  (!%p14976_p9), %s160_s0, 22528, %s162_s30, %s151_s4, %s14816_s21, %s14816_s21, %s14817_s28  }
  0x46   : > { %173 = sbr.rel (%p14940_p13) target bundleno = 1869 (0x74d), region = 28  ;;  %s14995_s7 = sand.u32 (!%p14940_p13), 1, %s14786_s13  }
  0x47   : > { %s13640_s18 = smul.u32 (!%p14940_p13), 2592, %s14995_s7  ;;  %s176_s17 = scalar_lea.sflag (!%p14940_p13), [#allocation4], %s14995_s7 }
  0x49   : > { %s14999_s9 = scalar_lea.vmem (!%p14940_p13), [#allocation3], %s13640_s18 }
  0x4b   : > { %14757 = dma.done.wait (%p14910_p6), %s176_s17, 41472  }
  0x4c   : > { %14759 = vsyncadd (%p14910_p6), %s176_s17, 4294925824  ;;  %s184_s0 = sand.u32 1, %s14774_s10  }
  0x4d   : > { %s13641_s22 = smul.u32 1408, %s184_s0  ;;  %s185_s4 = scalar_lea.sflag [#allocation7], %s184_s0 }
  0x4f   : > { %s15006_s20 = scalar_lea.vmem [#allocation6], %s13641_s22 }
  0x50   : > { %14761 = dma.done.wait (%p14961_p10), %s185_s4, 22528  }
  0x51   : > { %14763 = vsyncadd (%p14961_p10), %s185_s4, 4294944768  ;;  %s11743_s29 = sshll.u32 %s14995_s7, 9  ;;  %p11744_p9 = scmp.ne.s32.totalorder %s14794_s15, 0 }
  0x52   : > { %s15013_s24 = scalar_lea.vmem [#allocation8], %s11743_s29 }
  0x53   : > { %218 = sbr.rel (%p11744_p9) target bundleno = 121 (0x79), region = 40 }
  0x58   : > { %v14818_v0 = vmov 0.0  }
  0x59   : > { %219 = vst [vmem:[#allocation2 + $0xb0] sm:$0xff] %v14818_v0  ;;  %220 = vst [vmem:[#allocation2 + $0x1b0] sm:$0xff] %v14818_v0 }
  0x5a   : > { %221 = vst [vmem:[#allocation2 + $0xd8] sm:$0xff] %v14818_v0  ;;  %222 = vst [vmem:[#allocation2 + $0x18] sm:$0xff] %v14818_v0 }
  0x5b   : > { %223 = vst [vmem:[#allocation2 + $0x50] sm:$0xff] %v14818_v0  ;;  %224 = vst [vmem:[#allocation2 + $0x168] sm:$0xff] %v14818_v0 }
  0x5c   : > { %225 = vst [vmem:[#allocation2 + $0x130] sm:$0xff] %v14818_v0  ;;  %226 = vst [vmem:[#allocation2 + $0x48] sm:$0xff] %v14818_v0 }
  0x5d   : > { %227 = vst [vmem:[#allocation2 + $0x180] sm:$0xff] %v14818_v0  ;;  %228 = vst [vmem:[#allocation2 + $0x110] sm:$0xff] %v14818_v0 }
  0x5e   : > { %229 = vst [vmem:[#allocation2 + $0x118] sm:$0xff] %v14818_v0  ;;  %230 = vst [vmem:[#allocation2 + $0x98] sm:$0xff] %v14818_v0 }
  0x5f   : > { %231 = vst [vmem:[#allocation2 + $0x120] sm:$0xff] %v14818_v0  ;;  %232 = vst [vmem:[#allocation2 + $0x150] sm:$0xff] %v14818_v0 }
  0x60   : > { %233 = vst [vmem:[#allocation2 + $0x108] sm:$0xff] %v14818_v0  ;;  %234 = vst [vmem:[#allocation2 + $0x60] sm:$0xff] %v14818_v0 }
  0x61   : > { %235 = vst [vmem:[#allocation2 + $0xe0] sm:$0xff] %v14818_v0  ;;  %236 = vst [vmem:[#allocation2 + $0x188] sm:$0xff] %v14818_v0 }
  0x62   : > { %237 = vst [vmem:[#allocation2 + $0x138] sm:$0xff] %v14818_v0  ;;  %238 = vst [vmem:[#allocation2 + $0x140] sm:$0xff] %v14818_v0 }
  0x63   : > { %239 = vst [vmem:[#allocation2 + $0x80] sm:$0xff] %v14818_v0  ;;  %240 = vst [vmem:[#allocation2 + $0x1a8] sm:$0xff] %v14818_v0 }
  0x64   : > { %241 = vst [vmem:[#allocation2 + $0x1b8] sm:$0xff] %v14818_v0  ;;  %242 = vst [vmem:[#allocation2 + $0x28] sm:$0xff] %v14818_v0 }
  0x65   : > { %243 = vst [vmem:[#allocation2 + $0x1e8] sm:$0xff] %v14818_v0  ;;  %244 = vst [vmem:[#allocation2 + $0xf8] sm:$0xff] %v14818_v0 }
  0x66   : > { %245 = vst [vmem:[#allocation2 + $0x160] sm:$0xff] %v14818_v0  ;;  %246 = vst [vmem:[#allocation2 + $0x30] sm:$0xff] %v14818_v0 }
  0x67   : > { %247 = vst [vmem:[#allocation2 + $0x1e0] sm:$0xff] %v14818_v0  ;;  %248 = vst [vmem:[#allocation2] sm:$0xff] %v14818_v0 }
  0x68   : > { %249 = vst [vmem:[#allocation2 + $0xf0] sm:$0xff] %v14818_v0  ;;  %250 = vst [vmem:[#allocation2 + $0x8] sm:$0xff] %v14818_v0 }
  0x69   : > { %251 = vst [vmem:[#allocation2 + $0x148] sm:$0xff] %v14818_v0  ;;  %252 = vst [vmem:[#allocation2 + $0x1d0] sm:$0xff] %v14818_v0 }
  0x6a   : > { %253 = vst [vmem:[#allocation2 + $0x100] sm:$0xff] %v14818_v0  ;;  %254 = vst [vmem:[#allocation2 + $0xc8] sm:$0xff] %v14818_v0 }
  0x6b   : > { %255 = vst [vmem:[#allocation2 + $0x40] sm:$0xff] %v14818_v0  ;;  %256 = vst [vmem:[#allocation2 + $0x1f8] sm:$0xff] %v14818_v0 }
  0x6c   : > { %257 = vst [vmem:[#allocation2 + $0x20] sm:$0xff] %v14818_v0  ;;  %258 = vst [vmem:[#allocation2 + $0x128] sm:$0xff] %v14818_v0 }
  0x6d   : > { %259 = vst [vmem:[#allocation2 + $0x1a0] sm:$0xff] %v14818_v0  ;;  %260 = vst [vmem:[#allocation2 + $0x1f0] sm:$0xff] %v14818_v0 }
  0x6e   : > { %261 = vst [vmem:[#allocation2 + $0xe8] sm:$0xff] %v14818_v0  ;;  %262 = vst [vmem:[#allocation2 + $0x78] sm:$0xff] %v14818_v0 }
  0x6f   : > { %263 = vst [vmem:[#allocation2 + $0x70] sm:$0xff] %v14818_v0  ;;  %264 = vst [vmem:[#allocation2 + $0x90] sm:$0xff] %v14818_v0 }
  0x70   : > { %265 = vst [vmem:[#allocation2 + $0x1d8] sm:$0xff] %v14818_v0  ;;  %266 = vst [vmem:[#allocation2 + $0xd0] sm:$0xff] %v14818_v0 }
  0x71   : > { %267 = vst [vmem:[#allocation2 + $0xb8] sm:$0xff] %v14818_v0  ;;  %268 = vst [vmem:[#allocation2 + $0x88] sm:$0xff] %v14818_v0 }
  0x72   : > { %269 = vst [vmem:[#allocation2 + $0xa8] sm:$0xff] %v14818_v0  ;;  %270 = vst [vmem:[#allocation2 + $0x1c8] sm:$0xff] %v14818_v0 }
  0x73   : > { %271 = vst [vmem:[#allocation2 + $0x170] sm:$0xff] %v14818_v0  ;;  %272 = vst [vmem:[#allocation2 + $0x178] sm:$0xff] %v14818_v0 }
  0x74   : > { %273 = vst [vmem:[#allocation2 + $0x68] sm:$0xff] %v14818_v0  ;;  %274 = vst [vmem:[#allocation2 + $0x190] sm:$0xff] %v14818_v0 }
  0x75   : > { %275 = vst [vmem:[#allocation2 + $0x198] sm:$0xff] %v14818_v0  ;;  %276 = vst [vmem:[#allocation2 + $0x38] sm:$0xff] %v14818_v0 }
  0x76   : > { %277 = vst [vmem:[#allocation2 + $0xc0] sm:$0xff] %v14818_v0  ;;  %278 = vst [vmem:[#allocation2 + $0x1c0] sm:$0xff] %v14818_v0 }
  0x77   : > { %279 = vst [vmem:[#allocation2 + $0x158] sm:$0xff] %v14818_v0  ;;  %280 = vst [vmem:[#allocation2 + $0x10] sm:$0xff] %v14818_v0 }
  0x78   : > { %281 = vst [vmem:[#allocation2 + $0x58] sm:$0xff] %v14818_v0  ;;  %282 = vst [vmem:[#allocation2 + $0xa0] sm:$0xff] %v14818_v0 }
  0x79 PF: > { %v13757_v1 = vld [vmem:[%s15006_s20 + $0x38] sm:$0xff]   ;;  %v14819_v2 = vmov 0   ;;  %v13758_v3 = vld [vmem:[%s15006_s20 + $0x30] sm:$0xff]   ;;  %v13759_v4 = vld [vmem:[%s15006_s20 + $0x28] sm:$0xff]   ;;  %s13602_s25 = smul.u32 144, %s14794_s15  ;;  %p13596_p6 = scmp.ne.s32.totalorder %s14794_s15, 10 }
  0x7a   : > { %13604 = vmatprep.subr.bf16.mxu1 %v14819_v2  ;;  %862 = vmatprep.subr.bf16.mxu0 %v14819_v2  ;;  %v13760_v5 = vld [vmem:[%s15006_s20 + $0x20] sm:$0xff]   ;;  %v13761_v6 = vld [vmem:[%s15006_s20 + $0x18] sm:$0xff]   ;;  %v13762_v8 = vld [vmem:[%s15006_s20 + $0x10] sm:$0xff]  }
  0x7b   : > { %13620 = vmatpush1.bf16.msra.mxu1 %v13757_v1  ;;  %863 = vmatpush1.bf16.msra.mxu0 %v13757_v1  ;;  %s15095_s6 = scalar_lea.vmem %s14999_s9, %s13602_s25 [#allocation3]  ;;  %v13763_v12 = vld [vmem:[%s15006_s20 + $0x8] sm:$0xff]   ;;  %v13764_v13 = vld [vmem:[%s15006_s20] sm:$0xff]   ;;  %v13765_v14 = vld [vmem:[%s15006_s20 + $0x78] sm:$0xff]  }
  0x7c   : > { %13605 = vmatprep.subr.bf16.mxu1 %v14819_v2  ;;  %864 = vmatprep.subr.bf16.mxu0 %v14819_v2  ;;  %v13775_v7 = vld [vmem:[%s15095_s6 + $0x244] ss:$8 sps:$4 sm:$0xff]   ;;  %v13766_v15 = vld [vmem:[%s15006_s20 + $0x70] sm:$0xff]   ;;  %v13769_v18 = vld [vmem:[%s15006_s20 + $0x58] sm:$0xff]  }
  0x7d   : > { %v15102_v9 = vld [vmem:[%s15095_s6] sm:$0xff]  ;;  %v15105_v10 = vld [vmem:[%s15095_s6 + $0x8] sm:$0xff]  ;;  %1022 = vmatprep.mubr.bf16.mxu1 %v13775_v7  ;;  %v13770_v19 = vld [vmem:[%s15006_s20 + $0x50] sm:$0xff]  }
  0x7e   : > { %v11747_v11 = vcombine.high %v15102_v9, %v15105_v10  ;;  %v13767_v16 = vld [vmem:[%s15006_s20 + $0x68] sm:$0xff]   ;;  %v13768_v17 = vld [vmem:[%s15006_s20 + $0x60] sm:$0xff]   ;;  %v15139_v21 = vld [vmem:[%s15095_s6 + $0x10] sm:$0xff]  ;;  %v11746_v26 = vcombine.low %v15102_v9, %v15105_v10 }
  0x7f   : > { %13621 = vmatpush1.bf16.msra.mxu1 %v13758_v3  ;;  %865 = vmatpush1.bf16.msra.mxu0 %v13758_v3  ;;  %v13771_v20 = vld [vmem:[%s15006_s20 + $0x48] sm:$0xff]   ;;  %v11923_v22 = vcombine.low %v15105_v10, %v15139_v21  ;;  %v11924_v23 = vcombine.high %v15105_v10, %v15139_v21  ;;  %v13772_v24 = vld [vmem:[%s15006_s20 + $0x40] sm:$0xff]   ;;  %v15152_v27 = vld [vmem:[%s15095_s6 + $0x18] sm:$0xff] }
  0x80   : > { %13606 = vmatprep.subr.bf16.mxu1 %v14819_v2  ;;  %866 = vmatprep.subr.bf16.mxu0 %v14819_v2  ;;  %v13773_v25 = vld [vmem:[%s15095_s6 + $0x240] ss:$8 sps:$4 sm:$0xff]   ;;  %v13776_v28 = vld [vmem:[%s15006_s20 + $0xb8] sm:$0xff]   ;;  %v15161_v31 = vcombine.high %v15139_v21, %v15152_v27  ;;  %v13782_v33 = vld [vmem:[%s15006_s20 + $0xb0] sm:$0xff]   ;;  %v15181_v39 = vcombine.low %v15139_v21, %v15152_v27 }
  0x81   : > { %894 = vmatprep.mubr.bf16.mxu0 %v11747_v11  ;;  %v13779_v29 = vld [vmem:[%s15095_s6 + $0x254] ss:$8 sps:$4 sm:$0xff]   ;;  %v15164_v32 = vld [vmem:[%s15095_s6 + $0x20] sm:$0xff]  ;;  %v15176_v37 = vld [vmem:[%s15095_s6 + $0x28] sm:$0xff] }
  0x82   : > { %v13783_v30 = vld [vmem:[%s15006_s20 + $0x138] sm:$0xff]   ;;  %v11926_v34 = vcombine.high %v15152_v27, %v15164_v32  ;;  %v11925_v35 = vcombine.low %v15152_v27, %v15164_v32  ;;  %v13790_v36 = vld [vmem:[%s15006_s20 + $0x130] sm:$0xff]   ;;  %v13786_v40 = vld [vmem:[%s15095_s6 + $0x264] ss:$8 sps:$4 sm:$0xff]   ;;  %v15188_v42 = vcombine.high %v15164_v32, %v15176_v37  ;;  %v15208_v51 = vcombine.low %v15164_v32, %v15176_v37 }
  0x83   : > { %13622 = vmatpush1.bf16.msra.mxu1 %v13759_v4  ;;  %867 = vmatpush1.bf16.msra.mxu0 %v13759_v4  ;;  %v13781_v38 = vld [vmem:[%s15095_s6 + $0x250] ss:$8 sps:$4 sm:$0xff]   ;;  %v13789_v41 = vld [vmem:[%s15006_s20 + $0xa8] sm:$0xff]   ;;  %v13796_v46 = vld [vmem:[%s15006_s20 + $0xa0] sm:$0xff]  }
  0x84   : > { %13607 = vmatprep.subr.bf16.mxu1 %v14819_v2  ;;  %868 = vmatprep.subr.bf16.mxu0 %v14819_v2  ;;  %v13797_v43 = vld [vmem:[%s15006_s20 + $0x128] sm:$0xff]   ;;  %v15193_v44 = vld [vmem:[%s15095_s6 + $0x30] sm:$0xff]  ;;  %v293_v48 = vld [vmem:[%s15095_s6 + $0x38] sm:$0xff] }
  0x85   : > { %v11928_v45 = vcombine.high %v15176_v37, %v15193_v44  ;;  %v11927_v47 = vcombine.low %v15176_v37, %v15193_v44  ;;  %v13804_v49 = vld [vmem:[%s15006_s20 + $0x120] sm:$0xff]   ;;  %v13793_v52 = vld [vmem:[%s15095_s6 + $0x274] ss:$8 sps:$4 sm:$0xff]   ;;  %v15213_v53 = vcombine.high %v15193_v44, %v293_v48  ;;  %v13795_v59 = vld [vmem:[%s15095_s6 + $0x270] ss:$8 sps:$4 sm:$0xff]   ;;  %v15231_v62 = vcombine.low %v15193_v44, %v293_v48 }
  0x86   : > { %v13788_v50 = vld [vmem:[%s15095_s6 + $0x260] ss:$8 sps:$4 sm:$0xff]   ;;  %v13803_v54 = vld [vmem:[%s15006_s20 + $0x98] sm:$0xff]   ;;  %v294_v56 = vld [vmem:[%s15095_s6 + $0x90] sm:$0xff] }
  0x87   : > { %13623 = vmatpush1.bf16.msra.mxu1 %v13760_v5  ;;  %869 = vmatpush1.bf16.msra.mxu0 %v13760_v5  ;;  %v13811_v55 = vld [vmem:[%s15006_s20 + $0x118] sm:$0xff]   ;;  %v13810_v58 = vld [vmem:[%s15006_s20 + $0x90] sm:$0xff]   ;;  %v13817_v63 = vld [vmem:[%s15006_s20 + $0x88] sm:$0xff]  }
  0x88   : > { %13608 = vmatprep.subr.bf16.mxu1 %v14819_v2  ;;  %870 = vmatprep.subr.bf16.mxu0 %v14819_v2  ;;  %v15221_v57 = vld [vmem:[%s15095_s6 + $0x98] sm:$0xff]  ;;  %v13818_v60 = vld [vmem:[%s15006_s20 + $0x110] sm:$0xff]   ;;  %v15237_v1 = vld [vmem:[%s15095_s6 + $0xa0] sm:$0xff] }
  0x89   : > { %v13800_v61 = vld [vmem:[%s15095_s6 + $0x2d4] ss:$8 sps:$4 sm:$0xff]   ;;  %v11755_v0 = vcombine.high %v294_v56, %v15221_v57  ;;  %v13825_v3 = vld [vmem:[%s15006_s20 + $0x108] sm:$0xff]   ;;  %v13824_v5 = vld [vmem:[%s15006_s20 + $0x80] sm:$0xff]  }
  0x8a   : > { %v15243_v4 = vld [vmem:[%s15095_s6 + $0xa8] sm:$0xff]  ;;  %v13832_v7 = vld [vmem:[%s15006_s20 + $0x100] sm:$0xff]   ;;  %v13802_v9 = vld [vmem:[%s15095_s6 + $0x2d0] ss:$8 sps:$4 sm:$0xff]  }
  0x8b   : > { %13624 = vmatpush1.bf16.msra.mxu1 %v13761_v6  ;;  %871 = vmatpush1.bf16.msra.mxu0 %v13761_v6  ;;  %v11932_v6 = vcombine.high %v15221_v57, %v15237_v1  ;;  %v13807_v11 = vld [vmem:[%s15095_s6 + $0x2e4] ss:$8 sps:$4 sm:$0xff]   ;;  %v13816_v48 = vld [vmem:[%s15095_s6 + $0x2f0] ss:$8 sps:$4 sm:$0xff]  }
  0x8c   : > { %13609 = vmatprep.subr.bf16.mxu1 %v14819_v2  ;;  %872 = vmatprep.subr.bf16.mxu0 %v14819_v2  ;;  %v13901_v10 = vld [vmem:[%s15006_s20 + $0x1a8] sm:$0xff]   ;;  %v14629_v27 = vld [vmem:[%s15095_s6 + $0x38] sm:$0xff] }
  0x8d   : > { %v13904_v21 = vld [vmem:[%s15006_s20 + $0x228] sm:$0xff]  }
  0x8e   : > { %v13929_v37 = vld [vmem:[%s15006_s20 + $0x188] sm:$0xff]  }
  0x8f   : > { %13625 = vmatpush1.bf16.msra.mxu1 %v13762_v8  ;;  %873 = vmatpush1.bf16.msra.mxu0 %v13762_v8  ;;  %v11931_v8 = vcombine.low %v15221_v57, %v15237_v1  ;;  %v13932_v44 = vld [vmem:[%s15006_s20 + $0x208] sm:$0xff]  }
  0x90   : > { %13610 = vmatprep.subr.bf16.mxu1 %v14819_v2  ;;  %874 = vmatprep.subr.bf16.mxu0 %v14819_v2 }
  0x93   : > { %13626 = vmatpush1.bf16.msra.mxu1 %v13763_v12  ;;  %875 = vmatpush1.bf16.msra.mxu0 %v13763_v12  ;;  %v11754_v12 = vcombine.low %v294_v56, %v15221_v57  ;;  %v302_v56 = vld [vmem:[%s15095_s6 + $0x120] sm:$0xff]  ;;  %v13963_v57 = vld [vmem:[%s15006_s20 + $0x1e8] sm:$0xff]  }
  0x94   : > { %13611 = vmatprep.subr.bf16.mxu1 %v14819_v2  ;;  %876 = vmatprep.subr.bf16.mxu0 %v14819_v2 }
  0x97   : > { %13627 = vmatpush1.bf16.msra.mxu1 %v13764_v13  ;;  %877 = vmatpush1.bf16.msra.mxu0 %v13764_v13  ;;  %v13831_v13 = vld [vmem:[%s15006_s20 + $0xf8] sm:$0xff]  }
  0x98   : > { %13612 = vmatprep.subr.bf16.mxu1 %v14819_v2  ;;  %878 = vmatprep.subr.bf16.mxu0 %v14819_v2 }
  0x9b   : > { %13628 = vmatpush2.bf16.msra.mxu1 %v13765_v14  ;;  %879 = vmatpush2.bf16.msra.mxu0 %v13765_v14  ;;  %v15260_v14 = vcombine.high %v15237_v1, %v15243_v4 }
  0x9c   : > { %13613 = vmatprep.subr.bf16.mxu1 %v14819_v2  ;;  %880 = vmatprep.subr.bf16.mxu0 %v14819_v2 }
  0x9f   : > { %13629 = vmatpush2.bf16.msra.mxu1 %v13766_v15  ;;  %881 = vmatpush2.bf16.msra.mxu0 %v13766_v15  ;;  %v15263_v15 = vld [vmem:[%s15095_s6 + $0xb0] sm:$0xff] }
  0xa0   : > { %13614 = vmatprep.subr.bf16.mxu1 %v14819_v2  ;;  %882 = vmatprep.subr.bf16.mxu0 %v14819_v2 }
  0xa3   : > { %13630 = vmatpush2.bf16.msra.mxu1 %v13767_v16  ;;  %883 = vmatpush2.bf16.msra.mxu0 %v13767_v16  ;;  %v13839_v16 = vld [vmem:[%s15006_s20 + $0x178] sm:$0xff]  }
  0xa4   : > { %13615 = vmatprep.subr.bf16.mxu1 %v14819_v2  ;;  %884 = vmatprep.subr.bf16.mxu0 %v14819_v2 }
  0xa7   : > { %13631 = vmatpush2.bf16.msra.mxu1 %v13768_v17  ;;  %885 = vmatpush2.bf16.msra.mxu0 %v13768_v17  ;;  %v15268_v17 = vld [vmem:[%s15095_s6 + $0xb8] sm:$0xff] }
  0xa8   : > { %13616 = vmatprep.subr.bf16.mxu1 %v14819_v2  ;;  %886 = vmatprep.subr.bf16.mxu0 %v14819_v2 }
  0xab   : > { %13632 = vmatpush2.bf16.msra.mxu1 %v13769_v18  ;;  %887 = vmatpush2.bf16.msra.mxu0 %v13769_v18  ;;  %v13838_v18 = vld [vmem:[%s15006_s20 + $0xf0] sm:$0xff]  }
  0xac   : > { %13617 = vmatprep.subr.bf16.mxu1 %v14819_v2  ;;  %888 = vmatprep.subr.bf16.mxu0 %v14819_v2 }
  0xaf   : > { %13633 = vmatpush2.bf16.msra.mxu1 %v13770_v19  ;;  %889 = vmatpush2.bf16.msra.mxu0 %v13770_v19  ;;  %v11934_v19 = vcombine.high %v15243_v4, %v15263_v15 }
  0xb0   : > { %13618 = vmatprep.subr.bf16.mxu1 %v14819_v2  ;;  %890 = vmatprep.subr.bf16.mxu0 %v14819_v2 }
  0xb3   : > { %13634 = vmatpush2.bf16.msra.mxu1 %v13771_v20  ;;  %891 = vmatpush2.bf16.msra.mxu0 %v13771_v20  ;;  %v13846_v20 = vld [vmem:[%s15006_s20 + $0x170] sm:$0xff]  }
  0xb4   : > { %13619 = vmatprep.subr.bf16.mxu1 %v14819_v2  ;;  %892 = vmatprep.subr.bf16.mxu0 %v14819_v2 }
  0xb7   : > { %13635 = vmatpush2.bf16.msra.mxu1 %v13772_v24  ;;  %893 = vmatpush2.bf16.msra.mxu0 %v13772_v24 }
  0xb8   : > { %1859 = vmatprep.subr.bf16.mxu1 %v14819_v2  ;;  %2856 = vmatprep.subr.bf16.mxu0 %v14819_v2 }
  0xba   : > { %1023 = vmatmul.mubr.bf16.vlgmr.msra.gmra.mxu1 %v13773_v25  ;;  %895 = vmatmul.mubr.bf16.vlgmr.msra.gmra.mxu0 %v11746_v26  ;;  %v13809_v25 = vld [vmem:[%s15095_s6 + $0x2e0] ss:$8 sps:$4 sm:$0xff]   ;;  %v13814_v26 = vld [vmem:[%s15095_s6 + $0x2f4] ss:$8 sps:$4 sm:$0xff]  }
  0xbb   : > { %1860 = vmatpush1.bf16.msra.mxu1 %v13776_v28  ;;  %1030 = vmatprep.mubr.bf16.mxu1 %v13779_v29  ;;  %v15283_v28 = vcombine.low %v15237_v1, %v15243_v4  ;;  %v13845_v29 = vld [vmem:[%s15006_s20 + $0xe8] sm:$0xff]   ;;  %v17096_v1 = vcombine.low %v15243_v4, %v15263_v15 }
  0xbc   : > { %1861 = vmatprep.subr.bf16.mxu1 %v14819_v2  ;;  %2857 = vmatpush1.bf16.msra.mxu0 %v13783_v30  ;;  %v15289_v30 = vcombine.high %v15263_v15, %v15268_v17 }
  0xbd   : > { %902 = vmatprep.mubr.bf16.mxu0 %v15161_v31  ;;  %2858 = vmatprep.subr.bf16.mxu0 %v14819_v2 }
  0xbf   : > { %1862 = vmatpush1.bf16.msra.mxu1 %v13782_v33  ;;  %v15292_v33 = vld [vmem:[%s15095_s6 + $0xc0] sm:$0xff] }
  0xc0   : > { %1863 = vmatprep.subr.bf16.mxu1 %v14819_v2  ;;  %2859 = vmatpush1.bf16.msra.mxu0 %v13790_v36  ;;  %v13853_v36 = vld [vmem:[%s15006_s20 + $0x168] sm:$0xff]   ;;  %v17098_v4 = vcombine.low %v15268_v17, %v15292_v33 }
  0xc1   : > { %2860 = vmatprep.subr.bf16.mxu0 %v14819_v2 }
  0xc2   : > { %1031 = vmatmul.mubr.bf16.gmra.mxu1 %v13781_v38  ;;  %903 = vmatmul.mubr.bf16.gmra.mxu0 %v15181_v39  ;;  %v15298_v38 = vld [vmem:[%s15095_s6 + $0xc8] sm:$0xff] }
  0xc3   : > { %1038 = vmatprep.mubr.bf16.mxu1 %v13786_v40  ;;  %1864 = vmatpush1.bf16.msra.mxu1 %v13789_v41  ;;  %v13852_v40 = vld [vmem:[%s15006_s20 + $0xe0] sm:$0xff]  }
  0xc4   : > { %910 = vmatprep.mubr.bf16.mxu0 %v15188_v42  ;;  %1865 = vmatprep.subr.bf16.mxu1 %v14819_v2  ;;  %v13877_v41 = vld [vmem:[%s15095_s6 + $0x424] ss:$8 sps:$4 sm:$0xff]  }
  0xc5   : > { %2861 = vmatpush1.bf16.msra.mxu0 %v13797_v43  ;;  %v13860_v43 = vld [vmem:[%s15006_s20 + $0x160] sm:$0xff]  }
  0xc6   : > { %2862 = vmatprep.subr.bf16.mxu0 %v14819_v2 }
  0xc7   : > { %1866 = vmatpush1.bf16.msra.mxu1 %v13796_v46 }
  0xc8   : > { %1867 = vmatprep.subr.bf16.mxu1 %v14819_v2 }
  0xc9   : > { %2863 = vmatpush1.bf16.msra.mxu0 %v13804_v49  ;;  %v13821_v49 = vld [vmem:[%s15095_s6 + $0x304] ss:$8 sps:$4 sm:$0xff]  }
  0xca   : > { %1039 = vmatmul.mubr.bf16.gmra.mxu1 %v13788_v50  ;;  %911 = vmatmul.mubr.bf16.gmra.mxu0 %v15208_v51  ;;  %v15313_v50 = vcombine.low %v15263_v15, %v15268_v17  ;;  %v13973_v15 = vld [vmem:[%s15006_s20 + $0x1e0] sm:$0xff]  }
  0xcb   : > { %1046 = vmatprep.mubr.bf16.mxu1 %v13793_v52  ;;  %918 = vmatprep.mubr.bf16.mxu0 %v15213_v53  ;;  %v13859_v52 = vld [vmem:[%s15006_s20 + $0xd8] sm:$0xff]  }
  0xcc   : > { %1868 = vmatpush1.bf16.msra.mxu1 %v13803_v54  ;;  %2864 = vmatprep.subr.bf16.mxu0 %v14819_v2  ;;  %v15319_v54 = vcombine.high %v15292_v33, %v15298_v38 }
  0xcd   : > { %1869 = vmatprep.subr.bf16.mxu1 %v14819_v2  ;;  %2865 = vmatpush1.bf16.msra.mxu0 %v13811_v55  ;;  %v13867_v55 = vld [vmem:[%s15006_s20 + $0x158] sm:$0xff]  }
  0xce   : > { %2866 = vmatprep.subr.bf16.mxu0 %v14819_v2 }
  0xd0   : > { %1870 = vmatpush1.bf16.msra.mxu1 %v13810_v58  ;;  %v15326_v58 = vld [vmem:[%s15095_s6 + $0x128] sm:$0xff] }
  0xd1   : > { %1871 = vmatprep.subr.bf16.mxu1 %v14819_v2  ;;  %2867 = vmatpush1.bf16.msra.mxu0 %v13818_v60  ;;  %v13874_v60 = vld [vmem:[%s15006_s20 + $0x150] sm:$0xff]  }
  0xd2   : > { %1047 = vmatmul.mubr.bf16.gmra.mxu1 %v13795_v59  ;;  %919 = vmatmul.mubr.bf16.gmra.mxu0 %v15231_v62  ;;  %v13866_v59 = vld [vmem:[%s15006_s20 + $0xd0] sm:$0xff]  }
  0xd3   : > { %1054 = vmatprep.mubr.bf16.mxu1 %v13800_v61  ;;  %926 = vmatprep.mubr.bf16.mxu0 %v11755_v0  ;;  %v13823_v61 = vld [vmem:[%s15095_s6 + $0x300] ss:$8 sps:$4 sm:$0xff]   ;;  %v15337_v0 = vcombine.low %v15292_v33, %v15298_v38 }
  0xd4   : > { %1872 = vmatpush1.bf16.msra.mxu1 %v13817_v63  ;;  %2868 = vmatprep.subr.bf16.mxu0 %v14819_v2  ;;  %v13828_v63 = vld [vmem:[%s15095_s6 + $0x364] ss:$8 sps:$4 sm:$0xff]  }
  0xd5   : > { %1873 = vmatprep.subr.bf16.mxu1 %v14819_v2  ;;  %2869 = vmatpush1.bf16.msra.mxu0 %v13825_v3  ;;  %v13873_v3 = vld [vmem:[%s15006_s20 + $0xc8] sm:$0xff]  }
  0xd6   : > { %2870 = vmatprep.subr.bf16.mxu0 %v14819_v2 }
  0xd8   : > { %1874 = vmatpush1.bf16.msra.mxu1 %v13824_v5  ;;  %v11763_v5 = vcombine.high %v302_v56, %v15326_v58 }
  0xd9   : > { %1875 = vmatprep.subr.bf16.mxu1 %v14819_v2  ;;  %2871 = vmatpush1.bf16.msra.mxu0 %v13832_v7  ;;  %v13881_v7 = vld [vmem:[%s15006_s20 + $0x148] sm:$0xff]  }
  0xda   : > { %1055 = vmatmul.mubr.bf16.gmra.mxu1 %v13802_v9  ;;  %927 = vmatmul.mubr.bf16.gmra.mxu0 %v11754_v12  ;;  %v15346_v9 = vld [vmem:[%s15095_s6 + $0x130] sm:$0xff]  ;;  %v13880_v12 = vld [vmem:[%s15006_s20 + $0xc0] sm:$0xff]  }
  0xdb   : > { %1062 = vmatprep.mubr.bf16.mxu1 %v13807_v11  ;;  %934 = vmatprep.mubr.bf16.mxu0 %v15260_v14  ;;  %v15349_v11 = vld [vmem:[%s15095_s6 + $0x138] sm:$0xff] }
  0xdc   : > { %1876 = vmatpush2.bf16.msra.mxu1 %v13831_v13  ;;  %2872 = vmatprep.subr.bf16.mxu0 %v14819_v2  ;;  %v13887_v13 = vld [vmem:[%s15006_s20 + $0x140] sm:$0xff]  }
  0xdd   : > { %1877 = vmatprep.subr.bf16.mxu1 %v14819_v2  ;;  %2873 = vmatpush2.bf16.msra.mxu0 %v13839_v16  ;;  %v13830_v16 = vld [vmem:[%s15095_s6 + $0x360] ss:$8 sps:$4 sm:$0xff]  }
  0xde   : > { %2874 = vmatprep.subr.bf16.mxu0 %v14819_v2 }
  0xe0   : > { %1878 = vmatpush2.bf16.msra.mxu1 %v13838_v18  ;;  %v13835_v18 = vld [vmem:[%s15095_s6 + $0x374] ss:$8 sps:$4 sm:$0xff]  }
  0xe1   : > { %1879 = vmatprep.subr.bf16.mxu1 %v14819_v2  ;;  %2875 = vmatpush2.bf16.msra.mxu0 %v13846_v20  ;;  %v11762_v20 = vcombine.low %v302_v56, %v15326_v58 }
  0xe2   : > { %1063 = vmatmul.mubr.bf16.gmra.mxu1 %v13809_v25  ;;  %935 = vmatmul.mubr.bf16.gmra.mxu0 %v15283_v28  ;;  %v15361_v25 = vcombine.high %v15346_v9, %v15349_v11 }
  0xe3   : > { %1070 = vmatprep.mubr.bf16.mxu1 %v13814_v26  ;;  %942 = vmatprep.mubr.bf16.mxu0 %v15289_v30  ;;  %v15365_v26 = vld [vmem:[%s15095_s6 + $0x140] sm:$0xff] }
  0xe4   : > { %1880 = vmatpush2.bf16.msra.mxu1 %v13845_v29  ;;  %2876 = vmatprep.subr.bf16.mxu0 %v14819_v2  ;;  %v15369_v29 = vld [vmem:[%s15095_s6 + $0x148] sm:$0xff] }
  0xe5   : > { %1881 = vmatprep.subr.bf16.mxu1 %v14819_v2  ;;  %2877 = vmatpush2.bf16.msra.mxu0 %v13853_v36  ;;  %v13837_v36 = vld [vmem:[%s15095_s6 + $0x370] ss:$8 sps:$4 sm:$0xff]   ;;  %v15393_v56 = vcombine.low %v15365_v26, %v15369_v29 }
  0xe6   : > { %2878 = vmatprep.subr.bf16.mxu0 %v14819_v2 }
  0xe8   : > { %1882 = vmatpush2.bf16.msra.mxu1 %v13852_v40  ;;  %v15375_v40 = vcombine.low %v15346_v9, %v15349_v11 }
  0xe9   : > { %1883 = vmatprep.subr.bf16.mxu1 %v14819_v2  ;;  %2879 = vmatpush2.bf16.msra.mxu0 %v13860_v43  ;;  %v13842_v43 = vld [vmem:[%s15095_s6 + $0x384] ss:$8 sps:$4 sm:$0xff]  }
  0xea   : > { %1071 = vmatmul.mubr.bf16.gmra.mxu1 %v13816_v48  ;;  %943 = vmatmul.mubr.bf16.gmra.mxu0 %v15313_v50  ;;  %v15380_v48 = vcombine.high %v15365_v26, %v15369_v29 }
  0xeb   : > { %1078 = vmatprep.mubr.bf16.mxu1 %v13821_v49  ;;  %950 = vmatprep.mubr.bf16.mxu0 %v15319_v54  ;;  %v15384_v49 = vld [vmem:[%s15095_s6 + $0x150] sm:$0xff] }
  0xec   : > { %1884 = vmatpush2.bf16.msra.mxu1 %v13859_v52  ;;  %2880 = vmatprep.subr.bf16.mxu0 %v14819_v2  ;;  %v15388_v52 = vld [vmem:[%s15095_s6 + $0x158] sm:$0xff] }
  0xed   : > { %1885 = vmatprep.subr.bf16.mxu1 %v14819_v2  ;;  %2881 = vmatpush2.bf16.msra.mxu0 %v13867_v55  ;;  %v13844_v55 = vld [vmem:[%s15095_s6 + $0x380] ss:$8 sps:$4 sm:$0xff]  }
  0xee   : > { %2882 = vmatprep.subr.bf16.mxu0 %v14819_v2 }
  0xf0   : > { %1886 = vmatpush2.bf16.msra.mxu1 %v13866_v59  ;;  %v13849_v59 = vld [vmem:[%s15095_s6 + $0x394] ss:$8 sps:$4 sm:$0xff]  }
  0xf1   : > { %1887 = vmatprep.subr.bf16.mxu1 %v14819_v2  ;;  %2883 = vmatpush2.bf16.msra.mxu0 %v13874_v60  ;;  %v15398_v60 = vcombine.high %v15384_v49, %v15388_v52 }
  0xf2   : > { %1079 = vmatmul.mubr.bf16.gmra.mxu1 %v13823_v61  ;;  %951 = vmatmul.mubr.bf16.gmra.mxu0 %v15337_v0  ;;  %v310_v61 = vld [vmem:[%s15095_s6 + $0x1b0] sm:$0xff] }
  0xf3   : > { %1086 = vmatprep.mubr.bf16.mxu1 %v13828_v63  ;;  %958 = vmatprep.mubr.bf16.mxu0 %v11763_v5  ;;  %v15404_v63 = vld [vmem:[%s15095_s6 + $0x1b8] sm:$0xff]  ;;  %v15409_v5 = vcombine.low %v15384_v49, %v15388_v52 }
  0xf4   : > { %1888 = vmatpush2.bf16.msra.mxu1 %v13873_v3  ;;  %2884 = vmatprep.subr.bf16.mxu0 %v14819_v2  ;;  %v13851_v3 = vld [vmem:[%s15095_s6 + $0x390] ss:$8 sps:$4 sm:$0xff]  }
  0xf5   : > { %1889 = vmatprep.subr.bf16.mxu1 %v14819_v2  ;;  %2885 = vmatpush2.bf16.msra.mxu0 %v13881_v7  ;;  %v13856_v7 = vld [vmem:[%s15095_s6 + $0x3f4] ss:$8 sps:$4 sm:$0xff]  }
  0xf6   : > { %2886 = vmatprep.subr.bf16.mxu0 %v14819_v2 }
  0xf8   : > { %1890 = vmatpush2.bf16.msra.mxu1 %v13880_v12  ;;  %v11771_v12 = vcombine.high %v310_v61, %v15404_v63 }
  0xf9   : > { %3853 = vmatprep.subr.bf16.mxu1 %v14819_v2  ;;  %2887 = vmatpush2.bf16.msra.mxu0 %v13887_v13  ;;  %v15415_v13 = vld [vmem:[%s15095_s6 + $0x1c0] sm:$0xff] }
  0xfa   : > { %1087 = vmatmul.mubr.bf16.gmra.mxu1 %v13830_v16  ;;  %959 = vmatmul.mubr.bf16.gmra.mxu0 %v11762_v20  ;;  %v15418_v16 = vld [vmem:[%s15095_s6 + $0x1c8] sm:$0xff]  ;;  %v11770_v20 = vcombine.low %v310_v61, %v15404_v63 }
  0xfb   : > { %1094 = vmatprep.mubr.bf16.mxu1 %v13835_v18  ;;  %966 = vmatprep.mubr.bf16.mxu0 %v15361_v25  ;;  %v13858_v18 = vld [vmem:[%s15095_s6 + $0x3f0] ss:$8 sps:$4 sm:$0xff]   ;;  %v15437_v61 = vcombine.low %v15415_v13, %v15418_v16 }
  0xfc   : > { %4850 = vmatprep.subr.bf16.mxu0 %v14819_v2 }
 0x102   : > { %1095 = vmatmul.mubr.bf16.gmra.mxu1 %v13837_v36  ;;  %967 = vmatmul.mubr.bf16.gmra.mxu0 %v15375_v40  ;;  %v13863_v36 = vld [vmem:[%s15095_s6 + $0x404] ss:$8 sps:$4 sm:$0xff]  }
 0x103   : > { %1102 = vmatprep.mubr.bf16.mxu1 %v13842_v43  ;;  %974 = vmatprep.mubr.bf16.mxu0 %v15380_v48  ;;  %v15425_v43 = vcombine.high %v15415_v13, %v15418_v16 }
 0x10a   : > { %1103 = vmatmul.mubr.bf16.gmra.mxu1 %v13844_v55  ;;  %975 = vmatmul.mubr.bf16.gmra.mxu0 %v15393_v56  ;;  %v15428_v55 = vld [vmem:[%s15095_s6 + $0x1d0] sm:$0xff] }
 0x10b   : > { %1110 = vmatprep.mubr.bf16.mxu1 %v13849_v59  ;;  %982 = vmatprep.mubr.bf16.mxu0 %v15398_v60  ;;  %v15432_v59 = vld [vmem:[%s15095_s6 + $0x1d8] sm:$0xff] }
 0x10c   : > { %v15455_v46 = vcombine.low %v15428_v55, %v15432_v59 }
 0x112   : > { %1111 = vmatmul.mubr.bf16.gmra.mxu1 %v13851_v3  ;;  %983 = vmatmul.mubr.bf16.gmra.mxu0 %v15409_v5  ;;  %v13865_v3 = vld [vmem:[%s15095_s6 + $0x400] ss:$8 sps:$4 sm:$0xff]  }
 0x113   : > { %1118 = vmatprep.mubr.bf16.mxu1 %v13856_v7  ;;  %990 = vmatprep.mubr.bf16.mxu0 %v11771_v12  ;;  %v13870_v7 = vld [vmem:[%s15095_s6 + $0x414] ss:$8 sps:$4 sm:$0xff]   ;;  %v15442_v12 = vcombine.high %v15428_v55, %v15432_v59 }
 0x11a   : > { %1119 = vmatmul.mubr.bf16.gmra.mxu1 %v13858_v18  ;;  %991 = vmatmul.mubr.bf16.gmra.mxu0 %v11770_v20  ;;  %v15446_v18 = vld [vmem:[%s15095_s6 + $0x1e0] sm:$0xff]  ;;  %v15450_v20 = vld [vmem:[%s15095_s6 + $0x1e8] sm:$0xff] }
 0x11b   : > { %1126 = vmatprep.mubr.bf16.mxu1 %v13863_v36  ;;  %998 = vmatprep.mubr.bf16.mxu0 %v15425_v43  ;;  %v13872_v36 = vld [vmem:[%s15095_s6 + $0x410] ss:$8 sps:$4 sm:$0xff]   ;;  %v15467_v24 = vcombine.low %v15446_v18, %v15450_v20 }
 0x122   : > { %1127 = vmatmul.mubr.bf16.gmra.mxu1 %v13865_v3  ;;  %999 = vmatmul.mubr.bf16.gmra.mxu0 %v15437_v61  ;;  %v15460_v3 = vcombine.high %v15446_v18, %v15450_v20 }
 0x123   : > { %1134 = vmatprep.mubr.bf16.mxu1 %v13870_v7  ;;  %1006 = vmatprep.mubr.bf16.mxu0 %v15442_v12  ;;  %v13879_v7 = vld [vmem:[%s15095_s6 + $0x420] ss:$8 sps:$4 sm:$0xff]  }
 0x12a   : > { %1135 = vmatmul.mubr.bf16.gmra.mxu1 %v13872_v36  ;;  %1007 = vmatmul.mubr.bf16.gmra.mxu0 %v15455_v46  ;;  %v13886_v36 = vld [vmem:[%s15006_s20 + $0x1b8] sm:$0xff]  }
 0x12b   : > { %1142 = vmatprep.mubr.bf16.mxu1 %v13877_v41  ;;  %1014 = vmatprep.mubr.bf16.mxu0 %v15460_v3  ;;  %v13890_v41 = vld [vmem:[%s15006_s20 + $0x238] sm:$0xff]  }
 0x132   : > { %1143 = vmatmul.mubr.bf16.gmra.mxu1 %v13879_v7  ;;  %1015 = vmatmul.mubr.bf16.gmra.mxu0 %v15467_v24  ;;  %v13893_v7 = vld [vmem:[%s15006_s20 + $0x1b0] sm:$0xff]  }
 0x133   : > { %1891 = vmatprep.mubr.bf16.mxu1 %v11924_v23  ;;  %2888 = vmatprep.mubr.bf16.mxu0 %v15161_v31  ;;  %v13896_v23 = vld [vmem:[%s15006_s20 + $0x230] sm:$0xff]   ;;  %v12011_v31 = vld [vmem:[%s15095_s6 + $0x48] sm:$0xff] }
 0x13a   : > { %1892 = vmatmul.mubr.bf16.vlgmr.msra.gmra.mxu1 %v11923_v22  ;;  %2889 = vmatmul.mubr.bf16.vlgmr.msra.gmra.mxu0 %v15181_v39  ;;  %v11834_v22 = vld [vmem:[%s15095_s6 + $0x40] sm:$0xff] }
 0x13b   : > { %3854 = vmatpush1.bf16.msra.mxu1 %v13886_v36  ;;  %1899 = vmatprep.mubr.bf16.mxu1 %v11926_v34  ;;  %v13907_v34 = vld [vmem:[%s15006_s20 + $0x1a0] sm:$0xff]   ;;  %v11930_v32 = vcombine.high %v14629_v27, %v11834_v22  ;;  %v11929_v36 = vcombine.low %v14629_v27, %v11834_v22 }
 0x13c   : > { %4851 = vmatpush1.bf16.msra.mxu0 %v13890_v41  ;;  %2896 = vmatprep.mubr.bf16.mxu0 %v15188_v42  ;;  %v13910_v39 = vld [vmem:[%s15006_s20 + $0x220] sm:$0xff]   ;;  %v13915_v42 = vld [vmem:[%s15006_s20 + $0x198] sm:$0xff]   ;;  %v12106_v41 = vcombine.low %v11834_v22, %v12011_v31 }
 0x13d   : > { %3855 = vmatprep.subr.bf16.mxu1 %v14819_v2  ;;  %4852 = vmatprep.subr.bf16.mxu0 %v14819_v2 }
 0x13f   : > { %3856 = vmatpush1.bf16.msra.mxu1 %v13893_v7  ;;  %v13943_v7 = vld [vmem:[%s15006_s20 + $0x1f8] sm:$0xff]  }
 0x140   : > { %4853 = vmatpush1.bf16.msra.mxu0 %v13896_v23  ;;  %3857 = vmatprep.subr.bf16.mxu1 %v14819_v2  ;;  %v13948_v23 = vld [vmem:[%s15006_s20 + $0x278] sm:$0xff]  }
 0x141   : > { %4854 = vmatprep.subr.bf16.mxu0 %v14819_v2 }
 0x142   : > { %1900 = vmatmul.mubr.bf16.gmra.mxu1 %v11925_v35  ;;  %2897 = vmatmul.mubr.bf16.gmra.mxu0 %v15208_v51  ;;  %v12107_v35 = vcombine.high %v11834_v22, %v12011_v31  ;;  %v13921_v51 = vld [vmem:[%s15006_s20 + $0x190] sm:$0xff]   ;;  %v11940_v22 = vcombine.high %v15326_v58, %v15346_v9 }
 0x143   : > { %1907 = vmatprep.mubr.bf16.mxu1 %v11928_v45  ;;  %2904 = vmatprep.mubr.bf16.mxu0 %v15213_v53  ;;  %v13918_v45 = vld [vmem:[%s15006_s20 + $0x218] sm:$0xff]   ;;  %v13924_v53 = vld [vmem:[%s15006_s20 + $0x210] sm:$0xff]  }
 0x144   : > { %3858 = vmatpush1.bf16.msra.mxu1 %v13901_v10  ;;  %4855 = vmatpush1.bf16.msra.mxu0 %v13904_v21  ;;  %v350_v31 = vld [vmem:[#allocation2 + $0xb0] sm:$0xff] }
 0x145   : > { %3859 = vmatprep.subr.bf16.mxu1 %v14819_v2  ;;  %4856 = vmatprep.subr.bf16.mxu0 %v14819_v2 }
 0x148   : > { %3860 = vmatpush1.bf16.msra.mxu1 %v13907_v34  ;;  %4857 = vmatpush1.bf16.msra.mxu0 %v13910_v39 }
 0x149   : > { %3861 = vmatprep.subr.bf16.mxu1 %v14819_v2  ;;  %4858 = vmatprep.subr.bf16.mxu0 %v14819_v2 }
 0x14a   : > { %1908 = vmatmul.mubr.bf16.gmra.mxu1 %v11927_v47  ;;  %2905 = vmatmul.mubr.bf16.gmra.mxu0 %v15231_v62  ;;  %v13935_v47 = vld [vmem:[%s15006_s20 + $0x180] sm:$0xff]  }
 0x14b   : > { %1915 = vmatprep.mubr.bf16.mxu1 %v11930_v32  ;;  %2912 = vmatprep.mubr.bf16.mxu0 %v12107_v35  ;;  %v13938_v62 = vld [vmem:[%s15006_s20 + $0x200] sm:$0xff]   ;;  %v13983_v32 = vld [vmem:[%s15006_s20 + $0x1d8] sm:$0xff]  }
 0x14c   : > { %3862 = vmatpush1.bf16.msra.mxu1 %v13915_v42  ;;  %4859 = vmatpush1.bf16.msra.mxu0 %v13918_v45  ;;  %v351_v42 = vld [vmem:[#allocation2 + $0x1b0] sm:$0xff] }
 0x14d   : > { %3863 = vmatprep.subr.bf16.mxu1 %v14819_v2  ;;  %4860 = vmatprep.subr.bf16.mxu0 %v14819_v2 }
 0x150   : > { %3864 = vmatpush1.bf16.msra.mxu1 %v13921_v51  ;;  %4861 = vmatpush1.bf16.msra.mxu0 %v13924_v53  ;;  %v11941_v51 = vcombine.low %v15349_v11, %v15365_v26 }
 0x151   : > { %3865 = vmatprep.subr.bf16.mxu1 %v14819_v2  ;;  %4862 = vmatprep.subr.bf16.mxu0 %v14819_v2 }
 0x152   : > { %1916 = vmatmul.mubr.bf16.gmra.mxu1 %v11929_v36  ;;  %2913 = vmatmul.mubr.bf16.gmra.mxu0 %v12106_v41 }
 0x153   : > { %1923 = vmatprep.mubr.bf16.mxu1 %v11932_v6  ;;  %2920 = vmatprep.mubr.bf16.mxu0 %v15260_v14  ;;  %v13953_v6 = vld [vmem:[%s15006_s20 + $0x1f0] sm:$0xff]  }
 0x154   : > { %3866 = vmatpush1.bf16.msra.mxu1 %v13929_v37  ;;  %4863 = vmatpush1.bf16.msra.mxu0 %v13932_v44  ;;  %v13958_v14 = vld [vmem:[%s15006_s20 + $0x270] sm:$0xff]   ;;  %v384_v37 = vld [vmem:[#allocation2 + $0x100] sm:$0xff] }
 0x155   : > { %3867 = vmatprep.subr.bf16.mxu1 %v14819_v2  ;;  %4864 = vmatprep.subr.bf16.mxu0 %v14819_v2 }
 0x158   : > { %3868 = vmatpush1.bf16.msra.mxu1 %v13935_v47  ;;  %4865 = vmatpush1.bf16.msra.mxu0 %v13938_v62  ;;  %v352_v47 = vld [vmem:[#allocation2 + $0xd8] sm:$0xff] }
 0x159   : > { %3869 = vmatprep.subr.bf16.mxu1 %v14819_v2  ;;  %4866 = vmatprep.subr.bf16.mxu0 %v14819_v2 }
 0x15a   : > { %1924 = vmatmul.mubr.bf16.gmra.mxu1 %v11931_v8  ;;  %2921 = vmatmul.mubr.bf16.gmra.mxu0 %v15283_v28  ;;  %v17097_v8 = vcombine.high %v15268_v17, %v15292_v33  ;;  %v12019_v28 = vld [vmem:[%s15095_s6 + $0xd8] sm:$0xff]  ;;  %v13978_v17 = vld [vmem:[%s15006_s20 + $0x260] sm:$0xff]   ;;  %v11939_v33 = vcombine.low %v15326_v58, %v15346_v9  ;;  %v383_v9 = vld [vmem:[#allocation2 + $0x1d0] sm:$0xff] }
 0x15b   : > { %1931 = vmatprep.mubr.bf16.mxu1 %v11934_v19  ;;  %2928 = vmatprep.mubr.bf16.mxu0 %v15289_v30  ;;  %v11842_v19 = vld [vmem:[%s15095_s6 + $0xd0] sm:$0xff]  ;;  %v13968_v30 = vld [vmem:[%s15006_s20 + $0x268] sm:$0xff]  }
 0x15c   : > { %3870 = vmatpush2.bf16.msra.mxu1 %v13943_v7  ;;  %4867 = vmatpush2.bf16.msra.mxu0 %v13948_v23  ;;  %v11938_v10 = vcombine.high %v15298_v38, %v11842_v19  ;;  %v12115_v21 = vcombine.high %v11842_v19, %v12019_v28  ;;  %v385_v7 = vld [vmem:[#allocation2 + $0xc8] sm:$0xff] }
 0x15d   : > { %3871 = vmatprep.subr.bf16.mxu1 %v14819_v2  ;;  %4868 = vmatprep.subr.bf16.mxu0 %v14819_v2 }
 0x160   : > { %3872 = vmatpush2.bf16.msra.mxu1 %v13953_v6  ;;  %4869 = vmatpush2.bf16.msra.mxu0 %v13958_v14  ;;  %v353_v6 = vld [vmem:[#allocation2 + $0x18] sm:$0xff] }
 0x161   : > { %3873 = vmatprep.subr.bf16.mxu1 %v14819_v2  ;;  %4870 = vmatprep.subr.bf16.mxu0 %v14819_v2 }
 0x162   : > { %1932 = vmatmul.mubr.bf16.gmra.mxu1 %v17096_v1  ;;  %2929 = vmatmul.mubr.bf16.gmra.mxu0 %v15313_v50  ;;  %v11937_v50 = vcombine.low %v15298_v38, %v11842_v19  ;;  %v11942_v38 = vcombine.high %v15349_v11, %v15365_v26  ;;  %v11850_v1 = vld [vmem:[%s15095_s6 + $0x160] sm:$0xff] }
 0x163   : > { %1939 = vmatprep.mubr.bf16.mxu1 %v17097_v8  ;;  %2936 = vmatprep.mubr.bf16.mxu0 %v15319_v54  ;;  %v12114_v54 = vcombine.low %v11842_v19, %v12019_v28  ;;  %v12027_v8 = vld [vmem:[%s15095_s6 + $0x168] sm:$0xff]  ;;  %v13988_v19 = vld [vmem:[%s15006_s20 + $0x258] sm:$0xff]  }
 0x164   : > { %3874 = vmatpush2.bf16.msra.mxu1 %v13963_v57  ;;  %4871 = vmatpush2.bf16.msra.mxu0 %v13968_v30  ;;  %v11943_v30 = vcombine.low %v15369_v29, %v15384_v49 }
 0x165   : > { %3875 = vmatprep.subr.bf16.mxu1 %v14819_v2  ;;  %4872 = vmatprep.subr.bf16.mxu0 %v14819_v2 }
 0x168   : > { %3876 = vmatpush2.bf16.msra.mxu1 %v13973_v15  ;;  %4873 = vmatpush2.bf16.msra.mxu0 %v13978_v17  ;;  %v12123_v15 = vcombine.high %v11850_v1, %v12027_v8 }
 0x169   : > { %3877 = vmatprep.subr.bf16.mxu1 %v14819_v2  ;;  %4874 = vmatprep.subr.bf16.mxu0 %v14819_v2 }
 0x16a   : > { %1940 = vmatmul.mubr.bf16.gmra.mxu1 %v17098_v4  ;;  %2937 = vmatmul.mubr.bf16.gmra.mxu0 %v15337_v0  ;;  %v382_v0 = vld [vmem:[#allocation2 + $0x148] sm:$0xff]  ;;  %v11946_v4 = vcombine.high %v15388_v52, %v11850_v1 }
 0x16b   : > { %1947 = vmatprep.mubr.bf16.mxu1 %v11938_v10  ;;  %2944 = vmatprep.mubr.bf16.mxu0 %v12115_v21 }
 0x16c   : > { %3878 = vmatpush2.bf16.msra.mxu1 %v13983_v32  ;;  %4875 = vmatpush2.bf16.msra.mxu0 %v13988_v19 }
 0x16d   : > { %3879 = vmatprep.subr.bf16.mxu1 %v14819_v2  ;;  %4876 = vmatprep.subr.bf16.mxu0 %v14819_v2 }
 0x172   : > { %1948 = vmatmul.mubr.bf16.gmra.mxu1 %v11937_v50  ;;  %2945 = vmatmul.mubr.bf16.gmra.mxu0 %v12114_v54  ;;  %v386_v50 = vld [vmem:[#allocation2 + $0x40] sm:$0xff] }
 0x173   : > { %1955 = vmatprep.mubr.bf16.mxu1 %v11940_v22  ;;  %2952 = vmatprep.mubr.bf16.mxu0 %v15361_v25  ;;  %v354_v22 = vld [vmem:[#allocation2 + $0x50] sm:$0xff] }
 0x17a   : > { %v1024_v34 = vpop.f32.mrf.mxu1  ;;  %1956 = vmatmul.mubr.bf16.gmra.mxu1 %v11939_v33  ;;  %v896_v39 = vpop.f32.mrf.mxu0  ;;  %2953 = vmatmul.mubr.bf16.gmra.mxu0 %v15375_v40 }
 0x17b   : > { %v1183_v27 = vadd.f32 %v1024_v34, %v382_v0  ;;  %v1151_v25 = vadd.f32 %v896_v39, %v350_v31  ;;  %1963 = vmatprep.mubr.bf16.mxu1 %v11942_v38  ;;  %2960 = vmatprep.mubr.bf16.mxu0 %v15380_v48  ;;  %v11944_v48 = vcombine.high %v15369_v29, %v15384_v49  ;;  %v13993_v38 = vld [vmem:[%s15006_s20 + $0x1d0] sm:$0xff]   ;;  %v387_v31 = vld [vmem:[#allocation2 + $0x1f8] sm:$0xff]  ;;  %v355_v39 = vld [vmem:[#allocation2 + $0x168] sm:$0xff] }
 0x17c   : > { %v1026_v58 = vpop.f32.mrf.mxu1  ;;  %v898_v35 = vpop.f32.mrf.mxu0  ;;  %3880 = vmatpush2.bf16.msra.mxu1 %v13993_v38  ;;  %v393_v38 = vld [vmem:[#allocation2 + $0x78] sm:$0xff] }
 0x17d   : > { %1247 = vst [vmem:[#allocation2 + $0x148] sm:$0xff] %v1183_v27  ;;  %1215 = vst [vmem:[#allocation2 + $0xb0] sm:$0xff] %v1151_v25  ;;  %v11945_v25 = vcombine.low %v15388_v52, %v11850_v1  ;;  %v12122_v58 = vcombine.low %v11850_v1, %v12027_v8  ;;  %3881 = vmatprep.subr.bf16.mxu1 %v14819_v2  ;;  %v11948_v35 = vcombine.high %v15404_v63, %v15415_v13  ;;  %v358_v8 = vld [vmem:[#allocation2 + $0x180] sm:$0xff] }
 0x17e   : > { %v1027_v45 = vpop.f32.mrf.mxu1  ;;  %v899_v53 = vpop.f32.mrf.mxu0 }
 0x17f   : > { %v1184_v40 = vadd.f32 %v1027_v45, %v383_v9  ;;  %v1152_v36 = vadd.f32 %v899_v53, %v351_v42  ;;  %v388_v45 = vld [vmem:[#allocation2 + $0x20] sm:$0xff]  ;;  %v356_v53 = vld [vmem:[#allocation2 + $0x130] sm:$0xff] }
 0x180   : > { %v1029_v41 = vpop.f32.mrf.mxu1  ;;  %v901_v44 = vpop.f32.mrf.mxu0 }
 0x181   : > { %1248 = vst [vmem:[#allocation2 + $0x1d0] sm:$0xff] %v1184_v40  ;;  %1216 = vst [vmem:[#allocation2 + $0x1b0] sm:$0xff] %v1152_v36 }
 0x182   : > { %v1032_v62 = vpop.f32.mrf.mxu1  ;;  %1964 = vmatmul.mubr.bf16.gmra.mxu1 %v11941_v51  ;;  %v904_v11 = vpop.f32.mrf.mxu0  ;;  %2961 = vmatmul.mubr.bf16.gmra.mxu0 %v15393_v56 }
 0x183   : > { %v1185_v26 = vadd.f32 %v1032_v62, %v384_v37  ;;  %v1153_v23 = vadd.f32 %v904_v11, %v352_v47  ;;  %1971 = vmatprep.mubr.bf16.mxu1 %v11944_v48  ;;  %2968 = vmatprep.mubr.bf16.mxu0 %v15398_v60  ;;  %v389_v37 = vld [vmem:[#allocation2 + $0x128] sm:$0xff]  ;;  %v13998_v62 = vld [vmem:[%s15006_s20 + $0x250] sm:$0xff]  }
 0x184   : > { %v1034_v14 = vpop.f32.mrf.mxu1  ;;  %v906_v57 = vpop.f32.mrf.mxu0  ;;  %v357_v47 = vld [vmem:[#allocation2 + $0x48] sm:$0xff]  ;;  %4877 = vmatpush2.bf16.msra.mxu0 %v13998_v62 }
 0x185   : > { %1249 = vst [vmem:[#allocation2 + $0x100] sm:$0xff] %v1185_v26  ;;  %1217 = vst [vmem:[#allocation2 + $0xd8] sm:$0xff] %v1153_v23  ;;  %v11947_v26 = vcombine.low %v15404_v63, %v15415_v13  ;;  %v11950_v14 = vcombine.high %v15418_v16, %v15428_v55  ;;  %4878 = vmatprep.subr.bf16.mxu0 %v14819_v2  ;;  %v390_v57 = vld [vmem:[#allocation2 + $0x1a0] sm:$0xff]  ;;  %v11859_v62 = vld [vmem:[%s15095_s6 + $0x248] sm:$0xff] }
 0x186   : > { %v1035_v28 = vpop.f32.mrf.mxu1  ;;  %v907_v10 = vpop.f32.mrf.mxu0 }
 0x187   : > { %v1186_v56 = vadd.f32 %v1035_v28, %v385_v7  ;;  %v1154_v21 = vadd.f32 %v907_v10, %v353_v6 }
 0x188   : > { %v1037_v60 = vpop.f32.mrf.mxu1  ;;  %v909_v54 = vpop.f32.mrf.mxu0 }
 0x189   : > { %1250 = vst [vmem:[#allocation2 + $0xc8] sm:$0xff] %v1186_v56  ;;  %1218 = vst [vmem:[#allocation2 + $0x18] sm:$0xff] %v1154_v21  ;;  %v391_v56 = vld [vmem:[#allocation2 + $0x1f0] sm:$0xff]  ;;  %v11949_v60 = vcombine.low %v15418_v16, %v15428_v55 }
 0x18a   : > { %v1040_v17 = vpop.f32.mrf.mxu1  ;;  %1972 = vmatmul.mubr.bf16.gmra.mxu1 %v11943_v30  ;;  %v912_v33 = vpop.f32.mrf.mxu0  ;;  %2969 = vmatmul.mubr.bf16.gmra.mxu0 %v15409_v5  ;;  %v14003_v30 = vld [vmem:[%s15006_s20 + $0x1c8] sm:$0xff]  }
 0x18b   : > { %v1187_v29 = vadd.f32 %v1040_v17, %v386_v50  ;;  %v1155_v49 = vadd.f32 %v912_v33, %v354_v22  ;;  %1979 = vmatprep.mubr.bf16.mxu1 %v11946_v4  ;;  %2976 = vmatprep.mubr.bf16.mxu0 %v12123_v15  ;;  %v359_v4 = vld [vmem:[#allocation2 + $0x110] sm:$0xff]  ;;  %v392_v17 = vld [vmem:[#allocation2 + $0xe8] sm:$0xff] }
 0x18c   : > { %v1042_v0 = vpop.f32.mrf.mxu1  ;;  %v914_v34 = vpop.f32.mrf.mxu0  ;;  %3882 = vmatpush2.bf16.msra.mxu1 %v14003_v30 }
 0x18d   : > { %1251 = vst [vmem:[#allocation2 + $0x40] sm:$0xff] %v1187_v29  ;;  %1219 = vst [vmem:[#allocation2 + $0x50] sm:$0xff] %v1155_v49  ;;  %3883 = vmatprep.subr.bf16.mxu1 %v14819_v2  ;;  %v360_v29 = vld [vmem:[#allocation2 + $0x118] sm:$0xff] }
 0x18e   : > { %v1043_v27 = vpop.f32.mrf.mxu1  ;;  %v915_v32 = vpop.f32.mrf.mxu0 }
 0x18f   : > { %v1188_v5 = vadd.f32 %v1043_v27, %v387_v31  ;;  %v1156_v9 = vadd.f32 %v915_v32, %v355_v39  ;;  %v361_v31 = vld [vmem:[#allocation2 + $0x98] sm:$0xff]  ;;  %v11858_v27 = vld [vmem:[%s15095_s6 + $0x1f0] sm:$0xff]  ;;  %v14008_v32 = vld [vmem:[%s15006_s20 + $0x248] sm:$0xff]  }
 0x190   : > { %v1045_v42 = vpop.f32.mrf.mxu1  ;;  %v917_v51 = vpop.f32.mrf.mxu0  ;;  %4879 = vmatpush2.bf16.msra.mxu0 %v14008_v32 }
 0x191   : > { %1252 = vst [vmem:[#allocation2 + $0x1f8] sm:$0xff] %v1188_v5  ;;  %1220 = vst [vmem:[#allocation2 + $0x168] sm:$0xff] %v1156_v9  ;;  %v11951_v5 = vcombine.low %v15432_v59, %v15446_v18  ;;  %v11954_v42 = vcombine.high %v15450_v20, %v11858_v27  ;;  %4880 = vmatprep.subr.bf16.mxu0 %v14819_v2  ;;  %v394_v51 = vld [vmem:[#allocation2 + $0x70] sm:$0xff] }
 0x192   : > { %v1048_v40 = vpop.f32.mrf.mxu1  ;;  %1980 = vmatmul.mubr.bf16.gmra.mxu1 %v11945_v25  ;;  %v920_v36 = vpop.f32.mrf.mxu0  ;;  %2977 = vmatmul.mubr.bf16.gmra.mxu0 %v12122_v58  ;;  %v12035_v25 = vld [vmem:[%s15095_s6 + $0x1f8] sm:$0xff] }
 0x193   : > { %v1189_v52 = vadd.f32 %v1048_v40, %v388_v45  ;;  %v1157_v48 = vadd.f32 %v920_v36, %v356_v53  ;;  %1987 = vmatprep.mubr.bf16.mxu1 %v11948_v35  ;;  %2984 = vmatprep.mubr.bf16.mxu0 %v15425_v43  ;;  %v12131_v45 = vcombine.high %v11858_v27, %v12035_v25  ;;  %v362_v40 = vld [vmem:[#allocation2 + $0x120] sm:$0xff] }
 0x194   : > { %v1050_v41 = vpop.f32.mrf.mxu1  ;;  %v922_v44 = vpop.f32.mrf.mxu0 }
 0x195   : > { %1253 = vst [vmem:[#allocation2 + $0x20] sm:$0xff] %v1189_v52  ;;  %1221 = vst [vmem:[#allocation2 + $0x130] sm:$0xff] %v1157_v48  ;;  %v395_v52 = vld [vmem:[#allocation2 + $0x90] sm:$0xff] }
 0x196   : > { %v1051_v11 = vpop.f32.mrf.mxu1  ;;  %v923_v7 = vpop.f32.mrf.mxu0  ;;  %v363_v41 = vld [vmem:[#allocation2 + $0x150] sm:$0xff] }
 0x197   : > { %v1190_v23 = vadd.f32 %v1051_v11, %v389_v37  ;;  %v1158_v6 = vadd.f32 %v923_v7, %v357_v47  ;;  %v14013_v37 = vld [vmem:[%s15006_s20 + $0x1c0] sm:$0xff]   ;;  %v11860_v11 = vld [vmem:[%s15095_s6 + $0x250] sm:$0xff] }
 0x198   : > { %v1053_v43 = vpop.f32.mrf.mxu1  ;;  %v925_v1 = vpop.f32.mrf.mxu0  ;;  %3884 = vmatpush2.bf16.msra.mxu1 %v14013_v37 }
 0x199   : > { %1254 = vst [vmem:[#allocation2 + $0x128] sm:$0xff] %v1190_v23  ;;  %1222 = vst [vmem:[#allocation2 + $0x48] sm:$0xff] %v1158_v6  ;;  %v11953_v23 = vcombine.low %v15450_v20, %v11858_v27  ;;  %v12130_v6 = vcombine.low %v11858_v27, %v12035_v25  ;;  %5847 = vmatprep.subr.bf16.mxu1 %v14819_v2  ;;  %v399_v25 = vld [vmem:[#allocation2 + $0x88] sm:$0xff] }
 0x19a   : > { %v1056_v19 = vpop.f32.mrf.mxu1  ;;  %1988 = vmatmul.mubr.bf16.gmra.mxu1 %v11947_v26  ;;  %v928_v28 = vpop.f32.mrf.mxu0  ;;  %2985 = vmatmul.mubr.bf16.gmra.mxu0 %v15437_v61  ;;  %v15632_v26 = vld [vmem:[%s15095_s6 + $0x258] sm:$0xff] }
 0x19b   : > { %v1191_v63 = vadd.f32 %v1056_v19, %v390_v57  ;;  %v1159_v13 = vadd.f32 %v928_v28, %v358_v8  ;;  %1995 = vmatprep.mubr.bf16.mxu1 %v11950_v14  ;;  %2992 = vmatprep.mubr.bf16.mxu0 %v15442_v12  ;;  %v11952_v12 = vcombine.high %v15432_v59, %v15446_v18  ;;  %v396_v19 = vld [vmem:[#allocation2 + $0x1d8] sm:$0xff] }
 0x19c   : > { %v1058_v10 = vpop.f32.mrf.mxu1  ;;  %v930_v21 = vpop.f32.mrf.mxu0  ;;  %v11956_v57 = vcombine.high %v11859_v62, %v11860_v11  ;;  %v12133_v1 = vcombine.high %v11860_v11, %v15632_v26 }
 0x19d   : > { %1255 = vst [vmem:[#allocation2 + $0x1a0] sm:$0xff] %v1191_v63  ;;  %1223 = vst [vmem:[#allocation2 + $0x180] sm:$0xff] %v1159_v13  ;;  %v364_v63 = vld [vmem:[#allocation2 + $0x108] sm:$0xff]  ;;  %v397_v10 = vld [vmem:[#allocation2 + $0xd0] sm:$0xff] }
 0x19e   : > { %v1059_v15 = vpop.f32.mrf.mxu1  ;;  %v931_v50 = vpop.f32.mrf.mxu0  ;;  %v365_v21 = vld [vmem:[#allocation2 + $0x60] sm:$0xff] }
 0x19f   : > { %v1192_v61 = vadd.f32 %v1059_v15, %v391_v56  ;;  %v1160_v54 = vadd.f32 %v931_v50, %v359_v4  ;;  %v15639_v50 = vld [vmem:[%s15095_s6 + $0x268] sm:$0xff] }
 0x1a0   : > { %v1061_v22 = vpop.f32.mrf.mxu1  ;;  %v933_v33 = vpop.f32.mrf.mxu0 }
 0x1a1   : > { %1256 = vst [vmem:[#allocation2 + $0x1f0] sm:$0xff] %v1192_v61  ;;  %1224 = vst [vmem:[#allocation2 + $0x110] sm:$0xff] %v1160_v54  ;;  %v14018_v61 = vld [vmem:[%s15006_s20 + $0x240] sm:$0xff]  }
 0x1a2   : > { %v1064_v49 = vpop.f32.mrf.mxu1  ;;  %1996 = vmatmul.mubr.bf16.gmra.mxu1 %v11949_v60  ;;  %v936_v16 = vpop.f32.mrf.mxu0  ;;  %2993 = vmatmul.mubr.bf16.gmra.mxu0 %v15455_v46  ;;  %v11862_v60 = vld [vmem:[%s15095_s6 + $0x260] sm:$0xff] }
 0x1a3   : > { %v1193_v55 = vadd.f32 %v1064_v49, %v392_v17  ;;  %v1161_v0 = vadd.f32 %v936_v16, %v360_v29  ;;  %2003 = vmatprep.mubr.bf16.mxu1 %v11952_v12  ;;  %3000 = vmatprep.mubr.bf16.mxu0 %v15460_v3  ;;  %v11955_v12 = vcombine.low %v11859_v62, %v11860_v11  ;;  %v401_v62 = vld [vmem:[#allocation2 + $0x1c8] sm:$0xff] }
 0x1a4   : > { %v1066_v34 = vpop.f32.mrf.mxu1  ;;  %v938_v39 = vpop.f32.mrf.mxu0  ;;  %v12132_v17 = vcombine.low %v11860_v11, %v15632_v26  ;;  %4881 = vmatpush2.bf16.msra.mxu0 %v14018_v61  ;;  %v11958_v49 = vcombine.high %v15632_v26, %v11862_v60  ;;  %v12135_v16 = vcombine.high %v11862_v60, %v15639_v50 }
 0x1a5   : > { %1257 = vst [vmem:[#allocation2 + $0xe8] sm:$0xff] %v1193_v55  ;;  %1225 = vst [vmem:[#allocation2 + $0x118] sm:$0xff] %v1161_v0  ;;  %6844 = vmatprep.subr.bf16.mxu0 %v14819_v2 }
 0x1a6   : > { %v1067_v58 = vpop.f32.mrf.mxu1  ;;  %v939_v9 = vpop.f32.mrf.mxu0 }
 0x1a7   : > { %v1194_v46 = vadd.f32 %v1067_v58, %v393_v38  ;;  %v1162_v35 = vadd.f32 %v939_v9, %v361_v31  ;;  %v398_v38 = vld [vmem:[#allocation2 + $0xb8] sm:$0xff]  ;;  %v366_v31 = vld [vmem:[#allocation2 + $0xe0] sm:$0xff]  ;;  %v367_v9 = vld [vmem:[#allocation2 + $0x188] sm:$0xff] }
 0x1a8   : > { %v1069_v3 = vpop.f32.mrf.mxu1  ;;  %v941_v53 = vpop.f32.mrf.mxu0 }
 0x1a9   : > { %1258 = vst [vmem:[#allocation2 + $0x78] sm:$0xff] %v1194_v46  ;;  %1226 = vst [vmem:[#allocation2 + $0x98] sm:$0xff] %v1162_v35  ;;  %v11864_v46 = vld [vmem:[%s15095_s6 + $0x270] sm:$0xff]  ;;  %v15648_v35 = vld [vmem:[%s15095_s6 + $0x278] sm:$0xff] }
 0x1aa   : > { %v1072_v59 = vpop.f32.mrf.mxu1  ;;  %2004 = vmatmul.mubr.bf16.gmra.mxu1 %v11951_v5  ;;  %v944_v18 = vpop.f32.mrf.mxu0  ;;  %3001 = vmatmul.mubr.bf16.gmra.mxu0 %v15467_v24 }
 0x1ab   : > { %v1195_v36 = vadd.f32 %v1072_v59, %v394_v51  ;;  %v1163_v48 = vadd.f32 %v944_v18, %v362_v40  ;;  %2011 = vmatprep.mubr.bf16.mxu1 %v11954_v42  ;;  %3008 = vmatprep.mubr.bf16.mxu0 %v12131_v45  ;;  %v11957_v45 = vcombine.low %v15632_v26, %v11862_v60 }
 0x1ac   : > { %v1074_v44 = vpop.f32.mrf.mxu1  ;;  %v946_v47 = vpop.f32.mrf.mxu0  ;;  %v12134_v51 = vcombine.low %v11862_v60, %v15639_v50  ;;  %v11960_v59 = vcombine.high %v15639_v50, %v11864_v46  ;;  %v12137_v18 = vcombine.high %v11864_v46, %v15648_v35 }
 0x1ad   : > { %1259 = vst [vmem:[#allocation2 + $0x70] sm:$0xff] %v1195_v36  ;;  %1227 = vst [vmem:[#allocation2 + $0x120] sm:$0xff] %v1163_v48 }
 0x1ae   : > { %v1075_v7 = vpop.f32.mrf.mxu1  ;;  %v947_v24 = vpop.f32.mrf.mxu0 }
 0x1af   : > { %v1196_v14 = vadd.f32 %v1075_v7, %v395_v52  ;;  %v1164_v43 = vadd.f32 %v947_v24, %v363_v41  ;;  %v400_v52 = vld [vmem:[#allocation2 + $0xa8] sm:$0xff]  ;;  %v368_v41 = vld [vmem:[#allocation2 + $0x138] sm:$0xff]  ;;  %v11866_v24 = vld [vmem:[%s15095_s6 + $0x280] sm:$0xff] }
 0x1b0   : > { %v1077_v8 = vpop.f32.mrf.mxu1  ;;  %v949_v28 = vpop.f32.mrf.mxu0 }
 0x1b1   : > { %1260 = vst [vmem:[#allocation2 + $0x90] sm:$0xff] %v1196_v14  ;;  %1228 = vst [vmem:[#allocation2 + $0x150] sm:$0xff] %v1164_v43  ;;  %v11959_v43 = vcombine.low %v15639_v50, %v11864_v46  ;;  %v11962_v28 = vcombine.high %v15648_v35, %v11866_v24  ;;  %v371_v50 = vld [vmem:[#allocation2 + $0x1a8] sm:$0xff] }
 0x1b2   : > { %v1080_v13 = vpop.f32.mrf.mxu1  ;;  %2012 = vmatmul.mubr.bf16.gmra.mxu1 %v11953_v23  ;;  %v952_v20 = vpop.f32.mrf.mxu0  ;;  %3009 = vmatmul.mubr.bf16.gmra.mxu0 %v12130_v6  ;;  %v369_v23 = vld [vmem:[#allocation2 + $0x140] sm:$0xff]  ;;  %v12043_v6 = vld [vmem:[%s15095_s6 + $0x288] sm:$0xff] }
 0x1b3   : > { %v1197_v30 = vadd.f32 %v1080_v13, %v396_v19  ;;  %v1165_v56 = vadd.f32 %v952_v20, %v364_v63  ;;  %2019 = vmatprep.mubr.bf16.mxu1 %v11956_v57  ;;  %3016 = vmatprep.mubr.bf16.mxu0 %v12133_v1  ;;  %v12136_v1 = vcombine.low %v11864_v46, %v15648_v35  ;;  %v402_v20 = vld [vmem:[#allocation2 + $0x170] sm:$0xff] }
 0x1b4   : > { %v1082_v4 = vpop.f32.mrf.mxu1  ;;  %v954_v15 = vpop.f32.mrf.mxu0  ;;  %v12139_v63 = vcombine.high %v11866_v24, %v12043_v6 }
 0x1b5   : > { %1261 = vst [vmem:[#allocation2 + $0x1d8] sm:$0xff] %v1197_v30  ;;  %1229 = vst [vmem:[#allocation2 + $0x108] sm:$0xff] %v1165_v56  ;;  %v403_v15 = vld [vmem:[#allocation2 + $0x178] sm:$0xff] }
 0x1b6   : > { %v1083_v54 = vpop.f32.mrf.mxu1  ;;  %v955_v22 = vpop.f32.mrf.mxu0 }
 0x1b7   : > { %v1198_v33 = vadd.f32 %v1083_v54, %v397_v10  ;;  %v1166_v29 = vadd.f32 %v955_v22, %v365_v21  ;;  %v370_v10 = vld [vmem:[#allocation2 + $0x80] sm:$0xff] }
 0x1b8   : > { %v1085_v55 = vpop.f32.mrf.mxu1  ;;  %v957_v0 = vpop.f32.mrf.mxu0  ;;  %v11868_v22 = vld [vmem:[%s15095_s6 + $0x2e0] sm:$0xff] }
 0x1b9   : > { %1262 = vst [vmem:[#allocation2 + $0xd0] sm:$0xff] %v1198_v33  ;;  %1230 = vst [vmem:[#allocation2 + $0x60] sm:$0xff] %v1166_v29  ;;  %v11961_v29 = vcombine.low %v15648_v35, %v11866_v24 }
 0x1ba   : > { %v1088_v34 = vpop.f32.mrf.mxu1  ;;  %2020 = vmatmul.mubr.bf16.gmra.mxu1 %v11955_v12  ;;  %v960_v39 = vpop.f32.mrf.mxu0  ;;  %3017 = vmatmul.mubr.bf16.gmra.mxu0 %v12132_v17  ;;  %v11867_v12 = vld [vmem:[%s15095_s6 + $0x2d8] sm:$0xff]  ;;  %v15662_v17 = vld [vmem:[%s15095_s6 + $0x2e8] sm:$0xff] }
 0x1bb   : > { %v1199_v27 = vadd.f32 %v1088_v34, %v398_v38  ;;  %v1167_v32 = vadd.f32 %v960_v39, %v366_v31  ;;  %2027 = vmatprep.mubr.bf16.mxu1 %v11958_v49  ;;  %3024 = vmatprep.mubr.bf16.mxu0 %v12135_v16  ;;  %v12138_v16 = vcombine.low %v11866_v24, %v12043_v6  ;;  %v404_v39 = vld [vmem:[#allocation2 + $0x68] sm:$0xff] }
 0x1bc   : > { %v1090_v58 = vpop.f32.mrf.mxu1  ;;  %v962_v5 = vpop.f32.mrf.mxu0  ;;  %v11964_v0 = vcombine.high %v11867_v12, %v11868_v22  ;;  %v12141_v31 = vcombine.high %v11868_v22, %v15662_v17 }
 0x1bd   : > { %1263 = vst [vmem:[#allocation2 + $0xb8] sm:$0xff] %v1199_v27  ;;  %1231 = vst [vmem:[#allocation2 + $0xe0] sm:$0xff] %v1167_v32 }
 0x1be   : > { %v1091_v42 = vpop.f32.mrf.mxu1  ;;  %v963_v3 = vpop.f32.mrf.mxu0 }
 0x1bf   : > { %v1200_v53 = vadd.f32 %v1091_v42, %v399_v25  ;;  %v1168_v40 = vadd.f32 %v963_v3, %v367_v9  ;;  %v372_v25 = vld [vmem:[#allocation2 + $0x1b8] sm:$0xff]  ;;  %v405_v9 = vld [vmem:[#allocation2 + $0x190] sm:$0xff] }
 0x1c0   : > { %v1093_v36 = vpop.f32.mrf.mxu1  ;;  %v965_v48 = vpop.f32.mrf.mxu0  ;;  %v11870_v3 = vld [vmem:[%s15095_s6 + $0x2f0] sm:$0xff] }
 0x1c1   : > { %1264 = vst [vmem:[#allocation2 + $0x88] sm:$0xff] %v1200_v53  ;;  %1232 = vst [vmem:[#allocation2 + $0x188] sm:$0xff] %v1168_v40  ;;  %v11963_v40 = vcombine.low %v11867_v12, %v11868_v22  ;;  %v11966_v48 = vcombine.high %v15662_v17, %v11870_v3 }
 0x1c2   : > { %v1096_v37 = vpop.f32.mrf.mxu1  ;;  %2028 = vmatmul.mubr.bf16.gmra.mxu1 %v11957_v45  ;;  %v968_v44 = vpop.f32.mrf.mxu0  ;;  %3025 = vmatmul.mubr.bf16.gmra.mxu0 %v12134_v51  ;;  %v373_v45 = vld [vmem:[#allocation2 + $0x28] sm:$0xff]  ;;  %v15668_v51 = vld [vmem:[%s15095_s6 + $0x2f8] sm:$0xff] }
 0x1c3   : > { %v1201_v47 = vadd.f32 %v1096_v37, %v400_v52  ;;  %v1169_v11 = vadd.f32 %v968_v44, %v368_v41  ;;  %2035 = vmatprep.mubr.bf16.mxu1 %v11960_v59  ;;  %3032 = vmatprep.mubr.bf16.mxu0 %v12137_v18  ;;  %v12140_v18 = vcombine.low %v11868_v22, %v15662_v17  ;;  %v406_v44 = vld [vmem:[#allocation2 + $0x198] sm:$0xff] }
 0x1c4   : > { %v1098_v26 = vpop.f32.mrf.mxu1  ;;  %v970_v7 = vpop.f32.mrf.mxu0  ;;  %v12143_v41 = vcombine.high %v11870_v3, %v15668_v51 }
 0x1c5   : > { %1265 = vst [vmem:[#allocation2 + $0xa8] sm:$0xff] %v1201_v47  ;;  %1233 = vst [vmem:[#allocation2 + $0x138] sm:$0xff] %v1169_v11 }
 0x1c6   : > { %v1099_v14 = vpop.f32.mrf.mxu1  ;;  %v971_v57 = vpop.f32.mrf.mxu0 }
 0x1c7   : > { %v1202_v8 = vadd.f32 %v1099_v14, %v401_v62  ;;  %v1170_v19 = vadd.f32 %v971_v57, %v369_v23  ;;  %v374_v62 = vld [vmem:[#allocation2 + $0x1e8] sm:$0xff]  ;;  %v407_v23 = vld [vmem:[#allocation2 + $0x38] sm:$0xff]  ;;  %v11872_v57 = vld [vmem:[%s15095_s6 + $0x300] sm:$0xff] }
 0x1c8   : > { %v1101_v13 = vpop.f32.mrf.mxu1  ;;  %v973_v30 = vpop.f32.mrf.mxu0 }
 0x1c9   : > { %1266 = vst [vmem:[#allocation2 + $0x1c8] sm:$0xff] %v1202_v8  ;;  %1234 = vst [vmem:[#allocation2 + $0x140] sm:$0xff] %v1170_v19  ;;  %v11965_v19 = vcombine.low %v15662_v17, %v11870_v3  ;;  %v11968_v30 = vcombine.high %v15668_v51, %v11872_v57 }
 0x1ca   : > { %v1104_v56 = vpop.f32.mrf.mxu1  ;;  %2036 = vmatmul.mubr.bf16.gmra.mxu1 %v11959_v43  ;;  %v976_v21 = vpop.f32.mrf.mxu0  ;;  %3033 = vmatmul.mubr.bf16.gmra.mxu0 %v12136_v1  ;;  %v375_v43 = vld [vmem:[#allocation2 + $0xf8] sm:$0xff]  ;;  %v15675_v1 = vld [vmem:[%s15095_s6 + $0x308] sm:$0xff] }
 0x1cb   : > { %v1203_v4 = vadd.f32 %v1104_v56, %v402_v20  ;;  %v1171_v60 = vadd.f32 %v976_v21, %v370_v10  ;;  %2043 = vmatprep.mubr.bf16.mxu1 %v11962_v28  ;;  %3040 = vmatprep.mubr.bf16.mxu0 %v12139_v63  ;;  %v12142_v63 = vcombine.low %v11870_v3, %v15668_v51  ;;  %v408_v21 = vld [vmem:[#allocation2 + $0xc0] sm:$0xff] }
 0x1cc   : > { %v1106_v61 = vpop.f32.mrf.mxu1  ;;  %v978_v54 = vpop.f32.mrf.mxu0  ;;  %v12145_v10 = vcombine.high %v11872_v57, %v15675_v1  ;;  %v379_v3 = vld [vmem:[#allocation2] sm:$0xff] }
 0x1cd   : > { %1267 = vst [vmem:[#allocation2 + $0x170] sm:$0xff] %v1203_v4  ;;  %1235 = vst [vmem:[#allocation2 + $0x80] sm:$0xff] %v1171_v60  ;;  %v409_v54 = vld [vmem:[#allocation2 + $0x1c0] sm:$0xff] }
 0x1ce   : > { %v1107_v33 = vpop.f32.mrf.mxu1  ;;  %v979_v49 = vpop.f32.mrf.mxu0 }
 0x1cf   : > { %v1204_v55 = vadd.f32 %v1107_v33, %v403_v15  ;;  %v1172_v38 = vadd.f32 %v979_v49, %v371_v50  ;;  %v376_v15 = vld [vmem:[#allocation2 + $0x160] sm:$0xff]  ;;  %v377_v33 = vld [vmem:[#allocation2 + $0x30] sm:$0xff]  ;;  %v12051_v49 = vld [vmem:[%s15095_s6 + $0x318] sm:$0xff] }
 0x1d0   : > { %v1109_v34 = vpop.f32.mrf.mxu1  ;;  %v981_v27 = vpop.f32.mrf.mxu0 }
 0x1d1   : > { %1268 = vst [vmem:[#allocation2 + $0x178] sm:$0xff] %v1204_v55  ;;  %1236 = vst [vmem:[#allocation2 + $0x1a8] sm:$0xff] %v1172_v38  ;;  %v11967_v55 = vcombine.low %v15668_v51, %v11872_v57 }
 0x1d2   : > { %v1112_v32 = vpop.f32.mrf.mxu1  ;;  %2044 = vmatmul.mubr.bf16.gmra.mxu1 %v11961_v29  ;;  %v984_v58 = vpop.f32.mrf.mxu0  ;;  %3041 = vmatmul.mubr.bf16.gmra.mxu0 %v12138_v16  ;;  %v11874_v29 = vld [vmem:[%s15095_s6 + $0x310] sm:$0xff] }
 0x1d3   : > { %v1205_v5 = vadd.f32 %v1112_v32, %v404_v39  ;;  %v1173_v46 = vadd.f32 %v984_v58, %v372_v25  ;;  %2051 = vmatprep.mubr.bf16.mxu1 %v11964_v0  ;;  %3048 = vmatprep.mubr.bf16.mxu0 %v12141_v31  ;;  %v12144_v0 = vcombine.low %v11872_v57, %v15675_v1  ;;  %v410_v32 = vld [vmem:[#allocation2 + $0x158] sm:$0xff] }
 0x1d4   : > { %v1114_v35 = vpop.f32.mrf.mxu1  ;;  %v986_v42 = vpop.f32.mrf.mxu0  ;;  %v11970_v39 = vcombine.high %v15675_v1, %v11874_v29  ;;  %v12147_v27 = vcombine.high %v11874_v29, %v12051_v49 }
 0x1d5   : > { %1269 = vst [vmem:[#allocation2 + $0x68] sm:$0xff] %v1205_v5  ;;  %1237 = vst [vmem:[#allocation2 + $0x1b8] sm:$0xff] %v1173_v46  ;;  %v378_v5 = vld [vmem:[#allocation2 + $0x1e0] sm:$0xff]  ;;  %v411_v42 = vld [vmem:[#allocation2 + $0x10] sm:$0xff] }
 0x1d6   : > { %v1115_v53 = vpop.f32.mrf.mxu1  ;;  %v987_v59 = vpop.f32.mrf.mxu0 }
 0x1d7   : > { %v1206_v36 = vadd.f32 %v1115_v53, %v405_v9  ;;  %v1174_v52 = vadd.f32 %v987_v59, %v373_v45  ;;  %v11876_v59 = vld [vmem:[%s15095_s6 + $0x370] sm:$0xff] }
 0x1d8   : > { %v1117_v37 = vpop.f32.mrf.mxu1  ;;  %v989_v47 = vpop.f32.mrf.mxu0 }
 0x1d9   : > { %1270 = vst [vmem:[#allocation2 + $0x190] sm:$0xff] %v1206_v36  ;;  %1238 = vst [vmem:[#allocation2 + $0x28] sm:$0xff] %v1174_v52  ;;  %v11969_v52 = vcombine.low %v15675_v1, %v11874_v29 }
 0x1da   : > { %v1120_v11 = vpop.f32.mrf.mxu1  ;;  %2052 = vmatmul.mubr.bf16.gmra.mxu1 %v11963_v40  ;;  %v992_v26 = vpop.f32.mrf.mxu0  ;;  %3049 = vmatmul.mubr.bf16.gmra.mxu0 %v12140_v18  ;;  %v11875_v40 = vld [vmem:[%s15095_s6 + $0x368] sm:$0xff]  ;;  %v15689_v18 = vld [vmem:[%s15095_s6 + $0x378] sm:$0xff] }
 0x1db   : > { %v1207_v7 = vadd.f32 %v1120_v11, %v406_v44  ;;  %v1175_v24 = vadd.f32 %v992_v26, %v374_v62  ;;  %2059 = vmatprep.mubr.bf16.mxu1 %v11966_v48  ;;  %3056 = vmatprep.mubr.bf16.mxu0 %v12143_v41  ;;  %v12146_v41 = vcombine.low %v11874_v29, %v12051_v49  ;;  %v412_v26 = vld [vmem:[#allocation2 + $0x58] sm:$0xff]  ;;  %v11880_v29 = vld [vmem:[%s15095_s6 + $0x390] sm:$0xff] }
 0x1dc   : > { %v1122_v6 = vpop.f32.mrf.mxu1  ;;  %v994_v14 = vpop.f32.mrf.mxu0  ;;  %v11972_v47 = vcombine.high %v11875_v40, %v11876_v59  ;;  %v12149_v62 = vcombine.high %v11876_v59, %v15689_v18  ;;  %v15702_v49 = vld [vmem:[%s15095_s6 + $0x398] sm:$0xff] }
 0x1dd   : > { %1271 = vst [vmem:[#allocation2 + $0x198] sm:$0xff] %v1207_v7  ;;  %1239 = vst [vmem:[#allocation2 + $0x1e8] sm:$0xff] %v1175_v24 }
 0x1de   : > { %v1123_v8 = vpop.f32.mrf.mxu1  ;;  %v995_v28 = vpop.f32.mrf.mxu0 }
 0x1df   : > { %v1208_v13 = vadd.f32 %v1123_v8, %v407_v23  ;;  %v1176_v20 = vadd.f32 %v995_v28, %v375_v43  ;;  %v380_v23 = vld [vmem:[#allocation2 + $0xf0] sm:$0xff]  ;;  %v413_v43 = vld [vmem:[#allocation2 + $0xa0] sm:$0xff] }
 0x1e0   : > { %v1125_v56 = vpop.f32.mrf.mxu1  ;;  %v997_v4 = vpop.f32.mrf.mxu0  ;;  %v11878_v28 = vld [vmem:[%s15095_s6 + $0x380] sm:$0xff] }
 0x1e1   : > { %1272 = vst [vmem:[#allocation2 + $0x38] sm:$0xff] %v1208_v13  ;;  %1240 = vst [vmem:[#allocation2 + $0xf8] sm:$0xff] %v1176_v20  ;;  %v11971_v20 = vcombine.low %v11875_v40, %v11876_v59  ;;  %v11974_v4 = vcombine.high %v15689_v18, %v11878_v28 }
 0x1e2   : > { %v1128_v60 = vpop.f32.mrf.mxu1  ;;  %2060 = vmatmul.mubr.bf16.gmra.mxu1 %v11965_v19  ;;  %v1000_v50 = vpop.f32.mrf.mxu0  ;;  %3057 = vmatmul.mubr.bf16.gmra.mxu0 %v12142_v63  ;;  %v381_v19 = vld [vmem:[#allocation2 + $0x8] sm:$0xff] }
 0x1e3   : > { %v1209_v61 = vadd.f32 %v1128_v60, %v408_v21  ;;  %v1177_v12 = vadd.f32 %v1000_v50, %v376_v15  ;;  %2067 = vmatprep.mubr.bf16.mxu1 %v11968_v30  ;;  %3064 = vmatprep.mubr.bf16.mxu0 %v12145_v10  ;;  %v15695_v63 = vld [vmem:[%s15095_s6 + $0x388] sm:$0xff]  ;;  %v12148_v10 = vcombine.low %v11876_v59, %v15689_v18  ;;  %v1349_v59 = vld [vmem:[#allocation2 + $0x18] sm:$0xff] }
 0x1e4   : > { %v1130_v22 = vpop.f32.mrf.mxu1  ;;  %v1002_v17 = vpop.f32.mrf.mxu0  ;;  %v12151_v15 = vcombine.high %v11878_v28, %v15695_v63 }
 0x1e5   : > { %1273 = vst [vmem:[#allocation2 + $0xc0] sm:$0xff] %v1209_v61  ;;  %1241 = vst [vmem:[#allocation2 + $0x160] sm:$0xff] %v1177_v12  ;;  %v1346_v61 = vld [vmem:[#allocation2 + $0xb0] sm:$0xff] }
 0x1e6   : > { %v1131_v16 = vpop.f32.mrf.mxu1  ;;  %v1003_v38 = vpop.f32.mrf.mxu0 }
 0x1e7   : > { %v1210_v31 = vadd.f32 %v1131_v16, %v409_v54  ;;  %v1178_v34 = vadd.f32 %v1003_v38, %v377_v33 }
 0x1e8   : > { %v1133_v25 = vpop.f32.mrf.mxu1  ;;  %v1005_v58 = vpop.f32.mrf.mxu0 }
 0x1e9   : > { %1274 = vst [vmem:[#allocation2 + $0x1c0] sm:$0xff] %v1210_v31  ;;  %1242 = vst [vmem:[#allocation2 + $0x30] sm:$0xff] %v1178_v34  ;;  %v12150_v34 = vcombine.low %v11878_v28, %v15695_v63  ;;  %v12153_v25 = vcombine.high %v11880_v29, %v15702_v49 }
 0x1ea   : > { %v1136_v9 = vpop.f32.mrf.mxu1  ;;  %2068 = vmatmul.mubr.bf16.gmra.mxu1 %v11967_v55  ;;  %v1008_v46 = vpop.f32.mrf.mxu0  ;;  %3065 = vmatmul.mubr.bf16.gmra.mxu0 %v12144_v0  ;;  %v1347_v55 = vld [vmem:[#allocation2 + $0x1b0] sm:$0xff]  ;;  %v11973_v0 = vcombine.low %v15689_v18, %v11878_v28 }
 0x1eb   : > { %v1211_v35 = vadd.f32 %v1136_v9, %v410_v32  ;;  %v1179_v45 = vadd.f32 %v1008_v46, %v378_v5  ;;  %2075 = vmatprep.mubr.bf16.mxu1 %v11970_v39  ;;  %3072 = vmatprep.mubr.bf16.mxu0 %v12147_v27  ;;  %v11976_v27 = vcombine.high %v15695_v63, %v11880_v29  ;;  %v1348_v9 = vld [vmem:[#allocation2 + $0xd8] sm:$0xff] }
 0x1ec   : > { %v1138_v51 = vpop.f32.mrf.mxu1  ;;  %v1010_v53 = vpop.f32.mrf.mxu0 }
 0x1ed   : > { %1275 = vst [vmem:[#allocation2 + $0x158] sm:$0xff] %v1211_v35  ;;  %1243 = vst [vmem:[#allocation2 + $0x1e0] sm:$0xff] %v1179_v45  ;;  %v11882_v51 = vld [vmem:[%s15095_s6 + $0x3a0] sm:$0xff]  ;;  %v12059_v53 = vld [vmem:[%s15095_s6 + $0x3a8] sm:$0xff] }
 0x1ee   : > { %v1139_v36 = vpop.f32.mrf.mxu1  ;;  %v1011_v48 = vpop.f32.mrf.mxu0 }
 0x1ef   : > { %v1212_v37 = vadd.f32 %v1139_v36, %v411_v42  ;;  %v1180_v44 = vadd.f32 %v1011_v48, %v379_v3  ;;  %v11975_v36 = vcombine.low %v15695_v63, %v11880_v29  ;;  %v12152_v48 = vcombine.low %v11880_v29, %v15702_v49 }
 0x1f0   : > { %v1141_v11 = vpop.f32.mrf.mxu1  ;;  %v1013_v7 = vpop.f32.mrf.mxu0  ;;  %v11977_v63 = vcombine.low %v15702_v49, %v11882_v51 }
 0x1f1   : > { %1276 = vst [vmem:[#allocation2 + $0x10] sm:$0xff] %v1212_v37  ;;  %1244 = vst [vmem:[#allocation2] sm:$0xff] %v1180_v44  ;;  %v11978_v37 = vcombine.high %v15702_v49, %v11882_v51  ;;  %v12155_v44 = vcombine.high %v11882_v51, %v12059_v53  ;;  %v1353_v49 = vld [vmem:[#allocation2 + $0x48] sm:$0xff] }
 0x1f2   : > { %v1144_v24 = vpop.f32.mrf.mxu1  ;;  %2076 = vmatmul.mubr.bf16.gmra.mxu1 %v11969_v52  ;;  %v1016_v6 = vpop.f32.mrf.mxu0  ;;  %3073 = vmatmul.mubr.bf16.gmra.mxu0 %v12146_v41 }
 0x1f3   : > { %v1213_v14 = vadd.f32 %v1144_v24, %v412_v26  ;;  %v1181_v57 = vadd.f32 %v1016_v6, %v380_v23  ;;  %2083 = vmatprep.mubr.bf16.mxu1 %v11972_v47  ;;  %3080 = vmatprep.mubr.bf16.mxu0 %v12149_v62  ;;  %v1350_v26 = vld [vmem:[#allocation2 + $0x50] sm:$0xff] }
 0x1f4   : > { %v1146_v1 = vpop.f32.mrf.mxu1  ;;  %v1018_v8 = vpop.f32.mrf.mxu0 }
 0x1f5   : > { %1277 = vst [vmem:[#allocation2 + $0x58] sm:$0xff] %v1213_v14  ;;  %1245 = vst [vmem:[#allocation2 + $0xf0] sm:$0xff] %v1181_v57  ;;  %v11884_v57 = vld [vmem:[%s15095_s6 + $0x400] sm:$0xff]  ;;  %v15716_v1 = vld [vmem:[%s15095_s6 + $0x408] sm:$0xff] }
 0x1f6   : > { %v1147_v13 = vpop.f32.mrf.mxu1  ;;  %v1019_v30 = vpop.f32.mrf.mxu0 }
 0x1f7   : > { %v1214_v56 = vadd.f32 %v1147_v13, %v413_v43  ;;  %v1182_v21 = vadd.f32 %v1019_v30, %v381_v19  ;;  %v11883_v43 = vld [vmem:[%s15095_s6 + $0x3f8] sm:$0xff]  ;;  %v1351_v19 = vld [vmem:[#allocation2 + $0x168] sm:$0xff] }
 0x1f8   : > { %v1149_v60 = vpop.f32.mrf.mxu1  ;;  %v1021_v50 = vpop.f32.mrf.mxu0 }
 0x1f9   : > { %1278 = vst [vmem:[#allocation2 + $0xa0] sm:$0xff] %v1214_v56  ;;  %1246 = vst [vmem:[#allocation2 + $0x8] sm:$0xff] %v1182_v21  ;;  %v12157_v56 = vcombine.high %v11884_v57, %v15716_v1  ;;  %v1352_v60 = vld [vmem:[#allocation2 + $0x130] sm:$0xff] }
 0x1fa   : > { %v1893_v54 = vpop.f32.mrf.mxu1  ;;  %2084 = vmatmul.mubr.bf16.gmra.mxu1 %v11971_v20  ;;  %v2890_v12 = vpop.f32.mrf.mxu0  ;;  %3081 = vmatmul.mubr.bf16.gmra.mxu0 %v12148_v10  ;;  %v12154_v20 = vcombine.low %v11882_v51, %v12059_v53  ;;  %v11980_v10 = vcombine.high %v11883_v43, %v11884_v57  ;;  %v1355_v53 = vld [vmem:[#allocation2 + $0x110] sm:$0xff] }
 0x1fb   : > { %v2148_v22 = vadd.f32 %v1893_v54, %v1346_v61  ;;  %2091 = vmatprep.mubr.bf16.mxu1 %v11974_v4  ;;  %3088 = vmatprep.mubr.bf16.mxu0 %v12151_v15 }
 0x1fc   : > { %v1895_v17 = vpop.f32.mrf.mxu1  ;;  %v2892_v33 = vpop.f32.mrf.mxu0 }
 0x1fd   : > { %v3145_v16 = vadd.f32 %v2890_v12, %v2148_v22  ;;  %v11886_v17 = vld [vmem:[%s15095_s6 + $0x410] sm:$0xff]  ;;  %v15722_v33 = vld [vmem:[%s15095_s6 + $0x418] sm:$0xff] }
 0x1fe   : > { %v1896_v38 = vpop.f32.mrf.mxu1  ;;  %v2893_v31 = vpop.f32.mrf.mxu0 }
 0x1ff   : > { %v2149_v39 = vadd.f32 %v1896_v38, %v1347_v55  ;;  %3209 = vst [vmem:[#allocation2 + $0xb0] sm:$0xff] %v3145_v16  ;;  %v11979_v55 = vcombine.low %v11883_v43, %v11884_v57 }
 0x200   : > { %v1898_v32 = vpop.f32.mrf.mxu1  ;;  %v2895_v58 = vpop.f32.mrf.mxu0 }
 0x201   : > { %v3146_v5 = vadd.f32 %v2893_v31, %v2149_v39  ;;  %v12159_v39 = vcombine.high %v11886_v17, %v15722_v33  ;;  %v1354_v58 = vld [vmem:[#allocation2 + $0x180] sm:$0xff] }
 0x202   : > { %v1901_v46 = vpop.f32.mrf.mxu1  ;;  %2092 = vmatmul.mubr.bf16.gmra.mxu1 %v11973_v0  ;;  %v2898_v35 = vpop.f32.mrf.mxu0  ;;  %3089 = vmatmul.mubr.bf16.gmra.mxu0 %v12150_v34  ;;  %v12156_v0 = vcombine.low %v11884_v57, %v15716_v1  ;;  %v11982_v34 = vcombine.high %v15716_v1, %v11886_v17  ;;  %v1357_v57 = vld [vmem:[#allocation2 + $0x98] sm:$0xff] }
 0x203   : > { %v2150_v42 = vadd.f32 %v1901_v46, %v1348_v9  ;;  %3210 = vst [vmem:[#allocation2 + $0x1b0] sm:$0xff] %v3146_v5  ;;  %2099 = vmatprep.mubr.bf16.mxu1 %v11976_v27  ;;  %3096 = vmatprep.mubr.bf16.mxu0 %v12153_v25 }
 0x204   : > { %v1903_v45 = vpop.f32.mrf.mxu1  ;;  %v2900_v3 = vpop.f32.mrf.mxu0 }
 0x205   : > { %v3147_v40 = vadd.f32 %v2898_v35, %v2150_v42  ;;  %v11888_v45 = vld [vmem:[%s15095_s6 + $0x420] sm:$0xff]  ;;  %v15729_v3 = vld [vmem:[%s15095_s6 + $0x428] sm:$0xff] }
 0x206   : > { %v1904_v18 = vpop.f32.mrf.mxu1  ;;  %v2901_v52 = vpop.f32.mrf.mxu0 }
 0x207   : > { %v2151_v41 = vadd.f32 %v1904_v18, %v1349_v59  ;;  %3211 = vst [vmem:[#allocation2 + $0xd8] sm:$0xff] %v3147_v40  ;;  %v11981_v59 = vcombine.low %v15716_v1, %v11886_v17 }
 0x208   : > { %v1906_v47 = vpop.f32.mrf.mxu1  ;;  %v2903_v62 = vpop.f32.mrf.mxu0 }
 0x209   : > { %v3148_v11 = vadd.f32 %v2901_v52, %v2151_v41  ;;  %v12161_v41 = vcombine.high %v11888_v45, %v15729_v3  ;;  %v1356_v62 = vld [vmem:[#allocation2 + $0x118] sm:$0xff] }
 0x20a   : > { %v1909_v7 = vpop.f32.mrf.mxu1  ;;  %2100 = vmatmul.mubr.bf16.gmra.mxu1 %v11975_v36  ;;  %v2906_v23 = vpop.f32.mrf.mxu0  ;;  %3097 = vmatmul.mubr.bf16.gmra.mxu0 %v12152_v48  ;;  %v12158_v36 = vcombine.low %v11886_v17, %v15722_v33  ;;  %v11984_v48 = vcombine.high %v15722_v33, %v11888_v45 }
 0x20b   : > { %v2152_v24 = vadd.f32 %v1909_v7, %v1350_v26  ;;  %3212 = vst [vmem:[#allocation2 + $0x18] sm:$0xff] %v3148_v11  ;;  %2107 = vmatprep.mubr.bf16.mxu1 %v11978_v37  ;;  %3104 = vmatprep.mubr.bf16.mxu0 %v12155_v44 }
 0x20c   : > { %v1911_v6 = vpop.f32.mrf.mxu1  ;;  %v2908_v14 = vpop.f32.mrf.mxu0 }
 0x20d   : > { %v3149_v8 = vadd.f32 %v2906_v23, %v2152_v24  ;;  %v11890_v6 = vld [vmem:[%s15095_s6 + $0x430] sm:$0xff]  ;;  %v12067_v14 = vld [vmem:[%s15095_s6 + $0x438] sm:$0xff] }
 0x20e   : > { %v1912_v28 = vpop.f32.mrf.mxu1  ;;  %v2909_v13 = vpop.f32.mrf.mxu0 }
 0x20f   : > { %v2153_v30 = vadd.f32 %v1912_v28, %v1351_v19  ;;  %3213 = vst [vmem:[#allocation2 + $0x50] sm:$0xff] %v3149_v8  ;;  %v11983_v8 = vcombine.low %v15722_v33, %v11888_v45  ;;  %v12160_v28 = vcombine.low %v11888_v45, %v15729_v3  ;;  %v1359_v33 = vld [vmem:[#allocation2 + $0x150] sm:$0xff]  ;;  %v15749_v45 = vld [vmem:[%s15095_s6 + $0x38] sm:$0xff] }
 0x210   : > { %v1914_v21 = vpop.f32.mrf.mxu1  ;;  %v2911_v4 = vpop.f32.mrf.mxu0 }
 0x211   : > { %v3150_v15 = vadd.f32 %v2909_v13, %v2153_v30  ;;  %v11986_v13 = vcombine.high %v15729_v3, %v11890_v6  ;;  %v1358_v21 = vld [vmem:[#allocation2 + $0x120] sm:$0xff] }
 0x212   : > { %v1917_v50 = vpop.f32.mrf.mxu1  ;;  %2108 = vmatmul.mubr.bf16.gmra.mxu1 %v11977_v63  ;;  %v2914_v61 = vpop.f32.mrf.mxu0  ;;  %3105 = vmatmul.mubr.bf16.gmra.mxu0 %v12154_v20  ;;  %v12163_v20 = vcombine.high %v11890_v6, %v12067_v14 }
 0x213   : > { %v2154_v54 = vadd.f32 %v1917_v50, %v1352_v60  ;;  %3214 = vst [vmem:[#allocation2 + $0x168] sm:$0xff] %v3150_v15  ;;  %2115 = vmatprep.mubr.bf16.mxu1 %v11980_v10  ;;  %3112 = vmatprep.mubr.bf16.mxu0 %v12157_v56 }
 0x214   : > { %v1919_v12 = vpop.f32.mrf.mxu1  ;;  %v2916_v22 = vpop.f32.mrf.mxu0 }
 0x215   : > { %v3151_v29 = vadd.f32 %v2914_v61, %v2154_v54  ;;  %v12181_v54 = vld [vmem:[%s15095_s6 + $0x18] sm:$0xff]  ;;  %v12182_v12 = vld [vmem:[%s15095_s6 + $0x20] sm:$0xff]  ;;  %v15743_v22 = vld [vmem:[%s15095_s6 + $0x28] sm:$0xff] }
 0x216   : > { %v1920_v16 = vpop.f32.mrf.mxu1  ;;  %v2917_v38 = vpop.f32.mrf.mxu0 }
 0x217   : > { %v2155_v31 = vadd.f32 %v1920_v16, %v1353_v49  ;;  %3215 = vst [vmem:[#allocation2 + $0x130] sm:$0xff] %v3151_v29  ;;  %v11985_v49 = vcombine.low %v15729_v3, %v11890_v6  ;;  %v1361_v3 = vld [vmem:[#allocation2 + $0x60] sm:$0xff] }
 0x218   : > { %v1922_v27 = vpop.f32.mrf.mxu1  ;;  %v2919_v25 = vpop.f32.mrf.mxu0 }
 0x219   : > { %v3152_v32 = vadd.f32 %v2917_v38, %v2155_v31  ;;  %v12455_v31 = vcombine.high %v12182_v12, %v15743_v22  ;;  %v1360_v25 = vld [vmem:[#allocation2 + $0x108] sm:$0xff] }
 0x21a   : > { %v1925_v5 = vpop.f32.mrf.mxu1  ;;  %2116 = vmatmul.mubr.bf16.gmra.mxu1 %v11979_v55  ;;  %v2922_v9 = vpop.f32.mrf.mxu0  ;;  %3113 = vmatmul.mubr.bf16.gmra.mxu0 %v12156_v0  ;;  %v12162_v55 = vcombine.low %v11890_v6, %v12067_v14  ;;  %v12278_v0 = vcombine.high %v12181_v54, %v12182_v12  ;;  %v15758_v14 = vld [vmem:[%s15095_s6 + $0x40] sm:$0xff] }
 0x21b   : > { %v2156_v46 = vadd.f32 %v1925_v5, %v1354_v58  ;;  %3216 = vst [vmem:[#allocation2 + $0x48] sm:$0xff] %v3152_v32  ;;  %2123 = vmatprep.mubr.bf16.mxu1 %v11982_v34  ;;  %3120 = vmatprep.mubr.bf16.mxu0 %v12159_v39 }
 0x21c   : > { %v1927_v35 = vpop.f32.mrf.mxu1  ;;  %v2924_v42 = vpop.f32.mrf.mxu0 }
 0x21d   : > { %v3153_v51 = vadd.f32 %v2922_v9, %v2156_v46  ;;  %v12184_v35 = vld [vmem:[%s15095_s6 + $0x30] sm:$0xff] }
 0x21e   : > { %v1928_v40 = vpop.f32.mrf.mxu1  ;;  %v2925_v18 = vpop.f32.mrf.mxu0 }
 0x21f   : > { %v2157_v52 = vadd.f32 %v1928_v40, %v1355_v53  ;;  %3217 = vst [vmem:[#allocation2 + $0x180] sm:$0xff] %v3153_v51  ;;  %v12277_v53 = vcombine.low %v12181_v54, %v12182_v12 }
 0x220   : > { %v1930_v37 = vpop.f32.mrf.mxu1  ;;  %v2927_v44 = vpop.f32.mrf.mxu0 }
 0x221   : > { %v3154_v47 = vadd.f32 %v2925_v18, %v2157_v52  ;;  %v12280_v52 = vcombine.high %v15743_v22, %v12184_v35  ;;  %v14028_v37 = vld [vmem:[%s15006_s20 + $0x338] sm:$0xff]   ;;  %v12457_v44 = vcombine.high %v12184_v35, %v15749_v45 }
 0x222   : > { %v1933_v11 = vpop.f32.mrf.mxu1  ;;  %2124 = vmatmul.mubr.bf16.gmra.mxu1 %v11981_v59  ;;  %v2930_v26 = vpop.f32.mrf.mxu0  ;;  %3121 = vmatmul.mubr.bf16.gmra.mxu0 %v12158_v36  ;;  %v12454_v59 = vcombine.low %v12182_v12, %v15743_v22  ;;  %v14023_v36 = vld [vmem:[%s15006_s20 + $0x2b8] sm:$0xff]  }
 0x223   : > { %v2158_v7 = vadd.f32 %v1933_v11, %v1356_v62  ;;  %3218 = vst [vmem:[#allocation2 + $0x110] sm:$0xff] %v3154_v47  ;;  %2131 = vmatprep.mubr.bf16.mxu1 %v11984_v48  ;;  %3128 = vmatprep.mubr.bf16.mxu0 %v12161_v41  ;;  %v1362_v62 = vld [vmem:[#allocation2 + $0xe0] sm:$0xff] }
 0x224   : > { %v1935_v23 = vpop.f32.mrf.mxu1  ;;  %v2932_v24 = vpop.f32.mrf.mxu0 }
 0x225   : > { %v3155_v43 = vadd.f32 %v2930_v26, %v2158_v7  ;;  %v14033_v23 = vld [vmem:[%s15006_s20 + $0x2b0] sm:$0xff]  }
 0x226   : > { %v1936_v1 = vpop.f32.mrf.mxu1  ;;  %v2933_v19 = vpop.f32.mrf.mxu0 }
 0x227   : > { %v2159_v63 = vadd.f32 %v1936_v1, %v1357_v57  ;;  %3219 = vst [vmem:[#allocation2 + $0x118] sm:$0xff] %v3155_v43  ;;  %v15761_v43 = vld [vmem:[%s15095_s6 + $0x48] sm:$0xff]  ;;  %v14038_v57 = vld [vmem:[%s15006_s20 + $0x330] sm:$0xff]  }
 0x228   : > { %v1938_v30 = vpop.f32.mrf.mxu1  ;;  %v2935_v10 = vpop.f32.mrf.mxu0 }
 0x229   : > { %v3156_v56 = vadd.f32 %v2933_v19, %v2159_v63  ;;  %v12282_v30 = vcombine.high %v15749_v45, %v15758_v14  ;;  %v12459_v10 = vcombine.high %v15758_v14, %v15761_v43 }
 0x22a   : > { %v1941_v4 = vpop.f32.mrf.mxu1  ;;  %2132 = vmatmul.mubr.bf16.gmra.mxu1 %v11983_v8  ;;  %v2938_v15 = vpop.f32.mrf.mxu0  ;;  %3129 = vmatmul.mubr.bf16.gmra.mxu0 %v12160_v28  ;;  %v1363_v8 = vld [vmem:[#allocation2 + $0x188] sm:$0xff]  ;;  %v12279_v28 = vcombine.low %v15743_v22, %v12184_v35  ;;  %v15777_v22 = vld [vmem:[%s15095_s6 + $0x50] sm:$0xff] }
 0x22b   : > { %v2160_v60 = vadd.f32 %v1941_v4, %v1358_v21  ;;  %3220 = vst [vmem:[#allocation2 + $0x98] sm:$0xff] %v3156_v56  ;;  %2139 = vmatprep.mubr.bf16.mxu1 %v11986_v13  ;;  %3136 = vmatprep.mubr.bf16.mxu0 %v12163_v20  ;;  %v12456_v13 = vcombine.low %v12184_v35, %v15749_v45  ;;  %v14043_v4 = vld [vmem:[%s15006_s20 + $0x2a8] sm:$0xff]  }
 0x22c   : > { %v1943_v50 = vpop.f32.mrf.mxu1  ;;  %v2940_v61 = vpop.f32.mrf.mxu0 }
 0x22d   : > { %v3157_v17 = vadd.f32 %v2938_v15, %v2160_v60  ;;  %v14048_v15 = vld [vmem:[%s15006_s20 + $0x328] sm:$0xff]   ;;  %v1364_v50 = vld [vmem:[#allocation2 + $0x138] sm:$0xff] }
 0x22e   : > { %v1944_v29 = vpop.f32.mrf.mxu1  ;;  %v2941_v16 = vpop.f32.mrf.mxu0 }
 0x22f   : > { %v2161_v38 = vadd.f32 %v1944_v29, %v1359_v33  ;;  %3221 = vst [vmem:[#allocation2 + $0x120] sm:$0xff] %v3157_v17  ;;  %v15780_v29 = vld [vmem:[%s15095_s6 + $0x58] sm:$0xff] }
 0x230   : > { %v1946_v34 = vpop.f32.mrf.mxu1  ;;  %v2943_v39 = vpop.f32.mrf.mxu0 }
 0x231   : > { %v3158_v27 = vadd.f32 %v2941_v16, %v2161_v38  ;;  %v14058_v16 = vld [vmem:[%s15006_s20 + $0x320] sm:$0xff]   ;;  %v12458_v39 = vcombine.low %v15758_v14, %v15761_v43 }
 0x232   : > { %v1949_v32 = vpop.f32.mrf.mxu1  ;;  %2140 = vmatmul.mubr.bf16.gmra.mxu1 %v11985_v49  ;;  %v2946_v58 = vpop.f32.mrf.mxu0  ;;  %3137 = vmatmul.mubr.bf16.gmra.mxu0 %v12162_v55  ;;  %v14053_v49 = vld [vmem:[%s15006_s20 + $0x2a0] sm:$0xff]  }
 0x233   : > { %v2162_v5 = vadd.f32 %v1949_v32, %v1360_v25  ;;  %3222 = vst [vmem:[#allocation2 + $0x150] sm:$0xff] %v3158_v27  ;;  %3885 = vmatprep.mubr.bf16.mxu1 %v12278_v0  ;;  %4882 = vmatprep.mubr.bf16.mxu0 %v12455_v31  ;;  %v1365_v38 = vld [vmem:[#allocation2 + $0x140] sm:$0xff]  ;;  %v12281_v31 = vcombine.low %v15749_v45, %v15758_v14  ;;  %v14083_v14 = vld [vmem:[%s15006_s20 + $0x288] sm:$0xff]  }
 0x234   : > { %v1951_v9 = vpop.f32.mrf.mxu1  ;;  %v2948_v46 = vpop.f32.mrf.mxu0  ;;  %v12284_v25 = vcombine.high %v15761_v43, %v15777_v22  ;;  %v12461_v32 = vcombine.high %v15777_v22, %v15780_v29 }
 0x235   : > { %v3159_v42 = vadd.f32 %v2946_v58, %v2162_v5  ;;  %v14063_v9 = vld [vmem:[%s15006_s20 + $0x298] sm:$0xff]  }
 0x236   : > { %v1952_v51 = vpop.f32.mrf.mxu1  ;;  %v2949_v40 = vpop.f32.mrf.mxu0  ;;  %v14068_v46 = vld [vmem:[%s15006_s20 + $0x318] sm:$0xff]  }
 0x237   : > { %v2163_v18 = vadd.f32 %v1952_v51, %v1361_v3  ;;  %3223 = vst [vmem:[#allocation2 + $0x108] sm:$0xff] %v3159_v42  ;;  %v1366_v42 = vld [vmem:[#allocation2 + $0x80] sm:$0xff] }
 0x238   : > { %v1954_v48 = vpop.f32.mrf.mxu1  ;;  %v2951_v41 = vpop.f32.mrf.mxu0 }
 0x239   : > { %v3160_v47 = vadd.f32 %v2949_v40, %v2163_v18  ;;  %v15802_v40 = vld [vmem:[%s15095_s6 + $0xb0] sm:$0xff] }
 0x23a   : > { %v1957_v11 = vpop.f32.mrf.mxu1  ;;  %3886 = vmatmul.mubr.bf16.vlgmr.msra.gmra.mxu1 %v12277_v53  ;;  %v2954_v26 = vpop.f32.mrf.mxu0  ;;  %4883 = vmatmul.mubr.bf16.vlgmr.msra.gmra.mxu0 %v12454_v59  ;;  %v15799_v53 = vld [vmem:[%s15095_s6 + $0xa8] sm:$0xff]  ;;  %v14078_v48 = vld [vmem:[%s15006_s20 + $0x310] sm:$0xff]  }
 0x23b   : > { %v2164_v7 = vadd.f32 %v1957_v11, %v1362_v62  ;;  %3224 = vst [vmem:[#allocation2 + $0x60] sm:$0xff] %v3160_v47  ;;  %5848 = vmatpush1.bf16.msra.mxu1 %v14023_v36  ;;  %3893 = vmatprep.mubr.bf16.mxu1 %v12280_v52  ;;  %v15805_v36 = vld [vmem:[%s15095_s6 + $0xb8] sm:$0xff]  ;;  %v14073_v52 = vld [vmem:[%s15006_s20 + $0x290] sm:$0xff]   ;;  %v12283_v47 = vcombine.low %v15761_v43, %v15777_v22 }
 0x23c   : > { %v1959_v24 = vpop.f32.mrf.mxu1  ;;  %v2956_v6 = vpop.f32.mrf.mxu0  ;;  %6845 = vmatpush1.bf16.msra.mxu0 %v14028_v37  ;;  %4890 = vmatprep.mubr.bf16.mxu0 %v12457_v44  ;;  %v1367_v37 = vld [vmem:[#allocation2 + $0x1a8] sm:$0xff]  ;;  %v12460_v11 = vcombine.low %v15777_v22, %v15780_v29  ;;  %v14103_v29 = vld [vmem:[%s15006_s20 + $0x2f8] sm:$0xff]  }
 0x23d   : > { %v3161_v1 = vadd.f32 %v2954_v26, %v2164_v7  ;;  %5849 = vmatprep.subr.bf16.mxu1 %v14819_v2  ;;  %6846 = vmatprep.subr.bf16.mxu0 %v14819_v2  ;;  %v12286_v7 = vcombine.high %v15799_v53, %v15802_v40 }
 0x23e   : > { %v1960_v19 = vpop.f32.mrf.mxu1  ;;  %v2957_v63 = vpop.f32.mrf.mxu0 }
 0x23f   : > { %v2165_v20 = vadd.f32 %v1960_v19, %v1363_v8  ;;  %3225 = vst [vmem:[#allocation2 + $0xe0] sm:$0xff] %v3161_v1  ;;  %5850 = vmatpush1.bf16.msra.mxu1 %v14033_v23  ;;  %v12463_v23 = vcombine.high %v15802_v40, %v15805_v36  ;;  %v1368_v1 = vld [vmem:[#allocation2 + $0x1b8] sm:$0xff] }
 0x240   : > { %v1962_v56 = vpop.f32.mrf.mxu1  ;;  %v2959_v21 = vpop.f32.mrf.mxu0  ;;  %6847 = vmatpush1.bf16.msra.mxu0 %v14038_v57  ;;  %5851 = vmatprep.subr.bf16.mxu1 %v14819_v2  ;;  %v14088_v57 = vld [vmem:[%s15006_s20 + $0x308] sm:$0xff]  }
 0x241   : > { %v3162_v60 = vadd.f32 %v2957_v63, %v2165_v20  ;;  %6848 = vmatprep.subr.bf16.mxu0 %v14819_v2  ;;  %v15824_v63 = vld [vmem:[%s15095_s6 + $0xc0] sm:$0xff] }
 0x242   : > { %v1965_v61 = vpop.f32.mrf.mxu1  ;;  %3894 = vmatmul.mubr.bf16.gmra.mxu1 %v12279_v28  ;;  %v2962_v54 = vpop.f32.mrf.mxu0  ;;  %4891 = vmatmul.mubr.bf16.gmra.mxu0 %v12456_v13  ;;  %v14098_v56 = vld [vmem:[%s15006_s20 + $0x300] sm:$0xff]  }
 0x243   : > { %v2166_v12 = vadd.f32 %v1965_v61, %v1364_v50  ;;  %3226 = vst [vmem:[#allocation2 + $0x188] sm:$0xff] %v3162_v60  ;;  %3901 = vmatprep.mubr.bf16.mxu1 %v12282_v30  ;;  %4898 = vmatprep.mubr.bf16.mxu0 %v12459_v10  ;;  %v15827_v30 = vld [vmem:[%s15095_s6 + $0xc8] sm:$0xff]  ;;  %v14093_v10 = vld [vmem:[%s15006_s20 + $0x280] sm:$0xff]   ;;  %v12285_v60 = vcombine.low %v15799_v53, %v15802_v40 }
 0x244   : > { %v1967_v17 = vpop.f32.mrf.mxu1  ;;  %v2964_v33 = vpop.f32.mrf.mxu0  ;;  %5852 = vmatpush1.bf16.msra.mxu1 %v14043_v4  ;;  %6849 = vmatpush1.bf16.msra.mxu0 %v14048_v15  ;;  %v1369_v4 = vld [vmem:[#allocation2 + $0x28] sm:$0xff]  ;;  %v12462_v61 = vcombine.low %v15802_v40, %v15805_v36  ;;  %v12465_v22 = vcombine.high %v15824_v63, %v15827_v30 }
 0x245   : > { %v3163_v55 = vadd.f32 %v2962_v54, %v2166_v12  ;;  %5853 = vmatprep.subr.bf16.mxu1 %v14819_v2  ;;  %6850 = vmatprep.subr.bf16.mxu0 %v14819_v2  ;;  %v12288_v12 = vcombine.high %v15805_v36, %v15824_v63 }
 0x246   : > { %v1968_v0 = vpop.f32.mrf.mxu1  ;;  %v2965_v34 = vpop.f32.mrf.mxu0 }
 0x247   : > { %v2167_v27 = vadd.f32 %v1968_v0, %v1365_v38  ;;  %3227 = vst [vmem:[#allocation2 + $0x138] sm:$0xff] %v3163_v55  ;;  %v1370_v55 = vld [vmem:[#allocation2 + $0x1e8] sm:$0xff] }
 0x248   : > { %v1970_v58 = vpop.f32.mrf.mxu1  ;;  %v2967_v5 = vpop.f32.mrf.mxu0  ;;  %5854 = vmatpush1.bf16.msra.mxu1 %v14053_v49  ;;  %6851 = vmatpush1.bf16.msra.mxu0 %v14058_v16  ;;  %v14108_v49 = vld [vmem:[%s15006_s20 + $0x378] sm:$0xff]  }
 0x249   : > { %v3164_v35 = vadd.f32 %v2965_v34, %v2167_v27  ;;  %5855 = vmatprep.subr.bf16.mxu1 %v14819_v2  ;;  %6852 = vmatprep.subr.bf16.mxu0 %v14819_v2  ;;  %v15846_v34 = vld [vmem:[%s15095_s6 + $0xd0] sm:$0xff] }
 0x24a   : > { %v1973_v45 = vpop.f32.mrf.mxu1  ;;  %3902 = vmatmul.mubr.bf16.gmra.mxu1 %v12281_v31  ;;  %v2970_v3 = vpop.f32.mrf.mxu0  ;;  %4899 = vmatmul.mubr.bf16.gmra.mxu0 %v12458_v39  ;;  %v14118_v58 = vld [vmem:[%s15006_s20 + $0x370] sm:$0xff]  }
 0x24b   : > { %v2168_v51 = vadd.f32 %v1973_v45, %v1366_v42  ;;  %3228 = vst [vmem:[#allocation2 + $0x140] sm:$0xff] %v3164_v35  ;;  %3909 = vmatprep.mubr.bf16.mxu1 %v12284_v25  ;;  %4906 = vmatprep.mubr.bf16.mxu0 %v12461_v32  ;;  %v15849_v25 = vld [vmem:[%s15095_s6 + $0xd8] sm:$0xff]  ;;  %v14113_v32 = vld [vmem:[%s15006_s20 + $0x2f0] sm:$0xff]   ;;  %v12287_v35 = vcombine.low %v15805_v36, %v15824_v63 }
 0x24c   : > { %v1975_v59 = vpop.f32.mrf.mxu1  ;;  %v2972_v18 = vpop.f32.mrf.mxu0  ;;  %5856 = vmatpush1.bf16.msra.mxu1 %v14063_v9  ;;  %6853 = vmatpush1.bf16.msra.mxu0 %v14068_v46  ;;  %v1371_v9 = vld [vmem:[#allocation2 + $0xf8] sm:$0xff]  ;;  %v12464_v45 = vcombine.low %v15824_v63, %v15827_v30  ;;  %v12467_v53 = vcombine.high %v15846_v34, %v15849_v25 }
 0x24d   : > { %v3165_v41 = vadd.f32 %v2970_v3, %v2168_v51  ;;  %5857 = vmatprep.subr.bf16.mxu1 %v14819_v2  ;;  %6854 = vmatprep.subr.bf16.mxu0 %v14819_v2  ;;  %v12290_v51 = vcombine.high %v15827_v30, %v15846_v34  ;;  %v14123_v18 = vld [vmem:[%s15006_s20 + $0x2e8] sm:$0xff]  }
 0x24e   : > { %v1976_v44 = vpop.f32.mrf.mxu1  ;;  %v2973_v62 = vpop.f32.mrf.mxu0 }
 0x24f   : > { %v2169_v26 = vadd.f32 %v1976_v44, %v1367_v37  ;;  %3229 = vst [vmem:[#allocation2 + $0x80] sm:$0xff] %v3165_v41 }
 0x250   : > { %v1978_v24 = vpop.f32.mrf.mxu1  ;;  %v2975_v6 = vpop.f32.mrf.mxu0  ;;  %5858 = vmatpush1.bf16.msra.mxu1 %v14073_v52  ;;  %6855 = vmatpush1.bf16.msra.mxu0 %v14078_v48  ;;  %v1372_v52 = vld [vmem:[#allocation2 + $0x160] sm:$0xff] }
 0x251   : > { %v3166_v43 = vadd.f32 %v2973_v62, %v2169_v26  ;;  %5859 = vmatprep.subr.bf16.mxu1 %v14819_v2  ;;  %6856 = vmatprep.subr.bf16.mxu0 %v14819_v2  ;;  %v12196_v62 = vld [vmem:[%s15095_s6 + $0xe0] sm:$0xff]  ;;  %v14128_v26 = vld [vmem:[%s15006_s20 + $0x368] sm:$0xff]   ;;  %v12289_v6 = vcombine.low %v15827_v30, %v15846_v34 }
 0x252   : > { %v1981_v8 = vpop.f32.mrf.mxu1  ;;  %3910 = vmatmul.mubr.bf16.gmra.mxu1 %v12283_v47  ;;  %v2978_v19 = vpop.f32.mrf.mxu0  ;;  %4907 = vmatmul.mubr.bf16.gmra.mxu0 %v12460_v11  ;;  %v12373_v11 = vld [vmem:[%s15095_s6 + $0xe8] sm:$0xff] }
 0x253   : > { %v2170_v28 = vadd.f32 %v1981_v8, %v1368_v1  ;;  %3230 = vst [vmem:[#allocation2 + $0x1a8] sm:$0xff] %v3166_v43  ;;  %3917 = vmatprep.mubr.bf16.mxu1 %v12286_v7  ;;  %4914 = vmatprep.mubr.bf16.mxu0 %v12463_v23  ;;  %v1373_v23 = vld [vmem:[#allocation2 + $0x30] sm:$0xff]  ;;  %v12292_v1 = vcombine.high %v15849_v25, %v12196_v62 }
 0x254   : > { %v1983_v13 = vpop.f32.mrf.mxu1  ;;  %v2980_v20 = vpop.f32.mrf.mxu0  ;;  %5860 = vmatpush1.bf16.msra.mxu1 %v14083_v14  ;;  %6857 = vmatpush1.bf16.msra.mxu0 %v14088_v57  ;;  %v12466_v57 = vcombine.low %v15846_v34, %v15849_v25  ;;  %v12469_v8 = vcombine.high %v12196_v62, %v12373_v11 }
 0x255   : > { %v3167_v21 = vadd.f32 %v2978_v19, %v2170_v28  ;;  %5861 = vmatprep.subr.bf16.mxu1 %v14819_v2  ;;  %6858 = vmatprep.subr.bf16.mxu0 %v14819_v2  ;;  %v1374_v13 = vld [vmem:[#allocation2 + $0x1e0] sm:$0xff] }
 0x256   : > { %v1984_v15 = vpop.f32.mrf.mxu1  ;;  %v2981_v50 = vpop.f32.mrf.mxu0 }
 0x257   : > { %v2171_v54 = vadd.f32 %v1984_v15, %v1369_v4  ;;  %3231 = vst [vmem:[#allocation2 + $0x1b8] sm:$0xff] %v3167_v21  ;;  %v12197_v15 = vld [vmem:[%s15095_s6 + $0x138] sm:$0xff] }
 0x258   : > { %v1986_v17 = vpop.f32.mrf.mxu1  ;;  %v2983_v33 = vpop.f32.mrf.mxu0  ;;  %5862 = vmatpush1.bf16.msra.mxu1 %v14093_v10  ;;  %6859 = vmatpush1.bf16.msra.mxu0 %v14098_v56  ;;  %v14133_v56 = vld [vmem:[%s15006_s20 + $0x2e0] sm:$0xff]  }
 0x259   : > { %v3168_v16 = vadd.f32 %v2981_v50, %v2171_v54  ;;  %5863 = vmatprep.subr.bf16.mxu1 %v14819_v2  ;;  %6860 = vmatprep.subr.bf16.mxu0 %v14819_v2  ;;  %v15880_v50 = vld [vmem:[%s15095_s6 + $0x148] sm:$0xff]  ;;  %v1375_v54 = vld [vmem:[#allocation2] sm:$0xff]  ;;  %v12468_v33 = vcombine.low %v12196_v62, %v12373_v11 }
 0x25a   : > { %v1989_v38 = vpop.f32.mrf.mxu1  ;;  %3918 = vmatmul.mubr.bf16.gmra.mxu1 %v12285_v60  ;;  %v2986_v0 = vpop.f32.mrf.mxu0  ;;  %4915 = vmatmul.mubr.bf16.gmra.mxu0 %v12462_v61  ;;  %v12198_v60 = vld [vmem:[%s15095_s6 + $0x140] sm:$0xff] }
 0x25b   : > { %v2172_v31 = vadd.f32 %v1989_v38, %v1370_v55  ;;  %3232 = vst [vmem:[#allocation2 + $0x28] sm:$0xff] %v3168_v16  ;;  %3925 = vmatprep.mubr.bf16.mxu1 %v12288_v12  ;;  %4922 = vmatprep.mubr.bf16.mxu0 %v12465_v22  ;;  %v12291_v22 = vcombine.low %v15849_v25, %v12196_v62 }
 0x25c   : > { %v1991_v39 = vpop.f32.mrf.mxu1  ;;  %v2988_v27 = vpop.f32.mrf.mxu0  ;;  %5864 = vmatpush2.bf16.msra.mxu1 %v14103_v29  ;;  %6861 = vmatpush2.bf16.msra.mxu0 %v14108_v49  ;;  %v12294_v49 = vcombine.high %v12197_v15, %v12198_v60  ;;  %v12471_v16 = vcombine.high %v12198_v60, %v15880_v50 }
 0x25d   : > { %v3169_v5 = vadd.f32 %v2986_v0, %v2172_v31  ;;  %5865 = vmatprep.subr.bf16.mxu1 %v14819_v2  ;;  %6862 = vmatprep.subr.bf16.mxu0 %v14819_v2  ;;  %v1376_v31 = vld [vmem:[#allocation2 + $0xf0] sm:$0xff] }
 0x25e   : > { %v1992_v46 = vpop.f32.mrf.mxu1  ;;  %v2989_v42 = vpop.f32.mrf.mxu0 }
 0x25f   : > { %v2173_v3 = vadd.f32 %v1992_v46, %v1371_v9  ;;  %3233 = vst [vmem:[#allocation2 + $0x1e8] sm:$0xff] %v3169_v5  ;;  %v15887_v5 = vld [vmem:[%s15095_s6 + $0x158] sm:$0xff]  ;;  %v14138_v9 = vld [vmem:[%s15006_s20 + $0x360] sm:$0xff]  }
 0x260   : > { %v1994_v40 = vpop.f32.mrf.mxu1  ;;  %v2991_v59 = vpop.f32.mrf.mxu0  ;;  %5866 = vmatpush2.bf16.msra.mxu1 %v14113_v32  ;;  %6863 = vmatpush2.bf16.msra.mxu0 %v14118_v58  ;;  %v12200_v58 = vld [vmem:[%s15095_s6 + $0x150] sm:$0xff] }
 0x261   : > { %v3170_v36 = vadd.f32 %v2989_v42, %v2173_v3  ;;  %5867 = vmatprep.subr.bf16.mxu1 %v14819_v2  ;;  %6864 = vmatprep.subr.bf16.mxu0 %v14819_v2  ;;  %v12296_v40 = vcombine.high %v15880_v50, %v12200_v58  ;;  %v12473_v59 = vcombine.high %v12200_v58, %v15887_v5 }
 0x262   : > { %v1997_v48 = vpop.f32.mrf.mxu1  ;;  %3926 = vmatmul.mubr.bf16.gmra.mxu1 %v12287_v35  ;;  %v2994_v41 = vpop.f32.mrf.mxu0  ;;  %4923 = vmatmul.mubr.bf16.gmra.mxu0 %v12464_v45  ;;  %v1377_v35 = vld [vmem:[#allocation2 + $0x8] sm:$0xff]  ;;  %v12293_v45 = vcombine.low %v12197_v15, %v12198_v60  ;;  %v12204_v15 = vld [vmem:[%s15095_s6 + $0x170] sm:$0xff] }
 0x263   : > { %v2174_v37 = vadd.f32 %v1997_v48, %v1372_v52  ;;  %3234 = vst [vmem:[#allocation2 + $0xf8] sm:$0xff] %v3170_v36  ;;  %3933 = vmatprep.mubr.bf16.mxu1 %v12290_v51  ;;  %4930 = vmatprep.mubr.bf16.mxu0 %v12467_v53  ;;  %v12470_v51 = vcombine.low %v12198_v60, %v15880_v50  ;;  %v1378_v48 = vld [vmem:[#allocation2 + $0x148] sm:$0xff]  ;;  %v12381_v60 = vld [vmem:[%s15095_s6 + $0x178] sm:$0xff] }
 0x264   : > { %v1999_v44 = vpop.f32.mrf.mxu1  ;;  %v2996_v47 = vpop.f32.mrf.mxu0  ;;  %5868 = vmatpush2.bf16.msra.mxu1 %v14123_v18  ;;  %6865 = vmatpush2.bf16.msra.mxu0 %v14128_v26  ;;  %v12202_v26 = vld [vmem:[%s15095_s6 + $0x160] sm:$0xff] }
 0x265   : > { %v3171_v7 = vadd.f32 %v2994_v41, %v2174_v37  ;;  %5869 = vmatprep.subr.bf16.mxu1 %v14819_v2  ;;  %6866 = vmatprep.subr.bf16.mxu0 %v14819_v2  ;;  %v14143_v47 = vld [vmem:[%s15006_s20 + $0x2d8] sm:$0xff]  }
 0x266   : > { %v2000_v24 = vpop.f32.mrf.mxu1  ;;  %v2997_v14 = vpop.f32.mrf.mxu0 }
 0x267   : > { %v2175_v43 = vadd.f32 %v2000_v24, %v1373_v23  ;;  %3235 = vst [vmem:[#allocation2 + $0x160] sm:$0xff] %v3171_v7  ;;  %v15897_v7 = vld [vmem:[%s15095_s6 + $0x168] sm:$0xff]  ;;  %v1379_v24 = vld [vmem:[#allocation2 + $0x1d0] sm:$0xff] }
 0x268   : > { %v2002_v19 = vpop.f32.mrf.mxu1  ;;  %v2999_v28 = vpop.f32.mrf.mxu0  ;;  %5870 = vmatpush2.bf16.msra.mxu1 %v14133_v56  ;;  %6867 = vmatpush2.bf16.msra.mxu0 %v14138_v9  ;;  %v12206_v9 = vld [vmem:[%s15095_s6 + $0x1d0] sm:$0xff] }
 0x269   : > { %v3172_v63 = vadd.f32 %v2997_v14, %v2175_v43  ;;  %5871 = vmatprep.subr.bf16.mxu1 %v14819_v2  ;;  %6868 = vmatprep.subr.bf16.mxu0 %v14819_v2  ;;  %v12295_v14 = vcombine.low %v15880_v50, %v12200_v58  ;;  %v12472_v43 = vcombine.low %v12200_v58, %v15887_v5  ;;  %v14148_v50 = vld [vmem:[%s15006_s20 + $0x358] sm:$0xff]  }
 0x26a   : > { %v2005_v20 = vpop.f32.mrf.mxu1  ;;  %3934 = vmatmul.mubr.bf16.gmra.mxu1 %v12289_v6  ;;  %v3002_v30 = vpop.f32.mrf.mxu0  ;;  %4931 = vmatmul.mubr.bf16.gmra.mxu0 %v12466_v57  ;;  %v12475_v19 = vcombine.high %v12202_v26, %v15897_v7 }
 0x26b   : > { %v2176_v10 = vadd.f32 %v2005_v20, %v1374_v13  ;;  %3236 = vst [vmem:[#allocation2 + $0x30] sm:$0xff] %v3172_v63  ;;  %3941 = vmatprep.mubr.bf16.mxu1 %v12292_v1  ;;  %4938 = vmatprep.mubr.bf16.mxu0 %v12469_v8  ;;  %v12298_v8 = vcombine.high %v15887_v5, %v12202_v26  ;;  %v1380_v20 = vld [vmem:[#allocation2 + $0x100] sm:$0xff] }
 0x26c   : > { %v2007_v21 = vpop.f32.mrf.mxu1  ;;  %v3004_v4 = vpop.f32.mrf.mxu0  ;;  %5872 = vmatpush2.bf16.msra.mxu1 %v14143_v47  ;;  %6869 = vmatpush2.bf16.msra.mxu0 %v14148_v50  ;;  %v12210_v50 = vld [vmem:[%s15095_s6 + $0x1f0] sm:$0xff] }
 0x26d   : > { %v3173_v61 = vadd.f32 %v3002_v30, %v2176_v10  ;;  %5873 = vmatprep.subr.bf16.mxu1 %v14819_v2  ;;  %6870 = vmatprep.subr.bf16.mxu0 %v14819_v2 }
 0x26e   : > { %v2008_v12 = vpop.f32.mrf.mxu1  ;;  %v3005_v17 = vpop.f32.mrf.mxu0 }
 0x26f   : > { %v2177_v29 = vadd.f32 %v2008_v12, %v1375_v54  ;;  %3237 = vst [vmem:[#allocation2 + $0x1e0] sm:$0xff] %v3173_v61  ;;  %v1381_v54 = vld [vmem:[#allocation2 + $0xc8] sm:$0xff] }
 0x270   : > { %v2010_v55 = vpop.f32.mrf.mxu1  ;;  %v3007_v38 = vpop.f32.mrf.mxu0 }
 0x271   : > { %v3174_v0 = vadd.f32 %v3005_v17, %v2177_v29 }
 0x272   : > { %v2013_v34 = vpop.f32.mrf.mxu1  ;;  %3942 = vmatmul.mubr.bf16.gmra.mxu1 %v12291_v22  ;;  %v3010_v39 = vpop.f32.mrf.mxu0  ;;  %4939 = vmatmul.mubr.bf16.gmra.mxu0 %v12468_v33  ;;  %v12297_v22 = vcombine.low %v15887_v5, %v12202_v26  ;;  %v12474_v33 = vcombine.low %v12202_v26, %v15897_v7  ;;  %v12205_v5 = vld [vmem:[%s15095_s6 + $0x1c8] sm:$0xff]  ;;  %v12208_v26 = vld [vmem:[%s15095_s6 + $0x1e0] sm:$0xff] }
 0x273   : > { %v2178_v27 = vadd.f32 %v2013_v34, %v1376_v31  ;;  %3238 = vst [vmem:[#allocation2] sm:$0xff] %v3174_v0  ;;  %3949 = vmatprep.mubr.bf16.mxu1 %v12294_v49  ;;  %4946 = vmatprep.mubr.bf16.mxu0 %v12471_v16  ;;  %v12300_v49 = vcombine.high %v15897_v7, %v12204_v15  ;;  %v1382_v31 = vld [vmem:[#allocation2 + $0x40] sm:$0xff] }
 0x274   : > { %v2015_v25 = vpop.f32.mrf.mxu1  ;;  %v3012_v32 = vpop.f32.mrf.mxu0  ;;  %v12477_v16 = vcombine.high %v12204_v15, %v12381_v60 }
 0x275   : > { %v3175_v46 = vadd.f32 %v3010_v39, %v2178_v27  ;;  %v14153_v25 = vld [vmem:[%s15006_s20 + $0x2d0] sm:$0xff]  }
 0x276   : > { %v2016_v42 = vpop.f32.mrf.mxu1  ;;  %v3013_v3 = vpop.f32.mrf.mxu0  ;;  %5874 = vmatpush2.bf16.msra.mxu1 %v14153_v25 }
 0x277   : > { %v2179_v53 = vadd.f32 %v2016_v42, %v1377_v35  ;;  %3239 = vst [vmem:[#allocation2 + $0xf0] sm:$0xff] %v3175_v46  ;;  %v15915_v46 = vld [vmem:[%s15095_s6 + $0x1d8] sm:$0xff]  ;;  %5875 = vmatprep.subr.bf16.mxu1 %v14819_v2 }
 0x278   : > { %v2018_v18 = vpop.f32.mrf.mxu1  ;;  %v3015_v36 = vpop.f32.mrf.mxu0  ;;  %v1383_v42 = vld [vmem:[#allocation2 + $0x1f8] sm:$0xff] }
 0x279   : > { %v3176_v52 = vadd.f32 %v3013_v3, %v2179_v53  ;;  %v12299_v3 = vcombine.low %v15897_v7, %v12204_v15  ;;  %v12476_v53 = vcombine.low %v12204_v15, %v12381_v60  ;;  %v12479_v18 = vcombine.high %v12206_v9, %v15915_v46  ;;  %v15922_v7 = vld [vmem:[%s15095_s6 + $0x1e8] sm:$0xff] }
 0x27a   : > { %v2021_v41 = vpop.f32.mrf.mxu1  ;;  %3950 = vmatmul.mubr.bf16.gmra.mxu1 %v12293_v45  ;;  %v3018_v37 = vpop.f32.mrf.mxu0  ;;  %4947 = vmatmul.mubr.bf16.gmra.mxu0 %v12470_v51 }
 0x27b   : > { %v2180_v44 = vadd.f32 %v2021_v41, %v1378_v48  ;;  %3240 = vst [vmem:[#allocation2 + $0x8] sm:$0xff] %v3176_v52  ;;  %3957 = vmatprep.mubr.bf16.mxu1 %v12296_v40  ;;  %4954 = vmatprep.mubr.bf16.mxu0 %v12473_v59  ;;  %v12302_v59 = vcombine.high %v12205_v5, %v12206_v9  ;;  %v1384_v41 = vld [vmem:[#allocation2 + $0x20] sm:$0xff] }
 0x27c   : > { %v2023_v62 = vpop.f32.mrf.mxu1  ;;  %v3020_v11 = vpop.f32.mrf.mxu0 }
 0x27d   : > { %v3177_v23 = vadd.f32 %v3018_v37, %v2180_v44 }
 0x27e   : > { %v2024_v6 = vpop.f32.mrf.mxu1  ;;  %v3021_v57 = vpop.f32.mrf.mxu0 }
 0x27f   : > { %v2181_v1 = vadd.f32 %v2024_v6, %v1379_v24  ;;  %3241 = vst [vmem:[#allocation2 + $0x148] sm:$0xff] %v3177_v23  ;;  %v14158_v23 = vld [vmem:[%s15006_s20 + $0x350] sm:$0xff]   ;;  %v1385_v6 = vld [vmem:[#allocation2 + $0x128] sm:$0xff] }
 0x280   : > { %v2026_v28 = vpop.f32.mrf.mxu1  ;;  %v3023_v63 = vpop.f32.mrf.mxu0  ;;  %6871 = vmatpush2.bf16.msra.mxu0 %v14158_v23  ;;  %v12214_v23 = vld [vmem:[%s15095_s6 + $0x260] sm:$0xff] }
 0x281   : > { %v3178_v13 = vadd.f32 %v3021_v57, %v2181_v1  ;;  %v12301_v57 = vcombine.low %v12205_v5, %v12206_v9  ;;  %v12478_v1 = vcombine.low %v12206_v9, %v15915_v46  ;;  %v12481_v28 = vcombine.high %v12208_v26, %v15922_v7  ;;  %6872 = vmatprep.subr.bf16.mxu0 %v14819_v2  ;;  %v12212_v5 = vld [vmem:[%s15095_s6 + $0x200] sm:$0xff]  ;;  %v12389_v9 = vld [vmem:[%s15095_s6 + $0x208] sm:$0xff] }
 0x282   : > { %v2029_v30 = vpop.f32.mrf.mxu1  ;;  %3958 = vmatmul.mubr.bf16.gmra.mxu1 %v12295_v14  ;;  %v3026_v10 = vpop.f32.mrf.mxu0  ;;  %4955 = vmatmul.mubr.bf16.gmra.mxu0 %v12472_v43 }
 0x283   : > { %v2182_v56 = vadd.f32 %v2029_v30, %v1380_v20  ;;  %3242 = vst [vmem:[#allocation2 + $0x1d0] sm:$0xff] %v3178_v13  ;;  %3965 = vmatprep.mubr.bf16.mxu1 %v12298_v8  ;;  %4962 = vmatprep.mubr.bf16.mxu0 %v12475_v19  ;;  %v12304_v19 = vcombine.high %v15915_v46, %v12208_v26  ;;  %v1386_v30 = vld [vmem:[#allocation2 + $0x1a0] sm:$0xff] }
 0x284   : > { %v2031_v21 = vpop.f32.mrf.mxu1  ;;  %v3028_v4 = vpop.f32.mrf.mxu0 }
 0x285   : > { %v3179_v61 = vadd.f32 %v3026_v10, %v2182_v56  ;;  %v14163_v4 = vld [vmem:[%s15006_s20 + $0x2c8] sm:$0xff]  }
 0x286   : > { %v2032_v12 = vpop.f32.mrf.mxu1  ;;  %v3029_v17 = vpop.f32.mrf.mxu0  ;;  %5876 = vmatpush2.bf16.msra.mxu1 %v14163_v4 }
 0x287   : > { %v2183_v29 = vadd.f32 %v2032_v12, %v1381_v54  ;;  %3243 = vst [vmem:[#allocation2 + $0x100] sm:$0xff] %v3179_v61  ;;  %v15932_v61 = vld [vmem:[%s15095_s6 + $0x1f8] sm:$0xff]  ;;  %v1387_v12 = vld [vmem:[#allocation2 + $0x1f0] sm:$0xff]  ;;  %5877 = vmatprep.subr.bf16.mxu1 %v14819_v2 }
 0x288   : > { %v2034_v55 = vpop.f32.mrf.mxu1  ;;  %v3031_v38 = vpop.f32.mrf.mxu0 }
 0x289   : > { %v3180_v0 = vadd.f32 %v3029_v17, %v2183_v29  ;;  %v12303_v17 = vcombine.low %v15915_v46, %v12208_v26  ;;  %v12480_v29 = vcombine.low %v12208_v26, %v15922_v7  ;;  %v12483_v55 = vcombine.high %v12210_v50, %v15932_v61  ;;  %v14168_v46 = vld [vmem:[%s15006_s20 + $0x348] sm:$0xff]  }
 0x28a   : > { %v2037_v34 = vpop.f32.mrf.mxu1  ;;  %3966 = vmatmul.mubr.bf16.gmra.mxu1 %v12297_v22  ;;  %v3034_v39 = vpop.f32.mrf.mxu0  ;;  %4963 = vmatmul.mubr.bf16.gmra.mxu0 %v12474_v33 }
 0x28b   : > { %v2184_v27 = vadd.f32 %v2037_v34, %v1382_v31  ;;  %3244 = vst [vmem:[#allocation2 + $0xc8] sm:$0xff] %v3180_v0  ;;  %3973 = vmatprep.mubr.bf16.mxu1 %v12300_v49  ;;  %4970 = vmatprep.mubr.bf16.mxu0 %v12477_v16  ;;  %v12306_v16 = vcombine.high %v15922_v7, %v12210_v50  ;;  %v1388_v34 = vld [vmem:[#allocation2 + $0xe8] sm:$0xff] }
 0x28c   : > { %v2039_v32 = vpop.f32.mrf.mxu1  ;;  %v3036_v58 = vpop.f32.mrf.mxu0  ;;  %6873 = vmatpush2.bf16.msra.mxu0 %v14168_v46  ;;  %v15966_v46 = vld [vmem:[%s15095_s6 + $0x288] sm:$0xff] }
 0x28d   : > { %v3181_v35 = vadd.f32 %v3034_v39, %v2184_v27  ;;  %6874 = vmatprep.subr.bf16.mxu0 %v14819_v2 }
 0x28e   : > { %v2040_v45 = vpop.f32.mrf.mxu1  ;;  %v3037_v51 = vpop.f32.mrf.mxu0 }
 0x28f   : > { %v2185_v40 = vadd.f32 %v2040_v45, %v1383_v42  ;;  %3245 = vst [vmem:[#allocation2 + $0x40] sm:$0xff] %v3181_v35  ;;  %v1389_v42 = vld [vmem:[#allocation2 + $0x78] sm:$0xff] }
 0x290   : > { %v2042_v36 = vpop.f32.mrf.mxu1  ;;  %v3039_v52 = vpop.f32.mrf.mxu0 }
 0x291   : > { %v3182_v48 = vadd.f32 %v3037_v51, %v2185_v40 }
 0x292   : > { %v2045_v37 = vpop.f32.mrf.mxu1  ;;  %3974 = vmatmul.mubr.bf16.gmra.mxu1 %v12299_v3  ;;  %v3042_v44 = vpop.f32.mrf.mxu0  ;;  %4971 = vmatmul.mubr.bf16.gmra.mxu0 %v12476_v53  ;;  %v12305_v3 = vcombine.low %v15922_v7, %v12210_v50  ;;  %v12482_v53 = vcombine.low %v12210_v50, %v15932_v61  ;;  %v12213_v7 = vld [vmem:[%s15095_s6 + $0x258] sm:$0xff]  ;;  %v12216_v50 = vld [vmem:[%s15095_s6 + $0x270] sm:$0xff] }
 0x293   : > { %v2186_v47 = vadd.f32 %v2045_v37, %v1384_v41  ;;  %3246 = vst [vmem:[#allocation2 + $0x1f8] sm:$0xff] %v3182_v48  ;;  %3981 = vmatprep.mubr.bf16.mxu1 %v12302_v59  ;;  %4978 = vmatprep.mubr.bf16.mxu0 %v12479_v18  ;;  %v12308_v59 = vcombine.high %v15932_v61, %v12212_v5  ;;  %v1390_v41 = vld [vmem:[#allocation2 + $0x70] sm:$0xff] }
 0x294   : > { %v2047_v62 = vpop.f32.mrf.mxu1  ;;  %v3044_v11 = vpop.f32.mrf.mxu0  ;;  %v12485_v18 = vcombine.high %v12212_v5, %v12389_v9 }
 0x295   : > { %v3183_v24 = vadd.f32 %v3042_v44, %v2186_v47  ;;  %v14173_v62 = vld [vmem:[%s15006_s20 + $0x2c0] sm:$0xff]  }
 0x296   : > { %v2048_v14 = vpop.f32.mrf.mxu1  ;;  %v3045_v43 = vpop.f32.mrf.mxu0  ;;  %5878 = vmatpush2.bf16.msra.mxu1 %v14173_v62 }
 0x297   : > { %v2187_v8 = vadd.f32 %v2048_v14, %v1385_v6  ;;  %3247 = vst [vmem:[#allocation2 + $0x20] sm:$0xff] %v3183_v24  ;;  %v15950_v24 = vld [vmem:[%s15095_s6 + $0x268] sm:$0xff]  ;;  %v1391_v14 = vld [vmem:[#allocation2 + $0x90] sm:$0xff]  ;;  %7841 = vmatprep.subr.bf16.mxu1 %v14819_v2 }
 0x298   : > { %v2050_v63 = vpop.f32.mrf.mxu1  ;;  %v3047_v13 = vpop.f32.mrf.mxu0 }
 0x299   : > { %v3184_v20 = vadd.f32 %v3045_v43, %v2187_v8  ;;  %v12307_v43 = vcombine.low %v15932_v61, %v12212_v5  ;;  %v12484_v8 = vcombine.low %v12212_v5, %v12389_v9  ;;  %v12487_v63 = vcombine.high %v12214_v23, %v15950_v24  ;;  %v15957_v61 = vld [vmem:[%s15095_s6 + $0x278] sm:$0xff]  ;;  %v12218_v9 = vld [vmem:[%s15095_s6 + $0x280] sm:$0xff] }
 0x29a   : > { %v2053_v10 = vpop.f32.mrf.mxu1  ;;  %3982 = vmatmul.mubr.bf16.gmra.mxu1 %v12301_v57  ;;  %v3050_v56 = vpop.f32.mrf.mxu0  ;;  %4979 = vmatmul.mubr.bf16.gmra.mxu0 %v12478_v1 }
 0x29b   : > { %v2188_v21 = vadd.f32 %v2053_v10, %v1386_v30  ;;  %3248 = vst [vmem:[#allocation2 + $0x128] sm:$0xff] %v3184_v20  ;;  %3989 = vmatprep.mubr.bf16.mxu1 %v12304_v19  ;;  %4986 = vmatprep.mubr.bf16.mxu0 %v12481_v28  ;;  %v12310_v28 = vcombine.high %v12213_v7, %v12214_v23  ;;  %v1392_v10 = vld [vmem:[#allocation2 + $0x1d8] sm:$0xff] }
 0x29c   : > { %v2055_v15 = vpop.f32.mrf.mxu1  ;;  %v3052_v60 = vpop.f32.mrf.mxu0 }
 0x29d   : > { %v3185_v54 = vadd.f32 %v3050_v56, %v2188_v21 }
 0x29e   : > { %v2056_v22 = vpop.f32.mrf.mxu1  ;;  %v3053_v33 = vpop.f32.mrf.mxu0 }
 0x29f   : > { %v2189_v49 = vadd.f32 %v2056_v22, %v1387_v12  ;;  %3249 = vst [vmem:[#allocation2 + $0x1a0] sm:$0xff] %v3185_v54  ;;  %v14178_v54 = vld [vmem:[%s15006_s20 + $0x340] sm:$0xff]   ;;  %v1393_v22 = vld [vmem:[#allocation2 + $0xd0] sm:$0xff] }
 0x2a0   : > { %v2058_v38 = vpop.f32.mrf.mxu1  ;;  %v3055_v0 = vpop.f32.mrf.mxu0  ;;  %6875 = vmatpush2.bf16.msra.mxu0 %v14178_v54  ;;  %v1399_v54 = vld [vmem:[#allocation2 + $0x178] sm:$0xff] }
 0x2a1   : > { %v3186_v31 = vadd.f32 %v3053_v33, %v2189_v49  ;;  %v12309_v33 = vcombine.low %v12213_v7, %v12214_v23  ;;  %v12486_v49 = vcombine.low %v12214_v23, %v15950_v24  ;;  %v12489_v38 = vcombine.high %v12216_v50, %v15957_v61  ;;  %8838 = vmatprep.subr.bf16.mxu0 %v14819_v2  ;;  %v12397_v7 = vld [vmem:[%s15095_s6 + $0x298] sm:$0xff] }
 0x2a2   : > { %v2061_v39 = vpop.f32.mrf.mxu1  ;;  %3990 = vmatmul.mubr.bf16.gmra.mxu1 %v12303_v17  ;;  %v3058_v27 = vpop.f32.mrf.mxu0  ;;  %4987 = vmatmul.mubr.bf16.gmra.mxu0 %v12480_v29 }
 0x2a3   : > { %v2190_v25 = vadd.f32 %v2061_v39, %v1388_v34  ;;  %3250 = vst [vmem:[#allocation2 + $0x1f0] sm:$0xff] %v3186_v31  ;;  %3997 = vmatprep.mubr.bf16.mxu1 %v12306_v16  ;;  %4994 = vmatprep.mubr.bf16.mxu0 %v12483_v55  ;;  %v12312_v55 = vcombine.high %v15950_v24, %v12216_v50  ;;  %v1394_v39 = vld [vmem:[#allocation2 + $0xb8] sm:$0xff] }
 0x2a4   : > { %v2063_v32 = vpop.f32.mrf.mxu1  ;;  %v3060_v58 = vpop.f32.mrf.mxu0 }
 0x2a5   : > { %v3187_v35 = vadd.f32 %v3058_v27, %v2190_v25 }
 0x2a6   : > { %v2064_v45 = vpop.f32.mrf.mxu1  ;;  %v3061_v51 = vpop.f32.mrf.mxu0 }
 0x2a7   : > { %v2191_v40 = vadd.f32 %v2064_v45, %v1389_v42  ;;  %3251 = vst [vmem:[#allocation2 + $0xe8] sm:$0xff] %v3187_v35  ;;  %v1395_v42 = vld [vmem:[#allocation2 + $0x88] sm:$0xff] }
 0x2a8   : > { %v2066_v36 = vpop.f32.mrf.mxu1  ;;  %v3063_v52 = vpop.f32.mrf.mxu0 }
 0x2a9   : > { %v3188_v48 = vadd.f32 %v3061_v51, %v2191_v40 }
 0x2aa   : > { %v2069_v37 = vpop.f32.mrf.mxu1  ;;  %3998 = vmatmul.mubr.bf16.gmra.mxu1 %v12305_v3  ;;  %v3066_v44 = vpop.f32.mrf.mxu0  ;;  %4995 = vmatmul.mubr.bf16.gmra.mxu0 %v12482_v53  ;;  %v12311_v3 = vcombine.low %v15950_v24, %v12216_v50  ;;  %v12488_v53 = vcombine.low %v12216_v50, %v15957_v61  ;;  %v1397_v24 = vld [vmem:[#allocation2 + $0x1c8] sm:$0xff]  ;;  %v15980_v50 = vld [vmem:[%s15095_s6 + $0x2f8] sm:$0xff] }
 0x2ab   : > { %v2192_v47 = vadd.f32 %v2069_v37, %v1390_v41  ;;  %3252 = vst [vmem:[#allocation2 + $0x78] sm:$0xff] %v3188_v48  ;;  %4005 = vmatprep.mubr.bf16.mxu1 %v12308_v59  ;;  %5002 = vmatprep.mubr.bf16.mxu0 %v12485_v18  ;;  %v12314_v59 = vcombine.high %v15957_v61, %v12218_v9  ;;  %v1396_v41 = vld [vmem:[#allocation2 + $0xa8] sm:$0xff] }
 0x2ac   : > { %v2071_v11 = vpop.f32.mrf.mxu1  ;;  %v3068_v26 = vpop.f32.mrf.mxu0  ;;  %v12491_v18 = vcombine.high %v12218_v9, %v15966_v46 }
 0x2ad   : > { %v3189_v6 = vadd.f32 %v3066_v44, %v2192_v47  ;;  %v12220_v26 = vld [vmem:[%s15095_s6 + $0x290] sm:$0xff] }
 0x2ae   : > { %v2072_v57 = vpop.f32.mrf.mxu1  ;;  %v3069_v1 = vpop.f32.mrf.mxu0 }
 0x2af   : > { %v2193_v19 = vadd.f32 %v2072_v57, %v1391_v14  ;;  %3253 = vst [vmem:[#allocation2 + $0x70] sm:$0xff] %v3189_v6  ;;  %v12313_v14 = vcombine.low %v15957_v61, %v12218_v9 }
 0x2b0   : > { %v2074_v13 = vpop.f32.mrf.mxu1  ;;  %v3071_v20 = vpop.f32.mrf.mxu0 }
 0x2b1   : > { %v3190_v30 = vadd.f32 %v3069_v1, %v2193_v19  ;;  %v12493_v19 = vcombine.high %v12220_v26, %v12397_v7  ;;  %v1398_v20 = vld [vmem:[#allocation2 + $0x170] sm:$0xff] }
 0x2b2   : > { %v2077_v56 = vpop.f32.mrf.mxu1  ;;  %4006 = vmatmul.mubr.bf16.gmra.mxu1 %v12307_v43  ;;  %v3074_v21 = vpop.f32.mrf.mxu0  ;;  %5003 = vmatmul.mubr.bf16.gmra.mxu0 %v12484_v8  ;;  %v12490_v43 = vcombine.low %v12218_v9, %v15966_v46  ;;  %v12316_v8 = vcombine.high %v15966_v46, %v12220_v26 }
 0x2b3   : > { %v2194_v4 = vadd.f32 %v2077_v56, %v1392_v10  ;;  %3254 = vst [vmem:[#allocation2 + $0x90] sm:$0xff] %v3190_v30  ;;  %4013 = vmatprep.mubr.bf16.mxu1 %v12310_v28  ;;  %5010 = vmatprep.mubr.bf16.mxu0 %v12487_v63 }
 0x2b4   : > { %v2079_v15 = vpop.f32.mrf.mxu1  ;;  %v3076_v60 = vpop.f32.mrf.mxu0 }
 0x2b5   : > { %v3191_v12 = vadd.f32 %v3074_v21, %v2194_v4  ;;  %v12221_v15 = vld [vmem:[%s15095_s6 + $0x2e8] sm:$0xff]  ;;  %v12222_v60 = vld [vmem:[%s15095_s6 + $0x2f0] sm:$0xff] }
 0x2b6   : > { %v2080_v17 = vpop.f32.mrf.mxu1  ;;  %v3077_v29 = vpop.f32.mrf.mxu0 }
 0x2b7   : > { %v2195_v16 = vadd.f32 %v2080_v17, %v1393_v22  ;;  %3255 = vst [vmem:[#allocation2 + $0x1d8] sm:$0xff] %v3191_v12  ;;  %v12315_v22 = vcombine.low %v15966_v46, %v12220_v26  ;;  %v1401_v46 = vld [vmem:[#allocation2 + $0x190] sm:$0xff] }
 0x2b8   : > { %v2082_v0 = vpop.f32.mrf.mxu1  ;;  %v3079_v31 = vpop.f32.mrf.mxu0 }
 0x2b9   : > { %v3192_v34 = vadd.f32 %v3077_v29, %v2195_v16  ;;  %v12495_v16 = vcombine.high %v12222_v60, %v15980_v50  ;;  %v1400_v31 = vld [vmem:[#allocation2 + $0x68] sm:$0xff] }
 0x2ba   : > { %v2085_v27 = vpop.f32.mrf.mxu1  ;;  %4014 = vmatmul.mubr.bf16.gmra.mxu1 %v12309_v33  ;;  %v3082_v25 = vpop.f32.mrf.mxu0  ;;  %5011 = vmatmul.mubr.bf16.gmra.mxu0 %v12486_v49  ;;  %v12492_v33 = vcombine.low %v12220_v26, %v12397_v7  ;;  %v12318_v49 = vcombine.high %v12221_v15, %v12222_v60  ;;  %v1403_v7 = vld [vmem:[#allocation2 + $0x38] sm:$0xff] }
 0x2bb   : > { %v2196_v32 = vadd.f32 %v2085_v27, %v1394_v39  ;;  %3256 = vst [vmem:[#allocation2 + $0xd0] sm:$0xff] %v3192_v34  ;;  %4021 = vmatprep.mubr.bf16.mxu1 %v12312_v55  ;;  %5018 = vmatprep.mubr.bf16.mxu0 %v12489_v38 }
 0x2bc   : > { %v2087_v58 = vpop.f32.mrf.mxu1  ;;  %v3084_v5 = vpop.f32.mrf.mxu0 }
 0x2bd   : > { %v3193_v35 = vadd.f32 %v3082_v25, %v2196_v32  ;;  %v12224_v58 = vld [vmem:[%s15095_s6 + $0x300] sm:$0xff]  ;;  %v15986_v5 = vld [vmem:[%s15095_s6 + $0x308] sm:$0xff] }
 0x2be   : > { %v2088_v45 = vpop.f32.mrf.mxu1  ;;  %v3085_v51 = vpop.f32.mrf.mxu0 }
 0x2bf   : > { %v2197_v40 = vadd.f32 %v2088_v45, %v1395_v42  ;;  %3257 = vst [vmem:[#allocation2 + $0xb8] sm:$0xff] %v3193_v35  ;;  %v12317_v42 = vcombine.low %v12221_v15, %v12222_v60 }
 0x2c0   : > { %v2090_v36 = vpop.f32.mrf.mxu1  ;;  %v3087_v52 = vpop.f32.mrf.mxu0 }
 0x2c1   : > { %v3194_v48 = vadd.f32 %v3085_v51, %v2197_v40  ;;  %v12497_v40 = vcombine.high %v12224_v58, %v15986_v5  ;;  %v1402_v52 = vld [vmem:[#allocation2 + $0x198] sm:$0xff] }
 0x2c2   : > { %v2093_v37 = vpop.f32.mrf.mxu1  ;;  %4022 = vmatmul.mubr.bf16.gmra.mxu1 %v12311_v3  ;;  %v3090_v44 = vpop.f32.mrf.mxu0  ;;  %5019 = vmatmul.mubr.bf16.gmra.mxu0 %v12488_v53  ;;  %v12494_v3 = vcombine.low %v12222_v60, %v15980_v50  ;;  %v12320_v53 = vcombine.high %v15980_v50, %v12224_v58  ;;  %v1405_v60 = vld [vmem:[#allocation2 + $0x1c0] sm:$0xff] }
 0x2c3   : > { %v2198_v47 = vadd.f32 %v2093_v37, %v1396_v41  ;;  %3258 = vst [vmem:[#allocation2 + $0x88] sm:$0xff] %v3194_v48  ;;  %4029 = vmatprep.mubr.bf16.mxu1 %v12314_v59  ;;  %5026 = vmatprep.mubr.bf16.mxu0 %v12491_v18 }
 0x2c4   : > { %v2095_v62 = vpop.f32.mrf.mxu1  ;;  %v3092_v11 = vpop.f32.mrf.mxu0 }
 0x2c5   : > { %v3195_v23 = vadd.f32 %v3090_v44, %v2198_v47  ;;  %v12226_v62 = vld [vmem:[%s15095_s6 + $0x310] sm:$0xff]  ;;  %v15993_v11 = vld [vmem:[%s15095_s6 + $0x318] sm:$0xff] }
 0x2c6   : > { %v2096_v6 = vpop.f32.mrf.mxu1  ;;  %v3093_v57 = vpop.f32.mrf.mxu0 }
 0x2c7   : > { %v2199_v1 = vadd.f32 %v2096_v6, %v1397_v24  ;;  %3259 = vst [vmem:[#allocation2 + $0xa8] sm:$0xff] %v3195_v23  ;;  %v12319_v24 = vcombine.low %v15980_v50, %v12224_v58 }
 0x2c8   : > { %v2098_v28 = vpop.f32.mrf.mxu1  ;;  %v3095_v63 = vpop.f32.mrf.mxu0 }
 0x2c9   : > { %v3196_v13 = vadd.f32 %v3093_v57, %v2199_v1  ;;  %v12499_v1 = vcombine.high %v12226_v62, %v15993_v11  ;;  %v1404_v63 = vld [vmem:[#allocation2 + $0xc0] sm:$0xff] }
 0x2ca   : > { %v2101_v30 = vpop.f32.mrf.mxu1  ;;  %4030 = vmatmul.mubr.bf16.gmra.mxu1 %v12313_v14  ;;  %v3098_v10 = vpop.f32.mrf.mxu0  ;;  %5027 = vmatmul.mubr.bf16.gmra.mxu0 %v12490_v43  ;;  %v12496_v14 = vcombine.low %v12224_v58, %v15986_v5  ;;  %v12322_v43 = vcombine.high %v15986_v5, %v12226_v62 }
 0x2cb   : > { %v2200_v56 = vadd.f32 %v2101_v30, %v1398_v20  ;;  %3260 = vst [vmem:[#allocation2 + $0x1c8] sm:$0xff] %v3196_v13  ;;  %4037 = vmatprep.mubr.bf16.mxu1 %v12316_v8  ;;  %5034 = vmatprep.mubr.bf16.mxu0 %v12493_v19 }
 0x2cc   : > { %v2103_v21 = vpop.f32.mrf.mxu1  ;;  %v3100_v4 = vpop.f32.mrf.mxu0 }
 0x2cd   : > { %v3197_v61 = vadd.f32 %v3098_v10, %v2200_v56  ;;  %v12228_v21 = vld [vmem:[%s15095_s6 + $0x320] sm:$0xff]  ;;  %v12405_v4 = vld [vmem:[%s15095_s6 + $0x328] sm:$0xff] }
 0x2ce   : > { %v2104_v12 = vpop.f32.mrf.mxu1  ;;  %v3101_v17 = vpop.f32.mrf.mxu0 }
 0x2cf   : > { %v2201_v29 = vadd.f32 %v2104_v12, %v1399_v54  ;;  %3261 = vst [vmem:[#allocation2 + $0x170] sm:$0xff] %v3197_v61  ;;  %v12321_v61 = vcombine.low %v15986_v5, %v12226_v62  ;;  %v12498_v12 = vcombine.low %v12226_v62, %v15993_v11  ;;  %v1407_v5 = vld [vmem:[#allocation2 + $0x10] sm:$0xff] }
 0x2d0   : > { %v2106_v55 = vpop.f32.mrf.mxu1  ;;  %v3103_v38 = vpop.f32.mrf.mxu0 }
 0x2d1   : > { %v3198_v0 = vadd.f32 %v3101_v17, %v2201_v29  ;;  %v12324_v17 = vcombine.high %v15993_v11, %v12228_v21  ;;  %v1406_v55 = vld [vmem:[#allocation2 + $0x158] sm:$0xff] }
 0x2d2   : > { %v2109_v34 = vpop.f32.mrf.mxu1  ;;  %4038 = vmatmul.mubr.bf16.gmra.mxu1 %v12315_v22  ;;  %v3106_v39 = vpop.f32.mrf.mxu0  ;;  %5035 = vmatmul.mubr.bf16.gmra.mxu0 %v12492_v33  ;;  %v12501_v33 = vcombine.high %v12228_v21, %v12405_v4 }
 0x2d3   : > { %v2202_v27 = vadd.f32 %v2109_v34, %v1400_v31  ;;  %3262 = vst [vmem:[#allocation2 + $0x178] sm:$0xff] %v3198_v0  ;;  %4045 = vmatprep.mubr.bf16.mxu1 %v12318_v49  ;;  %5042 = vmatprep.mubr.bf16.mxu0 %v12495_v16 }
 0x2d4   : > { %v2111_v25 = vpop.f32.mrf.mxu1  ;;  %v3108_v32 = vpop.f32.mrf.mxu0 }
 0x2d5   : > { %v3199_v9 = vadd.f32 %v3106_v39, %v2202_v27  ;;  %v12229_v27 = vld [vmem:[%s15095_s6 + $0x378] sm:$0xff]  ;;  %v12230_v25 = vld [vmem:[%s15095_s6 + $0x380] sm:$0xff]  ;;  %v16007_v32 = vld [vmem:[%s15095_s6 + $0x388] sm:$0xff] }
 0x2d6   : > { %v2112_v35 = vpop.f32.mrf.mxu1  ;;  %v3109_v45 = vpop.f32.mrf.mxu0 }
 0x2d7   : > { %v2203_v51 = vadd.f32 %v2112_v35, %v1401_v46  ;;  %3263 = vst [vmem:[#allocation2 + $0x68] sm:$0xff] %v3199_v9  ;;  %v12323_v46 = vcombine.low %v15993_v11, %v12228_v21  ;;  %v1409_v11 = vld [vmem:[#allocation2 + $0xa0] sm:$0xff] }
 0x2d8   : > { %v2114_v59 = vpop.f32.mrf.mxu1  ;;  %v3111_v18 = vpop.f32.mrf.mxu0 }
 0x2d9   : > { %v3200_v36 = vadd.f32 %v3109_v45, %v2203_v51  ;;  %v12503_v51 = vcombine.high %v12230_v25, %v16007_v32  ;;  %v1408_v18 = vld [vmem:[#allocation2 + $0x58] sm:$0xff] }
 0x2da   : > { %v2117_v48 = vpop.f32.mrf.mxu1  ;;  %4046 = vmatmul.mubr.bf16.gmra.mxu1 %v12317_v42  ;;  %v3114_v41 = vpop.f32.mrf.mxu0  ;;  %5043 = vmatmul.mubr.bf16.gmra.mxu0 %v12494_v3  ;;  %v12500_v42 = vcombine.low %v12228_v21, %v12405_v4  ;;  %v12326_v3 = vcombine.high %v12229_v27, %v12230_v25  ;;  %v3341_v4 = vld [vmem:[#allocation2 + $0x1b0] sm:$0xff] }
 0x2db   : > { %v2204_v37 = vadd.f32 %v2117_v48, %v1402_v52  ;;  %3264 = vst [vmem:[#allocation2 + $0x190] sm:$0xff] %v3200_v36  ;;  %4053 = vmatprep.mubr.bf16.mxu1 %v12320_v53  ;;  %5050 = vmatprep.mubr.bf16.mxu0 %v12497_v40 }
 0x2dc   : > { %v2119_v44 = vpop.f32.mrf.mxu1  ;;  %v3116_v47 = vpop.f32.mrf.mxu0 }
 0x2dd   : > { %v3201_v26 = vadd.f32 %v3114_v41, %v2204_v37  ;;  %v12232_v44 = vld [vmem:[%s15095_s6 + $0x390] sm:$0xff]  ;;  %v16013_v47 = vld [vmem:[%s15095_s6 + $0x398] sm:$0xff] }
 0x2de   : > { %v2120_v23 = vpop.f32.mrf.mxu1  ;;  %v3117_v6 = vpop.f32.mrf.mxu0 }
 0x2df   : > { %v2205_v57 = vadd.f32 %v2120_v23, %v1403_v7  ;;  %3265 = vst [vmem:[#allocation2 + $0x198] sm:$0xff] %v3201_v26  ;;  %v12325_v7 = vcombine.low %v12229_v27, %v12230_v25 }
 0x2e0   : > { %v2122_v8 = vpop.f32.mrf.mxu1  ;;  %v3119_v19 = vpop.f32.mrf.mxu0 }
 0x2e1   : > { %v3202_v28 = vadd.f32 %v3117_v6, %v2205_v57  ;;  %v12505_v57 = vcombine.high %v12232_v44, %v16013_v47  ;;  %v3340_v19 = vld [vmem:[#allocation2 + $0xb0] sm:$0xff] }
 0x2e2   : > { %v2125_v13 = vpop.f32.mrf.mxu1  ;;  %4054 = vmatmul.mubr.bf16.gmra.mxu1 %v12319_v24  ;;  %v3122_v20 = vpop.f32.mrf.mxu0  ;;  %5051 = vmatmul.mubr.bf16.gmra.mxu0 %v12496_v14  ;;  %v12502_v24 = vcombine.low %v12230_v25, %v16007_v32  ;;  %v12328_v14 = vcombine.high %v16007_v32, %v12232_v44  ;;  %v3343_v25 = vld [vmem:[#allocation2 + $0x18] sm:$0xff] }
 0x2e3   : > { %v2206_v30 = vadd.f32 %v2125_v13, %v1404_v63  ;;  %3266 = vst [vmem:[#allocation2 + $0x38] sm:$0xff] %v3202_v28  ;;  %4061 = vmatprep.mubr.bf16.mxu1 %v12322_v43  ;;  %5058 = vmatprep.mubr.bf16.mxu0 %v12499_v1 }
 0x2e4   : > { %v2127_v10 = vpop.f32.mrf.mxu1  ;;  %v3124_v56 = vpop.f32.mrf.mxu0 }
 0x2e5   : > { %v3203_v15 = vadd.f32 %v3122_v20, %v2206_v30  ;;  %v12234_v10 = vld [vmem:[%s15095_s6 + $0x3a0] sm:$0xff]  ;;  %v16020_v56 = vld [vmem:[%s15095_s6 + $0x3a8] sm:$0xff] }
 0x2e6   : > { %v2128_v50 = vpop.f32.mrf.mxu1  ;;  %v3125_v54 = vpop.f32.mrf.mxu0 }
 0x2e7   : > { %v2207_v22 = vadd.f32 %v2128_v50, %v1405_v60  ;;  %3267 = vst [vmem:[#allocation2 + $0xc0] sm:$0xff] %v3203_v15  ;;  %v12327_v60 = vcombine.low %v16007_v32, %v12232_v44 }
 0x2e8   : > { %v2130_v29 = vpop.f32.mrf.mxu1  ;;  %v3127_v49 = vpop.f32.mrf.mxu0 }
 0x2e9   : > { %v3204_v16 = vadd.f32 %v3125_v54, %v2207_v22  ;;  %v12507_v22 = vcombine.high %v12234_v10, %v16020_v56  ;;  %v3342_v49 = vld [vmem:[#allocation2 + $0xd8] sm:$0xff] }
 0x2ea   : > { %v2133_v38 = vpop.f32.mrf.mxu1  ;;  %4062 = vmatmul.mubr.bf16.gmra.mxu1 %v12321_v61  ;;  %v3130_v0 = vpop.f32.mrf.mxu0  ;;  %5059 = vmatmul.mubr.bf16.gmra.mxu0 %v12498_v12  ;;  %v12504_v61 = vcombine.low %v12232_v44, %v16013_v47  ;;  %v12330_v12 = vcombine.high %v16013_v47, %v12234_v10 }
 0x2eb   : > { %v2208_v31 = vadd.f32 %v2133_v38, %v1406_v55  ;;  %3268 = vst [vmem:[#allocation2 + $0x1c0] sm:$0xff] %v3204_v16  ;;  %4069 = vmatprep.mubr.bf16.mxu1 %v12324_v17  ;;  %5066 = vmatprep.mubr.bf16.mxu0 %v12501_v33 }
 0x2ec   : > { %v2135_v34 = vpop.f32.mrf.mxu1  ;;  %v3132_v39 = vpop.f32.mrf.mxu0 }
 0x2ed   : > { %v3205_v58 = vadd.f32 %v3130_v0, %v2208_v31  ;;  %v12236_v34 = vld [vmem:[%s15095_s6 + $0x3b0] sm:$0xff]  ;;  %v12413_v39 = vld [vmem:[%s15095_s6 + $0x3b8] sm:$0xff] }
 0x2ee   : > { %v2136_v9 = vpop.f32.mrf.mxu1  ;;  %v3133_v35 = vpop.f32.mrf.mxu0 }
 0x2ef   : > { %v2209_v45 = vadd.f32 %v2136_v9, %v1407_v5  ;;  %3269 = vst [vmem:[#allocation2 + $0x158] sm:$0xff] %v3205_v58  ;;  %v12329_v58 = vcombine.low %v16013_v47, %v12234_v10  ;;  %v12506_v9 = vcombine.low %v12234_v10, %v16020_v56  ;;  %v3345_v47 = vld [vmem:[#allocation2 + $0x168] sm:$0xff] }
 0x2f0   : > { %v2138_v53 = vpop.f32.mrf.mxu1  ;;  %v3135_v40 = vpop.f32.mrf.mxu0 }
 0x2f1   : > { %v3206_v59 = vadd.f32 %v3133_v35, %v2209_v45  ;;  %v12332_v35 = vcombine.high %v16020_v56, %v12236_v34  ;;  %v3344_v53 = vld [vmem:[#allocation2 + $0x50] sm:$0xff] }
 0x2f2   : > { %v2141_v36 = vpop.f32.mrf.mxu1  ;;  %4070 = vmatmul.mubr.bf16.gmra.mxu1 %v12323_v46  ;;  %v3138_v52 = vpop.f32.mrf.mxu0  ;;  %5067 = vmatmul.mubr.bf16.gmra.mxu0 %v12500_v42  ;;  %v12509_v42 = vcombine.high %v12236_v34, %v12413_v39 }
 0x2f3   : > { %v2210_v48 = vadd.f32 %v2141_v36, %v1408_v18  ;;  %3270 = vst [vmem:[#allocation2 + $0x10] sm:$0xff] %v3206_v59  ;;  %4077 = vmatprep.mubr.bf16.mxu1 %v12326_v3  ;;  %5074 = vmatprep.mubr.bf16.mxu0 %v12503_v51 }
 0x2f4   : > { %v2143_v41 = vpop.f32.mrf.mxu1  ;;  %v3140_v37 = vpop.f32.mrf.mxu0 }
 0x2f5   : > { %v3207_v62 = vadd.f32 %v3138_v52, %v2210_v48  ;;  %v12237_v48 = vld [vmem:[%s15095_s6 + $0x408] sm:$0xff]  ;;  %v12238_v41 = vld [vmem:[%s15095_s6 + $0x410] sm:$0xff]  ;;  %v16034_v37 = vld [vmem:[%s15095_s6 + $0x418] sm:$0xff] }
 0x2f6   : > { %v2144_v26 = vpop.f32.mrf.mxu1  ;;  %v3141_v23 = vpop.f32.mrf.mxu0 }
 0x2f7   : > { %v2211_v6 = vadd.f32 %v2144_v26, %v1409_v11  ;;  %3271 = vst [vmem:[#allocation2 + $0x58] sm:$0xff] %v3207_v62  ;;  %v12331_v11 = vcombine.low %v16020_v56, %v12236_v34  ;;  %v3347_v56 = vld [vmem:[#allocation2 + $0x48] sm:$0xff] }
 0x2f8   : > { %v2146_v43 = vpop.f32.mrf.mxu1  ;;  %v3143_v1 = vpop.f32.mrf.mxu0 }
 0x2f9   : > { %v3208_v8 = vadd.f32 %v3141_v23, %v2211_v6  ;;  %v12511_v6 = vcombine.high %v12238_v41, %v16034_v37  ;;  %v3346_v1 = vld [vmem:[#allocation2 + $0x130] sm:$0xff] }
 0x2fa   : > { %v3887_v28 = vpop.f32.mrf.mxu1  ;;  %4078 = vmatmul.mubr.bf16.gmra.mxu1 %v12325_v7  ;;  %v4884_v63 = vpop.f32.mrf.mxu0  ;;  %5075 = vmatmul.mubr.bf16.gmra.mxu0 %v12502_v24  ;;  %v12508_v7 = vcombine.low %v12236_v34, %v12413_v39  ;;  %v12334_v24 = vcombine.high %v12237_v48, %v12238_v41  ;;  %v3349_v39 = vld [vmem:[#allocation2 + $0x110] sm:$0xff] }
 0x2fb   : > { %v4142_v13 = vadd.f32 %v3887_v28, %v3340_v19  ;;  %3272 = vst [vmem:[#allocation2 + $0xa0] sm:$0xff] %v3208_v8  ;;  %4085 = vmatprep.mubr.bf16.mxu1 %v12328_v14  ;;  %5082 = vmatprep.mubr.bf16.mxu0 %v12505_v57 }
 0x2fc   : > { %v3889_v20 = vpop.f32.mrf.mxu1  ;;  %v4886_v30 = vpop.f32.mrf.mxu0 }
 0x2fd   : > { %v5139_v21 = vadd.f32 %v4884_v63, %v4142_v13  ;;  %v12240_v20 = vld [vmem:[%s15095_s6 + $0x420] sm:$0xff]  ;;  %v16040_v30 = vld [vmem:[%s15095_s6 + $0x428] sm:$0xff] }
 0x2fe   : > { %v3890_v15 = vpop.f32.mrf.mxu1  ;;  %v4887_v50 = vpop.f32.mrf.mxu0 }
 0x2ff   : > { %v4143_v54 = vadd.f32 %v3890_v15, %v3341_v4  ;;  %5203 = vst [vmem:[#allocation2 + $0xb0] sm:$0xff] %v5139_v21  ;;  %v12333_v4 = vcombine.low %v12237_v48, %v12238_v41 }
 0x300   : > { %v3892_v17 = vpop.f32.mrf.mxu1  ;;  %v4889_v33 = vpop.f32.mrf.mxu0 }
 0x301   : > { %v5140_v29 = vadd.f32 %v4887_v50, %v4143_v54  ;;  %v12513_v54 = vcombine.high %v12240_v20, %v16040_v30  ;;  %v3348_v33 = vld [vmem:[#allocation2 + $0x180] sm:$0xff] }
 0x302   : > { %v3895_v16 = vpop.f32.mrf.mxu1  ;;  %4086 = vmatmul.mubr.bf16.gmra.mxu1 %v12327_v60  ;;  %v4892_v55 = vpop.f32.mrf.mxu0  ;;  %5083 = vmatmul.mubr.bf16.gmra.mxu0 %v12504_v61  ;;  %v12510_v60 = vcombine.low %v12238_v41, %v16034_v37  ;;  %v12336_v61 = vcombine.high %v16034_v37, %v12240_v20  ;;  %v3351_v41 = vld [vmem:[#allocation2 + $0x98] sm:$0xff] }
 0x303   : > { %v4144_v38 = vadd.f32 %v3895_v16, %v3342_v49  ;;  %5204 = vst [vmem:[#allocation2 + $0x1b0] sm:$0xff] %v5140_v29  ;;  %4093 = vmatprep.mubr.bf16.mxu1 %v12330_v12  ;;  %5090 = vmatprep.mubr.bf16.mxu0 %v12507_v22 }
 0x304   : > { %v3897_v0 = vpop.f32.mrf.mxu1  ;;  %v4894_v31 = vpop.f32.mrf.mxu0 }
 0x305   : > { %v5141_v27 = vadd.f32 %v4892_v55, %v4144_v38  ;;  %v12242_v0 = vld [vmem:[%s15095_s6 + $0x430] sm:$0xff]  ;;  %v16047_v31 = vld [vmem:[%s15095_s6 + $0x438] sm:$0xff] }
 0x306   : > { %v3898_v32 = vpop.f32.mrf.mxu1  ;;  %v4895_v5 = vpop.f32.mrf.mxu0 }
 0x307   : > { %v4145_v46 = vadd.f32 %v3898_v32, %v3343_v25  ;;  %5205 = vst [vmem:[#allocation2 + $0xd8] sm:$0xff] %v5141_v27  ;;  %v12335_v25 = vcombine.low %v16034_v37, %v12240_v20 }
 0x308   : > { %v3900_v45 = vpop.f32.mrf.mxu1  ;;  %v4897_v3 = vpop.f32.mrf.mxu0 }
 0x309   : > { %v5142_v51 = vadd.f32 %v4895_v5, %v4145_v46  ;;  %v12515_v46 = vcombine.high %v12242_v0, %v16047_v31  ;;  %v3350_v3 = vld [vmem:[#allocation2 + $0x118] sm:$0xff] }
 0x30a   : > { %v3903_v40 = vpop.f32.mrf.mxu1  ;;  %4094 = vmatmul.mubr.bf16.gmra.mxu1 %v12329_v58  ;;  %v4900_v59 = vpop.f32.mrf.mxu0  ;;  %5091 = vmatmul.mubr.bf16.gmra.mxu0 %v12506_v9  ;;  %v12512_v58 = vcombine.low %v12240_v20, %v16040_v30  ;;  %v12338_v9 = vcombine.high %v16040_v30, %v12242_v0 }
 0x30b   : > { %v4146_v18 = vadd.f32 %v3903_v40, %v3344_v53  ;;  %5206 = vst [vmem:[#allocation2 + $0x18] sm:$0xff] %v5142_v51  ;;  %4101 = vmatprep.mubr.bf16.mxu1 %v12332_v35  ;;  %5098 = vmatprep.mubr.bf16.mxu0 %v12509_v42 }
 0x30c   : > { %v3905_v36 = vpop.f32.mrf.mxu1  ;;  %v4902_v52 = vpop.f32.mrf.mxu0 }
 0x30d   : > { %v5143_v44 = vadd.f32 %v4900_v59, %v4146_v18  ;;  %v12244_v36 = vld [vmem:[%s15095_s6 + $0x440] sm:$0xff]  ;;  %v12421_v52 = vld [vmem:[%s15095_s6 + $0x448] sm:$0xff] }
 0x30e   : > { %v3906_v62 = vpop.f32.mrf.mxu1  ;;  %v4903_v26 = vpop.f32.mrf.mxu0 }
 0x30f   : > { %v4147_v23 = vadd.f32 %v3906_v62, %v3345_v47  ;;  %5207 = vst [vmem:[#allocation2 + $0x50] sm:$0xff] %v5143_v44  ;;  %v12337_v44 = vcombine.low %v16040_v30, %v12242_v0  ;;  %v12514_v62 = vcombine.low %v12242_v0, %v16047_v31  ;;  %v3353_v30 = vld [vmem:[#allocation2 + $0x150] sm:$0xff]  ;;  %v16067_v0 = vld [vmem:[%s15095_s6 + $0x48] sm:$0xff] }
 0x310   : > { %v3908_v14 = vpop.f32.mrf.mxu1  ;;  %v4905_v57 = vpop.f32.mrf.mxu0 }
 0x311   : > { %v5144_v43 = vadd.f32 %v4903_v26, %v4147_v23  ;;  %v12340_v26 = vcombine.high %v16047_v31, %v12244_v36  ;;  %v3352_v14 = vld [vmem:[#allocation2 + $0x120] sm:$0xff] }
 0x312   : > { %v3911_v8 = vpop.f32.mrf.mxu1  ;;  %4102 = vmatmul.mubr.bf16.gmra.mxu1 %v12331_v11  ;;  %v4908_v19 = vpop.f32.mrf.mxu0  ;;  %5099 = vmatmul.mubr.bf16.gmra.mxu0 %v12508_v7  ;;  %v12517_v7 = vcombine.high %v12244_v36, %v12421_v52 }
 0x313   : > { %v4148_v28 = vadd.f32 %v3911_v8, %v3346_v1  ;;  %5208 = vst [vmem:[#allocation2 + $0x168] sm:$0xff] %v5144_v43  ;;  %4109 = vmatprep.mubr.bf16.mxu1 %v12334_v24  ;;  %5106 = vmatprep.mubr.bf16.mxu0 %v12511_v6 }
 0x314   : > { %v3913_v63 = vpop.f32.mrf.mxu1  ;;  %v4910_v13 = vpop.f32.mrf.mxu0 }
 0x315   : > { %v5145_v10 = vadd.f32 %v4908_v19, %v4148_v28  ;;  %v12535_v28 = vld [vmem:[%s15095_s6 + $0x28] sm:$0xff]  ;;  %v12536_v63 = vld [vmem:[%s15095_s6 + $0x30] sm:$0xff]  ;;  %v16061_v13 = vld [vmem:[%s15095_s6 + $0x38] sm:$0xff] }
 0x316   : > { %v3914_v21 = vpop.f32.mrf.mxu1  ;;  %v4911_v15 = vpop.f32.mrf.mxu0 }
 0x317   : > { %v4149_v50 = vadd.f32 %v3914_v21, %v3347_v56  ;;  %5209 = vst [vmem:[#allocation2 + $0x130] sm:$0xff] %v5145_v10  ;;  %v12339_v56 = vcombine.low %v16047_v31, %v12244_v36  ;;  %v3355_v31 = vld [vmem:[#allocation2 + $0x60] sm:$0xff] }
 0x318   : > { %v3916_v12 = vpop.f32.mrf.mxu1  ;;  %v4913_v22 = vpop.f32.mrf.mxu0 }
 0x319   : > { %v5146_v17 = vadd.f32 %v4911_v15, %v4149_v50  ;;  %v12809_v50 = vcombine.high %v12536_v63, %v16061_v13  ;;  %v3354_v22 = vld [vmem:[#allocation2 + $0x108] sm:$0xff] }
 0x31a   : > { %v3919_v29 = vpop.f32.mrf.mxu1  ;;  %4110 = vmatmul.mubr.bf16.gmra.mxu1 %v12333_v4  ;;  %v4916_v49 = vpop.f32.mrf.mxu0  ;;  %5107 = vmatmul.mubr.bf16.gmra.mxu0 %v12510_v60  ;;  %v12516_v4 = vcombine.low %v12244_v36, %v12421_v52  ;;  %v12632_v60 = vcombine.high %v12535_v28, %v12536_v63  ;;  %v16076_v52 = vld [vmem:[%s15095_s6 + $0x50] sm:$0xff] }
 0x31b   : > { %v4150_v16 = vadd.f32 %v3919_v29, %v3348_v33  ;;  %5210 = vst [vmem:[#allocation2 + $0x48] sm:$0xff] %v5146_v17  ;;  %4117 = vmatprep.mubr.bf16.mxu1 %v12336_v61  ;;  %5114 = vmatprep.mubr.bf16.mxu0 %v12513_v54 }
 0x31c   : > { %v3921_v55 = vpop.f32.mrf.mxu1  ;;  %v4918_v38 = vpop.f32.mrf.mxu0 }
 0x31d   : > { %v5147_v34 = vadd.f32 %v4916_v49, %v4150_v16  ;;  %v12538_v55 = vld [vmem:[%s15095_s6 + $0x40] sm:$0xff] }
 0x31e   : > { %v3922_v27 = vpop.f32.mrf.mxu1  ;;  %v4919_v32 = vpop.f32.mrf.mxu0 }
 0x31f   : > { %v4151_v5 = vadd.f32 %v3922_v27, %v3349_v39  ;;  %5211 = vst [vmem:[#allocation2 + $0x180] sm:$0xff] %v5147_v34  ;;  %v12631_v39 = vcombine.low %v12535_v28, %v12536_v63 }
 0x320   : > { %v3924_v35 = vpop.f32.mrf.mxu1  ;;  %v4921_v42 = vpop.f32.mrf.mxu0 }
 0x321   : > { %v5148_v45 = vadd.f32 %v4919_v32, %v4151_v5  ;;  %v12634_v5 = vcombine.high %v16061_v13, %v12538_v55  ;;  %v14188_v35 = vld [vmem:[%s15006_s20 + $0x438] sm:$0xff]   ;;  %v12811_v42 = vcombine.high %v12538_v55, %v16067_v0 }
 0x322   : > { %v3927_v51 = vpop.f32.mrf.mxu1  ;;  %4118 = vmatmul.mubr.bf16.gmra.mxu1 %v12335_v25  ;;  %v4924_v53 = vpop.f32.mrf.mxu0  ;;  %5115 = vmatmul.mubr.bf16.gmra.mxu0 %v12512_v58  ;;  %v12808_v25 = vcombine.low %v12536_v63, %v16061_v13  ;;  %v14183_v58 = vld [vmem:[%s15006_s20 + $0x3b8] sm:$0xff]  }
 0x323   : > { %v4152_v40 = vadd.f32 %v3927_v51, %v3350_v3  ;;  %5212 = vst [vmem:[#allocation2 + $0x110] sm:$0xff] %v5148_v45  ;;  %4125 = vmatprep.mubr.bf16.mxu1 %v12338_v9  ;;  %5122 = vmatprep.mubr.bf16.mxu0 %v12515_v46  ;;  %v3356_v3 = vld [vmem:[#allocation2 + $0xe0] sm:$0xff] }
 0x324   : > { %v3929_v59 = vpop.f32.mrf.mxu1  ;;  %v4926_v18 = vpop.f32.mrf.mxu0 }
 0x325   : > { %v5149_v48 = vadd.f32 %v4924_v53, %v4152_v40  ;;  %v14193_v59 = vld [vmem:[%s15006_s20 + $0x3b0] sm:$0xff]  }
 0x326   : > { %v3930_v37 = vpop.f32.mrf.mxu1  ;;  %v4927_v47 = vpop.f32.mrf.mxu0 }
 0x327   : > { %v4153_v11 = vadd.f32 %v3930_v37, %v3351_v41  ;;  %5213 = vst [vmem:[#allocation2 + $0x118] sm:$0xff] %v5149_v48  ;;  %v16079_v48 = vld [vmem:[%s15095_s6 + $0x58] sm:$0xff]  ;;  %v14198_v41 = vld [vmem:[%s15006_s20 + $0x430] sm:$0xff]  }
 0x328   : > { %v3932_v23 = vpop.f32.mrf.mxu1  ;;  %v4929_v24 = vpop.f32.mrf.mxu0 }
 0x329   : > { %v5150_v6 = vadd.f32 %v4927_v47, %v4153_v11  ;;  %v12636_v23 = vcombine.high %v16067_v0, %v16076_v52  ;;  %v12813_v24 = vcombine.high %v16076_v52, %v16079_v48 }
 0x32a   : > { %v3935_v57 = vpop.f32.mrf.mxu1  ;;  %4126 = vmatmul.mubr.bf16.gmra.mxu1 %v12337_v44  ;;  %v4932_v43 = vpop.f32.mrf.mxu0  ;;  %5123 = vmatmul.mubr.bf16.gmra.mxu0 %v12514_v62  ;;  %v3357_v44 = vld [vmem:[#allocation2 + $0x188] sm:$0xff]  ;;  %v12633_v62 = vcombine.low %v16061_v13, %v12538_v55  ;;  %v16095_v13 = vld [vmem:[%s15095_s6 + $0x60] sm:$0xff] }
 0x32b   : > { %v4154_v1 = vadd.f32 %v3935_v57, %v3352_v14  ;;  %5214 = vst [vmem:[#allocation2 + $0x98] sm:$0xff] %v5150_v6  ;;  %4133 = vmatprep.mubr.bf16.mxu1 %v12340_v26  ;;  %5130 = vmatprep.mubr.bf16.mxu0 %v12517_v7  ;;  %v12810_v26 = vcombine.low %v12538_v55, %v16067_v0  ;;  %v14203_v57 = vld [vmem:[%s15006_s20 + $0x3a8] sm:$0xff]  }
 0x32c   : > { %v3937_v8 = vpop.f32.mrf.mxu1  ;;  %v4934_v19 = vpop.f32.mrf.mxu0 }
 0x32d   : > { %v5151_v20 = vadd.f32 %v4932_v43, %v4154_v1  ;;  %v14208_v43 = vld [vmem:[%s15006_s20 + $0x428] sm:$0xff]   ;;  %v3358_v8 = vld [vmem:[#allocation2 + $0x138] sm:$0xff] }
 0x32e   : > { %v3938_v10 = vpop.f32.mrf.mxu1  ;;  %v4935_v21 = vpop.f32.mrf.mxu0 }
 0x32f   : > { %v4155_v15 = vadd.f32 %v3938_v10, %v3353_v30  ;;  %5215 = vst [vmem:[#allocation2 + $0x120] sm:$0xff] %v5151_v20  ;;  %v16098_v10 = vld [vmem:[%s15095_s6 + $0x68] sm:$0xff] }
 0x330   : > { %v3940_v61 = vpop.f32.mrf.mxu1  ;;  %v4937_v54 = vpop.f32.mrf.mxu0 }
 0x331   : > { %v5152_v12 = vadd.f32 %v4935_v21, %v4155_v15  ;;  %v14218_v21 = vld [vmem:[%s15006_s20 + $0x420] sm:$0xff]   ;;  %v12812_v54 = vcombine.low %v16076_v52, %v16079_v48 }
 0x332   : > { %v3943_v17 = vpop.f32.mrf.mxu1  ;;  %4134 = vmatmul.mubr.bf16.gmra.mxu1 %v12339_v56  ;;  %v4940_v33 = vpop.f32.mrf.mxu0  ;;  %5131 = vmatmul.mubr.bf16.gmra.mxu0 %v12516_v4  ;;  %v14213_v56 = vld [vmem:[%s15006_s20 + $0x3a0] sm:$0xff]  }
 0x333   : > { %v4156_v29 = vadd.f32 %v3943_v17, %v3354_v22  ;;  %5216 = vst [vmem:[#allocation2 + $0x150] sm:$0xff] %v5152_v12  ;;  %5879 = vmatprep.mubr.bf16.mxu1 %v12632_v60  ;;  %6876 = vmatprep.mubr.bf16.mxu0 %v12809_v50  ;;  %v3359_v15 = vld [vmem:[#allocation2 + $0x140] sm:$0xff]  ;;  %v12635_v50 = vcombine.low %v16067_v0, %v16076_v52  ;;  %v14243_v52 = vld [vmem:[%s15006_s20 + $0x388] sm:$0xff]  }
 0x334   : > { %v3945_v49 = vpop.f32.mrf.mxu1  ;;  %v4942_v16 = vpop.f32.mrf.mxu0  ;;  %v12638_v22 = vcombine.high %v16079_v48, %v16095_v13  ;;  %v12815_v17 = vcombine.high %v16095_v13, %v16098_v10 }
 0x335   : > { %v5153_v38 = vadd.f32 %v4940_v33, %v4156_v29  ;;  %v14223_v49 = vld [vmem:[%s15006_s20 + $0x398] sm:$0xff]  }
 0x336   : > { %v3946_v34 = vpop.f32.mrf.mxu1  ;;  %v4943_v27 = vpop.f32.mrf.mxu0  ;;  %v14228_v16 = vld [vmem:[%s15006_s20 + $0x418] sm:$0xff]  }
 0x337   : > { %v4157_v32 = vadd.f32 %v3946_v34, %v3355_v31  ;;  %5217 = vst [vmem:[#allocation2 + $0x108] sm:$0xff] %v5153_v38  ;;  %v3360_v38 = vld [vmem:[#allocation2 + $0x80] sm:$0xff] }
 0x338   : > { %v3948_v9 = vpop.f32.mrf.mxu1  ;;  %v4945_v46 = vpop.f32.mrf.mxu0 }
 0x339   : > { %v5154_v45 = vadd.f32 %v4943_v27, %v4157_v32  ;;  %v16120_v27 = vld [vmem:[%s15095_s6 + $0xc0] sm:$0xff]  ;;  %v14238_v9 = vld [vmem:[%s15006_s20 + $0x410] sm:$0xff]  }
 0x33a   : > { %v3951_v51 = vpop.f32.mrf.mxu1  ;;  %5880 = vmatmul.mubr.bf16.vlgmr.msra.gmra.mxu1 %v12631_v39  ;;  %v4948_v53 = vpop.f32.mrf.mxu0  ;;  %6877 = vmatmul.mubr.bf16.vlgmr.msra.gmra.mxu0 %v12808_v25  ;;  %v16117_v39 = vld [vmem:[%s15095_s6 + $0xb8] sm:$0xff] }
 0x33b   : > { %v4158_v40 = vadd.f32 %v3951_v51, %v3356_v3  ;;  %5218 = vst [vmem:[#allocation2 + $0x60] sm:$0xff] %v5154_v45  ;;  %7842 = vmatpush1.bf16.msra.mxu1 %v14183_v58  ;;  %5887 = vmatprep.mubr.bf16.mxu1 %v12634_v5  ;;  %v16123_v58 = vld [vmem:[%s15095_s6 + $0xc8] sm:$0xff]  ;;  %v14233_v5 = vld [vmem:[%s15006_s20 + $0x390] sm:$0xff]   ;;  %v12637_v45 = vcombine.low %v16079_v48, %v16095_v13 }
 0x33c   : > { %v3953_v18 = vpop.f32.mrf.mxu1  ;;  %v4950_v36 = vpop.f32.mrf.mxu0  ;;  %8839 = vmatpush1.bf16.msra.mxu0 %v14188_v35  ;;  %6884 = vmatprep.mubr.bf16.mxu0 %v12811_v42  ;;  %v3361_v35 = vld [vmem:[#allocation2 + $0x1a8] sm:$0xff]  ;;  %v12814_v51 = vcombine.low %v16095_v13, %v16098_v10  ;;  %v14263_v10 = vld [vmem:[%s15006_s20 + $0x3f8] sm:$0xff]  }
 0x33d   : > { %v5155_v37 = vadd.f32 %v4948_v53, %v4158_v40  ;;  %7843 = vmatprep.subr.bf16.mxu1 %v14819_v2  ;;  %8840 = vmatprep.subr.bf16.mxu0 %v14819_v2  ;;  %v12640_v40 = vcombine.high %v16117_v39, %v16120_v27 }
 0x33e   : > { %v3954_v47 = vpop.f32.mrf.mxu1  ;;  %v4951_v11 = vpop.f32.mrf.mxu0 }
 0x33f   : > { %v4159_v7 = vadd.f32 %v3954_v47, %v3357_v44  ;;  %5219 = vst [vmem:[#allocation2 + $0xe0] sm:$0xff] %v5155_v37  ;;  %7844 = vmatpush1.bf16.msra.mxu1 %v14193_v59  ;;  %v12817_v59 = vcombine.high %v16120_v27, %v16123_v58  ;;  %v3362_v37 = vld [vmem:[#allocation2 + $0x1b8] sm:$0xff] }
 0x340   : > { %v3956_v6 = vpop.f32.mrf.mxu1  ;;  %v4953_v14 = vpop.f32.mrf.mxu0  ;;  %8841 = vmatpush1.bf16.msra.mxu0 %v14198_v41  ;;  %7845 = vmatprep.subr.bf16.mxu1 %v14819_v2  ;;  %v14248_v41 = vld [vmem:[%s15006_s20 + $0x408] sm:$0xff]  }
 0x341   : > { %v5156_v1 = vadd.f32 %v4951_v11, %v4159_v7  ;;  %8842 = vmatprep.subr.bf16.mxu0 %v14819_v2  ;;  %v16142_v11 = vld [vmem:[%s15095_s6 + $0xd0] sm:$0xff]  ;;  %v14258_v6 = vld [vmem:[%s15006_s20 + $0x400] sm:$0xff]  }
 0x342   : > { %v3959_v19 = vpop.f32.mrf.mxu1  ;;  %5888 = vmatmul.mubr.bf16.gmra.mxu1 %v12633_v62  ;;  %v4956_v28 = vpop.f32.mrf.mxu0  ;;  %6885 = vmatmul.mubr.bf16.gmra.mxu0 %v12810_v26 }
 0x343   : > { %v4160_v63 = vadd.f32 %v3959_v19, %v3358_v8  ;;  %5220 = vst [vmem:[#allocation2 + $0x188] sm:$0xff] %v5156_v1  ;;  %5895 = vmatprep.mubr.bf16.mxu1 %v12636_v23  ;;  %6892 = vmatprep.mubr.bf16.mxu0 %v12813_v24  ;;  %v16145_v23 = vld [vmem:[%s15095_s6 + $0xd8] sm:$0xff]  ;;  %v14253_v24 = vld [vmem:[%s15006_s20 + $0x380] sm:$0xff]   ;;  %v12639_v1 = vcombine.low %v16117_v39, %v16120_v27 }
 0x344   : > { %v3961_v20 = vpop.f32.mrf.mxu1  ;;  %v4958_v30 = vpop.f32.mrf.mxu0  ;;  %7846 = vmatpush1.bf16.msra.mxu1 %v14203_v57  ;;  %8843 = vmatpush1.bf16.msra.mxu0 %v14208_v43  ;;  %v3363_v57 = vld [vmem:[#allocation2 + $0x28] sm:$0xff]  ;;  %v12816_v19 = vcombine.low %v16120_v27, %v16123_v58  ;;  %v12819_v13 = vcombine.high %v16142_v11, %v16145_v23 }
 0x345   : > { %v5157_v4 = vadd.f32 %v4956_v28, %v4160_v63  ;;  %7847 = vmatprep.subr.bf16.mxu1 %v14819_v2  ;;  %8844 = vmatprep.subr.bf16.mxu0 %v14819_v2  ;;  %v12642_v63 = vcombine.high %v16123_v58, %v16142_v11 }
 0x346   : > { %v3962_v60 = vpop.f32.mrf.mxu1  ;;  %v4959_v61 = vpop.f32.mrf.mxu0 }
 0x347   : > { %v4161_v12 = vadd.f32 %v3962_v60, %v3359_v15  ;;  %5221 = vst [vmem:[#allocation2 + $0x138] sm:$0xff] %v5157_v4  ;;  %v3364_v4 = vld [vmem:[#allocation2 + $0x1e8] sm:$0xff] }
 0x348   : > { %v3964_v33 = vpop.f32.mrf.mxu1  ;;  %v4961_v29 = vpop.f32.mrf.mxu0  ;;  %7848 = vmatpush1.bf16.msra.mxu1 %v14213_v56  ;;  %8845 = vmatpush1.bf16.msra.mxu0 %v14218_v21  ;;  %v14268_v56 = vld [vmem:[%s15006_s20 + $0x478] sm:$0xff]  }
 0x349   : > { %v5158_v55 = vadd.f32 %v4959_v61, %v4161_v12  ;;  %7849 = vmatprep.subr.bf16.mxu1 %v14819_v2  ;;  %8846 = vmatprep.subr.bf16.mxu0 %v14819_v2  ;;  %v16164_v61 = vld [vmem:[%s15095_s6 + $0xe0] sm:$0xff]  ;;  %v14278_v33 = vld [vmem:[%s15006_s20 + $0x470] sm:$0xff]  }
 0x34a   : > { %v3967_v0 = vpop.f32.mrf.mxu1  ;;  %5896 = vmatmul.mubr.bf16.gmra.mxu1 %v12635_v50  ;;  %v4964_v31 = vpop.f32.mrf.mxu0  ;;  %6893 = vmatmul.mubr.bf16.gmra.mxu0 %v12812_v54 }
 0x34b   : > { %v4162_v34 = vadd.f32 %v3967_v0, %v3360_v38  ;;  %5222 = vst [vmem:[#allocation2 + $0x140] sm:$0xff] %v5158_v55  ;;  %5903 = vmatprep.mubr.bf16.mxu1 %v12638_v22  ;;  %6900 = vmatprep.mubr.bf16.mxu0 %v12815_v17  ;;  %v16167_v22 = vld [vmem:[%s15095_s6 + $0xe8] sm:$0xff]  ;;  %v14273_v17 = vld [vmem:[%s15006_s20 + $0x3f0] sm:$0xff]   ;;  %v12641_v55 = vcombine.low %v16123_v58, %v16142_v11 }
 0x34c   : > { %v3969_v25 = vpop.f32.mrf.mxu1  ;;  %v4966_v32 = vpop.f32.mrf.mxu0  ;;  %7850 = vmatpush1.bf16.msra.mxu1 %v14223_v49  ;;  %8847 = vmatpush1.bf16.msra.mxu0 %v14228_v16  ;;  %v3365_v49 = vld [vmem:[#allocation2 + $0xf8] sm:$0xff]  ;;  %v12818_v0 = vcombine.low %v16142_v11, %v16145_v23  ;;  %v12821_v39 = vcombine.high %v16164_v61, %v16167_v22 }
 0x34d   : > { %v5159_v46 = vadd.f32 %v4964_v31, %v4162_v34  ;;  %7851 = vmatprep.subr.bf16.mxu1 %v14819_v2  ;;  %8848 = vmatprep.subr.bf16.mxu0 %v14819_v2  ;;  %v12644_v34 = vcombine.high %v16145_v23, %v16164_v61  ;;  %v14283_v32 = vld [vmem:[%s15006_s20 + $0x3e8] sm:$0xff]  }
 0x34e   : > { %v3970_v42 = vpop.f32.mrf.mxu1  ;;  %v4967_v3 = vpop.f32.mrf.mxu0 }
 0x34f   : > { %v4163_v53 = vadd.f32 %v3970_v42, %v3361_v35  ;;  %5223 = vst [vmem:[#allocation2 + $0x80] sm:$0xff] %v5159_v46 }
 0x350   : > { %v3972_v18 = vpop.f32.mrf.mxu1  ;;  %v4969_v36 = vpop.f32.mrf.mxu0  ;;  %7852 = vmatpush1.bf16.msra.mxu1 %v14233_v5  ;;  %8849 = vmatpush1.bf16.msra.mxu0 %v14238_v9  ;;  %v3366_v5 = vld [vmem:[#allocation2 + $0x160] sm:$0xff] }
 0x351   : > { %v5160_v48 = vadd.f32 %v4967_v3, %v4163_v53  ;;  %7853 = vmatprep.subr.bf16.mxu1 %v14819_v2  ;;  %8850 = vmatprep.subr.bf16.mxu0 %v14819_v2  ;;  %v12550_v3 = vld [vmem:[%s15095_s6 + $0xf0] sm:$0xff]  ;;  %v14288_v53 = vld [vmem:[%s15006_s20 + $0x468] sm:$0xff]   ;;  %v12643_v36 = vcombine.low %v16145_v23, %v16164_v61 }
 0x352   : > { %v3975_v44 = vpop.f32.mrf.mxu1  ;;  %5904 = vmatmul.mubr.bf16.gmra.mxu1 %v12637_v45  ;;  %v4972_v47 = vpop.f32.mrf.mxu0  ;;  %6901 = vmatmul.mubr.bf16.gmra.mxu0 %v12814_v51  ;;  %v12727_v51 = vld [vmem:[%s15095_s6 + $0xf8] sm:$0xff] }
 0x353   : > { %v4164_v62 = vadd.f32 %v3975_v44, %v3362_v37  ;;  %5224 = vst [vmem:[#allocation2 + $0x1a8] sm:$0xff] %v5160_v48  ;;  %5911 = vmatprep.mubr.bf16.mxu1 %v12640_v40  ;;  %6908 = vmatprep.mubr.bf16.mxu0 %v12817_v59  ;;  %v3367_v59 = vld [vmem:[#allocation2 + $0x30] sm:$0xff]  ;;  %v12646_v37 = vcombine.high %v16167_v22, %v12550_v3 }
 0x354   : > { %v3977_v26 = vpop.f32.mrf.mxu1  ;;  %v4974_v7 = vpop.f32.mrf.mxu0  ;;  %7854 = vmatpush1.bf16.msra.mxu1 %v14243_v52  ;;  %8851 = vmatpush1.bf16.msra.mxu0 %v14248_v41  ;;  %v12820_v41 = vcombine.low %v16164_v61, %v16167_v22  ;;  %v12823_v44 = vcombine.high %v12550_v3, %v12727_v51 }
 0x355   : > { %v5161_v14 = vadd.f32 %v4972_v47, %v4164_v62  ;;  %7855 = vmatprep.subr.bf16.mxu1 %v14819_v2  ;;  %8852 = vmatprep.subr.bf16.mxu0 %v14819_v2  ;;  %v3368_v26 = vld [vmem:[#allocation2 + $0x1e0] sm:$0xff] }
 0x356   : > { %v3978_v43 = vpop.f32.mrf.mxu1  ;;  %v4975_v8 = vpop.f32.mrf.mxu0 }
 0x357   : > { %v4165_v28 = vadd.f32 %v3978_v43, %v3363_v57  ;;  %5225 = vst [vmem:[#allocation2 + $0x1b8] sm:$0xff] %v5161_v14  ;;  %v12551_v43 = vld [vmem:[%s15095_s6 + $0x148] sm:$0xff] }
 0x358   : > { %v3980_v20 = vpop.f32.mrf.mxu1  ;;  %v4977_v30 = vpop.f32.mrf.mxu0  ;;  %7856 = vmatpush1.bf16.msra.mxu1 %v14253_v24  ;;  %8853 = vmatpush1.bf16.msra.mxu0 %v14258_v6  ;;  %v14293_v6 = vld [vmem:[%s15006_s20 + $0x3e0] sm:$0xff]  }
 0x359   : > { %v5162_v21 = vadd.f32 %v4975_v8, %v4165_v28  ;;  %7857 = vmatprep.subr.bf16.mxu1 %v14819_v2  ;;  %8854 = vmatprep.subr.bf16.mxu0 %v14819_v2  ;;  %v16198_v8 = vld [vmem:[%s15095_s6 + $0x158] sm:$0xff]  ;;  %v3369_v28 = vld [vmem:[#allocation2] sm:$0xff]  ;;  %v12822_v30 = vcombine.low %v12550_v3, %v12727_v51 }
 0x35a   : > { %v3983_v15 = vpop.f32.mrf.mxu1  ;;  %5912 = vmatmul.mubr.bf16.gmra.mxu1 %v12639_v1  ;;  %v4980_v60 = vpop.f32.mrf.mxu0  ;;  %6909 = vmatmul.mubr.bf16.gmra.mxu0 %v12816_v19  ;;  %v12552_v1 = vld [vmem:[%s15095_s6 + $0x150] sm:$0xff] }
 0x35b   : > { %v4166_v50 = vadd.f32 %v3983_v15, %v3364_v4  ;;  %5226 = vst [vmem:[#allocation2 + $0x28] sm:$0xff] %v5162_v21  ;;  %5919 = vmatprep.mubr.bf16.mxu1 %v12642_v63  ;;  %6916 = vmatprep.mubr.bf16.mxu0 %v12819_v13  ;;  %v12645_v13 = vcombine.low %v16167_v22, %v12550_v3 }
 0x35c   : > { %v3985_v54 = vpop.f32.mrf.mxu1  ;;  %v4982_v12 = vpop.f32.mrf.mxu0  ;;  %7858 = vmatpush2.bf16.msra.mxu1 %v14263_v10  ;;  %8855 = vmatpush2.bf16.msra.mxu0 %v14268_v56  ;;  %v12648_v56 = vcombine.high %v12551_v43, %v12552_v1  ;;  %v12825_v21 = vcombine.high %v12552_v1, %v16198_v8 }
 0x35d   : > { %v5163_v29 = vadd.f32 %v4980_v60, %v4166_v50  ;;  %7859 = vmatprep.subr.bf16.mxu1 %v14819_v2  ;;  %8856 = vmatprep.subr.bf16.mxu0 %v14819_v2  ;;  %v3370_v50 = vld [vmem:[#allocation2 + $0xf0] sm:$0xff] }
 0x35e   : > { %v3986_v16 = vpop.f32.mrf.mxu1  ;;  %v4983_v38 = vpop.f32.mrf.mxu0 }
 0x35f   : > { %v4167_v31 = vadd.f32 %v3986_v16, %v3365_v49  ;;  %5227 = vst [vmem:[#allocation2 + $0x1e8] sm:$0xff] %v5163_v29  ;;  %v16205_v29 = vld [vmem:[%s15095_s6 + $0x168] sm:$0xff]  ;;  %v14298_v49 = vld [vmem:[%s15006_s20 + $0x460] sm:$0xff]  }
 0x360   : > { %v3988_v27 = vpop.f32.mrf.mxu1  ;;  %v4985_v25 = vpop.f32.mrf.mxu0  ;;  %7860 = vmatpush2.bf16.msra.mxu1 %v14273_v17  ;;  %8857 = vmatpush2.bf16.msra.mxu0 %v14278_v33  ;;  %v12554_v33 = vld [vmem:[%s15095_s6 + $0x160] sm:$0xff] }
 0x361   : > { %v5164_v58 = vadd.f32 %v4983_v38, %v4167_v31  ;;  %7861 = vmatprep.subr.bf16.mxu1 %v14819_v2  ;;  %8858 = vmatprep.subr.bf16.mxu0 %v14819_v2  ;;  %v12650_v27 = vcombine.high %v16198_v8, %v12554_v33  ;;  %v12827_v25 = vcombine.high %v12554_v33, %v16205_v29 }
 0x362   : > { %v3991_v9 = vpop.f32.mrf.mxu1  ;;  %5920 = vmatmul.mubr.bf16.gmra.mxu1 %v12641_v55  ;;  %v4988_v46 = vpop.f32.mrf.mxu0  ;;  %6917 = vmatmul.mubr.bf16.gmra.mxu0 %v12818_v0  ;;  %v3371_v55 = vld [vmem:[#allocation2 + $0x8] sm:$0xff]  ;;  %v12647_v0 = vcombine.low %v12551_v43, %v12552_v1  ;;  %v12558_v43 = vld [vmem:[%s15095_s6 + $0x180] sm:$0xff] }
 0x363   : > { %v4168_v35 = vadd.f32 %v3991_v9, %v3366_v5  ;;  %5228 = vst [vmem:[#allocation2 + $0xf8] sm:$0xff] %v5164_v58  ;;  %5927 = vmatprep.mubr.bf16.mxu1 %v12644_v34  ;;  %6924 = vmatprep.mubr.bf16.mxu0 %v12821_v39  ;;  %v12824_v34 = vcombine.low %v12552_v1, %v16198_v8  ;;  %v3372_v9 = vld [vmem:[#allocation2 + $0x148] sm:$0xff] }
 0x364   : > { %v3993_v42 = vpop.f32.mrf.mxu1  ;;  %v4990_v45 = vpop.f32.mrf.mxu0  ;;  %7862 = vmatpush2.bf16.msra.mxu1 %v14283_v32  ;;  %8859 = vmatpush2.bf16.msra.mxu0 %v14288_v53  ;;  %v12556_v53 = vld [vmem:[%s15095_s6 + $0x170] sm:$0xff]  ;;  %v12735_v1 = vld [vmem:[%s15095_s6 + $0x188] sm:$0xff] }
 0x365   : > { %v5165_v40 = vadd.f32 %v4988_v46, %v4168_v35  ;;  %7863 = vmatprep.subr.bf16.mxu1 %v14819_v2  ;;  %8860 = vmatprep.subr.bf16.mxu0 %v14819_v2  ;;  %v14303_v45 = vld [vmem:[%s15006_s20 + $0x3d8] sm:$0xff]  }
 0x366   : > { %v3994_v18 = vpop.f32.mrf.mxu1  ;;  %v4991_v52 = vpop.f32.mrf.mxu0 }
 0x367   : > { %v4169_v48 = vadd.f32 %v3994_v18, %v3367_v59  ;;  %5229 = vst [vmem:[#allocation2 + $0x160] sm:$0xff] %v5165_v40  ;;  %v16215_v40 = vld [vmem:[%s15095_s6 + $0x178] sm:$0xff]  ;;  %v3373_v18 = vld [vmem:[#allocation2 + $0x1d0] sm:$0xff] }
 0x368   : > { %v3996_v47 = vpop.f32.mrf.mxu1  ;;  %v4993_v62 = vpop.f32.mrf.mxu0  ;;  %7864 = vmatpush2.bf16.msra.mxu1 %v14293_v6  ;;  %8861 = vmatpush2.bf16.msra.mxu0 %v14298_v49  ;;  %v12560_v49 = vld [vmem:[%s15095_s6 + $0x1e0] sm:$0xff] }
 0x369   : > { %v5166_v11 = vadd.f32 %v4991_v52, %v4169_v48  ;;  %7865 = vmatprep.subr.bf16.mxu1 %v14819_v2  ;;  %8862 = vmatprep.subr.bf16.mxu0 %v14819_v2  ;;  %v12649_v52 = vcombine.low %v16198_v8, %v12554_v33  ;;  %v12826_v48 = vcombine.low %v12554_v33, %v16205_v29  ;;  %v14308_v8 = vld [vmem:[%s15006_s20 + $0x458] sm:$0xff]  }
 0x36a   : > { %v3999_v7 = vpop.f32.mrf.mxu1  ;;  %5928 = vmatmul.mubr.bf16.gmra.mxu1 %v12643_v36  ;;  %v4996_v23 = vpop.f32.mrf.mxu0  ;;  %6925 = vmatmul.mubr.bf16.gmra.mxu0 %v12820_v41  ;;  %v12829_v47 = vcombine.high %v12556_v53, %v16215_v40 }
 0x36b   : > { %v4170_v24 = vadd.f32 %v3999_v7, %v3368_v26  ;;  %5230 = vst [vmem:[#allocation2 + $0x30] sm:$0xff] %v5166_v11  ;;  %5935 = vmatprep.mubr.bf16.mxu1 %v12646_v37  ;;  %6932 = vmatprep.mubr.bf16.mxu0 %v12823_v44  ;;  %v12652_v44 = vcombine.high %v16205_v29, %v12556_v53  ;;  %v3374_v7 = vld [vmem:[#allocation2 + $0x100] sm:$0xff] }
 0x36c   : > { %v4001_v14 = vpop.f32.mrf.mxu1  ;;  %v4998_v57 = vpop.f32.mrf.mxu0  ;;  %7866 = vmatpush2.bf16.msra.mxu1 %v14303_v45  ;;  %8863 = vmatpush2.bf16.msra.mxu0 %v14308_v8  ;;  %v12564_v8 = vld [vmem:[%s15095_s6 + $0x200] sm:$0xff] }
 0x36d   : > { %v5167_v19 = vadd.f32 %v4996_v23, %v4170_v24  ;;  %7867 = vmatprep.subr.bf16.mxu1 %v14819_v2  ;;  %8864 = vmatprep.subr.bf16.mxu0 %v14819_v2 }
 0x36e   : > { %v4002_v63 = vpop.f32.mrf.mxu1  ;;  %v4999_v20 = vpop.f32.mrf.mxu0 }
 0x36f   : > { %v4171_v10 = vadd.f32 %v4002_v63, %v3369_v28  ;;  %5231 = vst [vmem:[#allocation2 + $0x1e0] sm:$0xff] %v5167_v19  ;;  %v3375_v28 = vld [vmem:[#allocation2 + $0xc8] sm:$0xff] }
 0x370   : > { %v4004_v4 = vpop.f32.mrf.mxu1  ;;  %v5001_v15 = vpop.f32.mrf.mxu0 }
 0x371   : > { %v5168_v60 = vadd.f32 %v4999_v20, %v4171_v10 }
 0x372   : > { %v4007_v61 = vpop.f32.mrf.mxu1  ;;  %5936 = vmatmul.mubr.bf16.gmra.mxu1 %v12645_v13  ;;  %v5004_v54 = vpop.f32.mrf.mxu0  ;;  %6933 = vmatmul.mubr.bf16.gmra.mxu0 %v12822_v30  ;;  %v12651_v13 = vcombine.low %v16205_v29, %v12556_v53  ;;  %v12828_v30 = vcombine.low %v12556_v53, %v16215_v40  ;;  %v12559_v29 = vld [vmem:[%s15095_s6 + $0x1d8] sm:$0xff]  ;;  %v12562_v53 = vld [vmem:[%s15095_s6 + $0x1f0] sm:$0xff] }
 0x373   : > { %v4172_v12 = vadd.f32 %v4007_v61, %v3370_v50  ;;  %5232 = vst [vmem:[#allocation2] sm:$0xff] %v5168_v60  ;;  %5943 = vmatprep.mubr.bf16.mxu1 %v12648_v56  ;;  %6940 = vmatprep.mubr.bf16.mxu0 %v12825_v21  ;;  %v12654_v56 = vcombine.high %v16215_v40, %v12558_v43  ;;  %v3376_v50 = vld [vmem:[#allocation2 + $0x40] sm:$0xff] }
 0x374   : > { %v4009_v22 = vpop.f32.mrf.mxu1  ;;  %v5006_v17 = vpop.f32.mrf.mxu0  ;;  %v12831_v21 = vcombine.high %v12558_v43, %v12735_v1 }
 0x375   : > { %v5169_v16 = vadd.f32 %v5004_v54, %v4172_v12  ;;  %v14313_v22 = vld [vmem:[%s15006_s20 + $0x3d0] sm:$0xff]  }
 0x376   : > { %v4010_v38 = vpop.f32.mrf.mxu1  ;;  %v5007_v31 = vpop.f32.mrf.mxu0  ;;  %7868 = vmatpush2.bf16.msra.mxu1 %v14313_v22 }
 0x377   : > { %v4173_v39 = vadd.f32 %v4010_v38, %v3371_v55  ;;  %5233 = vst [vmem:[#allocation2 + $0xf0] sm:$0xff] %v5169_v16  ;;  %v16233_v16 = vld [vmem:[%s15095_s6 + $0x1e8] sm:$0xff]  ;;  %v3377_v38 = vld [vmem:[#allocation2 + $0x1f8] sm:$0xff]  ;;  %7869 = vmatprep.subr.bf16.mxu1 %v14819_v2 }
 0x378   : > { %v4012_v32 = vpop.f32.mrf.mxu1  ;;  %v5009_v58 = vpop.f32.mrf.mxu0 }
 0x379   : > { %v5170_v5 = vadd.f32 %v5007_v31, %v4173_v39  ;;  %v12653_v31 = vcombine.low %v16215_v40, %v12558_v43  ;;  %v12830_v39 = vcombine.low %v12558_v43, %v12735_v1  ;;  %v12833_v32 = vcombine.high %v12560_v49, %v16233_v16  ;;  %v16240_v40 = vld [vmem:[%s15095_s6 + $0x1f8] sm:$0xff] }
 0x37a   : > { %v4015_v46 = vpop.f32.mrf.mxu1  ;;  %5944 = vmatmul.mubr.bf16.gmra.mxu1 %v12647_v0  ;;  %v5012_v35 = vpop.f32.mrf.mxu0  ;;  %6941 = vmatmul.mubr.bf16.gmra.mxu0 %v12824_v34 }
 0x37b   : > { %v4174_v42 = vadd.f32 %v4015_v46, %v3372_v9  ;;  %5234 = vst [vmem:[#allocation2 + $0x8] sm:$0xff] %v5170_v5  ;;  %5951 = vmatprep.mubr.bf16.mxu1 %v12650_v27  ;;  %6948 = vmatprep.mubr.bf16.mxu0 %v12827_v25  ;;  %v12656_v25 = vcombine.high %v12559_v29, %v12560_v49  ;;  %v3378_v46 = vld [vmem:[#allocation2 + $0x20] sm:$0xff] }
 0x37c   : > { %v4017_v3 = vpop.f32.mrf.mxu1  ;;  %v5014_v51 = vpop.f32.mrf.mxu0 }
 0x37d   : > { %v5171_v59 = vadd.f32 %v5012_v35, %v4174_v42 }
 0x37e   : > { %v4018_v36 = vpop.f32.mrf.mxu1  ;;  %v5015_v41 = vpop.f32.mrf.mxu0 }
 0x37f   : > { %v4175_v37 = vadd.f32 %v4018_v36, %v3373_v18  ;;  %5235 = vst [vmem:[#allocation2 + $0x148] sm:$0xff] %v5171_v59  ;;  %v14318_v59 = vld [vmem:[%s15006_s20 + $0x450] sm:$0xff]   ;;  %v3379_v36 = vld [vmem:[#allocation2 + $0x128] sm:$0xff] }
 0x380   : > { %v4020_v62 = vpop.f32.mrf.mxu1  ;;  %v5017_v11 = vpop.f32.mrf.mxu0  ;;  %8865 = vmatpush2.bf16.msra.mxu0 %v14318_v59  ;;  %v12568_v59 = vld [vmem:[%s15095_s6 + $0x270] sm:$0xff] }
 0x381   : > { %v5172_v26 = vadd.f32 %v5015_v41, %v4175_v37  ;;  %v12655_v41 = vcombine.low %v12559_v29, %v12560_v49  ;;  %v12832_v37 = vcombine.low %v12560_v49, %v16233_v16  ;;  %v12835_v62 = vcombine.high %v12562_v53, %v16240_v40  ;;  %8866 = vmatprep.subr.bf16.mxu0 %v14819_v2  ;;  %v12566_v29 = vld [vmem:[%s15095_s6 + $0x210] sm:$0xff]  ;;  %v12743_v49 = vld [vmem:[%s15095_s6 + $0x218] sm:$0xff] }
 0x382   : > { %v4023_v23 = vpop.f32.mrf.mxu1  ;;  %5952 = vmatmul.mubr.bf16.gmra.mxu1 %v12649_v52  ;;  %v5020_v24 = vpop.f32.mrf.mxu0  ;;  %6949 = vmatmul.mubr.bf16.gmra.mxu0 %v12826_v48 }
 0x383   : > { %v4176_v6 = vadd.f32 %v4023_v23, %v3374_v7  ;;  %5236 = vst [vmem:[#allocation2 + $0x1d0] sm:$0xff] %v5172_v26  ;;  %5959 = vmatprep.mubr.bf16.mxu1 %v12652_v44  ;;  %6956 = vmatprep.mubr.bf16.mxu0 %v12829_v47  ;;  %v12658_v47 = vcombine.high %v16233_v16, %v12562_v53  ;;  %v3380_v23 = vld [vmem:[#allocation2 + $0x1a0] sm:$0xff] }
 0x384   : > { %v4025_v14 = vpop.f32.mrf.mxu1  ;;  %v5022_v57 = vpop.f32.mrf.mxu0 }
 0x385   : > { %v5173_v19 = vadd.f32 %v5020_v24, %v4176_v6  ;;  %v14323_v57 = vld [vmem:[%s15006_s20 + $0x3c8] sm:$0xff]  }
 0x386   : > { %v4026_v63 = vpop.f32.mrf.mxu1  ;;  %v5023_v20 = vpop.f32.mrf.mxu0  ;;  %7870 = vmatpush2.bf16.msra.mxu1 %v14323_v57 }
 0x387   : > { %v4177_v10 = vadd.f32 %v4026_v63, %v3375_v28  ;;  %5237 = vst [vmem:[#allocation2 + $0x100] sm:$0xff] %v5173_v19  ;;  %v16250_v19 = vld [vmem:[%s15095_s6 + $0x208] sm:$0xff]  ;;  %v3381_v63 = vld [vmem:[#allocation2 + $0x1f0] sm:$0xff]  ;;  %7871 = vmatprep.subr.bf16.mxu1 %v14819_v2 }
 0x388   : > { %v4028_v4 = vpop.f32.mrf.mxu1  ;;  %v5025_v15 = vpop.f32.mrf.mxu0 }
 0x389   : > { %v5174_v60 = vadd.f32 %v5023_v20, %v4177_v10  ;;  %v12657_v20 = vcombine.low %v16233_v16, %v12562_v53  ;;  %v12834_v10 = vcombine.low %v12562_v53, %v16240_v40  ;;  %v12837_v4 = vcombine.high %v12564_v8, %v16250_v19  ;;  %v14328_v16 = vld [vmem:[%s15006_s20 + $0x448] sm:$0xff]  }
 0x38a   : > { %v4031_v61 = vpop.f32.mrf.mxu1  ;;  %5960 = vmatmul.mubr.bf16.gmra.mxu1 %v12651_v13  ;;  %v5028_v54 = vpop.f32.mrf.mxu0  ;;  %6957 = vmatmul.mubr.bf16.gmra.mxu0 %v12828_v30 }
 0x38b   : > { %v4178_v12 = vadd.f32 %v4031_v61, %v3376_v50  ;;  %5238 = vst [vmem:[#allocation2 + $0xc8] sm:$0xff] %v5174_v60  ;;  %5967 = vmatprep.mubr.bf16.mxu1 %v12654_v56  ;;  %6964 = vmatprep.mubr.bf16.mxu0 %v12831_v21  ;;  %v12660_v21 = vcombine.high %v16240_v40, %v12564_v8  ;;  %v3382_v61 = vld [vmem:[#allocation2 + $0xe8] sm:$0xff] }
 0x38c   : > { %v4033_v17 = vpop.f32.mrf.mxu1  ;;  %v5030_v33 = vpop.f32.mrf.mxu0  ;;  %8867 = vmatpush2.bf16.msra.mxu0 %v14328_v16  ;;  %v16284_v16 = vld [vmem:[%s15095_s6 + $0x298] sm:$0xff] }
 0x38d   : > { %v5175_v55 = vadd.f32 %v5028_v54, %v4178_v12  ;;  %8868 = vmatprep.subr.bf16.mxu0 %v14819_v2 }
 0x38e   : > { %v4034_v0 = vpop.f32.mrf.mxu1  ;;  %v5031_v34 = vpop.f32.mrf.mxu0 }
 0x38f   : > { %v4179_v27 = vadd.f32 %v4034_v0, %v3377_v38  ;;  %5239 = vst [vmem:[#allocation2 + $0x40] sm:$0xff] %v5175_v55  ;;  %v3383_v38 = vld [vmem:[#allocation2 + $0x78] sm:$0xff] }
 0x390   : > { %v4036_v58 = vpop.f32.mrf.mxu1  ;;  %v5033_v5 = vpop.f32.mrf.mxu0 }
 0x391   : > { %v5176_v9 = vadd.f32 %v5031_v34, %v4179_v27 }
 0x392   : > { %v4039_v35 = vpop.f32.mrf.mxu1  ;;  %5968 = vmatmul.mubr.bf16.gmra.mxu1 %v12653_v31  ;;  %v5036_v42 = vpop.f32.mrf.mxu0  ;;  %6965 = vmatmul.mubr.bf16.gmra.mxu0 %v12830_v39  ;;  %v12659_v31 = vcombine.low %v16240_v40, %v12564_v8  ;;  %v12836_v39 = vcombine.low %v12564_v8, %v16250_v19  ;;  %v12567_v40 = vld [vmem:[%s15095_s6 + $0x268] sm:$0xff]  ;;  %v12570_v8 = vld [vmem:[%s15095_s6 + $0x280] sm:$0xff] }
 0x393   : > { %v4180_v45 = vadd.f32 %v4039_v35, %v3378_v46  ;;  %5240 = vst [vmem:[#allocation2 + $0x1f8] sm:$0xff] %v5176_v9  ;;  %5975 = vmatprep.mubr.bf16.mxu1 %v12656_v25  ;;  %6972 = vmatprep.mubr.bf16.mxu0 %v12833_v32  ;;  %v12662_v25 = vcombine.high %v16250_v19, %v12566_v29  ;;  %v3384_v46 = vld [vmem:[#allocation2 + $0x70] sm:$0xff] }
 0x394   : > { %v4041_v3 = vpop.f32.mrf.mxu1  ;;  %v5038_v51 = vpop.f32.mrf.mxu0  ;;  %v12839_v32 = vcombine.high %v12566_v29, %v12743_v49 }
 0x395   : > { %v5177_v18 = vadd.f32 %v5036_v42, %v4180_v45  ;;  %v14333_v3 = vld [vmem:[%s15006_s20 + $0x3c0] sm:$0xff]  }
 0x396   : > { %v4042_v52 = vpop.f32.mrf.mxu1  ;;  %v5039_v48 = vpop.f32.mrf.mxu0  ;;  %7872 = vmatpush2.bf16.msra.mxu1 %v14333_v3 }
 0x397   : > { %v4181_v44 = vadd.f32 %v4042_v52, %v3379_v36  ;;  %5241 = vst [vmem:[#allocation2 + $0x20] sm:$0xff] %v5177_v18  ;;  %v16268_v18 = vld [vmem:[%s15095_s6 + $0x278] sm:$0xff]  ;;  %v3385_v52 = vld [vmem:[#allocation2 + $0x90] sm:$0xff]  ;;  %9835 = vmatprep.subr.bf16.mxu1 %v14819_v2 }
 0x398   : > { %v4044_v11 = vpop.f32.mrf.mxu1  ;;  %v5041_v26 = vpop.f32.mrf.mxu0 }
 0x399   : > { %v5178_v7 = vadd.f32 %v5039_v48, %v4181_v44  ;;  %v12661_v48 = vcombine.low %v16250_v19, %v12566_v29  ;;  %v12838_v44 = vcombine.low %v12566_v29, %v12743_v49  ;;  %v12841_v11 = vcombine.high %v12568_v59, %v16268_v18  ;;  %v16275_v19 = vld [vmem:[%s15095_s6 + $0x288] sm:$0xff]  ;;  %v12572_v49 = vld [vmem:[%s15095_s6 + $0x290] sm:$0xff] }
 0x39a   : > { %v4047_v24 = vpop.f32.mrf.mxu1  ;;  %5976 = vmatmul.mubr.bf16.gmra.mxu1 %v12655_v41  ;;  %v5044_v6 = vpop.f32.mrf.mxu0  ;;  %6973 = vmatmul.mubr.bf16.gmra.mxu0 %v12832_v37 }
 0x39b   : > { %v4182_v14 = vadd.f32 %v4047_v24, %v3380_v23  ;;  %5242 = vst [vmem:[#allocation2 + $0x128] sm:$0xff] %v5178_v7  ;;  %5983 = vmatprep.mubr.bf16.mxu1 %v12658_v47  ;;  %6980 = vmatprep.mubr.bf16.mxu0 %v12835_v62  ;;  %v12664_v62 = vcombine.high %v12567_v40, %v12568_v59  ;;  %v3386_v24 = vld [vmem:[#allocation2 + $0x1d8] sm:$0xff] }
 0x39c   : > { %v4049_v43 = vpop.f32.mrf.mxu1  ;;  %v5046_v1 = vpop.f32.mrf.mxu0 }
 0x39d   : > { %v5179_v28 = vadd.f32 %v5044_v6, %v4182_v14 }
 0x39e   : > { %v4050_v13 = vpop.f32.mrf.mxu1  ;;  %v5047_v30 = vpop.f32.mrf.mxu0 }
 0x39f   : > { %v4183_v56 = vadd.f32 %v4050_v13, %v3381_v63  ;;  %5243 = vst [vmem:[#allocation2 + $0x1a0] sm:$0xff] %v5179_v28  ;;  %v14338_v28 = vld [vmem:[%s15006_s20 + $0x440] sm:$0xff]   ;;  %v3387_v13 = vld [vmem:[#allocation2 + $0xd0] sm:$0xff] }
 0x3a0   : > { %v4052_v15 = vpop.f32.mrf.mxu1  ;;  %v5049_v60 = vpop.f32.mrf.mxu0  ;;  %8869 = vmatpush2.bf16.msra.mxu0 %v14338_v28  ;;  %v3393_v28 = vld [vmem:[#allocation2 + $0x178] sm:$0xff] }
 0x3a1   : > { %v5180_v50 = vadd.f32 %v5047_v30, %v4183_v56  ;;  %v12663_v30 = vcombine.low %v12567_v40, %v12568_v59  ;;  %v12840_v56 = vcombine.low %v12568_v59, %v16268_v18  ;;  %v12843_v15 = vcombine.high %v12570_v8, %v16275_v19  ;;  %10832 = vmatprep.subr.bf16.mxu0 %v14819_v2  ;;  %v12751_v40 = vld [vmem:[%s15095_s6 + $0x2a8] sm:$0xff] }
 0x3a2   : > { %v4055_v54 = vpop.f32.mrf.mxu1  ;;  %5984 = vmatmul.mubr.bf16.gmra.mxu1 %v12657_v20  ;;  %v5052_v12 = vpop.f32.mrf.mxu0  ;;  %6981 = vmatmul.mubr.bf16.gmra.mxu0 %v12834_v10 }
 0x3a3   : > { %v4184_v22 = vadd.f32 %v4055_v54, %v3382_v61  ;;  %5244 = vst [vmem:[#allocation2 + $0x1f0] sm:$0xff] %v5180_v50  ;;  %5991 = vmatprep.mubr.bf16.mxu1 %v12660_v21  ;;  %6988 = vmatprep.mubr.bf16.mxu0 %v12837_v4  ;;  %v12666_v4 = vcombine.high %v16268_v18, %v12570_v8  ;;  %v3388_v54 = vld [vmem:[#allocation2 + $0xb8] sm:$0xff] }
 0x3a4   : > { %v4057_v17 = vpop.f32.mrf.mxu1  ;;  %v5054_v33 = vpop.f32.mrf.mxu0 }
 0x3a5   : > { %v5181_v55 = vadd.f32 %v5052_v12, %v4184_v22 }
 0x3a6   : > { %v4058_v0 = vpop.f32.mrf.mxu1  ;;  %v5055_v34 = vpop.f32.mrf.mxu0 }
 0x3a7   : > { %v4185_v27 = vadd.f32 %v4058_v0, %v3383_v38  ;;  %5245 = vst [vmem:[#allocation2 + $0xe8] sm:$0xff] %v5181_v55  ;;  %v3389_v38 = vld [vmem:[#allocation2 + $0x88] sm:$0xff] }
 0x3a8   : > { %v4060_v58 = vpop.f32.mrf.mxu1  ;;  %v5057_v5 = vpop.f32.mrf.mxu0 }
 0x3a9   : > { %v5182_v9 = vadd.f32 %v5055_v34, %v4185_v27 }
 0x3aa   : > { %v4063_v35 = vpop.f32.mrf.mxu1  ;;  %5992 = vmatmul.mubr.bf16.gmra.mxu1 %v12659_v31  ;;  %v5060_v42 = vpop.f32.mrf.mxu0  ;;  %6989 = vmatmul.mubr.bf16.gmra.mxu0 %v12836_v39  ;;  %v12665_v31 = vcombine.low %v16268_v18, %v12570_v8  ;;  %v12842_v39 = vcombine.low %v12570_v8, %v16275_v19  ;;  %v3391_v18 = vld [vmem:[#allocation2 + $0x1c8] sm:$0xff] }
 0x3ab   : > { %v4186_v45 = vadd.f32 %v4063_v35, %v3384_v46  ;;  %5246 = vst [vmem:[#allocation2 + $0x78] sm:$0xff] %v5182_v9  ;;  %5999 = vmatprep.mubr.bf16.mxu1 %v12662_v25  ;;  %6996 = vmatprep.mubr.bf16.mxu0 %v12839_v32  ;;  %v12668_v25 = vcombine.high %v16275_v19, %v12572_v49  ;;  %v3390_v46 = vld [vmem:[#allocation2 + $0xa8] sm:$0xff] }
 0x3ac   : > { %v4065_v51 = vpop.f32.mrf.mxu1  ;;  %v5062_v53 = vpop.f32.mrf.mxu0  ;;  %v12845_v32 = vcombine.high %v12572_v49, %v16284_v16  ;;  %v16298_v8 = vld [vmem:[%s15095_s6 + $0x308] sm:$0xff] }
 0x3ad   : > { %v5183_v36 = vadd.f32 %v5060_v42, %v4186_v45  ;;  %v12574_v53 = vld [vmem:[%s15095_s6 + $0x2a0] sm:$0xff] }
 0x3ae   : > { %v4066_v41 = vpop.f32.mrf.mxu1  ;;  %v5063_v37 = vpop.f32.mrf.mxu0 }
 0x3af   : > { %v4187_v47 = vadd.f32 %v4066_v41, %v3385_v52  ;;  %5247 = vst [vmem:[#allocation2 + $0x70] sm:$0xff] %v5183_v36  ;;  %v12667_v52 = vcombine.low %v16275_v19, %v12572_v49 }
 0x3b0   : > { %v4068_v26 = vpop.f32.mrf.mxu1  ;;  %v5065_v7 = vpop.f32.mrf.mxu0 }
 0x3b1   : > { %v5184_v23 = vadd.f32 %v5063_v37, %v4187_v47  ;;  %v12847_v47 = vcombine.high %v12574_v53, %v12751_v40  ;;  %v3392_v7 = vld [vmem:[#allocation2 + $0x170] sm:$0xff] }
 0x3b2   : > { %v4071_v6 = vpop.f32.mrf.mxu1  ;;  %6000 = vmatmul.mubr.bf16.gmra.mxu1 %v12661_v48  ;;  %v5068_v14 = vpop.f32.mrf.mxu0  ;;  %6997 = vmatmul.mubr.bf16.gmra.mxu0 %v12838_v44  ;;  %v12844_v48 = vcombine.low %v12572_v49, %v16284_v16  ;;  %v12670_v44 = vcombine.high %v16284_v16, %v12574_v53 }
 0x3b3   : > { %v4188_v57 = vadd.f32 %v4071_v6, %v3386_v24  ;;  %5248 = vst [vmem:[#allocation2 + $0x90] sm:$0xff] %v5184_v23  ;;  %6007 = vmatprep.mubr.bf16.mxu1 %v12664_v62  ;;  %7004 = vmatprep.mubr.bf16.mxu0 %v12841_v11 }
 0x3b4   : > { %v4073_v43 = vpop.f32.mrf.mxu1  ;;  %v5070_v1 = vpop.f32.mrf.mxu0 }
 0x3b5   : > { %v5185_v63 = vadd.f32 %v5068_v14, %v4188_v57  ;;  %v12575_v43 = vld [vmem:[%s15095_s6 + $0x2f8] sm:$0xff]  ;;  %v12576_v1 = vld [vmem:[%s15095_s6 + $0x300] sm:$0xff] }
 0x3b6   : > { %v4074_v20 = vpop.f32.mrf.mxu1  ;;  %v5071_v10 = vpop.f32.mrf.mxu0 }
 0x3b7   : > { %v4189_v21 = vadd.f32 %v4074_v20, %v3387_v13  ;;  %5249 = vst [vmem:[#allocation2 + $0x1d8] sm:$0xff] %v5185_v63  ;;  %v12669_v13 = vcombine.low %v16284_v16, %v12574_v53  ;;  %v3395_v16 = vld [vmem:[#allocation2 + $0x190] sm:$0xff] }
 0x3b8   : > { %v4076_v60 = vpop.f32.mrf.mxu1  ;;  %v5073_v50 = vpop.f32.mrf.mxu0 }
 0x3b9   : > { %v5186_v61 = vadd.f32 %v5071_v10, %v4189_v21  ;;  %v12849_v21 = vcombine.high %v12576_v1, %v16298_v8  ;;  %v3394_v50 = vld [vmem:[#allocation2 + $0x68] sm:$0xff] }
 0x3ba   : > { %v4079_v12 = vpop.f32.mrf.mxu1  ;;  %6008 = vmatmul.mubr.bf16.gmra.mxu1 %v12663_v30  ;;  %v5076_v22 = vpop.f32.mrf.mxu0  ;;  %7005 = vmatmul.mubr.bf16.gmra.mxu0 %v12840_v56  ;;  %v12846_v30 = vcombine.low %v12574_v53, %v12751_v40  ;;  %v12672_v56 = vcombine.high %v12575_v43, %v12576_v1  ;;  %v3397_v40 = vld [vmem:[#allocation2 + $0x38] sm:$0xff] }
 0x3bb   : > { %v4190_v17 = vadd.f32 %v4079_v12, %v3388_v54  ;;  %5250 = vst [vmem:[#allocation2 + $0xd0] sm:$0xff] %v5186_v61  ;;  %6015 = vmatprep.mubr.bf16.mxu1 %v12666_v4  ;;  %7012 = vmatprep.mubr.bf16.mxu0 %v12843_v15 }
 0x3bc   : > { %v4081_v33 = vpop.f32.mrf.mxu1  ;;  %v5078_v29 = vpop.f32.mrf.mxu0 }
 0x3bd   : > { %v5187_v55 = vadd.f32 %v5076_v22, %v4190_v17  ;;  %v12578_v33 = vld [vmem:[%s15095_s6 + $0x310] sm:$0xff]  ;;  %v16304_v29 = vld [vmem:[%s15095_s6 + $0x318] sm:$0xff] }
 0x3be   : > { %v4082_v0 = vpop.f32.mrf.mxu1  ;;  %v5079_v34 = vpop.f32.mrf.mxu0 }
 0x3bf   : > { %v4191_v27 = vadd.f32 %v4082_v0, %v3389_v38  ;;  %5251 = vst [vmem:[#allocation2 + $0xb8] sm:$0xff] %v5187_v55  ;;  %v12671_v38 = vcombine.low %v12575_v43, %v12576_v1 }
 0x3c0   : > { %v4084_v58 = vpop.f32.mrf.mxu1  ;;  %v5081_v5 = vpop.f32.mrf.mxu0 }
 0x3c1   : > { %v5188_v9 = vadd.f32 %v5079_v34, %v4191_v27  ;;  %v12851_v27 = vcombine.high %v12578_v33, %v16304_v29  ;;  %v3396_v5 = vld [vmem:[#allocation2 + $0x198] sm:$0xff] }
 0x3c2   : > { %v4087_v35 = vpop.f32.mrf.mxu1  ;;  %6016 = vmatmul.mubr.bf16.gmra.mxu1 %v12665_v31  ;;  %v5084_v42 = vpop.f32.mrf.mxu0  ;;  %7013 = vmatmul.mubr.bf16.gmra.mxu0 %v12842_v39  ;;  %v12848_v31 = vcombine.low %v12576_v1, %v16298_v8  ;;  %v12674_v39 = vcombine.high %v16298_v8, %v12578_v33  ;;  %v3399_v1 = vld [vmem:[#allocation2 + $0x1c0] sm:$0xff] }
 0x3c3   : > { %v4192_v45 = vadd.f32 %v4087_v35, %v3390_v46  ;;  %5252 = vst [vmem:[#allocation2 + $0x88] sm:$0xff] %v5188_v9  ;;  %6023 = vmatprep.mubr.bf16.mxu1 %v12668_v25  ;;  %7020 = vmatprep.mubr.bf16.mxu0 %v12845_v32 }
 0x3c4   : > { %v4089_v3 = vpop.f32.mrf.mxu1  ;;  %v5086_v51 = vpop.f32.mrf.mxu0 }
 0x3c5   : > { %v5189_v59 = vadd.f32 %v5084_v42, %v4192_v45  ;;  %v12580_v3 = vld [vmem:[%s15095_s6 + $0x320] sm:$0xff]  ;;  %v16311_v51 = vld [vmem:[%s15095_s6 + $0x328] sm:$0xff] }
 0x3c6   : > { %v4090_v36 = vpop.f32.mrf.mxu1  ;;  %v5087_v41 = vpop.f32.mrf.mxu0 }
 0x3c7   : > { %v4193_v37 = vadd.f32 %v4090_v36, %v3391_v18  ;;  %5253 = vst [vmem:[#allocation2 + $0xa8] sm:$0xff] %v5189_v59  ;;  %v12673_v18 = vcombine.low %v16298_v8, %v12578_v33 }
 0x3c8   : > { %v4092_v62 = vpop.f32.mrf.mxu1  ;;  %v5089_v11 = vpop.f32.mrf.mxu0 }
 0x3c9   : > { %v5190_v26 = vadd.f32 %v5087_v41, %v4193_v37  ;;  %v12853_v37 = vcombine.high %v12580_v3, %v16311_v51  ;;  %v3398_v11 = vld [vmem:[#allocation2 + $0xc0] sm:$0xff] }
 0x3ca   : > { %v4095_v23 = vpop.f32.mrf.mxu1  ;;  %6024 = vmatmul.mubr.bf16.gmra.mxu1 %v12667_v52  ;;  %v5092_v24 = vpop.f32.mrf.mxu0  ;;  %7021 = vmatmul.mubr.bf16.gmra.mxu0 %v12844_v48  ;;  %v12850_v52 = vcombine.low %v12578_v33, %v16304_v29  ;;  %v12676_v48 = vcombine.high %v16304_v29, %v12580_v3 }
 0x3cb   : > { %v4194_v6 = vadd.f32 %v4095_v23, %v3392_v7  ;;  %5254 = vst [vmem:[#allocation2 + $0x1c8] sm:$0xff] %v5190_v26  ;;  %6031 = vmatprep.mubr.bf16.mxu1 %v12670_v44  ;;  %7028 = vmatprep.mubr.bf16.mxu0 %v12847_v47 }
 0x3cc   : > { %v4097_v14 = vpop.f32.mrf.mxu1  ;;  %v5094_v57 = vpop.f32.mrf.mxu0 }
 0x3cd   : > { %v5191_v19 = vadd.f32 %v5092_v24, %v4194_v6  ;;  %v12582_v14 = vld [vmem:[%s15095_s6 + $0x330] sm:$0xff]  ;;  %v12759_v57 = vld [vmem:[%s15095_s6 + $0x338] sm:$0xff] }
 0x3ce   : > { %v4098_v63 = vpop.f32.mrf.mxu1  ;;  %v5095_v20 = vpop.f32.mrf.mxu0 }
 0x3cf   : > { %v4195_v10 = vadd.f32 %v4098_v63, %v3393_v28  ;;  %5255 = vst [vmem:[#allocation2 + $0x170] sm:$0xff] %v5191_v19  ;;  %v12675_v19 = vcombine.low %v16304_v29, %v12580_v3  ;;  %v12852_v63 = vcombine.low %v12580_v3, %v16311_v51  ;;  %v3401_v29 = vld [vmem:[#allocation2 + $0x10] sm:$0xff] }
 0x3d0   : > { %v4100_v4 = vpop.f32.mrf.mxu1  ;;  %v5097_v15 = vpop.f32.mrf.mxu0 }
 0x3d1   : > { %v5192_v60 = vadd.f32 %v5095_v20, %v4195_v10  ;;  %v12678_v20 = vcombine.high %v16311_v51, %v12582_v14  ;;  %v3400_v4 = vld [vmem:[#allocation2 + $0x158] sm:$0xff] }
 0x3d2   : > { %v4103_v61 = vpop.f32.mrf.mxu1  ;;  %6032 = vmatmul.mubr.bf16.gmra.mxu1 %v12669_v13  ;;  %v5100_v54 = vpop.f32.mrf.mxu0  ;;  %7029 = vmatmul.mubr.bf16.gmra.mxu0 %v12846_v30  ;;  %v12855_v30 = vcombine.high %v12582_v14, %v12759_v57 }
 0x3d3   : > { %v4196_v12 = vadd.f32 %v4103_v61, %v3394_v50  ;;  %5256 = vst [vmem:[#allocation2 + $0x178] sm:$0xff] %v5192_v60  ;;  %6039 = vmatprep.mubr.bf16.mxu1 %v12672_v56  ;;  %7036 = vmatprep.mubr.bf16.mxu0 %v12849_v21 }
 0x3d4   : > { %v4105_v22 = vpop.f32.mrf.mxu1  ;;  %v5102_v17 = vpop.f32.mrf.mxu0 }
 0x3d5   : > { %v5193_v49 = vadd.f32 %v5100_v54, %v4196_v12  ;;  %v12583_v12 = vld [vmem:[%s15095_s6 + $0x388] sm:$0xff]  ;;  %v12584_v22 = vld [vmem:[%s15095_s6 + $0x390] sm:$0xff]  ;;  %v16325_v17 = vld [vmem:[%s15095_s6 + $0x398] sm:$0xff] }
 0x3d6   : > { %v4106_v55 = vpop.f32.mrf.mxu1  ;;  %v5103_v0 = vpop.f32.mrf.mxu0 }
 0x3d7   : > { %v4197_v34 = vadd.f32 %v4106_v55, %v3395_v16  ;;  %5257 = vst [vmem:[#allocation2 + $0x68] sm:$0xff] %v5193_v49  ;;  %v12677_v16 = vcombine.low %v16311_v51, %v12582_v14  ;;  %v3403_v51 = vld [vmem:[#allocation2 + $0xa0] sm:$0xff] }
 0x3d8   : > { %v4108_v25 = vpop.f32.mrf.mxu1  ;;  %v5105_v32 = vpop.f32.mrf.mxu0 }
 0x3d9   : > { %v5194_v58 = vadd.f32 %v5103_v0, %v4197_v34  ;;  %v12857_v34 = vcombine.high %v12584_v22, %v16325_v17  ;;  %v3402_v32 = vld [vmem:[#allocation2 + $0x58] sm:$0xff] }
 0x3da   : > { %v4111_v9 = vpop.f32.mrf.mxu1  ;;  %6040 = vmatmul.mubr.bf16.gmra.mxu1 %v12671_v38  ;;  %v5108_v46 = vpop.f32.mrf.mxu0  ;;  %7037 = vmatmul.mubr.bf16.gmra.mxu0 %v12848_v31  ;;  %v12854_v38 = vcombine.low %v12582_v14, %v12759_v57  ;;  %v12680_v31 = vcombine.high %v12583_v12, %v12584_v22  ;;  %v5335_v57 = vld [vmem:[#allocation2 + $0x1b0] sm:$0xff] }
 0x3db   : > { %v4198_v35 = vadd.f32 %v4111_v9, %v3396_v5  ;;  %5258 = vst [vmem:[#allocation2 + $0x190] sm:$0xff] %v5194_v58  ;;  %6047 = vmatprep.mubr.bf16.mxu1 %v12674_v39  ;;  %7044 = vmatprep.mubr.bf16.mxu0 %v12851_v27 }
 0x3dc   : > { %v4113_v42 = vpop.f32.mrf.mxu1  ;;  %v5110_v45 = vpop.f32.mrf.mxu0 }
 0x3dd   : > { %v5195_v53 = vadd.f32 %v5108_v46, %v4198_v35  ;;  %v12586_v42 = vld [vmem:[%s15095_s6 + $0x3a0] sm:$0xff]  ;;  %v16331_v45 = vld [vmem:[%s15095_s6 + $0x3a8] sm:$0xff] }
 0x3de   : > { %v4114_v59 = vpop.f32.mrf.mxu1  ;;  %v5111_v36 = vpop.f32.mrf.mxu0 }
 0x3df   : > { %v4199_v41 = vadd.f32 %v4114_v59, %v3397_v40  ;;  %5259 = vst [vmem:[#allocation2 + $0x198] sm:$0xff] %v5195_v53  ;;  %v12679_v40 = vcombine.low %v12583_v12, %v12584_v22 }
 0x3e0   : > { %v4116_v44 = vpop.f32.mrf.mxu1  ;;  %v5113_v47 = vpop.f32.mrf.mxu0 }
 0x3e1   : > { %v5196_v62 = vadd.f32 %v5111_v36, %v4199_v41  ;;  %v12859_v41 = vcombine.high %v12586_v42, %v16331_v45  ;;  %v5334_v47 = vld [vmem:[#allocation2 + $0xb0] sm:$0xff] }
 0x3e2   : > { %v4119_v26 = vpop.f32.mrf.mxu1  ;;  %6048 = vmatmul.mubr.bf16.gmra.mxu1 %v12673_v18  ;;  %v5116_v7 = vpop.f32.mrf.mxu0  ;;  %7045 = vmatmul.mubr.bf16.gmra.mxu0 %v12850_v52  ;;  %v12856_v18 = vcombine.low %v12584_v22, %v16325_v17  ;;  %v12682_v52 = vcombine.high %v16325_v17, %v12586_v42  ;;  %v5337_v22 = vld [vmem:[#allocation2 + $0x18] sm:$0xff] }
 0x3e3   : > { %v4200_v23 = vadd.f32 %v4119_v26, %v3398_v11  ;;  %5260 = vst [vmem:[#allocation2 + $0x38] sm:$0xff] %v5196_v62  ;;  %6055 = vmatprep.mubr.bf16.mxu1 %v12676_v48  ;;  %7052 = vmatprep.mubr.bf16.mxu0 %v12853_v37 }
 0x3e4   : > { %v4121_v24 = vpop.f32.mrf.mxu1  ;;  %v5118_v6 = vpop.f32.mrf.mxu0 }
 0x3e5   : > { %v5197_v43 = vadd.f32 %v5116_v7, %v4200_v23  ;;  %v12588_v24 = vld [vmem:[%s15095_s6 + $0x3b0] sm:$0xff]  ;;  %v16338_v6 = vld [vmem:[%s15095_s6 + $0x3b8] sm:$0xff] }
 0x3e6   : > { %v4122_v8 = vpop.f32.mrf.mxu1  ;;  %v5119_v28 = vpop.f32.mrf.mxu0 }
 0x3e7   : > { %v4201_v13 = vadd.f32 %v4122_v8, %v3399_v1  ;;  %5261 = vst [vmem:[#allocation2 + $0xc0] sm:$0xff] %v5197_v43  ;;  %v12681_v1 = vcombine.low %v16325_v17, %v12586_v42 }
 0x3e8   : > { %v4124_v10 = vpop.f32.mrf.mxu1  ;;  %v5121_v56 = vpop.f32.mrf.mxu0 }
 0x3e9   : > { %v5198_v21 = vadd.f32 %v5119_v28, %v4201_v13  ;;  %v12861_v13 = vcombine.high %v12588_v24, %v16338_v6  ;;  %v5336_v56 = vld [vmem:[#allocation2 + $0xd8] sm:$0xff] }
 0x3ea   : > { %v4127_v15 = vpop.f32.mrf.mxu1  ;;  %6056 = vmatmul.mubr.bf16.gmra.mxu1 %v12675_v19  ;;  %v5124_v60 = vpop.f32.mrf.mxu0  ;;  %7053 = vmatmul.mubr.bf16.gmra.mxu0 %v12852_v63  ;;  %v12858_v19 = vcombine.low %v12586_v42, %v16331_v45  ;;  %v12684_v63 = vcombine.high %v16331_v45, %v12588_v24 }
 0x3eb   : > { %v4202_v50 = vadd.f32 %v4127_v15, %v3400_v4  ;;  %5262 = vst [vmem:[#allocation2 + $0x1c0] sm:$0xff] %v5198_v21  ;;  %6063 = vmatprep.mubr.bf16.mxu1 %v12678_v20  ;;  %7060 = vmatprep.mubr.bf16.mxu0 %v12855_v30 }
 0x3ec   : > { %v4129_v61 = vpop.f32.mrf.mxu1  ;;  %v5126_v54 = vpop.f32.mrf.mxu0 }
 0x3ed   : > { %v5199_v33 = vadd.f32 %v5124_v60, %v4202_v50  ;;  %v12590_v61 = vld [vmem:[%s15095_s6 + $0x3c0] sm:$0xff]  ;;  %v12767_v54 = vld [vmem:[%s15095_s6 + $0x3c8] sm:$0xff] }
 0x3ee   : > { %v4130_v49 = vpop.f32.mrf.mxu1  ;;  %v5127_v55 = vpop.f32.mrf.mxu0 }
 0x3ef   : > { %v4203_v0 = vadd.f32 %v4130_v49, %v3401_v29  ;;  %5263 = vst [vmem:[#allocation2 + $0x158] sm:$0xff] %v5199_v33  ;;  %v12683_v33 = vcombine.low %v16331_v45, %v12588_v24  ;;  %v12860_v49 = vcombine.low %v12588_v24, %v16338_v6  ;;  %v5339_v45 = vld [vmem:[#allocation2 + $0x168] sm:$0xff] }
 0x3f0   : > { %v4132_v39 = vpop.f32.mrf.mxu1  ;;  %v5129_v27 = vpop.f32.mrf.mxu0 }
 0x3f1   : > { %v5200_v25 = vadd.f32 %v5127_v55, %v4203_v0  ;;  %v12686_v55 = vcombine.high %v16338_v6, %v12590_v61  ;;  %v5338_v39 = vld [vmem:[#allocation2 + $0x50] sm:$0xff] }
 0x3f2   : > { %v4135_v58 = vpop.f32.mrf.mxu1  ;;  %6064 = vmatmul.mubr.bf16.gmra.mxu1 %v12677_v16  ;;  %v5132_v5 = vpop.f32.mrf.mxu0  ;;  %7061 = vmatmul.mubr.bf16.gmra.mxu0 %v12854_v38  ;;  %v12863_v38 = vcombine.high %v12590_v61, %v12767_v54 }
 0x3f3   : > { %v4204_v9 = vadd.f32 %v4135_v58, %v3402_v32  ;;  %5264 = vst [vmem:[#allocation2 + $0x10] sm:$0xff] %v5200_v25  ;;  %6071 = vmatprep.mubr.bf16.mxu1 %v12680_v31  ;;  %7068 = vmatprep.mubr.bf16.mxu0 %v12857_v34 }
 0x3f4   : > { %v4137_v46 = vpop.f32.mrf.mxu1  ;;  %v5134_v35 = vpop.f32.mrf.mxu0 }
 0x3f5   : > { %v5201_v3 = vadd.f32 %v5132_v5, %v4204_v9  ;;  %v12591_v9 = vld [vmem:[%s15095_s6 + $0x418] sm:$0xff]  ;;  %v12592_v46 = vld [vmem:[%s15095_s6 + $0x420] sm:$0xff]  ;;  %v16352_v35 = vld [vmem:[%s15095_s6 + $0x428] sm:$0xff] }
 0x3f6   : > { %v4138_v53 = vpop.f32.mrf.mxu1  ;;  %v5135_v59 = vpop.f32.mrf.mxu0 }
 0x3f7   : > { %v4205_v36 = vadd.f32 %v4138_v53, %v3403_v51  ;;  %5265 = vst [vmem:[#allocation2 + $0x58] sm:$0xff] %v5201_v3  ;;  %v12685_v51 = vcombine.low %v16338_v6, %v12590_v61  ;;  %v5341_v6 = vld [vmem:[#allocation2 + $0x48] sm:$0xff] }
 0x3f8   : > { %v4140_v48 = vpop.f32.mrf.mxu1  ;;  %v5137_v37 = vpop.f32.mrf.mxu0 }
 0x3f9   : > { %v5202_v44 = vadd.f32 %v5135_v59, %v4205_v36  ;;  %v12865_v36 = vcombine.high %v12592_v46, %v16352_v35  ;;  %v5340_v37 = vld [vmem:[#allocation2 + $0x130] sm:$0xff] }
 0x3fa   : > { %v5881_v62 = vpop.f32.mrf.mxu1  ;;  %6072 = vmatmul.mubr.bf16.gmra.mxu1 %v12679_v40  ;;  %v6878_v11 = vpop.f32.mrf.mxu0  ;;  %7069 = vmatmul.mubr.bf16.gmra.mxu0 %v12856_v18  ;;  %v12862_v40 = vcombine.low %v12590_v61, %v12767_v54  ;;  %v12688_v18 = vcombine.high %v12591_v9, %v12592_v46  ;;  %v5343_v54 = vld [vmem:[#allocation2 + $0x110] sm:$0xff] }
 0x3fb   : > { %v6136_v26 = vadd.f32 %v5881_v62, %v5334_v47  ;;  %5266 = vst [vmem:[#allocation2 + $0xa0] sm:$0xff] %v5202_v44  ;;  %6079 = vmatprep.mubr.bf16.mxu1 %v12682_v52  ;;  %7076 = vmatprep.mubr.bf16.mxu0 %v12859_v41 }
 0x3fc   : > { %v5883_v7 = vpop.f32.mrf.mxu1  ;;  %v6880_v23 = vpop.f32.mrf.mxu0 }
 0x3fd   : > { %v7133_v14 = vadd.f32 %v6878_v11, %v6136_v26  ;;  %v12594_v7 = vld [vmem:[%s15095_s6 + $0x430] sm:$0xff]  ;;  %v16358_v23 = vld [vmem:[%s15095_s6 + $0x438] sm:$0xff] }
 0x3fe   : > { %v5884_v43 = vpop.f32.mrf.mxu1  ;;  %v6881_v8 = vpop.f32.mrf.mxu0 }
 0x3ff   : > { %v6137_v28 = vadd.f32 %v5884_v43, %v5335_v57  ;;  %7197 = vst [vmem:[#allocation2 + $0xb0] sm:$0xff] %v7133_v14  ;;  %v12687_v57 = vcombine.low %v12591_v9, %v12592_v46 }
 0x400   : > { %v5886_v20 = vpop.f32.mrf.mxu1  ;;  %v6883_v30 = vpop.f32.mrf.mxu0 }
 0x401   : > { %v7134_v10 = vadd.f32 %v6881_v8, %v6137_v28  ;;  %v12867_v28 = vcombine.high %v12594_v7, %v16358_v23  ;;  %v5342_v30 = vld [vmem:[#allocation2 + $0x180] sm:$0xff] }
 0x402   : > { %v5889_v21 = vpop.f32.mrf.mxu1  ;;  %6080 = vmatmul.mubr.bf16.gmra.mxu1 %v12681_v1  ;;  %v6886_v4 = vpop.f32.mrf.mxu0  ;;  %7077 = vmatmul.mubr.bf16.gmra.mxu0 %v12858_v19  ;;  %v12864_v1 = vcombine.low %v12592_v46, %v16352_v35  ;;  %v12690_v19 = vcombine.high %v16352_v35, %v12594_v7  ;;  %v5345_v46 = vld [vmem:[#allocation2 + $0x98] sm:$0xff] }
 0x403   : > { %v6138_v15 = vadd.f32 %v5889_v21, %v5336_v56  ;;  %7198 = vst [vmem:[#allocation2 + $0x1b0] sm:$0xff] %v7134_v10  ;;  %6087 = vmatprep.mubr.bf16.mxu1 %v12684_v63  ;;  %7084 = vmatprep.mubr.bf16.mxu0 %v12861_v13 }
 0x404   : > { %v5891_v60 = vpop.f32.mrf.mxu1  ;;  %v6888_v50 = vpop.f32.mrf.mxu0 }
 0x405   : > { %v7135_v12 = vadd.f32 %v6886_v4, %v6138_v15  ;;  %v12596_v60 = vld [vmem:[%s15095_s6 + $0x440] sm:$0xff]  ;;  %v16365_v50 = vld [vmem:[%s15095_s6 + $0x448] sm:$0xff] }
 0x406   : > { %v5892_v17 = vpop.f32.mrf.mxu1  ;;  %v6889_v29 = vpop.f32.mrf.mxu0 }
 0x407   : > { %v6139_v16 = vadd.f32 %v5892_v17, %v5337_v22  ;;  %7199 = vst [vmem:[#allocation2 + $0xd8] sm:$0xff] %v7135_v12  ;;  %v12689_v22 = vcombine.low %v16352_v35, %v12594_v7 }
 0x408   : > { %v5894_v0 = vpop.f32.mrf.mxu1  ;;  %v6891_v31 = vpop.f32.mrf.mxu0 }
 0x409   : > { %v7136_v34 = vadd.f32 %v6889_v29, %v6139_v16  ;;  %v12869_v16 = vcombine.high %v12596_v60, %v16365_v50  ;;  %v5344_v31 = vld [vmem:[#allocation2 + $0x118] sm:$0xff] }
 0x40a   : > { %v5897_v27 = vpop.f32.mrf.mxu1  ;;  %6088 = vmatmul.mubr.bf16.gmra.mxu1 %v12683_v33  ;;  %v6894_v25 = vpop.f32.mrf.mxu0  ;;  %7085 = vmatmul.mubr.bf16.gmra.mxu0 %v12860_v49  ;;  %v12866_v33 = vcombine.low %v12594_v7, %v16358_v23  ;;  %v12692_v49 = vcombine.high %v16358_v23, %v12596_v60 }
 0x40b   : > { %v6140_v32 = vadd.f32 %v5897_v27, %v5338_v39  ;;  %7200 = vst [vmem:[#allocation2 + $0x18] sm:$0xff] %v7136_v34  ;;  %6095 = vmatprep.mubr.bf16.mxu1 %v12686_v55  ;;  %7092 = vmatprep.mubr.bf16.mxu0 %v12863_v38 }
 0x40c   : > { %v5899_v58 = vpop.f32.mrf.mxu1  ;;  %v6896_v5 = vpop.f32.mrf.mxu0 }
 0x40d   : > { %v7137_v42 = vadd.f32 %v6894_v25, %v6140_v32  ;;  %v12598_v58 = vld [vmem:[%s15095_s6 + $0x450] sm:$0xff]  ;;  %v12775_v5 = vld [vmem:[%s15095_s6 + $0x458] sm:$0xff] }
 0x40e   : > { %v5900_v3 = vpop.f32.mrf.mxu1  ;;  %v6897_v53 = vpop.f32.mrf.mxu0 }
 0x40f   : > { %v6141_v59 = vadd.f32 %v5900_v3, %v5339_v45  ;;  %7201 = vst [vmem:[#allocation2 + $0x50] sm:$0xff] %v7137_v42  ;;  %v12691_v42 = vcombine.low %v16358_v23, %v12596_v60  ;;  %v12868_v3 = vcombine.low %v12596_v60, %v16365_v50  ;;  %v5347_v23 = vld [vmem:[#allocation2 + $0x150] sm:$0xff]  ;;  %v16385_v60 = vld [vmem:[%s15095_s6 + $0x58] sm:$0xff] }
 0x410   : > { %v5902_v52 = vpop.f32.mrf.mxu1  ;;  %v6899_v41 = vpop.f32.mrf.mxu0 }
 0x411   : > { %v7138_v48 = vadd.f32 %v6897_v53, %v6141_v59  ;;  %v12694_v53 = vcombine.high %v16365_v50, %v12598_v58  ;;  %v5346_v52 = vld [vmem:[#allocation2 + $0x120] sm:$0xff] }
 0x412   : > { %v5905_v44 = vpop.f32.mrf.mxu1  ;;  %6096 = vmatmul.mubr.bf16.gmra.mxu1 %v12685_v51  ;;  %v6902_v47 = vpop.f32.mrf.mxu0  ;;  %7093 = vmatmul.mubr.bf16.gmra.mxu0 %v12862_v40  ;;  %v12871_v40 = vcombine.high %v12598_v58, %v12775_v5 }
 0x413   : > { %v6142_v62 = vadd.f32 %v5905_v44, %v5340_v37  ;;  %7202 = vst [vmem:[#allocation2 + $0x168] sm:$0xff] %v7138_v48  ;;  %6103 = vmatprep.mubr.bf16.mxu1 %v12688_v18  ;;  %7100 = vmatprep.mubr.bf16.mxu0 %v12865_v36 }
 0x414   : > { %v5907_v11 = vpop.f32.mrf.mxu1  ;;  %v6904_v26 = vpop.f32.mrf.mxu0 }
 0x415   : > { %v7139_v24 = vadd.f32 %v6902_v47, %v6142_v62  ;;  %v12889_v62 = vld [vmem:[%s15095_s6 + $0x38] sm:$0xff]  ;;  %v12890_v11 = vld [vmem:[%s15095_s6 + $0x40] sm:$0xff]  ;;  %v16379_v26 = vld [vmem:[%s15095_s6 + $0x48] sm:$0xff] }
 0x416   : > { %v5908_v14 = vpop.f32.mrf.mxu1  ;;  %v6905_v43 = vpop.f32.mrf.mxu0 }
 0x417   : > { %v6143_v8 = vadd.f32 %v5908_v14, %v5341_v6  ;;  %7203 = vst [vmem:[#allocation2 + $0x130] sm:$0xff] %v7139_v24  ;;  %v12693_v6 = vcombine.low %v16365_v50, %v12598_v58  ;;  %v5349_v50 = vld [vmem:[#allocation2 + $0x60] sm:$0xff] }
 0x418   : > { %v5910_v63 = vpop.f32.mrf.mxu1  ;;  %v6907_v13 = vpop.f32.mrf.mxu0 }
 0x419   : > { %v7140_v20 = vadd.f32 %v6905_v43, %v6143_v8  ;;  %v13163_v8 = vcombine.high %v12890_v11, %v16379_v26  ;;  %v5348_v13 = vld [vmem:[#allocation2 + $0x108] sm:$0xff] }
 0x41a   : > { %v5913_v10 = vpop.f32.mrf.mxu1  ;;  %6104 = vmatmul.mubr.bf16.gmra.mxu1 %v12687_v57  ;;  %v6910_v56 = vpop.f32.mrf.mxu0  ;;  %7101 = vmatmul.mubr.bf16.gmra.mxu0 %v12864_v1  ;;  %v12870_v57 = vcombine.low %v12598_v58, %v12775_v5  ;;  %v12986_v1 = vcombine.high %v12889_v62, %v12890_v11  ;;  %v16394_v5 = vld [vmem:[%s15095_s6 + $0x60] sm:$0xff] }
 0x41b   : > { %v6144_v21 = vadd.f32 %v5913_v10, %v5342_v30  ;;  %7204 = vst [vmem:[#allocation2 + $0x48] sm:$0xff] %v7140_v20  ;;  %6111 = vmatprep.mubr.bf16.mxu1 %v12690_v19  ;;  %7108 = vmatprep.mubr.bf16.mxu0 %v12867_v28 }
 0x41c   : > { %v5915_v4 = vpop.f32.mrf.mxu1  ;;  %v6912_v15 = vpop.f32.mrf.mxu0 }
 0x41d   : > { %v7141_v61 = vadd.f32 %v6910_v56, %v6144_v21  ;;  %v12892_v4 = vld [vmem:[%s15095_s6 + $0x50] sm:$0xff] }
 0x41e   : > { %v5916_v12 = vpop.f32.mrf.mxu1  ;;  %v6913_v17 = vpop.f32.mrf.mxu0 }
 0x41f   : > { %v6145_v29 = vadd.f32 %v5916_v12, %v5343_v54  ;;  %7205 = vst [vmem:[#allocation2 + $0x180] sm:$0xff] %v7141_v61  ;;  %v12985_v54 = vcombine.low %v12889_v62, %v12890_v11 }
 0x420   : > { %v5918_v55 = vpop.f32.mrf.mxu1  ;;  %v6915_v38 = vpop.f32.mrf.mxu0 }
 0x421   : > { %v7142_v0 = vadd.f32 %v6913_v17, %v6145_v29  ;;  %v12988_v29 = vcombine.high %v16379_v26, %v12892_v4  ;;  %v14348_v55 = vld [vmem:[%s15006_s20 + $0x538] sm:$0xff]   ;;  %v13165_v38 = vcombine.high %v12892_v4, %v16385_v60 }
 0x422   : > { %v5921_v34 = vpop.f32.mrf.mxu1  ;;  %6112 = vmatmul.mubr.bf16.gmra.mxu1 %v12689_v22  ;;  %v6918_v39 = vpop.f32.mrf.mxu0  ;;  %7109 = vmatmul.mubr.bf16.gmra.mxu0 %v12866_v33  ;;  %v13162_v22 = vcombine.low %v12890_v11, %v16379_v26  ;;  %v14343_v33 = vld [vmem:[%s15006_s20 + $0x4b8] sm:$0xff]  }
 0x423   : > { %v6146_v27 = vadd.f32 %v5921_v34, %v5344_v31  ;;  %7206 = vst [vmem:[#allocation2 + $0x110] sm:$0xff] %v7142_v0  ;;  %6119 = vmatprep.mubr.bf16.mxu1 %v12692_v49  ;;  %7116 = vmatprep.mubr.bf16.mxu0 %v12869_v16  ;;  %v5350_v31 = vld [vmem:[#allocation2 + $0xe0] sm:$0xff] }
 0x424   : > { %v5923_v25 = vpop.f32.mrf.mxu1  ;;  %v6920_v32 = vpop.f32.mrf.mxu0 }
 0x425   : > { %v7143_v9 = vadd.f32 %v6918_v39, %v6146_v27  ;;  %v14353_v25 = vld [vmem:[%s15006_s20 + $0x4b0] sm:$0xff]  }
 0x426   : > { %v5924_v35 = vpop.f32.mrf.mxu1  ;;  %v6921_v45 = vpop.f32.mrf.mxu0 }
 0x427   : > { %v6147_v51 = vadd.f32 %v5924_v35, %v5345_v46  ;;  %7207 = vst [vmem:[#allocation2 + $0x118] sm:$0xff] %v7143_v9  ;;  %v16397_v9 = vld [vmem:[%s15095_s6 + $0x68] sm:$0xff]  ;;  %v14358_v46 = vld [vmem:[%s15006_s20 + $0x530] sm:$0xff]  }
 0x428   : > { %v5926_v59 = vpop.f32.mrf.mxu1  ;;  %v6923_v18 = vpop.f32.mrf.mxu0 }
 0x429   : > { %v7144_v36 = vadd.f32 %v6921_v45, %v6147_v51  ;;  %v12990_v59 = vcombine.high %v16385_v60, %v16394_v5  ;;  %v13167_v18 = vcombine.high %v16394_v5, %v16397_v9 }
 0x42a   : > { %v5929_v41 = vpop.f32.mrf.mxu1  ;;  %6120 = vmatmul.mubr.bf16.gmra.mxu1 %v12691_v42  ;;  %v6926_v48 = vpop.f32.mrf.mxu0  ;;  %7117 = vmatmul.mubr.bf16.gmra.mxu0 %v12868_v3  ;;  %v5351_v42 = vld [vmem:[#allocation2 + $0x188] sm:$0xff]  ;;  %v12987_v3 = vcombine.low %v16379_v26, %v12892_v4  ;;  %v16413_v26 = vld [vmem:[%s15095_s6 + $0x70] sm:$0xff] }
 0x42b   : > { %v6148_v37 = vadd.f32 %v5929_v41, %v5346_v52  ;;  %7208 = vst [vmem:[#allocation2 + $0x98] sm:$0xff] %v7144_v36  ;;  %6127 = vmatprep.mubr.bf16.mxu1 %v12694_v53  ;;  %7124 = vmatprep.mubr.bf16.mxu0 %v12871_v40  ;;  %v13164_v53 = vcombine.low %v12892_v4, %v16385_v60  ;;  %v14363_v41 = vld [vmem:[%s15006_s20 + $0x4a8] sm:$0xff]  }
 0x42c   : > { %v5931_v44 = vpop.f32.mrf.mxu1  ;;  %v6928_v47 = vpop.f32.mrf.mxu0 }
 0x42d   : > { %v7145_v7 = vadd.f32 %v6926_v48, %v6148_v37  ;;  %v14368_v48 = vld [vmem:[%s15006_s20 + $0x528] sm:$0xff]   ;;  %v5352_v44 = vld [vmem:[#allocation2 + $0x138] sm:$0xff] }
 0x42e   : > { %v5932_v24 = vpop.f32.mrf.mxu1  ;;  %v6929_v14 = vpop.f32.mrf.mxu0 }
 0x42f   : > { %v6149_v43 = vadd.f32 %v5932_v24, %v5347_v23  ;;  %7209 = vst [vmem:[#allocation2 + $0x120] sm:$0xff] %v7145_v7  ;;  %v16416_v24 = vld [vmem:[%s15095_s6 + $0x78] sm:$0xff] }
 0x430   : > { %v5934_v19 = vpop.f32.mrf.mxu1  ;;  %v6931_v28 = vpop.f32.mrf.mxu0 }
 0x431   : > { %v7146_v63 = vadd.f32 %v6929_v14, %v6149_v43  ;;  %v14378_v14 = vld [vmem:[%s15006_s20 + $0x520] sm:$0xff]   ;;  %v13166_v28 = vcombine.low %v16394_v5, %v16397_v9 }
 0x432   : > { %v5937_v20 = vpop.f32.mrf.mxu1  ;;  %6128 = vmatmul.mubr.bf16.gmra.mxu1 %v12693_v6  ;;  %v6934_v30 = vpop.f32.mrf.mxu0  ;;  %7125 = vmatmul.mubr.bf16.gmra.mxu0 %v12870_v57  ;;  %v14373_v6 = vld [vmem:[%s15006_s20 + $0x4a0] sm:$0xff]  }
 0x433   : > { %v6150_v10 = vadd.f32 %v5937_v20, %v5348_v13  ;;  %7210 = vst [vmem:[#allocation2 + $0x150] sm:$0xff] %v7146_v63  ;;  %7873 = vmatprep.mubr.bf16.mxu1 %v12986_v1  ;;  %8870 = vmatprep.mubr.bf16.mxu0 %v13163_v8  ;;  %v5353_v43 = vld [vmem:[#allocation2 + $0x140] sm:$0xff]  ;;  %v12989_v8 = vcombine.low %v16385_v60, %v16394_v5  ;;  %v14403_v5 = vld [vmem:[%s15006_s20 + $0x488] sm:$0xff]  }
 0x434   : > { %v5939_v56 = vpop.f32.mrf.mxu1  ;;  %v6936_v21 = vpop.f32.mrf.mxu0  ;;  %v12992_v13 = vcombine.high %v16397_v9, %v16413_v26  ;;  %v13169_v20 = vcombine.high %v16413_v26, %v16416_v24 }
 0x435   : > { %v7147_v15 = vadd.f32 %v6934_v30, %v6150_v10  ;;  %v14383_v56 = vld [vmem:[%s15006_s20 + $0x498] sm:$0xff]  }
 0x436   : > { %v5940_v61 = vpop.f32.mrf.mxu1  ;;  %v6937_v12 = vpop.f32.mrf.mxu0  ;;  %v14388_v21 = vld [vmem:[%s15006_s20 + $0x518] sm:$0xff]  }
 0x437   : > { %v6151_v17 = vadd.f32 %v5940_v61, %v5349_v50  ;;  %7211 = vst [vmem:[#allocation2 + $0x108] sm:$0xff] %v7147_v15  ;;  %v5354_v15 = vld [vmem:[#allocation2 + $0x80] sm:$0xff] }
 0x438   : > { %v5942_v49 = vpop.f32.mrf.mxu1  ;;  %v6939_v16 = vpop.f32.mrf.mxu0 }
 0x439   : > { %v7148_v0 = vadd.f32 %v6937_v12, %v6151_v17  ;;  %v16438_v12 = vld [vmem:[%s15095_s6 + $0xd0] sm:$0xff] }
 0x43a   : > { %v5945_v34 = vpop.f32.mrf.mxu1  ;;  %7874 = vmatmul.mubr.bf16.vlgmr.msra.gmra.mxu1 %v12985_v54  ;;  %v6942_v39 = vpop.f32.mrf.mxu0  ;;  %8871 = vmatmul.mubr.bf16.vlgmr.msra.gmra.mxu0 %v13162_v22  ;;  %v16435_v54 = vld [vmem:[%s15095_s6 + $0xc8] sm:$0xff]  ;;  %v14398_v49 = vld [vmem:[%s15006_s20 + $0x510] sm:$0xff]  }
 0x43b   : > { %v6152_v27 = vadd.f32 %v5945_v34, %v5350_v31  ;;  %7212 = vst [vmem:[#allocation2 + $0x60] sm:$0xff] %v7148_v0  ;;  %9836 = vmatpush1.bf16.msra.mxu1 %v14343_v33  ;;  %7881 = vmatprep.mubr.bf16.mxu1 %v12988_v29  ;;  %v16441_v33 = vld [vmem:[%s15095_s6 + $0xd8] sm:$0xff]  ;;  %v14393_v29 = vld [vmem:[%s15006_s20 + $0x490] sm:$0xff]   ;;  %v12991_v0 = vcombine.low %v16397_v9, %v16413_v26 }
 0x43c   : > { %v5947_v32 = vpop.f32.mrf.mxu1  ;;  %v6944_v58 = vpop.f32.mrf.mxu0  ;;  %10833 = vmatpush1.bf16.msra.mxu0 %v14348_v55  ;;  %8878 = vmatprep.mubr.bf16.mxu0 %v13165_v38  ;;  %v5355_v55 = vld [vmem:[#allocation2 + $0x1a8] sm:$0xff]  ;;  %v13168_v34 = vcombine.low %v16413_v26, %v16416_v24  ;;  %v14423_v24 = vld [vmem:[%s15006_s20 + $0x4f8] sm:$0xff]  }
 0x43d   : > { %v7149_v35 = vadd.f32 %v6942_v39, %v6152_v27  ;;  %9837 = vmatprep.subr.bf16.mxu1 %v14819_v2  ;;  %10834 = vmatprep.subr.bf16.mxu0 %v14819_v2  ;;  %v12994_v27 = vcombine.high %v16435_v54, %v16438_v12 }
 0x43e   : > { %v5948_v45 = vpop.f32.mrf.mxu1  ;;  %v6945_v51 = vpop.f32.mrf.mxu0 }
 0x43f   : > { %v6153_v40 = vadd.f32 %v5948_v45, %v5351_v42  ;;  %7213 = vst [vmem:[#allocation2 + $0xe0] sm:$0xff] %v7149_v35  ;;  %9838 = vmatpush1.bf16.msra.mxu1 %v14353_v25  ;;  %v13171_v25 = vcombine.high %v16438_v12, %v16441_v33  ;;  %v5356_v35 = vld [vmem:[#allocation2 + $0x1b8] sm:$0xff] }
 0x440   : > { %v5950_v36 = vpop.f32.mrf.mxu1  ;;  %v6947_v52 = vpop.f32.mrf.mxu0  ;;  %10835 = vmatpush1.bf16.msra.mxu0 %v14358_v46  ;;  %9839 = vmatprep.subr.bf16.mxu1 %v14819_v2  ;;  %v14408_v46 = vld [vmem:[%s15006_s20 + $0x508] sm:$0xff]  }
 0x441   : > { %v7150_v37 = vadd.f32 %v6945_v51, %v6153_v40  ;;  %10836 = vmatprep.subr.bf16.mxu0 %v14819_v2  ;;  %v16460_v51 = vld [vmem:[%s15095_s6 + $0xe0] sm:$0xff] }
 0x442   : > { %v5953_v47 = vpop.f32.mrf.mxu1  ;;  %7882 = vmatmul.mubr.bf16.gmra.mxu1 %v12987_v3  ;;  %v6950_v62 = vpop.f32.mrf.mxu0  ;;  %8879 = vmatmul.mubr.bf16.gmra.mxu0 %v13164_v53  ;;  %v14418_v36 = vld [vmem:[%s15006_s20 + $0x500] sm:$0xff]  }
 0x443   : > { %v6154_v11 = vadd.f32 %v5953_v47, %v5352_v44  ;;  %7214 = vst [vmem:[#allocation2 + $0x188] sm:$0xff] %v7150_v37  ;;  %7889 = vmatprep.mubr.bf16.mxu1 %v12990_v59  ;;  %8886 = vmatprep.mubr.bf16.mxu0 %v13167_v18  ;;  %v16463_v59 = vld [vmem:[%s15095_s6 + $0xe8] sm:$0xff]  ;;  %v14413_v18 = vld [vmem:[%s15006_s20 + $0x480] sm:$0xff]   ;;  %v12993_v37 = vcombine.low %v16435_v54, %v16438_v12 }
 0x444   : > { %v5955_v7 = vpop.f32.mrf.mxu1  ;;  %v6952_v23 = vpop.f32.mrf.mxu0  ;;  %9840 = vmatpush1.bf16.msra.mxu1 %v14363_v41  ;;  %10837 = vmatpush1.bf16.msra.mxu0 %v14368_v48  ;;  %v5357_v41 = vld [vmem:[#allocation2 + $0x28] sm:$0xff]  ;;  %v13170_v47 = vcombine.low %v16438_v12, %v16441_v33  ;;  %v13173_v26 = vcombine.high %v16460_v51, %v16463_v59 }
 0x445   : > { %v7151_v57 = vadd.f32 %v6950_v62, %v6154_v11  ;;  %9841 = vmatprep.subr.bf16.mxu1 %v14819_v2  ;;  %10838 = vmatprep.subr.bf16.mxu0 %v14819_v2  ;;  %v12996_v11 = vcombine.high %v16441_v33, %v16460_v51 }
 0x446   : > { %v5956_v1 = vpop.f32.mrf.mxu1  ;;  %v6953_v19 = vpop.f32.mrf.mxu0 }
 0x447   : > { %v6155_v63 = vadd.f32 %v5956_v1, %v5353_v43  ;;  %7215 = vst [vmem:[#allocation2 + $0x138] sm:$0xff] %v7151_v57  ;;  %v5358_v57 = vld [vmem:[#allocation2 + $0x1e8] sm:$0xff] }
 0x448   : > { %v5958_v30 = vpop.f32.mrf.mxu1  ;;  %v6955_v10 = vpop.f32.mrf.mxu0  ;;  %9842 = vmatpush1.bf16.msra.mxu1 %v14373_v6  ;;  %10839 = vmatpush1.bf16.msra.mxu0 %v14378_v14  ;;  %v14428_v6 = vld [vmem:[%s15006_s20 + $0x578] sm:$0xff]  }
 0x449   : > { %v7152_v4 = vadd.f32 %v6953_v19, %v6155_v63  ;;  %9843 = vmatprep.subr.bf16.mxu1 %v14819_v2  ;;  %10840 = vmatprep.subr.bf16.mxu0 %v14819_v2  ;;  %v16482_v19 = vld [vmem:[%s15095_s6 + $0xf0] sm:$0xff] }
 0x44a   : > { %v5961_v60 = vpop.f32.mrf.mxu1  ;;  %7890 = vmatmul.mubr.bf16.gmra.mxu1 %v12989_v8  ;;  %v6958_v50 = vpop.f32.mrf.mxu0  ;;  %8887 = vmatmul.mubr.bf16.gmra.mxu0 %v13166_v28  ;;  %v14438_v30 = vld [vmem:[%s15006_s20 + $0x570] sm:$0xff]  }
 0x44b   : > { %v6156_v61 = vadd.f32 %v5961_v60, %v5354_v15  ;;  %7216 = vst [vmem:[#allocation2 + $0x140] sm:$0xff] %v7152_v4  ;;  %7897 = vmatprep.mubr.bf16.mxu1 %v12992_v13  ;;  %8894 = vmatprep.mubr.bf16.mxu0 %v13169_v20  ;;  %v16485_v13 = vld [vmem:[%s15095_s6 + $0xf8] sm:$0xff]  ;;  %v14433_v20 = vld [vmem:[%s15006_s20 + $0x4f0] sm:$0xff]   ;;  %v12995_v4 = vcombine.low %v16441_v33, %v16460_v51 }
 0x44c   : > { %v5963_v22 = vpop.f32.mrf.mxu1  ;;  %v6960_v17 = vpop.f32.mrf.mxu0  ;;  %9844 = vmatpush1.bf16.msra.mxu1 %v14383_v56  ;;  %10841 = vmatpush1.bf16.msra.mxu0 %v14388_v21  ;;  %v5359_v56 = vld [vmem:[#allocation2 + $0xf8] sm:$0xff]  ;;  %v13172_v60 = vcombine.low %v16460_v51, %v16463_v59  ;;  %v13175_v54 = vcombine.high %v16482_v19, %v16485_v13 }
 0x44d   : > { %v7153_v16 = vadd.f32 %v6958_v50, %v6156_v61  ;;  %9845 = vmatprep.subr.bf16.mxu1 %v14819_v2  ;;  %10842 = vmatprep.subr.bf16.mxu0 %v14819_v2  ;;  %v12998_v61 = vcombine.high %v16463_v59, %v16482_v19  ;;  %v14443_v17 = vld [vmem:[%s15006_s20 + $0x4e8] sm:$0xff]  }
 0x44e   : > { %v5964_v38 = vpop.f32.mrf.mxu1  ;;  %v6961_v31 = vpop.f32.mrf.mxu0 }
 0x44f   : > { %v6157_v39 = vadd.f32 %v5964_v38, %v5355_v55  ;;  %7217 = vst [vmem:[#allocation2 + $0x80] sm:$0xff] %v7153_v16 }
 0x450   : > { %v5966_v32 = vpop.f32.mrf.mxu1  ;;  %v6963_v58 = vpop.f32.mrf.mxu0  ;;  %9846 = vmatpush1.bf16.msra.mxu1 %v14393_v29  ;;  %10843 = vmatpush1.bf16.msra.mxu0 %v14398_v49  ;;  %v5360_v29 = vld [vmem:[#allocation2 + $0x160] sm:$0xff] }
 0x451   : > { %v7154_v9 = vadd.f32 %v6961_v31, %v6157_v39  ;;  %9847 = vmatprep.subr.bf16.mxu1 %v14819_v2  ;;  %10844 = vmatprep.subr.bf16.mxu0 %v14819_v2  ;;  %v12904_v31 = vld [vmem:[%s15095_s6 + $0x100] sm:$0xff]  ;;  %v14448_v39 = vld [vmem:[%s15006_s20 + $0x568] sm:$0xff]   ;;  %v12997_v58 = vcombine.low %v16463_v59, %v16482_v19 }
 0x452   : > { %v5969_v42 = vpop.f32.mrf.mxu1  ;;  %7898 = vmatmul.mubr.bf16.gmra.mxu1 %v12991_v0  ;;  %v6966_v45 = vpop.f32.mrf.mxu0  ;;  %8895 = vmatmul.mubr.bf16.gmra.mxu0 %v13168_v34  ;;  %v13081_v34 = vld [vmem:[%s15095_s6 + $0x108] sm:$0xff] }
 0x453   : > { %v6158_v3 = vadd.f32 %v5969_v42, %v5356_v35  ;;  %7218 = vst [vmem:[#allocation2 + $0x1a8] sm:$0xff] %v7154_v9  ;;  %7905 = vmatprep.mubr.bf16.mxu1 %v12994_v27  ;;  %8902 = vmatprep.mubr.bf16.mxu0 %v13171_v25  ;;  %v5361_v25 = vld [vmem:[#allocation2 + $0x30] sm:$0xff]  ;;  %v13000_v35 = vcombine.high %v16485_v13, %v12904_v31 }
 0x454   : > { %v5971_v53 = vpop.f32.mrf.mxu1  ;;  %v6968_v40 = vpop.f32.mrf.mxu0  ;;  %9848 = vmatpush1.bf16.msra.mxu1 %v14403_v5  ;;  %10845 = vmatpush1.bf16.msra.mxu0 %v14408_v46  ;;  %v13174_v46 = vcombine.low %v16482_v19, %v16485_v13  ;;  %v13177_v42 = vcombine.high %v12904_v31, %v13081_v34 }
 0x455   : > { %v7155_v52 = vadd.f32 %v6966_v45, %v6158_v3  ;;  %9849 = vmatprep.subr.bf16.mxu1 %v14819_v2  ;;  %10846 = vmatprep.subr.bf16.mxu0 %v14819_v2  ;;  %v5362_v53 = vld [vmem:[#allocation2 + $0x1e0] sm:$0xff] }
 0x456   : > { %v5972_v48 = vpop.f32.mrf.mxu1  ;;  %v6969_v44 = vpop.f32.mrf.mxu0 }
 0x457   : > { %v6159_v62 = vadd.f32 %v5972_v48, %v5357_v41  ;;  %7219 = vst [vmem:[#allocation2 + $0x1b8] sm:$0xff] %v7155_v52  ;;  %v12905_v48 = vld [vmem:[%s15095_s6 + $0x158] sm:$0xff] }
 0x458   : > { %v5974_v7 = vpop.f32.mrf.mxu1  ;;  %v6971_v23 = vpop.f32.mrf.mxu0  ;;  %9850 = vmatpush1.bf16.msra.mxu1 %v14413_v18  ;;  %10847 = vmatpush1.bf16.msra.mxu0 %v14418_v36  ;;  %v14453_v36 = vld [vmem:[%s15006_s20 + $0x4e0] sm:$0xff]  }
 0x459   : > { %v7156_v14 = vadd.f32 %v6969_v44, %v6159_v62  ;;  %9851 = vmatprep.subr.bf16.mxu1 %v14819_v2  ;;  %10848 = vmatprep.subr.bf16.mxu0 %v14819_v2  ;;  %v16516_v44 = vld [vmem:[%s15095_s6 + $0x168] sm:$0xff]  ;;  %v5363_v62 = vld [vmem:[#allocation2] sm:$0xff]  ;;  %v13176_v23 = vcombine.low %v12904_v31, %v13081_v34 }
 0x45a   : > { %v5977_v43 = vpop.f32.mrf.mxu1  ;;  %7906 = vmatmul.mubr.bf16.gmra.mxu1 %v12993_v37  ;;  %v6974_v1 = vpop.f32.mrf.mxu0  ;;  %8903 = vmatmul.mubr.bf16.gmra.mxu0 %v13170_v47  ;;  %v12906_v37 = vld [vmem:[%s15095_s6 + $0x160] sm:$0xff] }
 0x45b   : > { %v6160_v8 = vadd.f32 %v5977_v43, %v5358_v57  ;;  %7220 = vst [vmem:[#allocation2 + $0x28] sm:$0xff] %v7156_v14  ;;  %7913 = vmatprep.mubr.bf16.mxu1 %v12996_v11  ;;  %8910 = vmatprep.mubr.bf16.mxu0 %v13173_v26  ;;  %v12999_v26 = vcombine.low %v16485_v13, %v12904_v31 }
 0x45c   : > { %v5979_v28 = vpop.f32.mrf.mxu1  ;;  %v6976_v63 = vpop.f32.mrf.mxu0  ;;  %9852 = vmatpush2.bf16.msra.mxu1 %v14423_v24  ;;  %10849 = vmatpush2.bf16.msra.mxu0 %v14428_v6  ;;  %v13002_v6 = vcombine.high %v12905_v48, %v12906_v37  ;;  %v13179_v14 = vcombine.high %v12906_v37, %v16516_v44 }
 0x45d   : > { %v7157_v10 = vadd.f32 %v6974_v1, %v6160_v8  ;;  %9853 = vmatprep.subr.bf16.mxu1 %v14819_v2  ;;  %10850 = vmatprep.subr.bf16.mxu0 %v14819_v2  ;;  %v5364_v8 = vld [vmem:[#allocation2 + $0xf0] sm:$0xff] }
 0x45e   : > { %v5980_v21 = vpop.f32.mrf.mxu1  ;;  %v6977_v15 = vpop.f32.mrf.mxu0 }
 0x45f   : > { %v6161_v50 = vadd.f32 %v5980_v21, %v5359_v56  ;;  %7221 = vst [vmem:[#allocation2 + $0x1e8] sm:$0xff] %v7157_v10  ;;  %v16523_v10 = vld [vmem:[%s15095_s6 + $0x178] sm:$0xff]  ;;  %v14458_v56 = vld [vmem:[%s15006_s20 + $0x560] sm:$0xff]  }
 0x460   : > { %v5982_v12 = vpop.f32.mrf.mxu1  ;;  %v6979_v22 = vpop.f32.mrf.mxu0  ;;  %9854 = vmatpush2.bf16.msra.mxu1 %v14433_v20  ;;  %10851 = vmatpush2.bf16.msra.mxu0 %v14438_v30  ;;  %v12908_v30 = vld [vmem:[%s15095_s6 + $0x170] sm:$0xff] }
 0x461   : > { %v7158_v33 = vadd.f32 %v6977_v15, %v6161_v50  ;;  %9855 = vmatprep.subr.bf16.mxu1 %v14819_v2  ;;  %10852 = vmatprep.subr.bf16.mxu0 %v14819_v2  ;;  %v13004_v12 = vcombine.high %v16516_v44, %v12908_v30  ;;  %v13181_v22 = vcombine.high %v12908_v30, %v16523_v10 }
 0x462   : > { %v5985_v49 = vpop.f32.mrf.mxu1  ;;  %7914 = vmatmul.mubr.bf16.gmra.mxu1 %v12995_v4  ;;  %v6982_v16 = vpop.f32.mrf.mxu0  ;;  %8911 = vmatmul.mubr.bf16.gmra.mxu0 %v13172_v60  ;;  %v5365_v4 = vld [vmem:[#allocation2 + $0x8] sm:$0xff]  ;;  %v13001_v60 = vcombine.low %v12905_v48, %v12906_v37  ;;  %v12912_v48 = vld [vmem:[%s15095_s6 + $0x190] sm:$0xff] }
 0x463   : > { %v6162_v55 = vadd.f32 %v5985_v49, %v5360_v29  ;;  %7222 = vst [vmem:[#allocation2 + $0xf8] sm:$0xff] %v7158_v33  ;;  %7921 = vmatprep.mubr.bf16.mxu1 %v12998_v61  ;;  %8918 = vmatprep.mubr.bf16.mxu0 %v13175_v54  ;;  %v13178_v61 = vcombine.low %v12906_v37, %v16516_v44  ;;  %v5366_v49 = vld [vmem:[#allocation2 + $0x148] sm:$0xff]  ;;  %v13089_v37 = vld [vmem:[%s15095_s6 + $0x198] sm:$0xff] }
 0x464   : > { %v5987_v38 = vpop.f32.mrf.mxu1  ;;  %v6984_v0 = vpop.f32.mrf.mxu0  ;;  %9856 = vmatpush2.bf16.msra.mxu1 %v14443_v17  ;;  %10853 = vmatpush2.bf16.msra.mxu0 %v14448_v39  ;;  %v12910_v39 = vld [vmem:[%s15095_s6 + $0x180] sm:$0xff] }
 0x465   : > { %v7159_v27 = vadd.f32 %v6982_v16, %v6162_v55  ;;  %9857 = vmatprep.subr.bf16.mxu1 %v14819_v2  ;;  %10854 = vmatprep.subr.bf16.mxu0 %v14819_v2  ;;  %v14463_v0 = vld [vmem:[%s15006_s20 + $0x4d8] sm:$0xff]  }
 0x466   : > { %v5988_v32 = vpop.f32.mrf.mxu1  ;;  %v6985_v5 = vpop.f32.mrf.mxu0 }
 0x467   : > { %v6163_v9 = vadd.f32 %v5988_v32, %v5361_v25  ;;  %7223 = vst [vmem:[#allocation2 + $0x160] sm:$0xff] %v7159_v27  ;;  %v16533_v27 = vld [vmem:[%s15095_s6 + $0x188] sm:$0xff]  ;;  %v5367_v32 = vld [vmem:[#allocation2 + $0x1d0] sm:$0xff] }
 0x468   : > { %v5990_v45 = vpop.f32.mrf.mxu1  ;;  %v6987_v3 = vpop.f32.mrf.mxu0  ;;  %9858 = vmatpush2.bf16.msra.mxu1 %v14453_v36  ;;  %10855 = vmatpush2.bf16.msra.mxu0 %v14458_v56  ;;  %v12914_v56 = vld [vmem:[%s15095_s6 + $0x1f0] sm:$0xff] }
 0x469   : > { %v7160_v51 = vadd.f32 %v6985_v5, %v6163_v9  ;;  %9859 = vmatprep.subr.bf16.mxu1 %v14819_v2  ;;  %10856 = vmatprep.subr.bf16.mxu0 %v14819_v2  ;;  %v13003_v5 = vcombine.low %v16516_v44, %v12908_v30  ;;  %v13180_v9 = vcombine.low %v12908_v30, %v16523_v10  ;;  %v14468_v44 = vld [vmem:[%s15006_s20 + $0x558] sm:$0xff]  }
 0x46a   : > { %v5993_v40 = vpop.f32.mrf.mxu1  ;;  %7922 = vmatmul.mubr.bf16.gmra.mxu1 %v12997_v58  ;;  %v6990_v59 = vpop.f32.mrf.mxu0  ;;  %8919 = vmatmul.mubr.bf16.gmra.mxu0 %v13174_v46  ;;  %v13183_v45 = vcombine.high %v12910_v39, %v16533_v27 }
 0x46b   : > { %v6164_v18 = vadd.f32 %v5993_v40, %v5362_v53  ;;  %7224 = vst [vmem:[#allocation2 + $0x30] sm:$0xff] %v7160_v51  ;;  %7929 = vmatprep.mubr.bf16.mxu1 %v13000_v35  ;;  %8926 = vmatprep.mubr.bf16.mxu0 %v13177_v42  ;;  %v13006_v42 = vcombine.high %v16523_v10, %v12910_v39  ;;  %v5368_v40 = vld [vmem:[#allocation2 + $0x100] sm:$0xff] }
 0x46c   : > { %v5995_v52 = vpop.f32.mrf.mxu1  ;;  %v6992_v41 = vpop.f32.mrf.mxu0  ;;  %9860 = vmatpush2.bf16.msra.mxu1 %v14463_v0  ;;  %10857 = vmatpush2.bf16.msra.mxu0 %v14468_v44  ;;  %v12918_v44 = vld [vmem:[%s15095_s6 + $0x210] sm:$0xff] }
 0x46d   : > { %v7161_v47 = vadd.f32 %v6990_v59, %v6164_v18  ;;  %9861 = vmatprep.subr.bf16.mxu1 %v14819_v2  ;;  %10858 = vmatprep.subr.bf16.mxu0 %v14819_v2 }
 0x46e   : > { %v5996_v11 = vpop.f32.mrf.mxu1  ;;  %v6993_v7 = vpop.f32.mrf.mxu0 }
 0x46f   : > { %v6165_v24 = vadd.f32 %v5996_v11, %v5363_v62  ;;  %7225 = vst [vmem:[#allocation2 + $0x1e0] sm:$0xff] %v7161_v47  ;;  %v5369_v62 = vld [vmem:[#allocation2 + $0xc8] sm:$0xff] }
 0x470   : > { %v5998_v57 = vpop.f32.mrf.mxu1  ;;  %v6995_v43 = vpop.f32.mrf.mxu0 }
 0x471   : > { %v7162_v1 = vadd.f32 %v6993_v7, %v6165_v24 }
 0x472   : > { %v6001_v19 = vpop.f32.mrf.mxu1  ;;  %7930 = vmatmul.mubr.bf16.gmra.mxu1 %v12999_v26  ;;  %v6998_v28 = vpop.f32.mrf.mxu0  ;;  %8927 = vmatmul.mubr.bf16.gmra.mxu0 %v13176_v23  ;;  %v13005_v26 = vcombine.low %v16523_v10, %v12910_v39  ;;  %v13182_v23 = vcombine.low %v12910_v39, %v16533_v27  ;;  %v12913_v10 = vld [vmem:[%s15095_s6 + $0x1e8] sm:$0xff]  ;;  %v12916_v39 = vld [vmem:[%s15095_s6 + $0x200] sm:$0xff] }
 0x473   : > { %v6166_v63 = vadd.f32 %v6001_v19, %v5364_v8  ;;  %7226 = vst [vmem:[#allocation2] sm:$0xff] %v7162_v1  ;;  %7937 = vmatprep.mubr.bf16.mxu1 %v13002_v6  ;;  %8934 = vmatprep.mubr.bf16.mxu0 %v13179_v14  ;;  %v13008_v6 = vcombine.high %v16533_v27, %v12912_v48  ;;  %v5370_v8 = vld [vmem:[#allocation2 + $0x40] sm:$0xff] }
 0x474   : > { %v6003_v13 = vpop.f32.mrf.mxu1  ;;  %v7000_v20 = vpop.f32.mrf.mxu0  ;;  %v13185_v14 = vcombine.high %v12912_v48, %v13089_v37 }
 0x475   : > { %v7163_v21 = vadd.f32 %v6998_v28, %v6166_v63  ;;  %v14473_v13 = vld [vmem:[%s15006_s20 + $0x4d0] sm:$0xff]  }
 0x476   : > { %v6004_v15 = vpop.f32.mrf.mxu1  ;;  %v7001_v50 = vpop.f32.mrf.mxu0  ;;  %9862 = vmatpush2.bf16.msra.mxu1 %v14473_v13 }
 0x477   : > { %v6167_v54 = vadd.f32 %v6004_v15, %v5365_v4  ;;  %7227 = vst [vmem:[#allocation2 + $0xf0] sm:$0xff] %v7163_v21  ;;  %v16551_v21 = vld [vmem:[%s15095_s6 + $0x1f8] sm:$0xff]  ;;  %9863 = vmatprep.subr.bf16.mxu1 %v14819_v2 }
 0x478   : > { %v6006_v17 = vpop.f32.mrf.mxu1  ;;  %v7003_v33 = vpop.f32.mrf.mxu0  ;;  %v5371_v15 = vld [vmem:[#allocation2 + $0x1f8] sm:$0xff] }
 0x479   : > { %v7164_v29 = vadd.f32 %v7001_v50, %v6167_v54  ;;  %v13007_v50 = vcombine.low %v16533_v27, %v12912_v48  ;;  %v13184_v54 = vcombine.low %v12912_v48, %v13089_v37  ;;  %v13187_v17 = vcombine.high %v12914_v56, %v16551_v21  ;;  %v16558_v27 = vld [vmem:[%s15095_s6 + $0x208] sm:$0xff] }
 0x47a   : > { %v6009_v16 = vpop.f32.mrf.mxu1  ;;  %7938 = vmatmul.mubr.bf16.gmra.mxu1 %v13001_v60  ;;  %v7006_v55 = vpop.f32.mrf.mxu0  ;;  %8935 = vmatmul.mubr.bf16.gmra.mxu0 %v13178_v61 }
 0x47b   : > { %v6168_v38 = vadd.f32 %v6009_v16, %v5366_v49  ;;  %7228 = vst [vmem:[#allocation2 + $0x8] sm:$0xff] %v7164_v29  ;;  %7945 = vmatprep.mubr.bf16.mxu1 %v13004_v12  ;;  %8942 = vmatprep.mubr.bf16.mxu0 %v13181_v22  ;;  %v13010_v22 = vcombine.high %v12913_v10, %v12914_v56  ;;  %v5372_v16 = vld [vmem:[#allocation2 + $0x20] sm:$0xff] }
 0x47c   : > { %v6011_v31 = vpop.f32.mrf.mxu1  ;;  %v7008_v34 = vpop.f32.mrf.mxu0 }
 0x47d   : > { %v7165_v25 = vadd.f32 %v7006_v55, %v6168_v38 }
 0x47e   : > { %v6012_v58 = vpop.f32.mrf.mxu1  ;;  %v7009_v46 = vpop.f32.mrf.mxu0 }
 0x47f   : > { %v6169_v35 = vadd.f32 %v6012_v58, %v5367_v32  ;;  %7229 = vst [vmem:[#allocation2 + $0x148] sm:$0xff] %v7165_v25  ;;  %v14478_v25 = vld [vmem:[%s15006_s20 + $0x550] sm:$0xff]   ;;  %v5373_v58 = vld [vmem:[#allocation2 + $0x128] sm:$0xff] }
 0x480   : > { %v6014_v3 = vpop.f32.mrf.mxu1  ;;  %v7011_v51 = vpop.f32.mrf.mxu0  ;;  %10859 = vmatpush2.bf16.msra.mxu0 %v14478_v25  ;;  %v16586_v25 = vld [vmem:[%s15095_s6 + $0x288] sm:$0xff] }
 0x481   : > { %v7166_v53 = vadd.f32 %v7009_v46, %v6169_v35  ;;  %v13009_v46 = vcombine.low %v12913_v10, %v12914_v56  ;;  %v13186_v35 = vcombine.low %v12914_v56, %v16551_v21  ;;  %v13189_v3 = vcombine.high %v12916_v39, %v16558_v27  ;;  %10860 = vmatprep.subr.bf16.mxu0 %v14819_v2  ;;  %v12920_v10 = vld [vmem:[%s15095_s6 + $0x220] sm:$0xff]  ;;  %v13097_v56 = vld [vmem:[%s15095_s6 + $0x228] sm:$0xff] }
 0x482   : > { %v6017_v59 = vpop.f32.mrf.mxu1  ;;  %7946 = vmatmul.mubr.bf16.gmra.mxu1 %v13003_v5  ;;  %v7014_v18 = vpop.f32.mrf.mxu0  ;;  %8943 = vmatmul.mubr.bf16.gmra.mxu0 %v13180_v9 }
 0x483   : > { %v6170_v36 = vadd.f32 %v6017_v59, %v5368_v40  ;;  %7230 = vst [vmem:[#allocation2 + $0x1d0] sm:$0xff] %v7166_v53  ;;  %7953 = vmatprep.mubr.bf16.mxu1 %v13006_v42  ;;  %8950 = vmatprep.mubr.bf16.mxu0 %v13183_v45  ;;  %v13012_v45 = vcombine.high %v16551_v21, %v12916_v39  ;;  %v5374_v59 = vld [vmem:[#allocation2 + $0x1a0] sm:$0xff] }
 0x484   : > { %v6019_v52 = vpop.f32.mrf.mxu1  ;;  %v7016_v41 = vpop.f32.mrf.mxu0 }
 0x485   : > { %v7167_v47 = vadd.f32 %v7014_v18, %v6170_v36  ;;  %v14483_v41 = vld [vmem:[%s15006_s20 + $0x4c8] sm:$0xff]  }
 0x486   : > { %v6020_v11 = vpop.f32.mrf.mxu1  ;;  %v7017_v7 = vpop.f32.mrf.mxu0  ;;  %9864 = vmatpush2.bf16.msra.mxu1 %v14483_v41 }
 0x487   : > { %v6171_v24 = vadd.f32 %v6020_v11, %v5369_v62  ;;  %7231 = vst [vmem:[#allocation2 + $0x100] sm:$0xff] %v7167_v47  ;;  %v16568_v47 = vld [vmem:[%s15095_s6 + $0x218] sm:$0xff]  ;;  %v5375_v11 = vld [vmem:[#allocation2 + $0x1f0] sm:$0xff]  ;;  %9865 = vmatprep.subr.bf16.mxu1 %v14819_v2 }
 0x488   : > { %v6022_v57 = vpop.f32.mrf.mxu1  ;;  %v7019_v43 = vpop.f32.mrf.mxu0 }
 0x489   : > { %v7168_v1 = vadd.f32 %v7017_v7, %v6171_v24  ;;  %v13011_v7 = vcombine.low %v16551_v21, %v12916_v39  ;;  %v13188_v24 = vcombine.low %v12916_v39, %v16558_v27  ;;  %v13191_v57 = vcombine.high %v12918_v44, %v16568_v47  ;;  %v14488_v21 = vld [vmem:[%s15006_s20 + $0x548] sm:$0xff]  }
 0x48a   : > { %v6025_v19 = vpop.f32.mrf.mxu1  ;;  %7954 = vmatmul.mubr.bf16.gmra.mxu1 %v13005_v26  ;;  %v7022_v28 = vpop.f32.mrf.mxu0  ;;  %8951 = vmatmul.mubr.bf16.gmra.mxu0 %v13182_v23 }
 0x48b   : > { %v6172_v63 = vadd.f32 %v6025_v19, %v5370_v8  ;;  %7232 = vst [vmem:[#allocation2 + $0xc8] sm:$0xff] %v7168_v1  ;;  %7961 = vmatprep.mubr.bf16.mxu1 %v13008_v6  ;;  %8958 = vmatprep.mubr.bf16.mxu0 %v13185_v14  ;;  %v13014_v14 = vcombine.high %v16558_v27, %v12918_v44  ;;  %v5376_v19 = vld [vmem:[#allocation2 + $0xe8] sm:$0xff] }
 0x48c   : > { %v6027_v20 = vpop.f32.mrf.mxu1  ;;  %v7024_v30 = vpop.f32.mrf.mxu0  ;;  %10861 = vmatpush2.bf16.msra.mxu0 %v14488_v21 }
 0x48d   : > { %v7169_v4 = vadd.f32 %v7022_v28, %v6172_v63  ;;  %10862 = vmatprep.subr.bf16.mxu0 %v14819_v2  ;;  %v12922_v2 = vld [vmem:[%s15095_s6 + $0x280] sm:$0xff] }
 0x48e   : > { %v6028_v60 = vpop.f32.mrf.mxu1  ;;  %v7025_v61 = vpop.f32.mrf.mxu0 }
 0x48f   : > { %v6173_v12 = vadd.f32 %v6028_v60, %v5371_v15  ;;  %7233 = vst [vmem:[#allocation2 + $0x40] sm:$0xff] %v7169_v4  ;;  %v5377_v15 = vld [vmem:[#allocation2 + $0x78] sm:$0xff] }
 0x490   : > { %v6030_v33 = vpop.f32.mrf.mxu1  ;;  %v7027_v29 = vpop.f32.mrf.mxu0 }
 0x491   : > { %v7170_v49 = vadd.f32 %v7025_v61, %v6173_v12 }
 0x492   : > { %v6033_v55 = vpop.f32.mrf.mxu1  ;;  %7962 = vmatmul.mubr.bf16.gmra.mxu1 %v13007_v50  ;;  %v7030_v38 = vpop.f32.mrf.mxu0  ;;  %8959 = vmatmul.mubr.bf16.gmra.mxu0 %v13184_v54  ;;  %v13013_v50 = vcombine.low %v16558_v27, %v12918_v44  ;;  %v13190_v54 = vcombine.low %v12918_v44, %v16568_v47  ;;  %v12921_v27 = vld [vmem:[%s15095_s6 + $0x278] sm:$0xff] }
 0x493   : > { %v6174_v0 = vadd.f32 %v6033_v55, %v5372_v16  ;;  %7234 = vst [vmem:[#allocation2 + $0x1f8] sm:$0xff] %v7170_v49  ;;  %7969 = vmatprep.mubr.bf16.mxu1 %v13010_v22  ;;  %8966 = vmatprep.mubr.bf16.mxu0 %v13187_v17  ;;  %v13016_v22 = vcombine.high %v16568_v47, %v12920_v10  ;;  %v5378_v16 = vld [vmem:[#allocation2 + $0x70] sm:$0xff]  ;;  %v16592_v44 = vld [vmem:[%s15095_s6 + $0x298] sm:$0xff] }
 0x494   : > { %v6035_v31 = vpop.f32.mrf.mxu1  ;;  %v7032_v34 = vpop.f32.mrf.mxu0  ;;  %v13193_v17 = vcombine.high %v12920_v10, %v13097_v56 }
 0x495   : > { %v7171_v32 = vadd.f32 %v7030_v38, %v6174_v0  ;;  %v14493_v31 = vld [vmem:[%s15006_s20 + $0x4c0] sm:$0xff]  }
 0x496   : > { %v6036_v5 = vpop.f32.mrf.mxu1  ;;  %v7033_v9 = vpop.f32.mrf.mxu0  ;;  %9866 = vmatpush2.bf16.msra.mxu1 %v14493_v31 }
 0x497   : > { %v6175_v42 = vadd.f32 %v6036_v5, %v5373_v58  ;;  %7235 = vst [vmem:[#allocation2 + $0x20] sm:$0xff] %v7171_v32  ;;  %v5379_v58 = vld [vmem:[#allocation2 + $0x90] sm:$0xff] }
 0x498   : > { %v6038_v51 = vpop.f32.mrf.mxu1  ;;  %v7035_v53 = vpop.f32.mrf.mxu0 }
 0x499   : > { %v7172_v40 = vadd.f32 %v7033_v9, %v6175_v42 }
 0x49a   : > { %v6041_v18 = vpop.f32.mrf.mxu1  ;;  %7970 = vmatmul.mubr.bf16.gmra.mxu1 %v13009_v46  ;;  %v7038_v36 = vpop.f32.mrf.mxu0  ;;  %8967 = vmatmul.mubr.bf16.gmra.mxu0 %v13186_v35  ;;  %v13015_v46 = vcombine.low %v16568_v47, %v12920_v10  ;;  %v13192_v35 = vcombine.low %v12920_v10, %v13097_v56  ;;  %v14498_v47 = vld [vmem:[%s15006_s20 + $0x540] sm:$0xff]   ;;  %v16600_v56 = vld [vmem:[%s15095_s6 + $0x2a8] sm:$0xff] }
 0x49b   : > { %v6176_v52 = vadd.f32 %v6041_v18, %v5374_v59  ;;  %7236 = vst [vmem:[#allocation2 + $0x128] sm:$0xff] %v7172_v40  ;;  %7977 = vmatprep.mubr.bf16.mxu1 %v13012_v45  ;;  %8974 = vmatprep.mubr.bf16.mxu0 %v13189_v3  ;;  %v13018_v45 = vcombine.high %v12921_v27, %v12922_v2  ;;  %v5380_v59 = vld [vmem:[#allocation2 + $0x1d8] sm:$0xff]  ;;  %v12926_v10 = vld [vmem:[%s15095_s6 + $0x2a0] sm:$0xff] }
 0x49c   : > { %v6043_v48 = vpop.f32.mrf.mxu1  ;;  %v7040_v37 = vpop.f32.mrf.mxu0  ;;  %v13195_v3 = vcombine.high %v12922_v2, %v16586_v25  ;;  %10863 = vmatpush2.bf16.msra.mxu0 %v14498_v47 }
 0x49d   : > { %v7173_v62 = vadd.f32 %v7038_v36, %v6176_v52  ;;  %v12924_v37 = vld [vmem:[%s15095_s6 + $0x290] sm:$0xff] }
 0x49e   : > { %v6044_v26 = vpop.f32.mrf.mxu1  ;;  %v7041_v23 = vpop.f32.mrf.mxu0 }
 0x49f   : > { %v6177_v6 = vadd.f32 %v6044_v26, %v5375_v11  ;;  %7237 = vst [vmem:[#allocation2 + $0x1a0] sm:$0xff] %v7173_v62  ;;  %v5381_v11 = vld [vmem:[#allocation2 + $0xd0] sm:$0xff] }
 0x4a0   : > { %v6046_v43 = vpop.f32.mrf.mxu1  ;;  %v7043_v1 = vpop.f32.mrf.mxu0 }
 0x4a1   : > { %v7174_v8 = vadd.f32 %v7041_v23, %v6177_v6 }
 0x4a2   : > { %v6049_v28 = vpop.f32.mrf.mxu1  ;;  %7978 = vmatmul.mubr.bf16.gmra.mxu1 %v13011_v7  ;;  %v7046_v63 = vpop.f32.mrf.mxu0  ;;  %8975 = vmatmul.mubr.bf16.gmra.mxu0 %v13188_v24  ;;  %v13017_v7 = vcombine.low %v12921_v27, %v12922_v2  ;;  %v13194_v24 = vcombine.low %v12922_v2, %v16586_v25  ;;  %v5385_v2 = vld [vmem:[#allocation2 + $0x1c8] sm:$0xff] }
 0x4a3   : > { %v6178_v13 = vadd.f32 %v6049_v28, %v5376_v19  ;;  %7238 = vst [vmem:[#allocation2 + $0x1f0] sm:$0xff] %v7174_v8  ;;  %7985 = vmatprep.mubr.bf16.mxu1 %v13014_v14  ;;  %8982 = vmatprep.mubr.bf16.mxu0 %v13191_v57  ;;  %v13020_v14 = vcombine.high %v16586_v25, %v12924_v37  ;;  %v5382_v19 = vld [vmem:[#allocation2 + $0xb8] sm:$0xff] }
 0x4a4   : > { %v6051_v20 = vpop.f32.mrf.mxu1  ;;  %v7048_v30 = vpop.f32.mrf.mxu0  ;;  %v13197_v57 = vcombine.high %v12924_v37, %v16592_v44 }
 0x4a5   : > { %v7175_v4 = vadd.f32 %v7046_v63, %v6178_v13 }
 0x4a6   : > { %v6052_v60 = vpop.f32.mrf.mxu1  ;;  %v7049_v61 = vpop.f32.mrf.mxu0 }
 0x4a7   : > { %v6179_v12 = vadd.f32 %v6052_v60, %v5377_v15  ;;  %7239 = vst [vmem:[#allocation2 + $0xe8] sm:$0xff] %v7175_v4  ;;  %v5383_v4 = vld [vmem:[#allocation2 + $0x88] sm:$0xff]  ;;  %v13019_v60 = vcombine.low %v16586_v25, %v12924_v37 }
 0x4a8   : > { %v6054_v33 = vpop.f32.mrf.mxu1  ;;  %v7051_v29 = vpop.f32.mrf.mxu0 }
 0x4a9   : > { %v7176_v49 = vadd.f32 %v7049_v61, %v6179_v12  ;;  %v13196_v61 = vcombine.low %v12924_v37, %v16592_v44  ;;  %v13022_v12 = vcombine.high %v16592_v44, %v12926_v10 }
 0x4aa   : > { %v6057_v55 = vpop.f32.mrf.mxu1  ;;  %7986 = vmatmul.mubr.bf16.gmra.mxu1 %v13013_v50  ;;  %v7054_v38 = vpop.f32.mrf.mxu0  ;;  %8983 = vmatmul.mubr.bf16.gmra.mxu0 %v13190_v54 }
 0x4ab   : > { %v6180_v0 = vadd.f32 %v6057_v55, %v5378_v16  ;;  %7240 = vst [vmem:[#allocation2 + $0x78] sm:$0xff] %v7176_v49  ;;  %7993 = vmatprep.mubr.bf16.mxu1 %v13016_v22  ;;  %8990 = vmatprep.mubr.bf16.mxu0 %v13193_v17  ;;  %v13199_v22 = vcombine.high %v12926_v10, %v16600_v56  ;;  %v5384_v49 = vld [vmem:[#allocation2 + $0xa8] sm:$0xff] }
 0x4ac   : > { %v6059_v34 = vpop.f32.mrf.mxu1  ;;  %v7056_v39 = vpop.f32.mrf.mxu0 }
 0x4ad   : > { %v7177_v32 = vadd.f32 %v7054_v38, %v6180_v0  ;;  %v12928_v34 = vld [vmem:[%s15095_s6 + $0x2b0] sm:$0xff]  ;;  %v13105_v39 = vld [vmem:[%s15095_s6 + $0x2b8] sm:$0xff] }
 0x4ae   : > { %v6060_v5 = vpop.f32.mrf.mxu1  ;;  %v7057_v9 = vpop.f32.mrf.mxu0 }
 0x4af   : > { %v6181_v42 = vadd.f32 %v6060_v5, %v5379_v58  ;;  %7241 = vst [vmem:[#allocation2 + $0x70] sm:$0xff] %v7177_v32  ;;  %v13021_v32 = vcombine.low %v16592_v44, %v12926_v10  ;;  %v13198_v5 = vcombine.low %v12926_v10, %v16600_v56  ;;  %v5387_v44 = vld [vmem:[#allocation2 + $0x178] sm:$0xff]  ;;  %v5389_v10 = vld [vmem:[#allocation2 + $0x190] sm:$0xff] }
 0x4b0   : > { %v6062_v51 = vpop.f32.mrf.mxu1  ;;  %v7059_v53 = vpop.f32.mrf.mxu0 }
 0x4b1   : > { %v7178_v40 = vadd.f32 %v7057_v9, %v6181_v42  ;;  %v13024_v9 = vcombine.high %v16600_v56, %v12928_v34  ;;  %v5386_v51 = vld [vmem:[#allocation2 + $0x170] sm:$0xff] }
 0x4b2   : > { %v6065_v18 = vpop.f32.mrf.mxu1  ;;  %7994 = vmatmul.mubr.bf16.gmra.mxu1 %v13015_v46  ;;  %v7062_v36 = vpop.f32.mrf.mxu0  ;;  %8991 = vmatmul.mubr.bf16.gmra.mxu0 %v13192_v35  ;;  %v13201_v35 = vcombine.high %v12928_v34, %v13105_v39 }
 0x4b3   : > { %v6182_v52 = vadd.f32 %v6065_v18, %v5380_v59  ;;  %7242 = vst [vmem:[#allocation2 + $0x90] sm:$0xff] %v7178_v40  ;;  %8001 = vmatprep.mubr.bf16.mxu1 %v13018_v45  ;;  %8998 = vmatprep.mubr.bf16.mxu0 %v13195_v3 }
 0x4b4   : > { %v6067_v41 = vpop.f32.mrf.mxu1  ;;  %v7064_v48 = vpop.f32.mrf.mxu0 }
 0x4b5   : > { %v7179_v62 = vadd.f32 %v7062_v36, %v6182_v52  ;;  %v12929_v52 = vld [vmem:[%s15095_s6 + $0x308] sm:$0xff]  ;;  %v12930_v41 = vld [vmem:[%s15095_s6 + $0x310] sm:$0xff]  ;;  %v16614_v48 = vld [vmem:[%s15095_s6 + $0x318] sm:$0xff] }
 0x4b6   : > { %v6068_v26 = vpop.f32.mrf.mxu1  ;;  %v7065_v23 = vpop.f32.mrf.mxu0 }
 0x4b7   : > { %v6183_v6 = vadd.f32 %v6068_v26, %v5381_v11  ;;  %7243 = vst [vmem:[#allocation2 + $0x1d8] sm:$0xff] %v7179_v62  ;;  %v13023_v62 = vcombine.low %v16600_v56, %v12928_v34  ;;  %v13200_v26 = vcombine.low %v12928_v34, %v13105_v39  ;;  %v5391_v34 = vld [vmem:[#allocation2 + $0x38] sm:$0xff] }
 0x4b8   : > { %v6070_v43 = vpop.f32.mrf.mxu1  ;;  %v7067_v1 = vpop.f32.mrf.mxu0 }
 0x4b9   : > { %v7180_v8 = vadd.f32 %v7065_v23, %v6183_v6  ;;  %v13026_v23 = vcombine.high %v12929_v52, %v12930_v41  ;;  %v5388_v43 = vld [vmem:[#allocation2 + $0x68] sm:$0xff] }
 0x4ba   : > { %v6073_v28 = vpop.f32.mrf.mxu1  ;;  %8002 = vmatmul.mubr.bf16.gmra.mxu1 %v13017_v7  ;;  %v7070_v63 = vpop.f32.mrf.mxu0  ;;  %8999 = vmatmul.mubr.bf16.gmra.mxu0 %v13194_v24  ;;  %v13203_v24 = vcombine.high %v12930_v41, %v16614_v48 }
 0x4bb   : > { %v6184_v13 = vadd.f32 %v6073_v28, %v5382_v19  ;;  %7244 = vst [vmem:[#allocation2 + $0xd0] sm:$0xff] %v7180_v8  ;;  %8009 = vmatprep.mubr.bf16.mxu1 %v13020_v14  ;;  %9006 = vmatprep.mubr.bf16.mxu0 %v13197_v57 }
 0x4bc   : > { %v6075_v20 = vpop.f32.mrf.mxu1  ;;  %v7072_v30 = vpop.f32.mrf.mxu0 }
 0x4bd   : > { %v7181_v21 = vadd.f32 %v7070_v63, %v6184_v13  ;;  %v12932_v13 = vld [vmem:[%s15095_s6 + $0x320] sm:$0xff]  ;;  %v16620_v20 = vld [vmem:[%s15095_s6 + $0x328] sm:$0xff] }
 0x4be   : > { %v6076_v15 = vpop.f32.mrf.mxu1  ;;  %v7073_v50 = vpop.f32.mrf.mxu0 }
 0x4bf   : > { %v6185_v54 = vadd.f32 %v6076_v15, %v5383_v4  ;;  %7245 = vst [vmem:[#allocation2 + $0xb8] sm:$0xff] %v7181_v21  ;;  %v13025_v21 = vcombine.low %v12929_v52, %v12930_v41  ;;  %v13202_v15 = vcombine.low %v12930_v41, %v16614_v48  ;;  %v5393_v52 = vld [vmem:[#allocation2 + $0x1c0] sm:$0xff] }
 0x4c0   : > { %v6078_v17 = vpop.f32.mrf.mxu1  ;;  %v7075_v33 = vpop.f32.mrf.mxu0 }
 0x4c1   : > { %v7182_v29 = vadd.f32 %v7073_v50, %v6185_v54  ;;  %v13028_v50 = vcombine.high %v16614_v48, %v12932_v13  ;;  %v5390_v17 = vld [vmem:[#allocation2 + $0x198] sm:$0xff] }
 0x4c2   : > { %v6081_v16 = vpop.f32.mrf.mxu1  ;;  %8010 = vmatmul.mubr.bf16.gmra.mxu1 %v13019_v60  ;;  %v7078_v55 = vpop.f32.mrf.mxu0  ;;  %9007 = vmatmul.mubr.bf16.gmra.mxu0 %v13196_v61  ;;  %v13205_v61 = vcombine.high %v12932_v13, %v16620_v20 }
 0x4c3   : > { %v6186_v38 = vadd.f32 %v6081_v16, %v5384_v49  ;;  %7246 = vst [vmem:[#allocation2 + $0x88] sm:$0xff] %v7182_v29  ;;  %8017 = vmatprep.mubr.bf16.mxu1 %v13022_v12  ;;  %9014 = vmatprep.mubr.bf16.mxu0 %v13199_v22 }
 0x4c4   : > { %v6083_v0 = vpop.f32.mrf.mxu1  ;;  %v7080_v31 = vpop.f32.mrf.mxu0 }
 0x4c5   : > { %v7183_v27 = vadd.f32 %v7078_v55, %v6186_v38  ;;  %v12934_v38 = vld [vmem:[%s15095_s6 + $0x330] sm:$0xff]  ;;  %v16627_v0 = vld [vmem:[%s15095_s6 + $0x338] sm:$0xff] }
 0x4c6   : > { %v6084_v25 = vpop.f32.mrf.mxu1  ;;  %v7081_v58 = vpop.f32.mrf.mxu0 }
 0x4c7   : > { %v6187_v46 = vadd.f32 %v6084_v25, %v5385_v2  ;;  %7247 = vst [vmem:[#allocation2 + $0xa8] sm:$0xff] %v7183_v27  ;;  %v13027_v27 = vcombine.low %v16614_v48, %v12932_v13  ;;  %v13204_v25 = vcombine.low %v12932_v13, %v16620_v20  ;;  %v13029_v48 = vcombine.low %v16620_v20, %v12934_v38  ;;  %v5395_v13 = vld [vmem:[#allocation2 + $0x10] sm:$0xff] }
 0x4c8   : > { %v6086_v42 = vpop.f32.mrf.mxu1  ;;  %v7083_v45 = vpop.f32.mrf.mxu0 }
 0x4c9   : > { %v7184_v3 = vadd.f32 %v7081_v58, %v6187_v46  ;;  %v13030_v58 = vcombine.high %v16620_v20, %v12934_v38  ;;  %v5392_v42 = vld [vmem:[#allocation2 + $0xc0] sm:$0xff] }
 0x4ca   : > { %v6089_v53 = vpop.f32.mrf.mxu1  ;;  %8018 = vmatmul.mubr.bf16.gmra.mxu1 %v13021_v32  ;;  %v7086_v40 = vpop.f32.mrf.mxu0  ;;  %9015 = vmatmul.mubr.bf16.gmra.mxu0 %v13198_v5  ;;  %v13207_v5 = vcombine.high %v12934_v38, %v16627_v0 }
 0x4cb   : > { %v6188_v59 = vadd.f32 %v6089_v53, %v5386_v51  ;;  %7248 = vst [vmem:[#allocation2 + $0x1c8] sm:$0xff] %v7184_v3  ;;  %8025 = vmatprep.mubr.bf16.mxu1 %v13024_v9  ;;  %9022 = vmatprep.mubr.bf16.mxu0 %v13201_v35 }
 0x4cc   : > { %v6091_v18 = vpop.f32.mrf.mxu1  ;;  %v7088_v36 = vpop.f32.mrf.mxu0 }
 0x4cd   : > { %v7185_v37 = vadd.f32 %v7086_v40, %v6188_v59  ;;  %v12936_v59 = vld [vmem:[%s15095_s6 + $0x340] sm:$0xff]  ;;  %v13113_v18 = vld [vmem:[%s15095_s6 + $0x348] sm:$0xff] }
 0x4ce   : > { %v6092_v47 = vpop.f32.mrf.mxu1  ;;  %v7089_v11 = vpop.f32.mrf.mxu0 }
 0x4cf   : > { %v6189_v7 = vadd.f32 %v6092_v47, %v5387_v44  ;;  %7249 = vst [vmem:[#allocation2 + $0x170] sm:$0xff] %v7185_v37  ;;  %v13206_v44 = vcombine.low %v12934_v38, %v16627_v0  ;;  %v5397_v38 = vld [vmem:[#allocation2 + $0xa0] sm:$0xff] }
 0x4d0   : > { %v6094_v6 = vpop.f32.mrf.mxu1  ;;  %v7091_v14 = vpop.f32.mrf.mxu0 }
 0x4d1   : > { %v7186_v57 = vadd.f32 %v7089_v11, %v6189_v7  ;;  %v13209_v11 = vcombine.high %v12936_v59, %v13113_v18 }
 0x4d2   : > { %v6097_v1 = vpop.f32.mrf.mxu1  ;;  %8026 = vmatmul.mubr.bf16.gmra.mxu1 %v13023_v62  ;;  %v7094_v8 = vpop.f32.mrf.mxu0  ;;  %9023 = vmatmul.mubr.bf16.gmra.mxu0 %v13200_v26  ;;  %v13032_v62 = vcombine.high %v16627_v0, %v12936_v59 }
 0x4d3   : > { %v6190_v19 = vadd.f32 %v6097_v1, %v5388_v43  ;;  %7250 = vst [vmem:[#allocation2 + $0x178] sm:$0xff] %v7186_v57  ;;  %8033 = vmatprep.mubr.bf16.mxu1 %v13026_v23  ;;  %9030 = vmatprep.mubr.bf16.mxu0 %v13203_v24  ;;  %v5394_v24 = vld [vmem:[#allocation2 + $0x158] sm:$0xff] }
 0x4d4   : > { %v6099_v28 = vpop.f32.mrf.mxu1  ;;  %v7096_v63 = vpop.f32.mrf.mxu0 }
 0x4d5   : > { %v7187_v30 = vadd.f32 %v7094_v8, %v6190_v19  ;;  %v12937_v8 = vld [vmem:[%s15095_s6 + $0x398] sm:$0xff]  ;;  %v12938_v19 = vld [vmem:[%s15095_s6 + $0x3a0] sm:$0xff]  ;;  %v16641_v28 = vld [vmem:[%s15095_s6 + $0x3a8] sm:$0xff] }
 0x4d6   : > { %v6100_v56 = vpop.f32.mrf.mxu1  ;;  %v7097_v4 = vpop.f32.mrf.mxu0 }
 0x4d7   : > { %v6191_v60 = vadd.f32 %v6100_v56, %v5389_v10  ;;  %7251 = vst [vmem:[#allocation2 + $0x68] sm:$0xff] %v7187_v30  ;;  %v13031_v30 = vcombine.low %v16627_v0, %v12936_v59  ;;  %v13208_v56 = vcombine.low %v12936_v59, %v13113_v18  ;;  %v7329_v59 = vld [vmem:[#allocation2 + $0x1b0] sm:$0xff] }
 0x4d8   : > { %v6102_v54 = vpop.f32.mrf.mxu1  ;;  %v7099_v12 = vpop.f32.mrf.mxu0 }
 0x4d9   : > { %v7188_v22 = vadd.f32 %v7097_v4, %v6191_v60  ;;  %v13034_v4 = vcombine.high %v12937_v8, %v12938_v19  ;;  %v5396_v54 = vld [vmem:[#allocation2 + $0x58] sm:$0xff] }
 0x4da   : > { %v6105_v33 = vpop.f32.mrf.mxu1  ;;  %8034 = vmatmul.mubr.bf16.gmra.mxu1 %v13025_v21  ;;  %v7102_v29 = vpop.f32.mrf.mxu0  ;;  %9031 = vmatmul.mubr.bf16.gmra.mxu0 %v13202_v15  ;;  %v13211_v15 = vcombine.high %v12938_v19, %v16641_v28 }
 0x4db   : > { %v6192_v49 = vadd.f32 %v6105_v33, %v5390_v17  ;;  %7252 = vst [vmem:[#allocation2 + $0x190] sm:$0xff] %v7188_v22  ;;  %8041 = vmatprep.mubr.bf16.mxu1 %v13028_v50  ;;  %9038 = vmatprep.mubr.bf16.mxu0 %v13205_v61 }
 0x4dc   : > { %v6107_v16 = vpop.f32.mrf.mxu1  ;;  %v7104_v55 = vpop.f32.mrf.mxu0 }
 0x4dd   : > { %v7189_v31 = vadd.f32 %v7102_v29, %v6192_v49  ;;  %v12940_v49 = vld [vmem:[%s15095_s6 + $0x3b0] sm:$0xff]  ;;  %v16647_v16 = vld [vmem:[%s15095_s6 + $0x3b8] sm:$0xff] }
 0x4de   : > { %v6108_v39 = vpop.f32.mrf.mxu1  ;;  %v7105_v2 = vpop.f32.mrf.mxu0 }
 0x4df   : > { %v6193_v32 = vadd.f32 %v6108_v39, %v5391_v34  ;;  %7253 = vst [vmem:[#allocation2 + $0x198] sm:$0xff] %v7189_v31  ;;  %v13033_v31 = vcombine.low %v12937_v8, %v12938_v19  ;;  %v13210_v39 = vcombine.low %v12938_v19, %v16641_v28  ;;  %v7331_v8 = vld [vmem:[#allocation2 + $0x18] sm:$0xff] }
 0x4e0   : > { %v6110_v46 = vpop.f32.mrf.mxu1  ;;  %v7107_v9 = vpop.f32.mrf.mxu0 }
 0x4e1   : > { %v7190_v35 = vadd.f32 %v7105_v2, %v6193_v32  ;;  %v13036_v2 = vcombine.high %v16641_v28, %v12940_v49  ;;  %v7328_v46 = vld [vmem:[#allocation2 + $0xb0] sm:$0xff] }
 0x4e2   : > { %v6113_v45 = vpop.f32.mrf.mxu1  ;;  %8042 = vmatmul.mubr.bf16.gmra.mxu1 %v13027_v27  ;;  %v7110_v3 = vpop.f32.mrf.mxu0  ;;  %9039 = vmatmul.mubr.bf16.gmra.mxu0 %v13204_v25  ;;  %v13213_v25 = vcombine.high %v12940_v49, %v16647_v16 }
 0x4e3   : > { %v6194_v51 = vadd.f32 %v6113_v45, %v5392_v42  ;;  %7254 = vst [vmem:[#allocation2 + $0x38] sm:$0xff] %v7190_v35  ;;  %8049 = vmatprep.mubr.bf16.mxu1 %v13030_v58  ;;  %9046 = vmatprep.mubr.bf16.mxu0 %v13207_v5 }
 0x4e4   : > { %v6115_v53 = vpop.f32.mrf.mxu1  ;;  %v7112_v40 = vpop.f32.mrf.mxu0 }
 0x4e5   : > { %v7191_v36 = vadd.f32 %v7110_v3, %v6194_v51  ;;  %v12942_v51 = vld [vmem:[%s15095_s6 + $0x3c0] sm:$0xff]  ;;  %v16654_v53 = vld [vmem:[%s15095_s6 + $0x3c8] sm:$0xff] }
 0x4e6   : > { %v6116_v41 = vpop.f32.mrf.mxu1  ;;  %v7113_v37 = vpop.f32.mrf.mxu0 }
 0x4e7   : > { %v6195_v47 = vadd.f32 %v6116_v41, %v5393_v52  ;;  %7255 = vst [vmem:[#allocation2 + $0xc0] sm:$0xff] %v7191_v36  ;;  %v13035_v36 = vcombine.low %v16641_v28, %v12940_v49  ;;  %v13212_v41 = vcombine.low %v12940_v49, %v16647_v16  ;;  %v13037_v28 = vcombine.low %v16647_v16, %v12942_v51  ;;  %v7333_v49 = vld [vmem:[#allocation2 + $0x168] sm:$0xff] }
 0x4e8   : > { %v6118_v26 = vpop.f32.mrf.mxu1  ;;  %v7115_v7 = vpop.f32.mrf.mxu0 }
 0x4e9   : > { %v7192_v23 = vadd.f32 %v7113_v37, %v6195_v47  ;;  %v13038_v37 = vcombine.high %v16647_v16, %v12942_v51  ;;  %v7330_v26 = vld [vmem:[#allocation2 + $0xd8] sm:$0xff] }
 0x4ea   : > { %v6121_v6 = vpop.f32.mrf.mxu1  ;;  %8050 = vmatmul.mubr.bf16.gmra.mxu1 %v13029_v48  ;;  %v7118_v14 = vpop.f32.mrf.mxu0  ;;  %9047 = vmatmul.mubr.bf16.gmra.mxu0 %v13206_v44  ;;  %v13215_v44 = vcombine.high %v12942_v51, %v16654_v53 }
 0x4eb   : > { %v6196_v57 = vadd.f32 %v6121_v6, %v5394_v24  ;;  %7256 = vst [vmem:[#allocation2 + $0x1c0] sm:$0xff] %v7192_v23  ;;  %8057 = vmatprep.mubr.bf16.mxu1 %v13032_v62  ;;  %9054 = vmatprep.mubr.bf16.mxu0 %v13209_v11 }
 0x4ec   : > { %v6123_v43 = vpop.f32.mrf.mxu1  ;;  %v7120_v1 = vpop.f32.mrf.mxu0 }
 0x4ed   : > { %v7193_v63 = vadd.f32 %v7118_v14, %v6196_v57  ;;  %v12944_v57 = vld [vmem:[%s15095_s6 + $0x3d0] sm:$0xff]  ;;  %v13121_v43 = vld [vmem:[%s15095_s6 + $0x3d8] sm:$0xff] }
 0x4ee   : > { %v6124_v20 = vpop.f32.mrf.mxu1  ;;  %v7121_v10 = vpop.f32.mrf.mxu0 }
 0x4ef   : > { %v6197_v21 = vadd.f32 %v6124_v20, %v5395_v13  ;;  %7257 = vst [vmem:[#allocation2 + $0x158] sm:$0xff] %v7193_v63  ;;  %v13214_v13 = vcombine.low %v12942_v51, %v16654_v53  ;;  %v7335_v51 = vld [vmem:[#allocation2 + $0x48] sm:$0xff] }
 0x4f0   : > { %v6126_v60 = vpop.f32.mrf.mxu1  ;;  %v7123_v50 = vpop.f32.mrf.mxu0 }
 0x4f1   : > { %v7194_v61 = vadd.f32 %v7121_v10, %v6197_v21  ;;  %v13217_v10 = vcombine.high %v12944_v57, %v13121_v43 }
 0x4f2   : > { %v6129_v12 = vpop.f32.mrf.mxu1  ;;  %8058 = vmatmul.mubr.bf16.gmra.mxu1 %v13031_v30  ;;  %v7126_v22 = vpop.f32.mrf.mxu0  ;;  %9055 = vmatmul.mubr.bf16.gmra.mxu0 %v13208_v56  ;;  %v13040_v30 = vcombine.high %v16654_v53, %v12944_v57 }
 0x4f3   : > { %v6198_v17 = vadd.f32 %v6129_v12, %v5396_v54  ;;  %7258 = vst [vmem:[#allocation2 + $0x10] sm:$0xff] %v7194_v61  ;;  %8065 = vmatprep.mubr.bf16.mxu1 %v13034_v4  ;;  %9062 = vmatprep.mubr.bf16.mxu0 %v13211_v15  ;;  %v7332_v15 = vld [vmem:[#allocation2 + $0x50] sm:$0xff] }
 0x4f4   : > { %v6131_v33 = vpop.f32.mrf.mxu1  ;;  %v7128_v29 = vpop.f32.mrf.mxu0 }
 0x4f5   : > { %v7195_v55 = vadd.f32 %v7126_v22, %v6198_v17  ;;  %v12945_v22 = vld [vmem:[%s15095_s6 + $0x428] sm:$0xff]  ;;  %v12946_v17 = vld [vmem:[%s15095_s6 + $0x430] sm:$0xff]  ;;  %v16668_v33 = vld [vmem:[%s15095_s6 + $0x438] sm:$0xff] }
 0x4f6   : > { %v6132_v0 = vpop.f32.mrf.mxu1  ;;  %v7129_v34 = vpop.f32.mrf.mxu0 }
 0x4f7   : > { %v6199_v27 = vadd.f32 %v6132_v0, %v5397_v38  ;;  %7259 = vst [vmem:[#allocation2 + $0x58] sm:$0xff] %v7195_v55  ;;  %v13039_v55 = vcombine.low %v16654_v53, %v12944_v57  ;;  %v13216_v0 = vcombine.low %v12944_v57, %v13121_v43  ;;  %v7337_v57 = vld [vmem:[#allocation2 + $0x110] sm:$0xff] }
 0x4f8   : > { %v6134_v32 = vpop.f32.mrf.mxu1  ;;  %v7131_v58 = vpop.f32.mrf.mxu0 }
 0x4f9   : > { %v7196_v5 = vadd.f32 %v7129_v34, %v6199_v27  ;;  %v13042_v34 = vcombine.high %v12945_v22, %v12946_v17  ;;  %v7334_v32 = vld [vmem:[#allocation2 + $0x130] sm:$0xff] }
 0x4fa   : > { %v7875_v9 = vpop.f32.mrf.mxu1  ;;  %8066 = vmatmul.mubr.bf16.gmra.mxu1 %v13033_v31  ;;  %v8872_v35 = vpop.f32.mrf.mxu0  ;;  %9063 = vmatmul.mubr.bf16.gmra.mxu0 %v13210_v39  ;;  %v13219_v39 = vcombine.high %v12946_v17, %v16668_v33 }
 0x4fb   : > { %v8130_v42 = vadd.f32 %v7875_v9, %v7328_v46  ;;  %7260 = vst [vmem:[#allocation2 + $0xa0] sm:$0xff] %v7196_v5  ;;  %8073 = vmatprep.mubr.bf16.mxu1 %v13036_v2  ;;  %9070 = vmatprep.mubr.bf16.mxu0 %v13213_v25 }
 0x4fc   : > { %v7877_v45 = vpop.f32.mrf.mxu1  ;;  %v8874_v3 = vpop.f32.mrf.mxu0 }
 0x4fd   : > { %v9127_v40 = vadd.f32 %v8872_v35, %v8130_v42  ;;  %v12948_v42 = vld [vmem:[%s15095_s6 + $0x440] sm:$0xff]  ;;  %v16674_v45 = vld [vmem:[%s15095_s6 + $0x448] sm:$0xff] }
 0x4fe   : > { %v7878_v18 = vpop.f32.mrf.mxu1  ;;  %v8875_v52 = vpop.f32.mrf.mxu0 }
 0x4ff   : > { %v8131_v48 = vadd.f32 %v7878_v18, %v7329_v59  ;;  %9191 = vst [vmem:[#allocation2 + $0xb0] sm:$0xff] %v9127_v40  ;;  %v13041_v40 = vcombine.low %v12945_v22, %v12946_v17  ;;  %v13218_v18 = vcombine.low %v12946_v17, %v16668_v33  ;;  %v7339_v22 = vld [vmem:[#allocation2 + $0x98] sm:$0xff] }
 0x500   : > { %v7880_v47 = vpop.f32.mrf.mxu1  ;;  %v8877_v62 = vpop.f32.mrf.mxu0 }
 0x501   : > { %v9128_v11 = vadd.f32 %v8875_v52, %v8131_v48  ;;  %v13044_v52 = vcombine.high %v16668_v33, %v12948_v42  ;;  %v7336_v47 = vld [vmem:[#allocation2 + $0x180] sm:$0xff] }
 0x502   : > { %v7883_v7 = vpop.f32.mrf.mxu1  ;;  %8074 = vmatmul.mubr.bf16.gmra.mxu1 %v13035_v36  ;;  %v8880_v23 = vpop.f32.mrf.mxu0  ;;  %9071 = vmatmul.mubr.bf16.gmra.mxu0 %v13212_v41  ;;  %v13221_v41 = vcombine.high %v12948_v42, %v16674_v45 }
 0x503   : > { %v8132_v24 = vadd.f32 %v7883_v7, %v7330_v26  ;;  %9192 = vst [vmem:[#allocation2 + $0x1b0] sm:$0xff] %v9128_v11  ;;  %8081 = vmatprep.mubr.bf16.mxu1 %v13038_v37  ;;  %9078 = vmatprep.mubr.bf16.mxu0 %v13215_v44 }
 0x504   : > { %v7885_v6 = vpop.f32.mrf.mxu1  ;;  %v8882_v14 = vpop.f32.mrf.mxu0 }
 0x505   : > { %v9129_v1 = vadd.f32 %v8880_v23, %v8132_v24  ;;  %v12950_v24 = vld [vmem:[%s15095_s6 + $0x450] sm:$0xff]  ;;  %v16681_v6 = vld [vmem:[%s15095_s6 + $0x458] sm:$0xff] }
 0x506   : > { %v7886_v19 = vpop.f32.mrf.mxu1  ;;  %v8883_v63 = vpop.f32.mrf.mxu0 }
 0x507   : > { %v8133_v20 = vadd.f32 %v7886_v19, %v7331_v8  ;;  %9193 = vst [vmem:[#allocation2 + $0xd8] sm:$0xff] %v9129_v1  ;;  %v13043_v1 = vcombine.low %v16668_v33, %v12948_v42  ;;  %v13220_v19 = vcombine.low %v12948_v42, %v16674_v45  ;;  %v13045_v33 = vcombine.low %v16674_v45, %v12950_v24  ;;  %v7341_v42 = vld [vmem:[#allocation2 + $0x150] sm:$0xff] }
 0x508   : > { %v7888_v56 = vpop.f32.mrf.mxu1  ;;  %v8885_v21 = vpop.f32.mrf.mxu0 }
 0x509   : > { %v9130_v4 = vadd.f32 %v8883_v63, %v8133_v20  ;;  %v13046_v63 = vcombine.high %v16674_v45, %v12950_v24  ;;  %v7338_v56 = vld [vmem:[#allocation2 + $0x118] sm:$0xff] }
 0x50a   : > { %v7891_v60 = vpop.f32.mrf.mxu1  ;;  %8082 = vmatmul.mubr.bf16.gmra.mxu1 %v13037_v28  ;;  %v8888_v50 = vpop.f32.mrf.mxu0  ;;  %9079 = vmatmul.mubr.bf16.gmra.mxu0 %v13214_v13  ;;  %v13223_v13 = vcombine.high %v12950_v24, %v16681_v6 }
 0x50b   : > { %v8134_v61 = vadd.f32 %v7891_v60, %v7332_v15  ;;  %9194 = vst [vmem:[#allocation2 + $0x18] sm:$0xff] %v9130_v4  ;;  %8089 = vmatprep.mubr.bf16.mxu1 %v13040_v30  ;;  %9086 = vmatprep.mubr.bf16.mxu0 %v13217_v10 }
 0x50c   : > { %v7893_v54 = vpop.f32.mrf.mxu1  ;;  %v8890_v12 = vpop.f32.mrf.mxu0 }
 0x50d   : > { %v9131_v29 = vadd.f32 %v8888_v50, %v8134_v61  ;;  %v12952_v61 = vld [vmem:[%s15095_s6 + $0x460] sm:$0xff]  ;;  %v13129_v54 = vld [vmem:[%s15095_s6 + $0x468] sm:$0xff] }
 0x50e   : > { %v7894_v16 = vpop.f32.mrf.mxu1  ;;  %v8891_v38 = vpop.f32.mrf.mxu0 }
 0x50f   : > { %v8135_v31 = vadd.f32 %v7894_v16, %v7333_v49  ;;  %9195 = vst [vmem:[#allocation2 + $0x50] sm:$0xff] %v9131_v29  ;;  %v13222_v49 = vcombine.low %v12950_v24, %v16681_v6  ;;  %v7343_v24 = vld [vmem:[#allocation2 + $0x60] sm:$0xff] }
 0x510   : > { %v7896_v27 = vpop.f32.mrf.mxu1  ;;  %v8893_v2 = vpop.f32.mrf.mxu0 }
 0x511   : > { %v9132_v25 = vadd.f32 %v8891_v38, %v8135_v31  ;;  %v13225_v38 = vcombine.high %v12952_v61, %v13129_v54 }
 0x512   : > { %v7899_v58 = vpop.f32.mrf.mxu1  ;;  %8090 = vmatmul.mubr.bf16.gmra.mxu1 %v13039_v55  ;;  %v8896_v5 = vpop.f32.mrf.mxu0  ;;  %9087 = vmatmul.mubr.bf16.gmra.mxu0 %v13216_v0  ;;  %v13048_v55 = vcombine.high %v16681_v6, %v12952_v61 }
 0x513   : > { %v8136_v46 = vadd.f32 %v7899_v58, %v7334_v32  ;;  %9196 = vst [vmem:[#allocation2 + $0x168] sm:$0xff] %v9132_v25  ;;  %8097 = vmatprep.mubr.bf16.mxu1 %v13042_v34  ;;  %9094 = vmatprep.mubr.bf16.mxu0 %v13219_v39  ;;  %v7340_v39 = vld [vmem:[#allocation2 + $0x120] sm:$0xff] }
 0x514   : > { %v7901_v9 = vpop.f32.mrf.mxu1  ;;  %v8898_v35 = vpop.f32.mrf.mxu0 }
 0x515   : > { %v9133_v3 = vadd.f32 %v8896_v5, %v8136_v46  ;;  %v13243_v5 = vld [vmem:[%s15095_s6 + $0x48] sm:$0xff]  ;;  %v13244_v46 = vld [vmem:[%s15095_s6 + $0x50] sm:$0xff]  ;;  %v16695_v9 = vld [vmem:[%s15095_s6 + $0x58] sm:$0xff] }
 0x516   : > { %v7902_v53 = vpop.f32.mrf.mxu1  ;;  %v8899_v59 = vpop.f32.mrf.mxu0 }
 0x517   : > { %v8137_v36 = vadd.f32 %v7902_v53, %v7335_v51  ;;  %9197 = vst [vmem:[#allocation2 + $0x130] sm:$0xff] %v9133_v3  ;;  %v13047_v3 = vcombine.low %v16681_v6, %v12952_v61  ;;  %v13224_v53 = vcombine.low %v12952_v61, %v13129_v54  ;;  %v7345_v61 = vld [vmem:[#allocation2 + $0x188] sm:$0xff] }
 0x518   : > { %v7904_v48 = vpop.f32.mrf.mxu1  ;;  %v8901_v37 = vpop.f32.mrf.mxu0 }
 0x519   : > { %v9134_v44 = vadd.f32 %v8899_v59, %v8137_v36  ;;  %v13340_v59 = vcombine.high %v13243_v5, %v13244_v46  ;;  %v7342_v48 = vld [vmem:[#allocation2 + $0x108] sm:$0xff] }
 0x51a   : > { %v7907_v62 = vpop.f32.mrf.mxu1  ;;  %8098 = vmatmul.mubr.bf16.gmra.mxu1 %v13041_v40  ;;  %v8904_v11 = vpop.f32.mrf.mxu0  ;;  %9095 = vmatmul.mubr.bf16.gmra.mxu0 %v13218_v18  ;;  %v13517_v18 = vcombine.high %v13244_v46, %v16695_v9 }
 0x51b   : > { %v8138_v26 = vadd.f32 %v7907_v62, %v7336_v47  ;;  %9198 = vst [vmem:[#allocation2 + $0x48] sm:$0xff] %v9134_v44  ;;  %8105 = vmatprep.mubr.bf16.mxu1 %v13044_v52  ;;  %9102 = vmatprep.mubr.bf16.mxu0 %v13221_v41 }
 0x51c   : > { %v7909_v7 = vpop.f32.mrf.mxu1  ;;  %v8906_v23 = vpop.f32.mrf.mxu0 }
 0x51d   : > { %v9135_v14 = vadd.f32 %v8904_v11, %v8138_v26  ;;  %v13246_v26 = vld [vmem:[%s15095_s6 + $0x60] sm:$0xff]  ;;  %v16701_v7 = vld [vmem:[%s15095_s6 + $0x68] sm:$0xff] }
 0x51e   : > { %v7910_v43 = vpop.f32.mrf.mxu1  ;;  %v8907_v8 = vpop.f32.mrf.mxu0 }
 0x51f   : > { %v8139_v28 = vadd.f32 %v7910_v43, %v7337_v57  ;;  %9199 = vst [vmem:[#allocation2 + $0x180] sm:$0xff] %v9135_v14  ;;  %v13339_v14 = vcombine.low %v13243_v5, %v13244_v46  ;;  %v13516_v43 = vcombine.low %v13244_v46, %v16695_v9  ;;  %v7347_v5 = vld [vmem:[#allocation2 + $0x140] sm:$0xff] }
 0x520   : > { %v7912_v20 = vpop.f32.mrf.mxu1  ;;  %v8909_v30 = vpop.f32.mrf.mxu0 }
 0x521   : > { %v9136_v10 = vadd.f32 %v8907_v8, %v8139_v28  ;;  %v13342_v8 = vcombine.high %v16695_v9, %v13246_v26  ;;  %v7344_v20 = vld [vmem:[#allocation2 + $0xe0] sm:$0xff] }
 0x522   : > { %v7915_v21 = vpop.f32.mrf.mxu1  ;;  %8106 = vmatmul.mubr.bf16.gmra.mxu1 %v13043_v1  ;;  %v8912_v4 = vpop.f32.mrf.mxu0  ;;  %9103 = vmatmul.mubr.bf16.gmra.mxu0 %v13220_v19  ;;  %v13519_v19 = vcombine.high %v13246_v26, %v16701_v7 }
 0x523   : > { %v8140_v15 = vadd.f32 %v7915_v21, %v7338_v56  ;;  %9200 = vst [vmem:[#allocation2 + $0x110] sm:$0xff] %v9136_v10  ;;  %8113 = vmatprep.mubr.bf16.mxu1 %v13046_v63  ;;  %9110 = vmatprep.mubr.bf16.mxu0 %v13223_v13 }
 0x524   : > { %v7917_v60 = vpop.f32.mrf.mxu1  ;;  %v8914_v50 = vpop.f32.mrf.mxu0 }
 0x525   : > { %v9137_v12 = vadd.f32 %v8912_v4, %v8140_v15  ;;  %v13248_v15 = vld [vmem:[%s15095_s6 + $0x70] sm:$0xff]  ;;  %v16708_v60 = vld [vmem:[%s15095_s6 + $0x78] sm:$0xff] }
 0x526   : > { %v7918_v17 = vpop.f32.mrf.mxu1  ;;  %v8915_v29 = vpop.f32.mrf.mxu0 }
 0x527   : > { %v8141_v16 = vadd.f32 %v7918_v17, %v7339_v22  ;;  %9201 = vst [vmem:[#allocation2 + $0x118] sm:$0xff] %v9137_v12  ;;  %v13341_v12 = vcombine.low %v16695_v9, %v13246_v26  ;;  %v13518_v17 = vcombine.low %v13246_v26, %v16701_v7  ;;  %v13343_v9 = vcombine.low %v16701_v7, %v13248_v15  ;;  %v7349_v26 = vld [vmem:[#allocation2 + $0x1a8] sm:$0xff] }
 0x528   : > { %v7920_v0 = vpop.f32.mrf.mxu1  ;;  %v8917_v31 = vpop.f32.mrf.mxu0 }
 0x529   : > { %v9138_v34 = vadd.f32 %v8915_v29, %v8141_v16  ;;  %v13344_v29 = vcombine.high %v16701_v7, %v13248_v15  ;;  %v7346_v0 = vld [vmem:[#allocation2 + $0x138] sm:$0xff] }
 0x52a   : > { %v7923_v27 = vpop.f32.mrf.mxu1  ;;  %8114 = vmatmul.mubr.bf16.gmra.mxu1 %v13045_v33  ;;  %v8920_v2 = vpop.f32.mrf.mxu0  ;;  %9111 = vmatmul.mubr.bf16.gmra.mxu0 %v13222_v49  ;;  %v13521_v49 = vcombine.high %v13248_v15, %v16708_v60 }
 0x52b   : > { %v8142_v25 = vadd.f32 %v7923_v27, %v7340_v39  ;;  %9202 = vst [vmem:[#allocation2 + $0x98] sm:$0xff] %v9138_v34  ;;  %8121 = vmatprep.mubr.bf16.mxu1 %v13048_v55  ;;  %9118 = vmatprep.mubr.bf16.mxu0 %v13225_v38 }
 0x52c   : > { %v7925_v32 = vpop.f32.mrf.mxu1  ;;  %v8922_v58 = vpop.f32.mrf.mxu0 }
 0x52d   : > { %v9139_v35 = vadd.f32 %v8920_v2, %v8142_v25  ;;  %v13250_v25 = vld [vmem:[%s15095_s6 + $0x80] sm:$0xff]  ;;  %v13427_v32 = vld [vmem:[%s15095_s6 + $0x88] sm:$0xff] }
 0x52e   : > { %v7926_v45 = vpop.f32.mrf.mxu1  ;;  %v8923_v51 = vpop.f32.mrf.mxu0 }
 0x52f   : > { %v8143_v40 = vadd.f32 %v7926_v45, %v7341_v42  ;;  %9203 = vst [vmem:[#allocation2 + $0x120] sm:$0xff] %v9139_v35  ;;  %v13520_v42 = vcombine.low %v13248_v15, %v16708_v60  ;;  %v7351_v15 = vld [vmem:[#allocation2 + $0x28] sm:$0xff] }
 0x530   : > { %v7928_v36 = vpop.f32.mrf.mxu1  ;;  %v8925_v52 = vpop.f32.mrf.mxu0 }
 0x531   : > { %v9140_v41 = vadd.f32 %v8923_v51, %v8143_v40  ;;  %v13523_v51 = vcombine.high %v13250_v25, %v13427_v32 }
 0x532   : > { %v7931_v37 = vpop.f32.mrf.mxu1  ;;  %8122 = vmatmul.mubr.bf16.gmra.mxu1 %v13047_v3  ;;  %v8928_v44 = vpop.f32.mrf.mxu0  ;;  %9119 = vmatmul.mubr.bf16.gmra.mxu0 %v13224_v53  ;;  %v13346_v3 = vcombine.high %v16708_v60, %v13250_v25 }
 0x533   : > { %v8144_v47 = vadd.f32 %v7931_v37, %v7342_v48  ;;  %9204 = vst [vmem:[#allocation2 + $0x150] sm:$0xff] %v9140_v41  ;;  %9867 = vmatprep.mubr.bf16.mxu1 %v13340_v59  ;;  %10864 = vmatprep.mubr.bf16.mxu0 %v13517_v18  ;;  %v7348_v18 = vld [vmem:[#allocation2 + $0x80] sm:$0xff] }
 0x534   : > { %v7933_v62 = vpop.f32.mrf.mxu1  ;;  %v8930_v11 = vpop.f32.mrf.mxu0 }
 0x535   : > { %v9141_v23 = vadd.f32 %v8928_v44, %v8144_v47  ;;  %v13251_v44 = vld [vmem:[%s15095_s6 + $0xd8] sm:$0xff]  ;;  %v13252_v47 = vld [vmem:[%s15095_s6 + $0xe0] sm:$0xff]  ;;  %v16722_v62 = vld [vmem:[%s15095_s6 + $0xe8] sm:$0xff] }
 0x536   : > { %v7934_v6 = vpop.f32.mrf.mxu1  ;;  %v8931_v57 = vpop.f32.mrf.mxu0 }
 0x537   : > { %v8145_v1 = vadd.f32 %v7934_v6, %v7343_v24  ;;  %9205 = vst [vmem:[#allocation2 + $0x108] sm:$0xff] %v9141_v23  ;;  %v13345_v23 = vcombine.low %v16708_v60, %v13250_v25  ;;  %v13522_v6 = vcombine.low %v13250_v25, %v13427_v32  ;;  %v7353_v25 = vld [vmem:[#allocation2 + $0xf8] sm:$0xff] }
 0x538   : > { %v7936_v28 = vpop.f32.mrf.mxu1  ;;  %v8933_v63 = vpop.f32.mrf.mxu0 }
 0x539   : > { %v9142_v13 = vadd.f32 %v8931_v57, %v8145_v1  ;;  %v13348_v57 = vcombine.high %v13251_v44, %v13252_v47  ;;  %v7350_v28 = vld [vmem:[#allocation2 + $0x1b8] sm:$0xff] }
 0x53a   : > { %v7939_v30 = vpop.f32.mrf.mxu1  ;;  %9868 = vmatmul.mubr.bf16.vlgmr.msra.gmra.mxu1 %v13339_v14  ;;  %v8936_v10 = vpop.f32.mrf.mxu0  ;;  %10865 = vmatmul.mubr.bf16.vlgmr.msra.gmra.mxu0 %v13516_v43  ;;  %v13525_v43 = vcombine.high %v13252_v47, %v16722_v62 }
 0x53b   : > { %v8146_v56 = vadd.f32 %v7939_v30, %v7344_v20  ;;  %9206 = vst [vmem:[#allocation2 + $0x60] sm:$0xff] %v9142_v13  ;;  %9875 = vmatprep.mubr.bf16.mxu1 %v13342_v8  ;;  %10872 = vmatprep.mubr.bf16.mxu0 %v13519_v19 }
 0x53c   : > { %v7941_v21 = vpop.f32.mrf.mxu1  ;;  %v8938_v4 = vpop.f32.mrf.mxu0 }
 0x53d   : > { %v9143_v50 = vadd.f32 %v8936_v10, %v8146_v56  ;;  %v13254_v56 = vld [vmem:[%s15095_s6 + $0xf0] sm:$0xff]  ;;  %v16728_v21 = vld [vmem:[%s15095_s6 + $0xf8] sm:$0xff] }
 0x53e   : > { %v7942_v54 = vpop.f32.mrf.mxu1  ;;  %v8939_v22 = vpop.f32.mrf.mxu0 }
 0x53f   : > { %v8147_v33 = vadd.f32 %v7942_v54, %v7345_v61  ;;  %9207 = vst [vmem:[#allocation2 + $0xe0] sm:$0xff] %v9143_v50  ;;  %v13347_v50 = vcombine.low %v13251_v44, %v13252_v47  ;;  %v13524_v54 = vcombine.low %v13252_v47, %v16722_v62  ;;  %v7355_v44 = vld [vmem:[#allocation2 + $0x30] sm:$0xff] }
 0x540   : > { %v7944_v16 = vpop.f32.mrf.mxu1  ;;  %v8941_v55 = vpop.f32.mrf.mxu0 }
 0x541   : > { %v9144_v38 = vadd.f32 %v8939_v22, %v8147_v33  ;;  %v13350_v22 = vcombine.high %v16722_v62, %v13254_v56  ;;  %v7352_v16 = vld [vmem:[#allocation2 + $0x1e8] sm:$0xff] }
 0x542   : > { %v7947_v31 = vpop.f32.mrf.mxu1  ;;  %9876 = vmatmul.mubr.bf16.gmra.mxu1 %v13341_v12  ;;  %v8944_v34 = vpop.f32.mrf.mxu0  ;;  %10873 = vmatmul.mubr.bf16.gmra.mxu0 %v13518_v17  ;;  %v13527_v17 = vcombine.high %v13254_v56, %v16728_v21 }
 0x543   : > { %v8148_v39 = vadd.f32 %v7947_v31, %v7346_v0  ;;  %9208 = vst [vmem:[#allocation2 + $0x188] sm:$0xff] %v9144_v38  ;;  %9883 = vmatprep.mubr.bf16.mxu1 %v13344_v29  ;;  %10880 = vmatprep.mubr.bf16.mxu0 %v13521_v49 }
 0x544   : > { %v7949_v27 = vpop.f32.mrf.mxu1  ;;  %v8946_v2 = vpop.f32.mrf.mxu0 }
 0x545   : > { %v9145_v58 = vadd.f32 %v8944_v34, %v8148_v39  ;;  %v13256_v39 = vld [vmem:[%s15095_s6 + $0x100] sm:$0xff]  ;;  %v16735_v27 = vld [vmem:[%s15095_s6 + $0x108] sm:$0xff] }
 0x546   : > { %v7950_v46 = vpop.f32.mrf.mxu1  ;;  %v8947_v35 = vpop.f32.mrf.mxu0 }
 0x547   : > { %v8149_v45 = vadd.f32 %v7950_v46, %v7347_v5  ;;  %9209 = vst [vmem:[#allocation2 + $0x138] sm:$0xff] %v9145_v58  ;;  %v13349_v58 = vcombine.low %v16722_v62, %v13254_v56  ;;  %v13526_v46 = vcombine.low %v13254_v56, %v16728_v21  ;;  %v13351_v62 = vcombine.low %v16728_v21, %v13256_v39  ;;  %v7357_v56 = vld [vmem:[#allocation2] sm:$0xff] }
 0x548   : > { %v7952_v53 = vpop.f32.mrf.mxu1  ;;  %v8949_v40 = vpop.f32.mrf.mxu0 }
 0x549   : > { %v9146_v59 = vadd.f32 %v8947_v35, %v8149_v45  ;;  %v13352_v35 = vcombine.high %v16728_v21, %v13256_v39  ;;  %v7354_v53 = vld [vmem:[#allocation2 + $0x160] sm:$0xff] }
 0x54a   : > { %v7955_v36 = vpop.f32.mrf.mxu1  ;;  %9884 = vmatmul.mubr.bf16.gmra.mxu1 %v13343_v9  ;;  %v8952_v52 = vpop.f32.mrf.mxu0  ;;  %10881 = vmatmul.mubr.bf16.gmra.mxu0 %v13520_v42  ;;  %v13529_v42 = vcombine.high %v13256_v39, %v16735_v27 }
 0x54b   : > { %v8150_v41 = vadd.f32 %v7955_v36, %v7348_v18  ;;  %9210 = vst [vmem:[#allocation2 + $0x140] sm:$0xff] %v9146_v59  ;;  %9891 = vmatprep.mubr.bf16.mxu1 %v13346_v3  ;;  %10888 = vmatprep.mubr.bf16.mxu0 %v13523_v51 }
 0x54c   : > { %v7957_v48 = vpop.f32.mrf.mxu1  ;;  %v8954_v37 = vpop.f32.mrf.mxu0 }
 0x54d   : > { %v9147_v11 = vadd.f32 %v8952_v52, %v8150_v41  ;;  %v13258_v41 = vld [vmem:[%s15095_s6 + $0x110] sm:$0xff]  ;;  %v13435_v48 = vld [vmem:[%s15095_s6 + $0x118] sm:$0xff] }
 0x54e   : > { %v7958_v7 = vpop.f32.mrf.mxu1  ;;  %v8955_v24 = vpop.f32.mrf.mxu0 }
 0x54f   : > { %v8151_v14 = vadd.f32 %v7958_v7, %v7349_v26  ;;  %9211 = vst [vmem:[#allocation2 + $0x80] sm:$0xff] %v9147_v11  ;;  %v13528_v26 = vcombine.low %v13256_v39, %v16735_v27  ;;  %v7359_v39 = vld [vmem:[#allocation2 + $0x8] sm:$0xff] }
 0x550   : > { %v7960_v1 = vpop.f32.mrf.mxu1  ;;  %v8957_v8 = vpop.f32.mrf.mxu0 }
 0x551   : > { %v9148_v19 = vadd.f32 %v8955_v24, %v8151_v14  ;;  %v13531_v24 = vcombine.high %v13258_v41, %v13435_v48 }
 0x552   : > { %v7963_v63 = vpop.f32.mrf.mxu1  ;;  %9892 = vmatmul.mubr.bf16.gmra.mxu1 %v13345_v23  ;;  %v8960_v13 = vpop.f32.mrf.mxu0  ;;  %10889 = vmatmul.mubr.bf16.gmra.mxu0 %v13522_v6  ;;  %v13354_v23 = vcombine.high %v16735_v27, %v13258_v41 }
 0x553   : > { %v8152_v20 = vadd.f32 %v7963_v63, %v7350_v28  ;;  %9212 = vst [vmem:[#allocation2 + $0x1a8] sm:$0xff] %v9148_v19  ;;  %9899 = vmatprep.mubr.bf16.mxu1 %v13348_v57  ;;  %10896 = vmatprep.mubr.bf16.mxu0 %v13525_v43  ;;  %v7356_v43 = vld [vmem:[#allocation2 + $0x1e0] sm:$0xff] }
 0x554   : > { %v7965_v30 = vpop.f32.mrf.mxu1  ;;  %v8962_v10 = vpop.f32.mrf.mxu0 }
 0x555   : > { %v9149_v4 = vadd.f32 %v8960_v13, %v8152_v20  ;;  %v13259_v13 = vld [vmem:[%s15095_s6 + $0x168] sm:$0xff]  ;;  %v13260_v20 = vld [vmem:[%s15095_s6 + $0x170] sm:$0xff]  ;;  %v16749_v30 = vld [vmem:[%s15095_s6 + $0x178] sm:$0xff] }
 0x556   : > { %v7966_v60 = vpop.f32.mrf.mxu1  ;;  %v8963_v61 = vpop.f32.mrf.mxu0 }
 0x557   : > { %v8153_v12 = vadd.f32 %v7966_v60, %v7351_v15  ;;  %9213 = vst [vmem:[#allocation2 + $0x1b8] sm:$0xff] %v9149_v4  ;;  %v13353_v4 = vcombine.low %v16735_v27, %v13258_v41  ;;  %v13530_v60 = vcombine.low %v13258_v41, %v13435_v48  ;;  %v7361_v41 = vld [vmem:[#allocation2 + $0x1d0] sm:$0xff] }
 0x558   : > { %v7968_v33 = vpop.f32.mrf.mxu1  ;;  %v8965_v29 = vpop.f32.mrf.mxu0 }
 0x559   : > { %v9150_v49 = vadd.f32 %v8963_v61, %v8153_v12  ;;  %v13356_v61 = vcombine.high %v13259_v13, %v13260_v20  ;;  %v7358_v33 = vld [vmem:[#allocation2 + $0xf0] sm:$0xff] }
 0x55a   : > { %v7971_v55 = vpop.f32.mrf.mxu1  ;;  %9900 = vmatmul.mubr.bf16.gmra.mxu1 %v13347_v50  ;;  %v8968_v38 = vpop.f32.mrf.mxu0  ;;  %10897 = vmatmul.mubr.bf16.gmra.mxu0 %v13524_v54  ;;  %v13533_v54 = vcombine.high %v13260_v20, %v16749_v30 }
 0x55b   : > { %v8154_v0 = vadd.f32 %v7971_v55, %v7352_v16  ;;  %9214 = vst [vmem:[#allocation2 + $0x28] sm:$0xff] %v9150_v49  ;;  %9907 = vmatprep.mubr.bf16.mxu1 %v13350_v22  ;;  %10904 = vmatprep.mubr.bf16.mxu0 %v13527_v17 }
 0x55c   : > { %v7973_v31 = vpop.f32.mrf.mxu1  ;;  %v8970_v34 = vpop.f32.mrf.mxu0 }
 0x55d   : > { %v9151_v2 = vadd.f32 %v8968_v38, %v8154_v0  ;;  %v13262_v0 = vld [vmem:[%s15095_s6 + $0x180] sm:$0xff]  ;;  %v16755_v31 = vld [vmem:[%s15095_s6 + $0x188] sm:$0xff] }
 0x55e   : > { %v7974_v32 = vpop.f32.mrf.mxu1  ;;  %v8971_v5 = vpop.f32.mrf.mxu0 }
 0x55f   : > { %v8155_v9 = vadd.f32 %v7974_v32, %v7353_v25  ;;  %9215 = vst [vmem:[#allocation2 + $0x1e8] sm:$0xff] %v9151_v2  ;;  %v13355_v2 = vcombine.low %v13259_v13, %v13260_v20  ;;  %v13532_v32 = vcombine.low %v13260_v20, %v16749_v30  ;;  %v7363_v13 = vld [vmem:[#allocation2 + $0xc8] sm:$0xff] }
 0x560   : > { %v7976_v45 = vpop.f32.mrf.mxu1  ;;  %v8973_v3 = vpop.f32.mrf.mxu0 }
 0x561   : > { %v9152_v51 = vadd.f32 %v8971_v5, %v8155_v9  ;;  %v13358_v5 = vcombine.high %v16749_v30, %v13262_v0  ;;  %v7360_v45 = vld [vmem:[#allocation2 + $0x148] sm:$0xff] }
 0x562   : > { %v7979_v40 = vpop.f32.mrf.mxu1  ;;  %9908 = vmatmul.mubr.bf16.gmra.mxu1 %v13349_v58  ;;  %v8976_v59 = vpop.f32.mrf.mxu0  ;;  %10905 = vmatmul.mubr.bf16.gmra.mxu0 %v13526_v46  ;;  %v13535_v46 = vcombine.high %v13262_v0, %v16755_v31 }
 0x563   : > { %v8156_v18 = vadd.f32 %v7979_v40, %v7354_v53  ;;  %9216 = vst [vmem:[#allocation2 + $0xf8] sm:$0xff] %v9152_v51  ;;  %9915 = vmatprep.mubr.bf16.mxu1 %v13352_v35  ;;  %10912 = vmatprep.mubr.bf16.mxu0 %v13529_v42 }
 0x564   : > { %v7981_v36 = vpop.f32.mrf.mxu1  ;;  %v8978_v52 = vpop.f32.mrf.mxu0 }
 0x565   : > { %v9153_v37 = vadd.f32 %v8976_v59, %v8156_v18  ;;  %v13264_v18 = vld [vmem:[%s15095_s6 + $0x190] sm:$0xff]  ;;  %v16762_v36 = vld [vmem:[%s15095_s6 + $0x198] sm:$0xff] }
 0x566   : > { %v7982_v47 = vpop.f32.mrf.mxu1  ;;  %v8979_v11 = vpop.f32.mrf.mxu0 }
 0x567   : > { %v8157_v7 = vadd.f32 %v7982_v47, %v7355_v44  ;;  %9217 = vst [vmem:[#allocation2 + $0x160] sm:$0xff] %v9153_v37  ;;  %v13357_v37 = vcombine.low %v16749_v30, %v13262_v0  ;;  %v13534_v47 = vcombine.low %v13262_v0, %v16755_v31  ;;  %v13359_v30 = vcombine.low %v16755_v31, %v13264_v18  ;;  %v7365_v0 = vld [vmem:[#allocation2 + $0x1f8] sm:$0xff] }
 0x568   : > { %v7984_v6 = vpop.f32.mrf.mxu1  ;;  %v8981_v14 = vpop.f32.mrf.mxu0 }
 0x569   : > { %v9154_v57 = vadd.f32 %v8979_v11, %v8157_v7  ;;  %v13360_v11 = vcombine.high %v16755_v31, %v13264_v18  ;;  %v7362_v6 = vld [vmem:[#allocation2 + $0x100] sm:$0xff] }
 0x56a   : > { %v7987_v1 = vpop.f32.mrf.mxu1  ;;  %9916 = vmatmul.mubr.bf16.gmra.mxu1 %v13351_v62  ;;  %v8984_v8 = vpop.f32.mrf.mxu0  ;;  %10913 = vmatmul.mubr.bf16.gmra.mxu0 %v13528_v26  ;;  %v13537_v26 = vcombine.high %v13264_v18, %v16762_v36 }
 0x56b   : > { %v8158_v19 = vadd.f32 %v7987_v1, %v7356_v43  ;;  %9218 = vst [vmem:[#allocation2 + $0x30] sm:$0xff] %v9154_v57  ;;  %9923 = vmatprep.mubr.bf16.mxu1 %v13354_v23  ;;  %10920 = vmatprep.mubr.bf16.mxu0 %v13531_v24 }
 0x56c   : > { %v7989_v28 = vpop.f32.mrf.mxu1  ;;  %v8986_v63 = vpop.f32.mrf.mxu0 }
 0x56d   : > { %v9155_v10 = vadd.f32 %v8984_v8, %v8158_v19  ;;  %v13266_v19 = vld [vmem:[%s15095_s6 + $0x1a0] sm:$0xff]  ;;  %v13443_v28 = vld [vmem:[%s15095_s6 + $0x1a8] sm:$0xff] }
 0x56e   : > { %v7990_v21 = vpop.f32.mrf.mxu1  ;;  %v8987_v15 = vpop.f32.mrf.mxu0 }
 0x56f   : > { %v8159_v50 = vadd.f32 %v7990_v21, %v7357_v56  ;;  %9219 = vst [vmem:[#allocation2 + $0x1e0] sm:$0xff] %v9155_v10  ;;  %v13536_v56 = vcombine.low %v13264_v18, %v16762_v36  ;;  %v7367_v18 = vld [vmem:[#allocation2 + $0x128] sm:$0xff] }
 0x570   : > { %v7992_v12 = vpop.f32.mrf.mxu1  ;;  %v8989_v22 = vpop.f32.mrf.mxu0 }
 0x571   : > { %v9156_v17 = vadd.f32 %v8987_v15, %v8159_v50  ;;  %v13539_v15 = vcombine.high %v13266_v19, %v13443_v28 }
 0x572   : > { %v7995_v29 = vpop.f32.mrf.mxu1  ;;  %9924 = vmatmul.mubr.bf16.gmra.mxu1 %v13353_v4  ;;  %v8992_v49 = vpop.f32.mrf.mxu0  ;;  %10921 = vmatmul.mubr.bf16.gmra.mxu0 %v13530_v60  ;;  %v13362_v4 = vcombine.high %v16762_v36, %v13266_v19 }
 0x573   : > { %v8160_v16 = vadd.f32 %v7995_v29, %v7358_v33  ;;  %9220 = vst [vmem:[#allocation2] sm:$0xff] %v9156_v17  ;;  %9931 = vmatprep.mubr.bf16.mxu1 %v13356_v61  ;;  %10928 = vmatprep.mubr.bf16.mxu0 %v13533_v54  ;;  %v7364_v54 = vld [vmem:[#allocation2 + $0x40] sm:$0xff] }
 0x574   : > { %v7997_v55 = vpop.f32.mrf.mxu1  ;;  %v8994_v38 = vpop.f32.mrf.mxu0 }
 0x575   : > { %v9157_v34 = vadd.f32 %v8992_v49, %v8160_v16  ;;  %v13267_v49 = vld [vmem:[%s15095_s6 + $0x1f8] sm:$0xff]  ;;  %v13268_v16 = vld [vmem:[%s15095_s6 + $0x200] sm:$0xff]  ;;  %v16776_v55 = vld [vmem:[%s15095_s6 + $0x208] sm:$0xff] }
 0x576   : > { %v7998_v27 = vpop.f32.mrf.mxu1  ;;  %v8995_v25 = vpop.f32.mrf.mxu0 }
 0x577   : > { %v8161_v58 = vadd.f32 %v7998_v27, %v7359_v39  ;;  %9221 = vst [vmem:[#allocation2 + $0xf0] sm:$0xff] %v9157_v34  ;;  %v13361_v34 = vcombine.low %v16762_v36, %v13266_v19  ;;  %v13538_v27 = vcombine.low %v13266_v19, %v13443_v28  ;;  %v7369_v19 = vld [vmem:[#allocation2 + $0x1f0] sm:$0xff] }
 0x578   : > { %v8000_v9 = vpop.f32.mrf.mxu1  ;;  %v8997_v35 = vpop.f32.mrf.mxu0 }
 0x579   : > { %v9158_v42 = vadd.f32 %v8995_v25, %v8161_v58  ;;  %v13364_v25 = vcombine.high %v13267_v49, %v13268_v16  ;;  %v7366_v9 = vld [vmem:[#allocation2 + $0x20] sm:$0xff] }
 0x57a   : > { %v8003_v3 = vpop.f32.mrf.mxu1  ;;  %9932 = vmatmul.mubr.bf16.gmra.mxu1 %v13355_v2  ;;  %v9000_v51 = vpop.f32.mrf.mxu0  ;;  %10929 = vmatmul.mubr.bf16.gmra.mxu0 %v13532_v32  ;;  %v13541_v32 = vcombine.high %v13268_v16, %v16776_v55 }
 0x57b   : > { %v8162_v53 = vadd.f32 %v8003_v3, %v7360_v45  ;;  %9222 = vst [vmem:[#allocation2 + $0x8] sm:$0xff] %v9158_v42  ;;  %9939 = vmatprep.mubr.bf16.mxu1 %v13358_v5  ;;  %10936 = vmatprep.mubr.bf16.mxu0 %v13535_v46 }
 0x57c   : > { %v8005_v40 = vpop.f32.mrf.mxu1  ;;  %v9002_v59 = vpop.f32.mrf.mxu0 }
 0x57d   : > { %v9159_v52 = vadd.f32 %v9000_v51, %v8162_v53  ;;  %v13270_v53 = vld [vmem:[%s15095_s6 + $0x210] sm:$0xff]  ;;  %v16782_v40 = vld [vmem:[%s15095_s6 + $0x218] sm:$0xff] }
 0x57e   : > { %v8006_v48 = vpop.f32.mrf.mxu1  ;;  %v9003_v44 = vpop.f32.mrf.mxu0 }
 0x57f   : > { %v8163_v62 = vadd.f32 %v8006_v48, %v7361_v41  ;;  %9223 = vst [vmem:[#allocation2 + $0x148] sm:$0xff] %v9159_v52  ;;  %v13363_v52 = vcombine.low %v13267_v49, %v13268_v16  ;;  %v13540_v48 = vcombine.low %v13268_v16, %v16776_v55  ;;  %v7371_v49 = vld [vmem:[#allocation2 + $0x78] sm:$0xff] }
 0x580   : > { %v8008_v7 = vpop.f32.mrf.mxu1  ;;  %v9005_v23 = vpop.f32.mrf.mxu0 }
 0x581   : > { %v9160_v24 = vadd.f32 %v9003_v44, %v8163_v62  ;;  %v13366_v44 = vcombine.high %v16776_v55, %v13270_v53  ;;  %v7368_v7 = vld [vmem:[#allocation2 + $0x1a0] sm:$0xff] }
 0x582   : > { %v8011_v14 = vpop.f32.mrf.mxu1  ;;  %9940 = vmatmul.mubr.bf16.gmra.mxu1 %v13357_v37  ;;  %v9008_v57 = vpop.f32.mrf.mxu0  ;;  %10937 = vmatmul.mubr.bf16.gmra.mxu0 %v13534_v47  ;;  %v13543_v47 = vcombine.high %v13270_v53, %v16782_v40 }
 0x583   : > { %v8164_v43 = vadd.f32 %v8011_v14, %v7362_v6  ;;  %9224 = vst [vmem:[#allocation2 + $0x1d0] sm:$0xff] %v9160_v24  ;;  %9947 = vmatprep.mubr.bf16.mxu1 %v13360_v11  ;;  %10944 = vmatprep.mubr.bf16.mxu0 %v13537_v26 }
 0x584   : > { %v8013_v1 = vpop.f32.mrf.mxu1  ;;  %v9010_v8 = vpop.f32.mrf.mxu0 }
 0x585   : > { %v9161_v63 = vadd.f32 %v9008_v57, %v8164_v43  ;;  %v13272_v43 = vld [vmem:[%s15095_s6 + $0x220] sm:$0xff]  ;;  %v16789_v1 = vld [vmem:[%s15095_s6 + $0x228] sm:$0xff] }
 0x586   : > { %v8014_v20 = vpop.f32.mrf.mxu1  ;;  %v9011_v10 = vpop.f32.mrf.mxu0 }
 0x587   : > { %v8165_v21 = vadd.f32 %v8014_v20, %v7363_v13  ;;  %9225 = vst [vmem:[#allocation2 + $0x100] sm:$0xff] %v9161_v63  ;;  %v13365_v63 = vcombine.low %v16776_v55, %v13270_v53  ;;  %v13542_v20 = vcombine.low %v13270_v53, %v16782_v40  ;;  %v13367_v55 = vcombine.low %v16782_v40, %v13272_v43  ;;  %v7373_v53 = vld [vmem:[#allocation2 + $0x90] sm:$0xff] }
 0x588   : > { %v8016_v60 = vpop.f32.mrf.mxu1  ;;  %v9013_v50 = vpop.f32.mrf.mxu0 }
 0x589   : > { %v9162_v61 = vadd.f32 %v9011_v10, %v8165_v21  ;;  %v13368_v10 = vcombine.high %v16782_v40, %v13272_v43  ;;  %v7370_v60 = vld [vmem:[#allocation2 + $0xe8] sm:$0xff] }
 0x58a   : > { %v8019_v12 = vpop.f32.mrf.mxu1  ;;  %9948 = vmatmul.mubr.bf16.gmra.mxu1 %v13359_v30  ;;  %v9016_v22 = vpop.f32.mrf.mxu0  ;;  %10945 = vmatmul.mubr.bf16.gmra.mxu0 %v13536_v56  ;;  %v13545_v56 = vcombine.high %v13272_v43, %v16789_v1 }
 0x58b   : > { %v8166_v17 = vadd.f32 %v8019_v12, %v7364_v54  ;;  %9226 = vst [vmem:[#allocation2 + $0xc8] sm:$0xff] %v9162_v61  ;;  %9955 = vmatprep.mubr.bf16.mxu1 %v13362_v4  ;;  %10952 = vmatprep.mubr.bf16.mxu0 %v13539_v15 }
 0x58c   : > { %v8021_v33 = vpop.f32.mrf.mxu1  ;;  %v9018_v29 = vpop.f32.mrf.mxu0 }
 0x58d   : > { %v9163_v38 = vadd.f32 %v9016_v22, %v8166_v17  ;;  %v13274_v17 = vld [vmem:[%s15095_s6 + $0x230] sm:$0xff]  ;;  %v13451_v33 = vld [vmem:[%s15095_s6 + $0x238] sm:$0xff] }
 0x58e   : > { %v8022_v31 = vpop.f32.mrf.mxu1  ;;  %v9019_v39 = vpop.f32.mrf.mxu0 }
 0x58f   : > { %v8167_v2 = vadd.f32 %v8022_v31, %v7365_v0  ;;  %9227 = vst [vmem:[#allocation2 + $0x40] sm:$0xff] %v9163_v38  ;;  %v13544_v0 = vcombine.low %v13272_v43, %v16789_v1  ;;  %v7375_v43 = vld [vmem:[#allocation2 + $0xd0] sm:$0xff] }
 0x590   : > { %v8024_v58 = vpop.f32.mrf.mxu1  ;;  %v9021_v5 = vpop.f32.mrf.mxu0 }
 0x591   : > { %v9164_v46 = vadd.f32 %v9019_v39, %v8167_v2  ;;  %v13547_v39 = vcombine.high %v13274_v17, %v13451_v33 }
 0x592   : > { %v8027_v35 = vpop.f32.mrf.mxu1  ;;  %9956 = vmatmul.mubr.bf16.gmra.mxu1 %v13361_v34  ;;  %v9024_v42 = vpop.f32.mrf.mxu0  ;;  %10953 = vmatmul.mubr.bf16.gmra.mxu0 %v13538_v27  ;;  %v13370_v34 = vcombine.high %v16789_v1, %v13274_v17 }
 0x593   : > { %v8168_v45 = vadd.f32 %v8027_v35, %v7366_v9  ;;  %9228 = vst [vmem:[#allocation2 + $0x1f8] sm:$0xff] %v9164_v46  ;;  %9963 = vmatprep.mubr.bf16.mxu1 %v13364_v25  ;;  %10960 = vmatprep.mubr.bf16.mxu0 %v13541_v32  ;;  %v7372_v32 = vld [vmem:[#allocation2 + $0x70] sm:$0xff] }
 0x594   : > { %v8029_v3 = vpop.f32.mrf.mxu1  ;;  %v9026_v51 = vpop.f32.mrf.mxu0 }
 0x595   : > { %v9165_v59 = vadd.f32 %v9024_v42, %v8168_v45  ;;  %v13275_v42 = vld [vmem:[%s15095_s6 + $0x288] sm:$0xff]  ;;  %v13276_v45 = vld [vmem:[%s15095_s6 + $0x290] sm:$0xff]  ;;  %v16803_v3 = vld [vmem:[%s15095_s6 + $0x298] sm:$0xff] }
 0x596   : > { %v8030_v36 = vpop.f32.mrf.mxu1  ;;  %v9027_v41 = vpop.f32.mrf.mxu0 }
 0x597   : > { %v8169_v37 = vadd.f32 %v8030_v36, %v7367_v18  ;;  %9229 = vst [vmem:[#allocation2 + $0x20] sm:$0xff] %v9165_v59  ;;  %v13369_v59 = vcombine.low %v16789_v1, %v13274_v17  ;;  %v13546_v36 = vcombine.low %v13274_v17, %v13451_v33  ;;  %v7377_v17 = vld [vmem:[#allocation2 + $0x88] sm:$0xff] }
 0x598   : > { %v8032_v62 = vpop.f32.mrf.mxu1  ;;  %v9029_v11 = vpop.f32.mrf.mxu0 }
 0x599   : > { %v9166_v26 = vadd.f32 %v9027_v41, %v8169_v37  ;;  %v13372_v41 = vcombine.high %v13275_v42, %v13276_v45  ;;  %v7374_v62 = vld [vmem:[#allocation2 + $0x1d8] sm:$0xff] }
 0x59a   : > { %v8035_v23 = vpop.f32.mrf.mxu1  ;;  %9964 = vmatmul.mubr.bf16.gmra.mxu1 %v13363_v52  ;;  %v9032_v24 = vpop.f32.mrf.mxu0  ;;  %10961 = vmatmul.mubr.bf16.gmra.mxu0 %v13540_v48  ;;  %v13549_v48 = vcombine.high %v13276_v45, %v16803_v3 }
 0x59b   : > { %v8170_v6 = vadd.f32 %v8035_v23, %v7368_v7  ;;  %9230 = vst [vmem:[#allocation2 + $0x128] sm:$0xff] %v9166_v26  ;;  %9971 = vmatprep.mubr.bf16.mxu1 %v13366_v44  ;;  %10968 = vmatprep.mubr.bf16.mxu0 %v13543_v47 }
 0x59c   : > { %v8037_v14 = vpop.f32.mrf.mxu1  ;;  %v9034_v57 = vpop.f32.mrf.mxu0 }
 0x59d   : > { %v9167_v8 = vadd.f32 %v9032_v24, %v8170_v6  ;;  %v13278_v6 = vld [vmem:[%s15095_s6 + $0x2a0] sm:$0xff]  ;;  %v16809_v14 = vld [vmem:[%s15095_s6 + $0x2a8] sm:$0xff] }
 0x59e   : > { %v8038_v28 = vpop.f32.mrf.mxu1  ;;  %v9035_v13 = vpop.f32.mrf.mxu0 }
 0x59f   : > { %v8171_v30 = vadd.f32 %v8038_v28, %v7369_v19  ;;  %9231 = vst [vmem:[#allocation2 + $0x1a0] sm:$0xff] %v9167_v8  ;;  %v13371_v8 = vcombine.low %v13275_v42, %v13276_v45  ;;  %v13548_v28 = vcombine.low %v13276_v45, %v16803_v3  ;;  %v7379_v42 = vld [vmem:[#allocation2 + $0x1c8] sm:$0xff] }
 0x5a0   : > { %v8040_v21 = vpop.f32.mrf.mxu1  ;;  %v9037_v4 = vpop.f32.mrf.mxu0 }
 0x5a1   : > { %v9168_v15 = vadd.f32 %v9035_v13, %v8171_v30  ;;  %v13374_v13 = vcombine.high %v16803_v3, %v13278_v6  ;;  %v7376_v21 = vld [vmem:[#allocation2 + $0xb8] sm:$0xff] }
 0x5a2   : > { %v8043_v50 = vpop.f32.mrf.mxu1  ;;  %9972 = vmatmul.mubr.bf16.gmra.mxu1 %v13365_v63  ;;  %v9040_v61 = vpop.f32.mrf.mxu0  ;;  %10969 = vmatmul.mubr.bf16.gmra.mxu0 %v13542_v20  ;;  %v13551_v20 = vcombine.high %v13278_v6, %v16809_v14 }
 0x5a3   : > { %v8172_v54 = vadd.f32 %v8043_v50, %v7370_v60  ;;  %9232 = vst [vmem:[#allocation2 + $0x1f0] sm:$0xff] %v9168_v15  ;;  %9979 = vmatprep.mubr.bf16.mxu1 %v13368_v10  ;;  %10976 = vmatprep.mubr.bf16.mxu0 %v13545_v56 }
 0x5a4   : > { %v8045_v12 = vpop.f32.mrf.mxu1  ;;  %v9042_v22 = vpop.f32.mrf.mxu0 }
 0x5a5   : > { %v9169_v29 = vadd.f32 %v9040_v61, %v8172_v54  ;;  %v13280_v54 = vld [vmem:[%s15095_s6 + $0x2b0] sm:$0xff]  ;;  %v16816_v12 = vld [vmem:[%s15095_s6 + $0x2b8] sm:$0xff] }
 0x5a6   : > { %v8046_v16 = vpop.f32.mrf.mxu1  ;;  %v9043_v38 = vpop.f32.mrf.mxu0 }
 0x5a7   : > { %v8173_v31 = vadd.f32 %v8046_v16, %v7371_v49  ;;  %9233 = vst [vmem:[#allocation2 + $0xe8] sm:$0xff] %v9169_v29  ;;  %v13373_v29 = vcombine.low %v16803_v3, %v13278_v6  ;;  %v13550_v16 = vcombine.low %v13278_v6, %v16809_v14  ;;  %v13375_v3 = vcombine.low %v16809_v14, %v13280_v54  ;;  %v7381_v6 = vld [vmem:[#allocation2 + $0x178] sm:$0xff] }
 0x5a8   : > { %v8048_v27 = vpop.f32.mrf.mxu1  ;;  %v9045_v2 = vpop.f32.mrf.mxu0 }
 0x5a9   : > { %v9170_v25 = vadd.f32 %v9043_v38, %v8173_v31  ;;  %v13376_v38 = vcombine.high %v16809_v14, %v13280_v54  ;;  %v7378_v27 = vld [vmem:[#allocation2 + $0xa8] sm:$0xff] }
 0x5aa   : > { %v8051_v58 = vpop.f32.mrf.mxu1  ;;  %9980 = vmatmul.mubr.bf16.gmra.mxu1 %v13367_v55  ;;  %v9048_v5 = vpop.f32.mrf.mxu0  ;;  %10977 = vmatmul.mubr.bf16.gmra.mxu0 %v13544_v0  ;;  %v13553_v0 = vcombine.high %v13280_v54, %v16816_v12 }
 0x5ab   : > { %v8174_v46 = vadd.f32 %v8051_v58, %v7372_v32  ;;  %9234 = vst [vmem:[#allocation2 + $0x78] sm:$0xff] %v9170_v25  ;;  %9987 = vmatprep.mubr.bf16.mxu1 %v13370_v34  ;;  %10984 = vmatprep.mubr.bf16.mxu0 %v13547_v39 }
 0x5ac   : > { %v8053_v9 = vpop.f32.mrf.mxu1  ;;  %v9050_v35 = vpop.f32.mrf.mxu0 }
 0x5ad   : > { %v9171_v51 = vadd.f32 %v9048_v5, %v8174_v46  ;;  %v13282_v46 = vld [vmem:[%s15095_s6 + $0x2c0] sm:$0xff]  ;;  %v13459_v9 = vld [vmem:[%s15095_s6 + $0x2c8] sm:$0xff] }
 0x5ae   : > { %v8054_v40 = vpop.f32.mrf.mxu1  ;;  %v9051_v18 = vpop.f32.mrf.mxu0 }
 0x5af   : > { %v8175_v52 = vadd.f32 %v8054_v40, %v7373_v53  ;;  %9235 = vst [vmem:[#allocation2 + $0x70] sm:$0xff] %v9171_v51  ;;  %v13552_v53 = vcombine.low %v13280_v54, %v16816_v12  ;;  %v7383_v54 = vld [vmem:[#allocation2 + $0x190] sm:$0xff] }
 0x5b0   : > { %v8056_v37 = vpop.f32.mrf.mxu1  ;;  %v9053_v44 = vpop.f32.mrf.mxu0 }
 0x5b1   : > { %v9172_v47 = vadd.f32 %v9051_v18, %v8175_v52  ;;  %v13555_v18 = vcombine.high %v13282_v46, %v13459_v9 }
 0x5b2   : > { %v8059_v11 = vpop.f32.mrf.mxu1  ;;  %9988 = vmatmul.mubr.bf16.gmra.mxu1 %v13369_v59  ;;  %v9056_v26 = vpop.f32.mrf.mxu0  ;;  %10985 = vmatmul.mubr.bf16.gmra.mxu0 %v13546_v36  ;;  %v13378_v59 = vcombine.high %v16816_v12, %v13282_v46 }
 0x5b3   : > { %v8176_v7 = vadd.f32 %v8059_v11, %v7374_v62  ;;  %9236 = vst [vmem:[#allocation2 + $0x90] sm:$0xff] %v9172_v47  ;;  %9995 = vmatprep.mubr.bf16.mxu1 %v13372_v41  ;;  %10992 = vmatprep.mubr.bf16.mxu0 %v13549_v48  ;;  %v7380_v48 = vld [vmem:[#allocation2 + $0x170] sm:$0xff] }
 0x5b4   : > { %v8061_v23 = vpop.f32.mrf.mxu1  ;;  %v9058_v24 = vpop.f32.mrf.mxu0 }
 0x5b5   : > { %v9173_v57 = vadd.f32 %v9056_v26, %v8176_v7  ;;  %v13283_v26 = vld [vmem:[%s15095_s6 + $0x318] sm:$0xff]  ;;  %v13284_v7 = vld [vmem:[%s15095_s6 + $0x320] sm:$0xff]  ;;  %v16830_v23 = vld [vmem:[%s15095_s6 + $0x328] sm:$0xff] }
 0x5b6   : > { %v8062_v1 = vpop.f32.mrf.mxu1  ;;  %v9059_v19 = vpop.f32.mrf.mxu0 }
 0x5b7   : > { %v8177_v63 = vadd.f32 %v8062_v1, %v7375_v43  ;;  %9237 = vst [vmem:[#allocation2 + $0x1d8] sm:$0xff] %v9173_v57  ;;  %v13377_v57 = vcombine.low %v16816_v12, %v13282_v46  ;;  %v13554_v1 = vcombine.low %v13282_v46, %v13459_v9  ;;  %v7385_v46 = vld [vmem:[#allocation2 + $0x38] sm:$0xff] }
 0x5b8   : > { %v8064_v30 = vpop.f32.mrf.mxu1  ;;  %v9061_v10 = vpop.f32.mrf.mxu0 }
 0x5b9   : > { %v9174_v56 = vadd.f32 %v9059_v19, %v8177_v63  ;;  %v13380_v19 = vcombine.high %v13283_v26, %v13284_v7  ;;  %v7382_v30 = vld [vmem:[#allocation2 + $0x68] sm:$0xff] }
 0x5ba   : > { %v8067_v4 = vpop.f32.mrf.mxu1  ;;  %9996 = vmatmul.mubr.bf16.gmra.mxu1 %v13371_v8  ;;  %v9064_v15 = vpop.f32.mrf.mxu0  ;;  %10993 = vmatmul.mubr.bf16.gmra.mxu0 %v13548_v28  ;;  %v13557_v28 = vcombine.high %v13284_v7, %v16830_v23 }
 0x5bb   : > { %v8178_v60 = vadd.f32 %v8067_v4, %v7376_v21  ;;  %9238 = vst [vmem:[#allocation2 + $0xd0] sm:$0xff] %v9174_v56  ;;  %10003 = vmatprep.mubr.bf16.mxu1 %v13374_v13  ;;  %11000 = vmatprep.mubr.bf16.mxu0 %v13551_v20 }
 0x5bc   : > { %v8069_v50 = vpop.f32.mrf.mxu1  ;;  %v9066_v61 = vpop.f32.mrf.mxu0 }
 0x5bd   : > { %v9175_v22 = vadd.f32 %v9064_v15, %v8178_v60  ;;  %v13286_v60 = vld [vmem:[%s15095_s6 + $0x330] sm:$0xff]  ;;  %v16836_v50 = vld [vmem:[%s15095_s6 + $0x338] sm:$0xff] }
 0x5be   : > { %v8070_v33 = vpop.f32.mrf.mxu1  ;;  %v9067_v49 = vpop.f32.mrf.mxu0 }
 0x5bf   : > { %v8179_v55 = vadd.f32 %v8070_v33, %v7377_v17  ;;  %9239 = vst [vmem:[#allocation2 + $0xb8] sm:$0xff] %v9175_v22  ;;  %v13379_v22 = vcombine.low %v13283_v26, %v13284_v7  ;;  %v13556_v33 = vcombine.low %v13284_v7, %v16830_v23  ;;  %v7387_v26 = vld [vmem:[#allocation2 + $0x1c0] sm:$0xff] }
 0x5c0   : > { %v8072_v31 = vpop.f32.mrf.mxu1  ;;  %v9069_v34 = vpop.f32.mrf.mxu0 }
 0x5c1   : > { %v9176_v39 = vadd.f32 %v9067_v49, %v8179_v55  ;;  %v13382_v49 = vcombine.high %v16830_v23, %v13286_v60  ;;  %v7384_v31 = vld [vmem:[#allocation2 + $0x198] sm:$0xff] }
 0x5c2   : > { %v8075_v2 = vpop.f32.mrf.mxu1  ;;  %10004 = vmatmul.mubr.bf16.gmra.mxu1 %v13373_v29  ;;  %v9072_v25 = vpop.f32.mrf.mxu0  ;;  %11001 = vmatmul.mubr.bf16.gmra.mxu0 %v13550_v16  ;;  %v13559_v16 = vcombine.high %v13286_v60, %v16836_v50 }
 0x5c3   : > { %v8180_v32 = vadd.f32 %v8075_v2, %v7378_v27  ;;  %9240 = vst [vmem:[#allocation2 + $0x88] sm:$0xff] %v9176_v39  ;;  %10011 = vmatprep.mubr.bf16.mxu1 %v13376_v38  ;;  %11008 = vmatprep.mubr.bf16.mxu0 %v13553_v0 }
 0x5c4   : > { %v8077_v58 = vpop.f32.mrf.mxu1  ;;  %v9074_v5 = vpop.f32.mrf.mxu0 }
 0x5c5   : > { %v9177_v35 = vadd.f32 %v9072_v25, %v8180_v32  ;;  %v13288_v32 = vld [vmem:[%s15095_s6 + $0x340] sm:$0xff]  ;;  %v16843_v58 = vld [vmem:[%s15095_s6 + $0x348] sm:$0xff] }
 0x5c6   : > { %v8078_v45 = vpop.f32.mrf.mxu1  ;;  %v9075_v51 = vpop.f32.mrf.mxu0 }
 0x5c7   : > { %v8181_v40 = vadd.f32 %v8078_v45, %v7379_v42  ;;  %9241 = vst [vmem:[#allocation2 + $0xa8] sm:$0xff] %v9177_v35  ;;  %v13381_v35 = vcombine.low %v16830_v23, %v13286_v60  ;;  %v13558_v45 = vcombine.low %v13286_v60, %v16836_v50  ;;  %v13383_v23 = vcombine.low %v16836_v50, %v13288_v32  ;;  %v7389_v60 = vld [vmem:[#allocation2 + $0x10] sm:$0xff] }
 0x5c8   : > { %v8080_v36 = vpop.f32.mrf.mxu1  ;;  %v9077_v52 = vpop.f32.mrf.mxu0 }
 0x5c9   : > { %v9178_v41 = vadd.f32 %v9075_v51, %v8181_v40  ;;  %v13384_v51 = vcombine.high %v16836_v50, %v13288_v32  ;;  %v7386_v36 = vld [vmem:[#allocation2 + $0xc0] sm:$0xff] }
 0x5ca   : > { %v8083_v37 = vpop.f32.mrf.mxu1  ;;  %10012 = vmatmul.mubr.bf16.gmra.mxu1 %v13375_v3  ;;  %v9080_v44 = vpop.f32.mrf.mxu0  ;;  %11009 = vmatmul.mubr.bf16.gmra.mxu0 %v13552_v53  ;;  %v13561_v53 = vcombine.high %v13288_v32, %v16843_v58 }
 0x5cb   : > { %v8182_v47 = vadd.f32 %v8083_v37, %v7380_v48  ;;  %9242 = vst [vmem:[#allocation2 + $0x1c8] sm:$0xff] %v9178_v41  ;;  %10019 = vmatprep.mubr.bf16.mxu1 %v13378_v59  ;;  %11016 = vmatprep.mubr.bf16.mxu0 %v13555_v18 }
 0x5cc   : > { %v8085_v62 = vpop.f32.mrf.mxu1  ;;  %v9082_v11 = vpop.f32.mrf.mxu0 }
 0x5cd   : > { %v9179_v24 = vadd.f32 %v9080_v44, %v8182_v47  ;;  %v13290_v47 = vld [vmem:[%s15095_s6 + $0x350] sm:$0xff]  ;;  %v13467_v62 = vld [vmem:[%s15095_s6 + $0x358] sm:$0xff] }
 0x5ce   : > { %v8086_v14 = vpop.f32.mrf.mxu1  ;;  %v9083_v43 = vpop.f32.mrf.mxu0 }
 0x5cf   : > { %v8183_v8 = vadd.f32 %v8086_v14, %v7381_v6  ;;  %9243 = vst [vmem:[#allocation2 + $0x170] sm:$0xff] %v9179_v24  ;;  %v13560_v6 = vcombine.low %v13288_v32, %v16843_v58  ;;  %v7391_v32 = vld [vmem:[#allocation2 + $0xa0] sm:$0xff] }
 0x5d0   : > { %v8088_v63 = vpop.f32.mrf.mxu1  ;;  %v9085_v13 = vpop.f32.mrf.mxu0 }
 0x5d1   : > { %v9180_v20 = vadd.f32 %v9083_v43, %v8183_v8  ;;  %v13563_v43 = vcombine.high %v13290_v47, %v13467_v62 }
 0x5d2   : > { %v8091_v10 = vpop.f32.mrf.mxu1  ;;  %10020 = vmatmul.mubr.bf16.gmra.mxu1 %v13377_v57  ;;  %v9088_v56 = vpop.f32.mrf.mxu0  ;;  %11017 = vmatmul.mubr.bf16.gmra.mxu0 %v13554_v1  ;;  %v13386_v57 = vcombine.high %v16843_v58, %v13290_v47 }
 0x5d3   : > { %v8184_v21 = vadd.f32 %v8091_v10, %v7382_v30  ;;  %9244 = vst [vmem:[#allocation2 + $0x178] sm:$0xff] %v9180_v20  ;;  %10027 = vmatprep.mubr.bf16.mxu1 %v13380_v19  ;;  %11024 = vmatprep.mubr.bf16.mxu0 %v13557_v28  ;;  %v7388_v28 = vld [vmem:[#allocation2 + $0x158] sm:$0xff] }
 0x5d4   : > { %v8093_v4 = vpop.f32.mrf.mxu1  ;;  %v9090_v15 = vpop.f32.mrf.mxu0 }
 0x5d5   : > { %v9181_v61 = vadd.f32 %v9088_v56, %v8184_v21  ;;  %v13291_v56 = vld [vmem:[%s15095_s6 + $0x3a8] sm:$0xff]  ;;  %v13292_v21 = vld [vmem:[%s15095_s6 + $0x3b0] sm:$0xff]  ;;  %v16857_v4 = vld [vmem:[%s15095_s6 + $0x3b8] sm:$0xff] }
 0x5d6   : > { %v8094_v12 = vpop.f32.mrf.mxu1  ;;  %v9091_v17 = vpop.f32.mrf.mxu0 }
 0x5d7   : > { %v8185_v29 = vadd.f32 %v8094_v12, %v7383_v54  ;;  %9245 = vst [vmem:[#allocation2 + $0x68] sm:$0xff] %v9181_v61  ;;  %v13385_v61 = vcombine.low %v16843_v58, %v13290_v47  ;;  %v13562_v12 = vcombine.low %v13290_v47, %v13467_v62  ;;  %v9323_v47 = vld [vmem:[#allocation2 + $0x1b0] sm:$0xff] }
 0x5d8   : > { %v8096_v55 = vpop.f32.mrf.mxu1  ;;  %v9093_v38 = vpop.f32.mrf.mxu0 }
 0x5d9   : > { %v9182_v0 = vadd.f32 %v9091_v17, %v8185_v29  ;;  %v13388_v17 = vcombine.high %v13291_v56, %v13292_v21  ;;  %v7390_v55 = vld [vmem:[#allocation2 + $0x58] sm:$0xff] }
 0x5da   : > { %v8099_v34 = vpop.f32.mrf.mxu1  ;;  %10028 = vmatmul.mubr.bf16.gmra.mxu1 %v13379_v22  ;;  %v9096_v39 = vpop.f32.mrf.mxu0  ;;  %11025 = vmatmul.mubr.bf16.gmra.mxu0 %v13556_v33  ;;  %v13565_v33 = vcombine.high %v13292_v21, %v16857_v4 }
 0x5db   : > { %v8186_v27 = vadd.f32 %v8099_v34, %v7384_v31  ;;  %9246 = vst [vmem:[#allocation2 + $0x190] sm:$0xff] %v9182_v0  ;;  %10035 = vmatprep.mubr.bf16.mxu1 %v13382_v49  ;;  %11032 = vmatprep.mubr.bf16.mxu0 %v13559_v16 }
 0x5dc   : > { %v8101_v2 = vpop.f32.mrf.mxu1  ;;  %v9098_v25 = vpop.f32.mrf.mxu0 }
 0x5dd   : > { %v9183_v5 = vadd.f32 %v9096_v39, %v8186_v27  ;;  %v13294_v27 = vld [vmem:[%s15095_s6 + $0x3c0] sm:$0xff]  ;;  %v16863_v2 = vld [vmem:[%s15095_s6 + $0x3c8] sm:$0xff] }
 0x5de   : > { %v8102_v9 = vpop.f32.mrf.mxu1  ;;  %v9099_v42 = vpop.f32.mrf.mxu0 }
 0x5df   : > { %v8187_v3 = vadd.f32 %v8102_v9, %v7385_v46  ;;  %9247 = vst [vmem:[#allocation2 + $0x198] sm:$0xff] %v9183_v5  ;;  %v13387_v5 = vcombine.low %v13291_v56, %v13292_v21  ;;  %v13564_v9 = vcombine.low %v13292_v21, %v16857_v4  ;;  %v9325_v56 = vld [vmem:[#allocation2 + $0x18] sm:$0xff] }
 0x5e0   : > { %v8104_v40 = vpop.f32.mrf.mxu1  ;;  %v9101_v59 = vpop.f32.mrf.mxu0 }
 0x5e1   : > { %v9184_v18 = vadd.f32 %v9099_v42, %v8187_v3  ;;  %v13390_v42 = vcombine.high %v16857_v4, %v13294_v27  ;;  %v9322_v40 = vld [vmem:[#allocation2 + $0xb0] sm:$0xff] }
 0x5e2   : > { %v8107_v52 = vpop.f32.mrf.mxu1  ;;  %10036 = vmatmul.mubr.bf16.gmra.mxu1 %v13381_v35  ;;  %v9104_v41 = vpop.f32.mrf.mxu0  ;;  %11033 = vmatmul.mubr.bf16.gmra.mxu0 %v13558_v45  ;;  %v13567_v45 = vcombine.high %v13294_v27, %v16863_v2 }
 0x5e3   : > { %v8188_v48 = vadd.f32 %v8107_v52, %v7386_v36  ;;  %9248 = vst [vmem:[#allocation2 + $0x38] sm:$0xff] %v9184_v18  ;;  %10043 = vmatprep.mubr.bf16.mxu1 %v13384_v51  ;;  %11040 = vmatprep.mubr.bf16.mxu0 %v13561_v53 }
 0x5e4   : > { %v8109_v37 = vpop.f32.mrf.mxu1  ;;  %v9106_v44 = vpop.f32.mrf.mxu0 }
 0x5e5   : > { %v9185_v11 = vadd.f32 %v9104_v41, %v8188_v48  ;;  %v13296_v48 = vld [vmem:[%s15095_s6 + $0x3d0] sm:$0xff]  ;;  %v16870_v37 = vld [vmem:[%s15095_s6 + $0x3d8] sm:$0xff] }
 0x5e6   : > { %v8110_v7 = vpop.f32.mrf.mxu1  ;;  %v9107_v24 = vpop.f32.mrf.mxu0 }
 0x5e7   : > { %v8189_v14 = vadd.f32 %v8110_v7, %v7387_v26  ;;  %9249 = vst [vmem:[#allocation2 + $0xc0] sm:$0xff] %v9185_v11  ;;  %v13389_v11 = vcombine.low %v16857_v4, %v13294_v27  ;;  %v13566_v7 = vcombine.low %v13294_v27, %v16863_v2  ;;  %v13391_v4 = vcombine.low %v16863_v2, %v13296_v48  ;;  %v9327_v27 = vld [vmem:[#allocation2 + $0x168] sm:$0xff] }
 0x5e8   : > { %v8112_v1 = vpop.f32.mrf.mxu1  ;;  %v9109_v8 = vpop.f32.mrf.mxu0 }
 0x5e9   : > { %v9186_v19 = vadd.f32 %v9107_v24, %v8189_v14  ;;  %v13392_v24 = vcombine.high %v16863_v2, %v13296_v48  ;;  %v9324_v1 = vld [vmem:[#allocation2 + $0xd8] sm:$0xff] }
 0x5ea   : > { %v8115_v63 = vpop.f32.mrf.mxu1  ;;  %10044 = vmatmul.mubr.bf16.gmra.mxu1 %v13383_v23  ;;  %v9112_v13 = vpop.f32.mrf.mxu0  ;;  %11041 = vmatmul.mubr.bf16.gmra.mxu0 %v13560_v6  ;;  %v13569_v6 = vcombine.high %v13296_v48, %v16870_v37 }
 0x5eb   : > { %v8190_v20 = vadd.f32 %v8115_v63, %v7388_v28  ;;  %9250 = vst [vmem:[#allocation2 + $0x1c0] sm:$0xff] %v9186_v19  ;;  %10051 = vmatprep.mubr.bf16.mxu1 %v13386_v57  ;;  %11048 = vmatprep.mubr.bf16.mxu0 %v13563_v43 }
 0x5ec   : > { %v8117_v30 = vpop.f32.mrf.mxu1  ;;  %v9114_v10 = vpop.f32.mrf.mxu0 }
 0x5ed   : > { %v9187_v15 = vadd.f32 %v9112_v13, %v8190_v20  ;;  %v13298_v20 = vld [vmem:[%s15095_s6 + $0x3e0] sm:$0xff]  ;;  %v13475_v30 = vld [vmem:[%s15095_s6 + $0x3e8] sm:$0xff] }
 0x5ee   : > { %v8118_v50 = vpop.f32.mrf.mxu1  ;;  %v9115_v54 = vpop.f32.mrf.mxu0 }
 0x5ef   : > { %v8191_v22 = vadd.f32 %v8118_v50, %v7389_v60  ;;  %9251 = vst [vmem:[#allocation2 + $0x158] sm:$0xff] %v9187_v15  ;;  %v13568_v60 = vcombine.low %v13296_v48, %v16870_v37  ;;  %v9329_v48 = vld [vmem:[#allocation2 + $0x48] sm:$0xff] }
 0x5f0   : > { %v8120_v29 = vpop.f32.mrf.mxu1  ;;  %v9117_v49 = vpop.f32.mrf.mxu0 }
 0x5f1   : > { %v9188_v16 = vadd.f32 %v9115_v54, %v8191_v22  ;;  %v13571_v54 = vcombine.high %v13298_v20, %v13475_v30 }
 0x5f2   : > { %v8123_v38 = vpop.f32.mrf.mxu1  ;;  %10052 = vmatmul.mubr.bf16.gmra.mxu1 %v13385_v61  ;;  %v9120_v0 = vpop.f32.mrf.mxu0  ;;  %11049 = vmatmul.mubr.bf16.gmra.mxu0 %v13562_v12  ;;  %v13394_v61 = vcombine.high %v16870_v37, %v13298_v20 }
 0x5f3   : > { %v8192_v31 = vadd.f32 %v8123_v38, %v7390_v55  ;;  %9252 = vst [vmem:[#allocation2 + $0x10] sm:$0xff] %v9188_v16  ;;  %10059 = vmatprep.mubr.bf16.mxu1 %v13388_v17  ;;  %11056 = vmatprep.mubr.bf16.mxu0 %v13565_v33  ;;  %v9326_v33 = vld [vmem:[#allocation2 + $0x50] sm:$0xff] }
 0x5f4   : > { %v8125_v34 = vpop.f32.mrf.mxu1  ;;  %v9122_v39 = vpop.f32.mrf.mxu0 }
 0x5f5   : > { %v9189_v25 = vadd.f32 %v9120_v0, %v8192_v31  ;;  %v13299_v0 = vld [vmem:[%s15095_s6 + $0x438] sm:$0xff]  ;;  %v13300_v31 = vld [vmem:[%s15095_s6 + $0x440] sm:$0xff]  ;;  %v16884_v34 = vld [vmem:[%s15095_s6 + $0x448] sm:$0xff] }
 0x5f6   : > { %v8126_v58 = vpop.f32.mrf.mxu1  ;;  %v9123_v46 = vpop.f32.mrf.mxu0 }
 0x5f7   : > { %v8193_v35 = vadd.f32 %v8126_v58, %v7391_v32  ;;  %9253 = vst [vmem:[#allocation2 + $0x58] sm:$0xff] %v9189_v25  ;;  %v13393_v25 = vcombine.low %v16870_v37, %v13298_v20  ;;  %v13570_v58 = vcombine.low %v13298_v20, %v13475_v30  ;;  %v9331_v20 = vld [vmem:[#allocation2 + $0x110] sm:$0xff] }
 0x5f8   : > { %v8128_v3 = vpop.f32.mrf.mxu1  ;;  %v9125_v51 = vpop.f32.mrf.mxu0 }
 0x5f9   : > { %v9190_v53 = vadd.f32 %v9123_v46, %v8193_v35  ;;  %v13396_v46 = vcombine.high %v13299_v0, %v13300_v31  ;;  %v9328_v3 = vld [vmem:[#allocation2 + $0x130] sm:$0xff] }
 0x5fa   : > { %v9869_v59 = vpop.f32.mrf.mxu1  ;;  %10060 = vmatmul.mubr.bf16.gmra.mxu1 %v13387_v5  ;;  %v10866_v18 = vpop.f32.mrf.mxu0  ;;  %11057 = vmatmul.mubr.bf16.gmra.mxu0 %v13564_v9  ;;  %v13573_v9 = vcombine.high %v13300_v31, %v16884_v34 }
 0x5fb   : > { %v10124_v36 = vadd.f32 %v9869_v59, %v9322_v40  ;;  %9254 = vst [vmem:[#allocation2 + $0xa0] sm:$0xff] %v9190_v53  ;;  %10067 = vmatprep.mubr.bf16.mxu1 %v13390_v42  ;;  %11064 = vmatprep.mubr.bf16.mxu0 %v13567_v45 }
 0x5fc   : > { %v9871_v52 = vpop.f32.mrf.mxu1  ;;  %v10868_v41 = vpop.f32.mrf.mxu0 }
 0x5fd   : > { %v11121_v44 = vadd.f32 %v10866_v18, %v10124_v36  ;;  %v13302_v36 = vld [vmem:[%s15095_s6 + $0x450] sm:$0xff]  ;;  %v16890_v52 = vld [vmem:[%s15095_s6 + $0x458] sm:$0xff] }
 0x5fe   : > { %v9872_v62 = vpop.f32.mrf.mxu1  ;;  %v10869_v26 = vpop.f32.mrf.mxu0 }
 0x5ff   : > { %v10125_v23 = vadd.f32 %v9872_v62, %v9323_v47  ;;  %11185 = vst [vmem:[#allocation2 + $0xb0] sm:$0xff] %v11121_v44  ;;  %v13395_v44 = vcombine.low %v13299_v0, %v13300_v31  ;;  %v13572_v62 = vcombine.low %v13300_v31, %v16884_v34  ;;  %v9333_v0 = vld [vmem:[#allocation2 + $0x98] sm:$0xff] }
 0x600   : > { %v9874_v14 = vpop.f32.mrf.mxu1  ;;  %v10871_v57 = vpop.f32.mrf.mxu0 }
 0x601   : > { %v11122_v43 = vadd.f32 %v10869_v26, %v10125_v23  ;;  %v13398_v26 = vcombine.high %v16884_v34, %v13302_v36  ;;  %v9330_v14 = vld [vmem:[#allocation2 + $0x180] sm:$0xff] }
 0x602   : > { %v9877_v8 = vpop.f32.mrf.mxu1  ;;  %10068 = vmatmul.mubr.bf16.gmra.mxu1 %v13389_v11  ;;  %v10874_v19 = vpop.f32.mrf.mxu0  ;;  %11065 = vmatmul.mubr.bf16.gmra.mxu0 %v13566_v7  ;;  %v13575_v7 = vcombine.high %v13302_v36, %v16890_v52 }
 0x603   : > { %v10126_v28 = vadd.f32 %v9877_v8, %v9324_v1  ;;  %11186 = vst [vmem:[#allocation2 + $0x1b0] sm:$0xff] %v11122_v43  ;;  %10075 = vmatprep.mubr.bf16.mxu1 %v13392_v24  ;;  %11072 = vmatprep.mubr.bf16.mxu0 %v13569_v6 }
 0x604   : > { %v9879_v63 = vpop.f32.mrf.mxu1  ;;  %v10876_v13 = vpop.f32.mrf.mxu0 }
 0x605   : > { %v11123_v10 = vadd.f32 %v10874_v19, %v10126_v28  ;;  %v13304_v28 = vld [vmem:[%s15095_s6 + $0x460] sm:$0xff]  ;;  %v16897_v63 = vld [vmem:[%s15095_s6 + $0x468] sm:$0xff] }
 0x606   : > { %v9880_v21 = vpop.f32.mrf.mxu1  ;;  %v10877_v15 = vpop.f32.mrf.mxu0 }
 0x607   : > { %v10127_v50 = vadd.f32 %v9880_v21, %v9325_v56  ;;  %11187 = vst [vmem:[#allocation2 + $0xd8] sm:$0xff] %v11123_v10  ;;  %v13397_v10 = vcombine.low %v16884_v34, %v13302_v36  ;;  %v13574_v21 = vcombine.low %v13302_v36, %v16890_v52  ;;  %v13399_v34 = vcombine.low %v16890_v52, %v13304_v28 }
 0x608   : > { %v9882_v12 = vpop.f32.mrf.mxu1  ;;  %v10879_v22 = vpop.f32.mrf.mxu0 }
 0x609   : > { %v11124_v17 = vadd.f32 %v10877_v15, %v10127_v50  ;;  %v13400_v15 = vcombine.high %v16890_v52, %v13304_v28  ;;  %v9332_v12 = vld [vmem:[#allocation2 + $0x118] sm:$0xff] }
 0x60a   : > { %v9885_v29 = vpop.f32.mrf.mxu1  ;;  %10076 = vmatmul.mubr.bf16.gmra.mxu1 %v13391_v4  ;;  %v10882_v49 = vpop.f32.mrf.mxu0  ;;  %11073 = vmatmul.mubr.bf16.gmra.mxu0 %v13568_v60  ;;  %v13577_v60 = vcombine.high %v13304_v28, %v16897_v63 }
 0x60b   : > { %v10128_v16 = vadd.f32 %v9885_v29, %v9326_v33  ;;  %11188 = vst [vmem:[#allocation2 + $0x18] sm:$0xff] %v11124_v17  ;;  %10083 = vmatprep.mubr.bf16.mxu1 %v13394_v61  ;;  %11080 = vmatprep.mubr.bf16.mxu0 %v13571_v54 }
 0x60c   : > { %v9887_v55 = vpop.f32.mrf.mxu1  ;;  %v10884_v38 = vpop.f32.mrf.mxu0 }
 0x60d   : > { %v11125_v39 = vadd.f32 %v10882_v49, %v10128_v16  ;;  %v13306_v16 = vld [vmem:[%s15095_s6 + $0x470] sm:$0xff]  ;;  %v13483_v55 = vld [vmem:[%s15095_s6 + $0x478] sm:$0xff] }
 0x60e   : > { %v9888_v2 = vpop.f32.mrf.mxu1  ;;  %v10885_v32 = vpop.f32.mrf.mxu0  ;;  %v13578_v52 = vcombine.low %v13306_v16, %v13483_v55 }
 0x60f   : > { %v10129_v5 = vadd.f32 %v9888_v2, %v9327_v27  ;;  %11189 = vst [vmem:[#allocation2 + $0x50] sm:$0xff] %v11125_v39  ;;  %v13576_v27 = vcombine.low %v13304_v28, %v16897_v63  ;;  %v9338_v28 = vld [vmem:[#allocation2 + $0xe0] sm:$0xff] }
 0x610   : > { %v9890_v35 = vpop.f32.mrf.mxu1  ;;  %v10887_v42 = vpop.f32.mrf.mxu0 }
 0x611   : > { %v11126_v45 = vadd.f32 %v10885_v32, %v10129_v5  ;;  %v13579_v32 = vcombine.high %v13306_v16, %v13483_v55  ;;  %v9341_v55 = vld [vmem:[#allocation2 + $0x140] sm:$0xff] }
 0x612   : > { %v9893_v51 = vpop.f32.mrf.mxu1  ;;  %10084 = vmatmul.mubr.bf16.gmra.mxu1 %v13393_v25  ;;  %v10890_v53 = vpop.f32.mrf.mxu0  ;;  %11081 = vmatmul.mubr.bf16.gmra.mxu0 %v13570_v58  ;;  %v13402_v25 = vcombine.high %v16897_v63, %v13306_v16 }
 0x613   : > { %v10130_v40 = vadd.f32 %v9893_v51, %v9328_v3  ;;  %11190 = vst [vmem:[#allocation2 + $0x168] sm:$0xff] %v11126_v45  ;;  %10091 = vmatprep.mubr.bf16.mxu1 %v13396_v46  ;;  %11088 = vmatprep.mubr.bf16.mxu0 %v13573_v9  ;;  %v9334_v9 = vld [vmem:[#allocation2 + $0x120] sm:$0xff] }
 0x614   : > { %v9895_v59 = vpop.f32.mrf.mxu1  ;;  %v10892_v18 = vpop.f32.mrf.mxu0 }
 0x615   : > { %v11127_v41 = vadd.f32 %v10890_v53, %v10130_v40  ;;  %v9335_v40 = vld [vmem:[#allocation2 + $0x150] sm:$0xff]  ;;  %v13401_v18 = vcombine.low %v16897_v63, %v13306_v16 }
 0x616   : > { %v9896_v37 = vpop.f32.mrf.mxu1  ;;  %v10893_v47 = vpop.f32.mrf.mxu0 }
 0x617   : > { %v10131_v11 = vadd.f32 %v9896_v37, %v9329_v48  ;;  %11191 = vst [vmem:[#allocation2 + $0x130] sm:$0xff] %v11127_v41 }
 0x618   : > { %v9898_v23 = vpop.f32.mrf.mxu1  ;;  %v10895_v24 = vpop.f32.mrf.mxu0 }
 0x619   : > { %v11128_v6 = vadd.f32 %v10893_v47, %v10131_v11  ;;  %v9336_v47 = vld [vmem:[#allocation2 + $0x108] sm:$0xff] }
 0x61a   : > { %v9901_v57 = vpop.f32.mrf.mxu1  ;;  %10092 = vmatmul.mubr.bf16.gmra.mxu1 %v13395_v44  ;;  %v10898_v43 = vpop.f32.mrf.mxu0  ;;  %11089 = vmatmul.mubr.bf16.gmra.mxu0 %v13572_v62 }
 0x61b   : > { %v10132_v1 = vadd.f32 %v9901_v57, %v9330_v14  ;;  %11192 = vst [vmem:[#allocation2 + $0x48] sm:$0xff] %v11128_v6  ;;  %10099 = vmatprep.mubr.bf16.mxu1 %v13398_v26  ;;  %11096 = vmatprep.mubr.bf16.mxu0 %v13575_v7  ;;  %v9337_v6 = vld [vmem:[#allocation2 + $0x60] sm:$0xff] }
 0x61c   : > { %v9903_v8 = vpop.f32.mrf.mxu1  ;;  %v10900_v19 = vpop.f32.mrf.mxu0 }
 0x61d   : > { %v11129_v13 = vadd.f32 %v10898_v43, %v10132_v1 }
 0x61e   : > { %v9904_v30 = vpop.f32.mrf.mxu1  ;;  %v10901_v56 = vpop.f32.mrf.mxu0 }
 0x61f   : > { %v10133_v4 = vadd.f32 %v9904_v30, %v9331_v20  ;;  %11193 = vst [vmem:[#allocation2 + $0x180] sm:$0xff] %v11129_v13 }
 0x620   : > { %v9906_v50 = vpop.f32.mrf.mxu1  ;;  %v10903_v61 = vpop.f32.mrf.mxu0 }
 0x621   : > { %v11130_v54 = vadd.f32 %v10901_v56, %v10133_v4 }
 0x622   : > { %v9909_v22 = vpop.f32.mrf.mxu1  ;;  %10100 = vmatmul.mubr.bf16.gmra.mxu1 %v13397_v10  ;;  %v10906_v17 = vpop.f32.mrf.mxu0  ;;  %11097 = vmatmul.mubr.bf16.gmra.mxu0 %v13574_v21  ;;  %v9339_v21 = vld [vmem:[#allocation2 + $0x188] sm:$0xff] }
 0x623   : > { %v10134_v33 = vadd.f32 %v9909_v22, %v9332_v12  ;;  %11194 = vst [vmem:[#allocation2 + $0x110] sm:$0xff] %v11130_v54  ;;  %10107 = vmatprep.mubr.bf16.mxu1 %v13400_v15  ;;  %11104 = vmatprep.mubr.bf16.mxu0 %v13577_v60  ;;  %v9340_v12 = vld [vmem:[#allocation2 + $0x138] sm:$0xff] }
 0x624   : > { %v9911_v29 = vpop.f32.mrf.mxu1  ;;  %v10908_v49 = vpop.f32.mrf.mxu0 }
 0x625   : > { %v11131_v38 = vadd.f32 %v10906_v17, %v10134_v33 }
 0x626   : > { %v9912_v31 = vpop.f32.mrf.mxu1  ;;  %v10909_v39 = vpop.f32.mrf.mxu0 }
 0x627   : > { %v10135_v2 = vadd.f32 %v9912_v31, %v9333_v0  ;;  %11195 = vst [vmem:[#allocation2 + $0x118] sm:$0xff] %v11131_v38 }
 0x628   : > { %v9914_v58 = vpop.f32.mrf.mxu1  ;;  %v10911_v5 = vpop.f32.mrf.mxu0 }
 0x629   : > { %v11132_v46 = vadd.f32 %v10909_v39, %v10135_v2  ;;  %v9342_v2 = vld [vmem:[#allocation2 + $0x80] sm:$0xff] }
 0x62a   : > { %v9917_v35 = vpop.f32.mrf.mxu1  ;;  %10108 = vmatmul.mubr.bf16.gmra.mxu1 %v13399_v34  ;;  %v10914_v42 = vpop.f32.mrf.mxu0  ;;  %11105 = vmatmul.mubr.bf16.gmra.mxu0 %v13576_v27 }
 0x62b   : > { %v10136_v45 = vadd.f32 %v9917_v35, %v9334_v9  ;;  %11196 = vst [vmem:[#allocation2 + $0x98] sm:$0xff] %v11132_v46  ;;  %10115 = vmatprep.mubr.bf16.mxu1 %v13402_v25  ;;  %11112 = vmatprep.mubr.bf16.mxu0 %v13579_v32  ;;  %v9343_v35 = vld [vmem:[#allocation2 + $0x1a8] sm:$0xff] }
 0x62c   : > { %v9919_v3 = vpop.f32.mrf.mxu1  ;;  %v10916_v51 = vpop.f32.mrf.mxu0 }
 0x62d   : > { %v11133_v53 = vadd.f32 %v10914_v42, %v10136_v45 }
 0x62e   : > { %v9920_v59 = vpop.f32.mrf.mxu1  ;;  %v10917_v36 = vpop.f32.mrf.mxu0 }
 0x62f   : > { %v10137_v41 = vadd.f32 %v9920_v59, %v9335_v40  ;;  %11197 = vst [vmem:[#allocation2 + $0x120] sm:$0xff] %v11133_v53  ;;  %v9344_v59 = vld [vmem:[#allocation2 + $0x1b8] sm:$0xff] }
 0x630   : > { %v9922_v48 = vpop.f32.mrf.mxu1  ;;  %v10919_v37 = vpop.f32.mrf.mxu0 }
 0x631   : > { %v11134_v44 = vadd.f32 %v10917_v36, %v10137_v41 }
 0x632   : > { %v9925_v62 = vpop.f32.mrf.mxu1  ;;  %10116 = vmatmul.mubr.bf16.gmra.mxu1 %v13401_v18  ;;  %v10922_v11 = vpop.f32.mrf.mxu0  ;;  %11113 = vmatmul.mubr.bf16.gmra.mxu0 %v13578_v52 }
 0x633   : > { %v10138_v26 = vadd.f32 %v9925_v62, %v9336_v47  ;;  %11198 = vst [vmem:[#allocation2 + $0x150] sm:$0xff] %v11134_v44  ;;  %v9345_v44 = vld [vmem:[#allocation2 + $0x28] sm:$0xff] }
 0x634   : > { %v9927_v7 = vpop.f32.mrf.mxu1  ;;  %v10924_v23 = vpop.f32.mrf.mxu0 }
 0x635   : > { %v11135_v24 = vadd.f32 %v10922_v11, %v10138_v26 }
 0x636   : > { %v9928_v14 = vpop.f32.mrf.mxu1  ;;  %v10925_v57 = vpop.f32.mrf.mxu0 }
 0x637   : > { %v10139_v43 = vadd.f32 %v9928_v14, %v9337_v6  ;;  %11199 = vst [vmem:[#allocation2 + $0x108] sm:$0xff] %v11135_v24  ;;  %v9346_v24 = vld [vmem:[#allocation2 + $0x1e8] sm:$0xff] }
 0x638   : > { %v9930_v1 = vpop.f32.mrf.mxu1  ;;  %v10927_v8 = vpop.f32.mrf.mxu0 }
 0x639   : > { %v11136_v19 = vadd.f32 %v10925_v57, %v10139_v43 }
 0x63a   : > { %v9933_v63 = vpop.f32.mrf.mxu1  ;;  %v10930_v13 = vpop.f32.mrf.mxu0 }
 0x63b   : > { %v10140_v20 = vadd.f32 %v9933_v63, %v9338_v28  ;;  %11200 = vst [vmem:[#allocation2 + $0x60] sm:$0xff] %v11136_v19  ;;  %v9347_v19 = vld [vmem:[#allocation2 + $0xf8] sm:$0xff] }
 0x63c   : > { %v9935_v30 = vpop.f32.mrf.mxu1  ;;  %v10932_v10 = vpop.f32.mrf.mxu0 }
 0x63d   : > { %v11137_v56 = vadd.f32 %v10930_v13, %v10140_v20 }
 0x63e   : > { %v9936_v4 = vpop.f32.mrf.mxu1  ;;  %v10933_v15 = vpop.f32.mrf.mxu0 }
 0x63f   : > { %v10141_v60 = vadd.f32 %v9936_v4, %v9339_v21  ;;  %11201 = vst [vmem:[#allocation2 + $0xe0] sm:$0xff] %v11137_v56  ;;  %v9348_v56 = vld [vmem:[#allocation2 + $0x160] sm:$0xff] }
 0x640   : > { %v9938_v50 = vpop.f32.mrf.mxu1  ;;  %v10935_v61 = vpop.f32.mrf.mxu0 }
 0x641   : > { %v11138_v54 = vadd.f32 %v10933_v15, %v10141_v60 }
 0x642   : > { %v9941_v22 = vpop.f32.mrf.mxu1  ;;  %v10938_v17 = vpop.f32.mrf.mxu0 }
 0x643   : > { %v10142_v33 = vadd.f32 %v9941_v22, %v9340_v12  ;;  %11202 = vst [vmem:[#allocation2 + $0x188] sm:$0xff] %v11138_v54  ;;  %v9349_v54 = vld [vmem:[#allocation2 + $0x30] sm:$0xff] }
 0x644   : > { %v9943_v29 = vpop.f32.mrf.mxu1  ;;  %v10940_v49 = vpop.f32.mrf.mxu0 }
 0x645   : > { %v11139_v16 = vadd.f32 %v10938_v17, %v10142_v33 }
 0x646   : > { %v9944_v38 = vpop.f32.mrf.mxu1  ;;  %v10941_v0 = vpop.f32.mrf.mxu0 }
 0x647   : > { %v10143_v31 = vadd.f32 %v9944_v38, %v9341_v55  ;;  %11203 = vst [vmem:[#allocation2 + $0x138] sm:$0xff] %v11139_v16  ;;  %v9350_v16 = vld [vmem:[#allocation2 + $0x1e0] sm:$0xff] }
 0x648   : > { %v9946_v34 = vpop.f32.mrf.mxu1  ;;  %v10943_v39 = vpop.f32.mrf.mxu0 }
 0x649   : > { %v11140_v27 = vadd.f32 %v10941_v0, %v10143_v31 }
 0x64a   : > { %v9949_v25 = vpop.f32.mrf.mxu1  ;;  %v10946_v32 = vpop.f32.mrf.mxu0 }
 0x64b   : > { %v10144_v58 = vadd.f32 %v9949_v25, %v9342_v2  ;;  %11204 = vst [vmem:[#allocation2 + $0x140] sm:$0xff] %v11140_v27  ;;  %v9351_v27 = vld [vmem:[#allocation2] sm:$0xff] }
 0x64c   : > { %v9951_v5 = vpop.f32.mrf.mxu1  ;;  %v10948_v46 = vpop.f32.mrf.mxu0 }
 0x64d   : > { %v11141_v9 = vadd.f32 %v10946_v32, %v10144_v58 }
 0x64e   : > { %v9952_v42 = vpop.f32.mrf.mxu1  ;;  %v10949_v45 = vpop.f32.mrf.mxu0 }
 0x64f   : > { %v10145_v3 = vadd.f32 %v9952_v42, %v9343_v35  ;;  %11205 = vst [vmem:[#allocation2 + $0x80] sm:$0xff] %v11141_v9  ;;  %v9352_v9 = vld [vmem:[#allocation2 + $0xf0] sm:$0xff] }
 0x650   : > { %v9954_v51 = vpop.f32.mrf.mxu1  ;;  %v10951_v53 = vpop.f32.mrf.mxu0 }
 0x651   : > { %v11142_v40 = vadd.f32 %v10949_v45, %v10145_v3 }
 0x652   : > { %v9957_v18 = vpop.f32.mrf.mxu1  ;;  %v10954_v36 = vpop.f32.mrf.mxu0 }
 0x653   : > { %v10146_v52 = vadd.f32 %v9957_v18, %v9344_v59  ;;  %11206 = vst [vmem:[#allocation2 + $0x1a8] sm:$0xff] %v11142_v40  ;;  %v9353_v40 = vld [vmem:[#allocation2 + $0x8] sm:$0xff] }
 0x654   : > { %v9959_v41 = vpop.f32.mrf.mxu1  ;;  %v10956_v48 = vpop.f32.mrf.mxu0 }
 0x655   : > { %v11143_v37 = vadd.f32 %v10954_v36, %v10146_v52 }
 0x656   : > { %v9960_v47 = vpop.f32.mrf.mxu1  ;;  %v10957_v62 = vpop.f32.mrf.mxu0 }
 0x657   : > { %v10147_v11 = vadd.f32 %v9960_v47, %v9345_v44  ;;  %11207 = vst [vmem:[#allocation2 + $0x1b8] sm:$0xff] %v11143_v37  ;;  %v9354_v37 = vld [vmem:[#allocation2 + $0x148] sm:$0xff] }
 0x658   : > { %v9962_v26 = vpop.f32.mrf.mxu1  ;;  %v10959_v7 = vpop.f32.mrf.mxu0 }
 0x659   : > { %v11144_v23 = vadd.f32 %v10957_v62, %v10147_v11 }
 0x65a   : > { %v9965_v6 = vpop.f32.mrf.mxu1  ;;  %v10962_v14 = vpop.f32.mrf.mxu0 }
 0x65b   : > { %v10148_v57 = vadd.f32 %v9965_v6, %v9346_v24  ;;  %11208 = vst [vmem:[#allocation2 + $0x28] sm:$0xff] %v11144_v23  ;;  %v9355_v23 = vld [vmem:[#allocation2 + $0x1d0] sm:$0xff] }
 0x65c   : > { %v9967_v43 = vpop.f32.mrf.mxu1  ;;  %v10964_v1 = vpop.f32.mrf.mxu0 }
 0x65d   : > { %v11145_v8 = vadd.f32 %v10962_v14, %v10148_v57 }
 0x65e   : > { %v9968_v28 = vpop.f32.mrf.mxu1  ;;  %v10965_v63 = vpop.f32.mrf.mxu0 }
 0x65f   : > { %v10149_v13 = vadd.f32 %v9968_v28, %v9347_v19  ;;  %11209 = vst [vmem:[#allocation2 + $0x1e8] sm:$0xff] %v11145_v8  ;;  %v9356_v8 = vld [vmem:[#allocation2 + $0x100] sm:$0xff] }
 0x660   : > { %v9970_v20 = vpop.f32.mrf.mxu1  ;;  %v10967_v30 = vpop.f32.mrf.mxu0 }
 0x661   : > { %v11146_v10 = vadd.f32 %v10965_v63, %v10149_v13 }
 0x662   : > { %v9973_v21 = vpop.f32.mrf.mxu1  ;;  %v10970_v4 = vpop.f32.mrf.mxu0 }
 0x663   : > { %v10150_v15 = vadd.f32 %v9973_v21, %v9348_v56  ;;  %11210 = vst [vmem:[#allocation2 + $0xf8] sm:$0xff] %v11146_v10  ;;  %v9357_v10 = vld [vmem:[#allocation2 + $0xc8] sm:$0xff] }
 0x664   : > { %v9975_v60 = vpop.f32.mrf.mxu1  ;;  %v10972_v50 = vpop.f32.mrf.mxu0 }
 0x665   : > { %v11147_v61 = vadd.f32 %v10970_v4, %v10150_v15 }
 0x666   : > { %v9976_v12 = vpop.f32.mrf.mxu1  ;;  %v10973_v22 = vpop.f32.mrf.mxu0 }
 0x667   : > { %v10151_v17 = vadd.f32 %v9976_v12, %v9349_v54  ;;  %11211 = vst [vmem:[#allocation2 + $0x160] sm:$0xff] %v11147_v61  ;;  %v9358_v61 = vld [vmem:[#allocation2 + $0x40] sm:$0xff] }
 0x668   : > { %v9978_v33 = vpop.f32.mrf.mxu1  ;;  %v10975_v29 = vpop.f32.mrf.mxu0 }
 0x669   : > { %v11148_v49 = vadd.f32 %v10973_v22, %v10151_v17 }
 0x66a   : > { %v9981_v55 = vpop.f32.mrf.mxu1  ;;  %v10978_v38 = vpop.f32.mrf.mxu0 }
 0x66b   : > { %v10152_v0 = vadd.f32 %v9981_v55, %v9350_v16  ;;  %11212 = vst [vmem:[#allocation2 + $0x30] sm:$0xff] %v11148_v49  ;;  %v9359_v49 = vld [vmem:[#allocation2 + $0x1f8] sm:$0xff] }
 0x66c   : > { %v9983_v31 = vpop.f32.mrf.mxu1  ;;  %v10980_v34 = vpop.f32.mrf.mxu0 }
 0x66d   : > { %v11149_v39 = vadd.f32 %v10978_v38, %v10152_v0 }
 0x66e   : > { %v9984_v2 = vpop.f32.mrf.mxu1  ;;  %v10981_v25 = vpop.f32.mrf.mxu0 }
 0x66f   : > { %v10153_v32 = vadd.f32 %v9984_v2, %v9351_v27  ;;  %11213 = vst [vmem:[#allocation2 + $0x1e0] sm:$0xff] %v11149_v39  ;;  %v9360_v39 = vld [vmem:[#allocation2 + $0x20] sm:$0xff] }
 0x670   : > { %v9986_v58 = vpop.f32.mrf.mxu1  ;;  %v10983_v5 = vpop.f32.mrf.mxu0 }
 0x671   : > { %v11150_v46 = vadd.f32 %v10981_v25, %v10153_v32 }
 0x672   : > { %v9989_v35 = vpop.f32.mrf.mxu1  ;;  %v10986_v42 = vpop.f32.mrf.mxu0 }
 0x673   : > { %v10154_v45 = vadd.f32 %v9989_v35, %v9352_v9  ;;  %11214 = vst [vmem:[#allocation2] sm:$0xff] %v11150_v46  ;;  %v9361_v46 = vld [vmem:[#allocation2 + $0x128] sm:$0xff] }
 0x674   : > { %v9991_v3 = vpop.f32.mrf.mxu1  ;;  %v10988_v51 = vpop.f32.mrf.mxu0 }
 0x675   : > { %v11151_v53 = vadd.f32 %v10986_v42, %v10154_v45 }
 0x676   : > { %v9992_v59 = vpop.f32.mrf.mxu1  ;;  %v10989_v18 = vpop.f32.mrf.mxu0 }
 0x677   : > { %v10155_v36 = vadd.f32 %v9992_v59, %v9353_v40  ;;  %11215 = vst [vmem:[#allocation2 + $0xf0] sm:$0xff] %v11151_v53  ;;  %v9362_v53 = vld [vmem:[#allocation2 + $0x1a0] sm:$0xff] }
 0x678   : > { %v9994_v52 = vpop.f32.mrf.mxu1  ;;  %v10991_v41 = vpop.f32.mrf.mxu0 }
 0x679   : > { %v11152_v48 = vadd.f32 %v10989_v18, %v10155_v36 }
 0x67a   : > { %v9997_v44 = vpop.f32.mrf.mxu1  ;;  %v10994_v47 = vpop.f32.mrf.mxu0 }
 0x67b   : > { %v10156_v62 = vadd.f32 %v9997_v44, %v9354_v37  ;;  %11216 = vst [vmem:[#allocation2 + $0x8] sm:$0xff] %v11152_v48  ;;  %v9363_v48 = vld [vmem:[#allocation2 + $0x1f0] sm:$0xff] }
 0x67c   : > { %v9999_v11 = vpop.f32.mrf.mxu1  ;;  %v10996_v26 = vpop.f32.mrf.mxu0 }
 0x67d   : > { %v11153_v7 = vadd.f32 %v10994_v47, %v10156_v62 }
 0x67e   : > { %v10000_v24 = vpop.f32.mrf.mxu1  ;;  %v10997_v6 = vpop.f32.mrf.mxu0 }
 0x67f   : > { %v10157_v14 = vadd.f32 %v10000_v24, %v9355_v23  ;;  %11217 = vst [vmem:[#allocation2 + $0x148] sm:$0xff] %v11153_v7  ;;  %v9364_v7 = vld [vmem:[#allocation2 + $0xe8] sm:$0xff] }
 0x680   : > { %v10002_v57 = vpop.f32.mrf.mxu1  ;;  %v10999_v43 = vpop.f32.mrf.mxu0 }
 0x681   : > { %v11154_v1 = vadd.f32 %v10997_v6, %v10157_v14 }
 0x682   : > { %v10005_v19 = vpop.f32.mrf.mxu1  ;;  %v11002_v28 = vpop.f32.mrf.mxu0 }
 0x683   : > { %v10158_v63 = vadd.f32 %v10005_v19, %v9356_v8  ;;  %11218 = vst [vmem:[#allocation2 + $0x1d0] sm:$0xff] %v11154_v1  ;;  %v9365_v1 = vld [vmem:[#allocation2 + $0x78] sm:$0xff] }
 0x684   : > { %v10007_v13 = vpop.f32.mrf.mxu1  ;;  %v11004_v20 = vpop.f32.mrf.mxu0 }
 0x685   : > { %v11155_v30 = vadd.f32 %v11002_v28, %v10158_v63 }
 0x686   : > { %v10008_v56 = vpop.f32.mrf.mxu1  ;;  %v11005_v21 = vpop.f32.mrf.mxu0 }
 0x687   : > { %v10159_v4 = vadd.f32 %v10008_v56, %v9357_v10  ;;  %11219 = vst [vmem:[#allocation2 + $0x100] sm:$0xff] %v11155_v30  ;;  %v9366_v30 = vld [vmem:[#allocation2 + $0x70] sm:$0xff] }
 0x688   : > { %v10010_v15 = vpop.f32.mrf.mxu1  ;;  %v11007_v60 = vpop.f32.mrf.mxu0 }
 0x689   : > { %v11156_v50 = vadd.f32 %v11005_v21, %v10159_v4 }
 0x68a   : > { %v10013_v54 = vpop.f32.mrf.mxu1  ;;  %v11010_v12 = vpop.f32.mrf.mxu0 }
 0x68b   : > { %v10160_v22 = vadd.f32 %v10013_v54, %v9358_v61  ;;  %11220 = vst [vmem:[#allocation2 + $0xc8] sm:$0xff] %v11156_v50  ;;  %v9367_v50 = vld [vmem:[#allocation2 + $0x90] sm:$0xff] }
 0x68c   : > { %v10015_v17 = vpop.f32.mrf.mxu1  ;;  %v11012_v33 = vpop.f32.mrf.mxu0 }
 0x68d   : > { %v11157_v29 = vadd.f32 %v11010_v12, %v10160_v22 }
 0x68e   : > { %v10016_v16 = vpop.f32.mrf.mxu1  ;;  %v11013_v55 = vpop.f32.mrf.mxu0 }
 0x68f   : > { %v10161_v38 = vadd.f32 %v10016_v16, %v9359_v49  ;;  %11221 = vst [vmem:[#allocation2 + $0x40] sm:$0xff] %v11157_v29  ;;  %v9368_v29 = vld [vmem:[#allocation2 + $0x1d8] sm:$0xff] }
 0x690   : > { %v10018_v0 = vpop.f32.mrf.mxu1  ;;  %v11015_v31 = vpop.f32.mrf.mxu0 }
 0x691   : > { %v11158_v34 = vadd.f32 %v11013_v55, %v10161_v38 }
 0x692   : > { %v10021_v27 = vpop.f32.mrf.mxu1  ;;  %v11018_v2 = vpop.f32.mrf.mxu0 }
 0x693   : > { %v10162_v25 = vadd.f32 %v10021_v27, %v9360_v39  ;;  %11222 = vst [vmem:[#allocation2 + $0x1f8] sm:$0xff] %v11158_v34  ;;  %v9369_v34 = vld [vmem:[#allocation2 + $0xd0] sm:$0xff] }
 0x694   : > { %v10023_v32 = vpop.f32.mrf.mxu1  ;;  %v11020_v58 = vpop.f32.mrf.mxu0 }
 0x695   : > { %v11159_v5 = vadd.f32 %v11018_v2, %v10162_v25 }
 0x696   : > { %v10024_v9 = vpop.f32.mrf.mxu1  ;;  %v11021_v35 = vpop.f32.mrf.mxu0 }
 0x697   : > { %v10163_v42 = vadd.f32 %v10024_v9, %v9361_v46  ;;  %11223 = vst [vmem:[#allocation2 + $0x20] sm:$0xff] %v11159_v5  ;;  %v9370_v5 = vld [vmem:[#allocation2 + $0xb8] sm:$0xff] }
 0x698   : > { %v10026_v45 = vpop.f32.mrf.mxu1  ;;  %v11023_v3 = vpop.f32.mrf.mxu0 }
 0x699   : > { %v11160_v51 = vadd.f32 %v11021_v35, %v10163_v42 }
 0x69a   : > { %v10029_v40 = vpop.f32.mrf.mxu1  ;;  %v11026_v59 = vpop.f32.mrf.mxu0 }
 0x69b   : > { %v10164_v18 = vadd.f32 %v10029_v40, %v9362_v53  ;;  %11224 = vst [vmem:[#allocation2 + $0x128] sm:$0xff] %v11160_v51  ;;  %v9371_v51 = vld [vmem:[#allocation2 + $0x88] sm:$0xff] }
 0x69c   : > { %v10031_v36 = vpop.f32.mrf.mxu1  ;;  %v11028_v52 = vpop.f32.mrf.mxu0 }
 0x69d   : > { %v11161_v41 = vadd.f32 %v11026_v59, %v10164_v18 }
 0x69e   : > { %v10032_v37 = vpop.f32.mrf.mxu1  ;;  %v11029_v44 = vpop.f32.mrf.mxu0 }
 0x69f   : > { %v10165_v47 = vadd.f32 %v10032_v37, %v9363_v48  ;;  %11225 = vst [vmem:[#allocation2 + $0x1a0] sm:$0xff] %v11161_v41  ;;  %v9372_v41 = vld [vmem:[#allocation2 + $0xa8] sm:$0xff] }
 0x6a0   : > { %v10034_v62 = vpop.f32.mrf.mxu1  ;;  %v11031_v11 = vpop.f32.mrf.mxu0 }
 0x6a1   : > { %v11162_v26 = vadd.f32 %v11029_v44, %v10165_v47 }
 0x6a2   : > { %v10037_v23 = vpop.f32.mrf.mxu1  ;;  %v11034_v24 = vpop.f32.mrf.mxu0 }
 0x6a3   : > { %v10166_v6 = vadd.f32 %v10037_v23, %v9364_v7  ;;  %11226 = vst [vmem:[#allocation2 + $0x1f0] sm:$0xff] %v11162_v26  ;;  %v9373_v26 = vld [vmem:[#allocation2 + $0x1c8] sm:$0xff] }
 0x6a4   : > { %v10039_v14 = vpop.f32.mrf.mxu1  ;;  %v11036_v57 = vpop.f32.mrf.mxu0 }
 0x6a5   : > { %v11163_v43 = vadd.f32 %v11034_v24, %v10166_v6 }
 0x6a6   : > { %v10040_v8 = vpop.f32.mrf.mxu1  ;;  %v11037_v19 = vpop.f32.mrf.mxu0 }
 0x6a7   : > { %v10167_v28 = vadd.f32 %v10040_v8, %v9365_v1  ;;  %11227 = vst [vmem:[#allocation2 + $0xe8] sm:$0xff] %v11163_v43  ;;  %v9374_v43 = vld [vmem:[#allocation2 + $0x170] sm:$0xff] }
 0x6a8   : > { %v10042_v63 = vpop.f32.mrf.mxu1  ;;  %v11039_v13 = vpop.f32.mrf.mxu0 }
 0x6a9   : > { %v11164_v20 = vadd.f32 %v11037_v19, %v10167_v28 }
 0x6aa   : > { %v10045_v10 = vpop.f32.mrf.mxu1  ;;  %v11042_v56 = vpop.f32.mrf.mxu0 }
 0x6ab   : > { %v10168_v21 = vadd.f32 %v10045_v10, %v9366_v30  ;;  %11228 = vst [vmem:[#allocation2 + $0x78] sm:$0xff] %v11164_v20  ;;  %v9375_v20 = vld [vmem:[#allocation2 + $0x178] sm:$0xff] }
 0x6ac   : > { %v10047_v4 = vpop.f32.mrf.mxu1  ;;  %v11044_v15 = vpop.f32.mrf.mxu0 }
 0x6ad   : > { %v11165_v60 = vadd.f32 %v11042_v56, %v10168_v21 }
 0x6ae   : > { %v10048_v61 = vpop.f32.mrf.mxu1  ;;  %v11045_v54 = vpop.f32.mrf.mxu0 }
 0x6af   : > { %v10169_v12 = vadd.f32 %v10048_v61, %v9367_v50  ;;  %11229 = vst [vmem:[#allocation2 + $0x70] sm:$0xff] %v11165_v60  ;;  %v9376_v60 = vld [vmem:[#allocation2 + $0x68] sm:$0xff] }
 0x6b0   : > { %v10050_v22 = vpop.f32.mrf.mxu1  ;;  %v11047_v17 = vpop.f32.mrf.mxu0 }
 0x6b1   : > { %v11166_v33 = vadd.f32 %v11045_v54, %v10169_v12 }
 0x6b2   : > { %v10053_v49 = vpop.f32.mrf.mxu1  ;;  %v11050_v16 = vpop.f32.mrf.mxu0 }
 0x6b3   : > { %v10170_v55 = vadd.f32 %v10053_v49, %v9368_v29  ;;  %11230 = vst [vmem:[#allocation2 + $0x90] sm:$0xff] %v11166_v33  ;;  %v9377_v33 = vld [vmem:[#allocation2 + $0x190] sm:$0xff] }
 0x6b4   : > { %v10055_v38 = vpop.f32.mrf.mxu1  ;;  %v11052_v0 = vpop.f32.mrf.mxu0 }
 0x6b5   : > { %v11167_v31 = vadd.f32 %v11050_v16, %v10170_v55 }
 0x6b6   : > { %v10056_v39 = vpop.f32.mrf.mxu1  ;;  %v11053_v27 = vpop.f32.mrf.mxu0 }
 0x6b7   : > { %v10171_v2 = vadd.f32 %v10056_v39, %v9369_v34  ;;  %11231 = vst [vmem:[#allocation2 + $0x1d8] sm:$0xff] %v11167_v31  ;;  %v9378_v31 = vld [vmem:[#allocation2 + $0x198] sm:$0xff] }
 0x6b8   : > { %v10058_v25 = vpop.f32.mrf.mxu1  ;;  %v11055_v32 = vpop.f32.mrf.mxu0 }
 0x6b9   : > { %v11168_v58 = vadd.f32 %v11053_v27, %v10171_v2 }
 0x6ba   : > { %v10061_v46 = vpop.f32.mrf.mxu1  ;;  %v11058_v9 = vpop.f32.mrf.mxu0 }
 0x6bb   : > { %v10172_v35 = vadd.f32 %v10061_v46, %v9370_v5  ;;  %11232 = vst [vmem:[#allocation2 + $0xd0] sm:$0xff] %v11168_v58  ;;  %v9379_v58 = vld [vmem:[#allocation2 + $0x38] sm:$0xff] }
 0x6bc   : > { %v10063_v42 = vpop.f32.mrf.mxu1  ;;  %v11060_v45 = vpop.f32.mrf.mxu0 }
 0x6bd   : > { %v11169_v3 = vadd.f32 %v11058_v9, %v10172_v35 }
 0x6be   : > { %v10064_v53 = vpop.f32.mrf.mxu1  ;;  %v11061_v40 = vpop.f32.mrf.mxu0 }
 0x6bf   : > { %v10173_v59 = vadd.f32 %v10064_v53, %v9371_v51  ;;  %11233 = vst [vmem:[#allocation2 + $0xb8] sm:$0xff] %v11169_v3  ;;  %v9380_v3 = vld [vmem:[#allocation2 + $0xc0] sm:$0xff] }
 0x6c0   : > { %v10066_v18 = vpop.f32.mrf.mxu1  ;;  %v11063_v36 = vpop.f32.mrf.mxu0 }
 0x6c1   : > { %v11170_v52 = vadd.f32 %v11061_v40, %v10173_v59 }
 0x6c2   : > { %v10069_v48 = vpop.f32.mrf.mxu1  ;;  %v11066_v37 = vpop.f32.mrf.mxu0 }
 0x6c3   : > { %v10174_v44 = vadd.f32 %v10069_v48, %v9372_v41  ;;  %11234 = vst [vmem:[#allocation2 + $0x88] sm:$0xff] %v11170_v52  ;;  %v9381_v52 = vld [vmem:[#allocation2 + $0x1c0] sm:$0xff] }
 0x6c4   : > { %v10071_v47 = vpop.f32.mrf.mxu1  ;;  %v11068_v62 = vpop.f32.mrf.mxu0 }
 0x6c5   : > { %v11171_v11 = vadd.f32 %v11066_v37, %v10174_v44 }
 0x6c6   : > { %v10072_v7 = vpop.f32.mrf.mxu1  ;;  %v11069_v23 = vpop.f32.mrf.mxu0 }
 0x6c7   : > { %v10175_v24 = vadd.f32 %v10072_v7, %v9373_v26  ;;  %11235 = vst [vmem:[#allocation2 + $0xa8] sm:$0xff] %v11171_v11  ;;  %v9382_v11 = vld [vmem:[#allocation2 + $0x158] sm:$0xff] }
 0x6c8   : > { %v10074_v6 = vpop.f32.mrf.mxu1  ;;  %v11071_v14 = vpop.f32.mrf.mxu0 }
 0x6c9   : > { %v11172_v57 = vadd.f32 %v11069_v23, %v10175_v24 }
 0x6ca   : > { %v10077_v1 = vpop.f32.mrf.mxu1  ;;  %v11074_v8 = vpop.f32.mrf.mxu0 }
 0x6cb   : > { %v10176_v19 = vadd.f32 %v10077_v1, %v9374_v43  ;;  %11236 = vst [vmem:[#allocation2 + $0x1c8] sm:$0xff] %v11172_v57  ;;  %v9383_v57 = vld [vmem:[#allocation2 + $0x10] sm:$0xff] }
 0x6cc   : > { %v10079_v28 = vpop.f32.mrf.mxu1  ;;  %v11076_v63 = vpop.f32.mrf.mxu0 }
 0x6cd   : > { %v11173_v13 = vadd.f32 %v11074_v8, %v10176_v19 }
 0x6ce   : > { %v10080_v30 = vpop.f32.mrf.mxu1  ;;  %v11077_v10 = vpop.f32.mrf.mxu0 }
 0x6cf   : > { %v10177_v56 = vadd.f32 %v10080_v30, %v9375_v20  ;;  %11237 = vst [vmem:[#allocation2 + $0x170] sm:$0xff] %v11173_v13  ;;  %v9384_v13 = vld [vmem:[#allocation2 + $0x58] sm:$0xff] }
 0x6d0   : > { %v10082_v21 = vpop.f32.mrf.mxu1  ;;  %v11079_v4 = vpop.f32.mrf.mxu0 }
 0x6d1   : > { %v11174_v15 = vadd.f32 %v11077_v10, %v10177_v56 }
 0x6d2   : > { %v10085_v50 = vpop.f32.mrf.mxu1  ;;  %v11082_v61 = vpop.f32.mrf.mxu0 }
 0x6d3   : > { %v10178_v54 = vadd.f32 %v10085_v50, %v9376_v60  ;;  %11238 = vst [vmem:[#allocation2 + $0x178] sm:$0xff] %v11174_v15  ;;  %v9385_v15 = vld [vmem:[#allocation2 + $0xa0] sm:$0xff] }
 0x6d4   : > { %v10087_v12 = vpop.f32.mrf.mxu1  ;;  %v11084_v22 = vpop.f32.mrf.mxu0 }
 0x6d5   : > { %v11175_v17 = vadd.f32 %v11082_v61, %v10178_v54 }
 0x6d6   : > { %v10088_v29 = vpop.f32.mrf.mxu1  ;;  %v11085_v49 = vpop.f32.mrf.mxu0 }
 0x6d7   : > { %v10179_v16 = vadd.f32 %v10088_v29, %v9377_v33  ;;  %11239 = vst [vmem:[#allocation2 + $0x68] sm:$0xff] %v11175_v17 }
 0x6d8   : > { %v10090_v55 = vpop.f32.mrf.mxu1  ;;  %v11087_v38 = vpop.f32.mrf.mxu0 }
 0x6d9   : > { %v11176_v0 = vadd.f32 %v11085_v49, %v10179_v16 }
 0x6da   : > { %v10093_v34 = vpop.f32.mrf.mxu1  ;;  %v11090_v39 = vpop.f32.mrf.mxu0 }
 0x6db   : > { %v10180_v27 = vadd.f32 %v10093_v34, %v9378_v31  ;;  %11240 = vst [vmem:[#allocation2 + $0x190] sm:$0xff] %v11176_v0 }
 0x6dc   : > { %v10095_v2 = vpop.f32.mrf.mxu1  ;;  %v11092_v25 = vpop.f32.mrf.mxu0 }
 0x6dd   : > { %v11177_v32 = vadd.f32 %v11090_v39, %v10180_v27 }
 0x6de   : > { %v10096_v5 = vpop.f32.mrf.mxu1  ;;  %v11093_v46 = vpop.f32.mrf.mxu0 }
 0x6df   : > { %v10181_v9 = vadd.f32 %v10096_v5, %v9379_v58  ;;  %11241 = vst [vmem:[#allocation2 + $0x198] sm:$0xff] %v11177_v32 }
 0x6e0   : > { %v10098_v35 = vpop.f32.mrf.mxu1  ;;  %v11095_v42 = vpop.f32.mrf.mxu0 }
 0x6e1   : > { %v11178_v45 = vadd.f32 %v11093_v46, %v10181_v9 }
 0x6e2   : > { %v10101_v51 = vpop.f32.mrf.mxu1  ;;  %v11098_v53 = vpop.f32.mrf.mxu0 }
 0x6e3   : > { %v10182_v40 = vadd.f32 %v10101_v51, %v9380_v3  ;;  %11242 = vst [vmem:[#allocation2 + $0x38] sm:$0xff] %v11178_v45 }
 0x6e4   : > { %v10103_v59 = vpop.f32.mrf.mxu1  ;;  %v11100_v18 = vpop.f32.mrf.mxu0 }
 0x6e5   : > { %v11179_v36 = vadd.f32 %v11098_v53, %v10182_v40 }
 0x6e6   : > { %v10104_v41 = vpop.f32.mrf.mxu1  ;;  %v11101_v48 = vpop.f32.mrf.mxu0 }
 0x6e7   : > { %v10183_v37 = vadd.f32 %v10104_v41, %v9381_v52  ;;  %11243 = vst [vmem:[#allocation2 + $0xc0] sm:$0xff] %v11179_v36 }
 0x6e8   : > { %v10106_v44 = vpop.f32.mrf.mxu1  ;;  %v11103_v47 = vpop.f32.mrf.mxu0 }
 0x6e9   : > { %v11180_v62 = vadd.f32 %v11101_v48, %v10183_v37 }
 0x6ea   : > { %v10109_v26 = vpop.f32.mrf.mxu1  ;;  %v11106_v7 = vpop.f32.mrf.mxu0 }
 0x6eb   : > { %v10184_v23 = vadd.f32 %v10109_v26, %v9382_v11  ;;  %11244 = vst [vmem:[#allocation2 + $0x1c0] sm:$0xff] %v11180_v62 }
 0x6ec   : > { %v10111_v24 = vpop.f32.mrf.mxu1  ;;  %v11108_v6 = vpop.f32.mrf.mxu0 }
 0x6ed   : > { %v11181_v14 = vadd.f32 %v11106_v7, %v10184_v23 }
 0x6ee   : > { %v10112_v43 = vpop.f32.mrf.mxu1  ;;  %v11109_v1 = vpop.f32.mrf.mxu0 }
 0x6ef   : > { %v10185_v8 = vadd.f32 %v10112_v43, %v9383_v57  ;;  %11245 = vst [vmem:[#allocation2 + $0x158] sm:$0xff] %v11181_v14 }
 0x6f0   : > { %v10114_v19 = vpop.f32.mrf.mxu1  ;;  %v11111_v28 = vpop.f32.mrf.mxu0 }
 0x6f1   : > { %v11182_v63 = vadd.f32 %v11109_v1, %v10185_v8 }
 0x6f2   : > { %v10117_v20 = vpop.f32.mrf.mxu1  ;;  %v11114_v30 = vpop.f32.mrf.mxu0 }
 0x6f3   : > { %v10186_v10 = vadd.f32 %v10117_v20, %v9384_v13  ;;  %11246 = vst [vmem:[#allocation2 + $0x10] sm:$0xff] %v11182_v63 }
 0x6f4   : > { %v10119_v56 = vpop.f32.mrf.mxu1  ;;  %v11116_v21 = vpop.f32.mrf.mxu0 }
 0x6f5   : > { %v11183_v4 = vadd.f32 %v11114_v30, %v10186_v10 }
 0x6f6   : > { %v10120_v60 = vpop.f32.mrf.mxu1  ;;  %v11117_v50 = vpop.f32.mrf.mxu0 }
 0x6f7   : > { %v10187_v61 = vadd.f32 %v10120_v60, %v9385_v15  ;;  %11247 = vst [vmem:[#allocation2 + $0x58] sm:$0xff] %v11183_v4  ;;  %11252 = sbr.rel (%p13596_p6) target bundleno = 1845 (0x735), region = 44 }
 0x6f8   : > { %v10122_v54 = vpop.f32.mrf.mxu1  ;;  %v11119_v12 = vpop.f32.mrf.mxu0 }
 0x6f9   : > { %v11184_v22 = vadd.f32 %v11117_v50, %v10187_v61 }
 0x6fb   : > { %11248 = vst [vmem:[#allocation2 + $0xa0] sm:$0xff] %v11184_v22 }
 0x6fc   : > { %v11253_v17 = vld [vmem:[#allocation2 + $0xb0] sm:$0xff]  ;;  %v11255_v29 = vld [vmem:[#allocation2 + $0xd8] sm:$0xff]  ;;  %v11258_v31 = vld [vmem:[#allocation2 + $0x168] sm:$0xff] }
 0x6fd   : > { %v11254_v33 = vld [vmem:[#allocation2 + $0x1b0] sm:$0xff]  ;;  %vm11317_vm0 = vcmp.gt.f32.partialorder %v11253_v17, 0.0  ;;  %v11381_v49 = vmul.f32 0.04, %v11253_v17  ;;  %vm11319_vm2 = vcmp.gt.f32.partialorder %v11255_v29, 0.0  ;;  %v11256_v38 = vld [vmem:[#allocation2 + $0x18] sm:$0xff] }
 0x6fe   : > { %vm11318_vm1 = vcmp.gt.f32.partialorder %v11254_v33, 0.0  ;;  %v11382_v16 = vmul.f32 0.04, %v11254_v33  ;;  %v11383_v55 = vmul.f32 0.04, %v11255_v29  ;;  %v11257_v0 = vld [vmem:[#allocation2 + $0x50] sm:$0xff] }
 0x6ff   : > { %v11445_v34 = vsel %vm11317_vm0, %v11253_v17, %v11381_v49  ;;  %vm11320_vm3 = vcmp.gt.f32.partialorder %v11256_v38, 0.0  ;;  %v11384_v27 = vmul.f32 0.04, %v11256_v38  ;;  %v11259_v2 = vld [vmem:[#allocation2 + $0x130] sm:$0xff]  ;;  %v11260_v25 = vld [vmem:[#allocation2 + $0x48] sm:$0xff]  ;;  %v11261_v32 = vld [vmem:[#allocation2 + $0x180] sm:$0xff] }
 0x700   : > { %v11446_v39 = vsel %vm11318_vm1, %v11254_v33, %v11382_v16  ;;  %11509 = vst [vmem:[%s15013_s24] sm:$0xff] %v11445_v34  ;;  %v11447_v58 = vsel %vm11319_vm2, %v11255_v29, %v11383_v55  ;;  %vm11321_vm4 = vcmp.gt.f32.partialorder %v11257_v0, 0.0  ;;  %v11385_v5 = vmul.f32 0.04, %v11257_v0  ;;  %v11262_v46 = vld [vmem:[#allocation2 + $0x110] sm:$0xff]  ;;  %v11263_v45 = vld [vmem:[#allocation2 + $0x118] sm:$0xff]  ;;  %v11265_v40 = vld [vmem:[#allocation2 + $0x120] sm:$0xff] }
 0x701   : > { %11510 = vst [vmem:[%s15013_s24 + $0x8] sm:$0xff] %v11446_v39  ;;  %vm11322_vm5 = vcmp.gt.f32.partialorder %v11258_v31, 0.0  ;;  %11511 = vst [vmem:[%s15013_s24 + $0x10] sm:$0xff] %v11447_v58  ;;  %v11448_v9 = vsel %vm11320_vm3, %v11256_v38, %v11384_v27  ;;  %v11386_v35 = vmul.f32 0.04, %v11258_v31  ;;  %vm11323_vm6 = vcmp.gt.f32.partialorder %v11259_v2, 0.0 }
 0x702   : > { %v11387_v42 = vmul.f32 0.04, %v11259_v2  ;;  %11512 = vst [vmem:[%s15013_s24 + $0x18] sm:$0xff] %v11448_v9  ;;  %v11449_v3 = vsel %vm11321_vm4, %v11257_v0, %v11385_v5  ;;  %vm11324_vm7 = vcmp.gt.f32.partialorder %v11260_v25, 0.0  ;;  %v11388_v51 = vmul.f32 0.04, %v11260_v25 }
 0x703   : > { %vm11325_vm8 = vcmp.gt.f32.partialorder %v11261_v32, 0.0  ;;  %v11264_v53 = vld [vmem:[#allocation2 + $0x98] sm:$0xff]  ;;  %11513 = vst [vmem:[%s15013_s24 + $0x20] sm:$0xff] %v11449_v3  ;;  %v11450_v59 = vsel %vm11322_vm5, %v11258_v31, %v11386_v35  ;;  %v11389_v36 = vmul.f32 0.04, %v11261_v32  ;;  %vm11326_vm9 = vcmp.gt.f32.partialorder %v11262_v46, 0.0 }
 0x704   : > { %v11451_v18 = vsel %vm11323_vm6, %v11259_v2, %v11387_v42  ;;  %v11266_v52 = vld [vmem:[#allocation2 + $0x150] sm:$0xff]  ;;  %11514 = vst [vmem:[%s15013_s24 + $0x28] sm:$0xff] %v11450_v59  ;;  %v11452_v41 = vsel %vm11324_vm7, %v11260_v25, %v11388_v51  ;;  %v11390_v48 = vmul.f32 0.04, %v11262_v46  ;;  %vm11327_vm10 = vcmp.gt.f32.partialorder %v11263_v45, 0.0  ;;  %v11267_v44 = vld [vmem:[#allocation2 + $0x108] sm:$0xff] }
 0x705   : > { %11515 = vst [vmem:[%s15013_s24 + $0x30] sm:$0xff] %v11451_v18  ;;  %v11391_v37 = vmul.f32 0.04, %v11263_v45  ;;  %11516 = vst [vmem:[%s15013_s24 + $0x38] sm:$0xff] %v11452_v41  ;;  %v11453_v47 = vsel %vm11325_vm8, %v11261_v32, %v11389_v36  ;;  %vm11328_vm11 = vcmp.gt.f32.partialorder %v11264_v53, 0.0  ;;  %vm11329_vm12 = vcmp.gt.f32.partialorder %v11265_v40, 0.0 }
 0x706   : > { %v11392_v62 = vmul.f32 0.04, %v11264_v53  ;;  %v11268_v11 = vld [vmem:[#allocation2 + $0x60] sm:$0xff]  ;;  %11517 = vst [vmem:[%s15013_s24 + $0x40] sm:$0xff] %v11453_v47  ;;  %v11454_v7 = vsel %vm11326_vm9, %v11262_v46, %v11390_v48  ;;  %v11393_v24 = vmul.f32 0.04, %v11265_v40 }
 0x707   : > { %v11269_v26 = vld [vmem:[#allocation2 + $0xe0] sm:$0xff]  ;;  %v11455_v23 = vsel %vm11327_vm10, %v11263_v45, %v11391_v37  ;;  %vm11330_vm13 = vcmp.gt.f32.partialorder %v11266_v52, 0.0  ;;  %v11270_v6 = vld [vmem:[#allocation2 + $0x188] sm:$0xff]  ;;  %11518 = vst [vmem:[%s15013_s24 + $0x48] sm:$0xff] %v11454_v7  ;;  %v11394_v57 = vmul.f32 0.04, %v11266_v52 }
 0x708   : > { %11519 = vst [vmem:[%s15013_s24 + $0x50] sm:$0xff] %v11455_v23  ;;  %v11456_v14 = vsel %vm11328_vm11, %v11264_v53, %v11392_v62  ;;  %vm11331_vm14 = vcmp.gt.f32.partialorder %v11267_v44, 0.0  ;;  %v11395_v43 = vmul.f32 0.04, %v11267_v44  ;;  %v11271_v1 = vld [vmem:[#allocation2 + $0x138] sm:$0xff]  ;;  %v11457_v8 = vsel %vm11329_vm12, %v11265_v40, %v11393_v24  ;;  %v11272_v28 = vld [vmem:[#allocation2 + $0x140] sm:$0xff] }
 0x709   : > { %11520 = vst [vmem:[%s15013_s24 + $0x58] sm:$0xff] %v11456_v14  ;;  %vm11332_vm15 = vcmp.gt.f32.partialorder %v11268_v11, 0.0  ;;  %v11396_v19 = vmul.f32 0.04, %v11268_v11  ;;  %vm11333_vm0 = vcmp.gt.f32.partialorder %v11269_v26, 0.0  ;;  %v11273_v63 = vld [vmem:[#allocation2 + $0x80] sm:$0xff]  ;;  %v11458_v13 = vsel %vm11330_vm13, %v11266_v52, %v11394_v57 }
 0x70a   : > { %11521 = vst [vmem:[%s15013_s24 + $0x60] sm:$0xff] %v11457_v8  ;;  %v11459_v20 = vsel %vm11331_vm14, %v11267_v44, %v11395_v43  ;;  %v11397_v30 = vmul.f32 0.04, %v11269_v26  ;;  %vm11334_vm1 = vcmp.gt.f32.partialorder %v11270_v6, 0.0  ;;  %v11274_v10 = vld [vmem:[#allocation2 + $0x1a8] sm:$0xff]  ;;  %11522 = vst [vmem:[%s15013_s24 + $0x68] sm:$0xff] %v11458_v13 }
 0x70b   : > { %11523 = vst [vmem:[%s15013_s24 + $0x70] sm:$0xff] %v11459_v20  ;;  %v11460_v56 = vsel %vm11332_vm15, %v11268_v11, %v11396_v19  ;;  %v11398_v21 = vmul.f32 0.04, %v11270_v6  ;;  %vm11335_vm2 = vcmp.gt.f32.partialorder %v11271_v1, 0.0  ;;  %v11399_v4 = vmul.f32 0.04, %v11271_v1 }
 0x70c   : > { %v11275_v15 = vld [vmem:[#allocation2 + $0x1b8] sm:$0xff]  ;;  %11524 = vst [vmem:[%s15013_s24 + $0x78] sm:$0xff] %v11460_v56  ;;  %v11461_v60 = vsel %vm11333_vm0, %v11269_v26, %v11397_v30  ;;  %vm11336_vm3 = vcmp.gt.f32.partialorder %v11272_v28, 0.0  ;;  %v11400_v50 = vmul.f32 0.04, %v11272_v28  ;;  %vm11337_vm4 = vcmp.gt.f32.partialorder %v11273_v63, 0.0 }
 0x70d   : > { %v11276_v61 = vld [vmem:[#allocation2 + $0x28] sm:$0xff]  ;;  %11525 = vst [vmem:[%s15013_s24 + $0x80] sm:$0xff] %v11461_v60  ;;  %v11462_v12 = vsel %vm11334_vm1, %v11270_v6, %v11398_v21  ;;  %v11463_v22 = vsel %vm11335_vm2, %v11271_v1, %v11399_v4  ;;  %v11401_v17 = vmul.f32 0.04, %v11273_v63  ;;  %vm11338_vm5 = vcmp.gt.f32.partialorder %v11274_v10, 0.0  ;;  %v11278_v33 = vld [vmem:[#allocation2 + $0xf8] sm:$0xff] }
 0x70e   : > { %v11277_v54 = vld [vmem:[#allocation2 + $0x1e8] sm:$0xff]  ;;  %11526 = vst [vmem:[%s15013_s24 + $0x88] sm:$0xff] %v11462_v12  ;;  %11527 = vst [vmem:[%s15013_s24 + $0x90] sm:$0xff] %v11463_v22  ;;  %v11464_v29 = vsel %vm11336_vm3, %v11272_v28, %v11400_v50  ;;  %v11402_v49 = vmul.f32 0.04, %v11274_v10  ;;  %vm11339_vm6 = vcmp.gt.f32.partialorder %v11275_v15, 0.0 }
 0x70f   : > { %v11403_v16 = vmul.f32 0.04, %v11275_v15  ;;  %v11279_v55 = vld [vmem:[#allocation2 + $0x160] sm:$0xff]  ;;  %11528 = vst [vmem:[%s15013_s24 + $0x98] sm:$0xff] %v11464_v29  ;;  %v11465_v38 = vsel %vm11337_vm4, %v11273_v63, %v11401_v17  ;;  %vm11340_vm7 = vcmp.gt.f32.partialorder %v11276_v61, 0.0  ;;  %vm11341_vm8 = vcmp.gt.f32.partialorder %v11277_v54, 0.0 }
 0x710   : > { %v11404_v0 = vmul.f32 0.04, %v11276_v61  ;;  %v11280_v31 = vld [vmem:[#allocation2 + $0x30] sm:$0xff]  ;;  %v11281_v34 = vld [vmem:[#allocation2 + $0x1e0] sm:$0xff]  ;;  %11529 = vst [vmem:[%s15013_s24 + $0xa0] sm:$0xff] %v11465_v38  ;;  %v11466_v39 = vsel %vm11338_vm5, %v11274_v10, %v11402_v49  ;;  %vm11342_vm9 = vcmp.gt.f32.partialorder %v11278_v33, 0.0 }
 0x711   : > { %v11467_v27 = vsel %vm11339_vm6, %v11275_v15, %v11403_v16  ;;  %v11405_v2 = vmul.f32 0.04, %v11277_v54  ;;  %v11282_v25 = vld [vmem:[#allocation2] sm:$0xff]  ;;  %11530 = vst [vmem:[%s15013_s24 + $0xa8] sm:$0xff] %v11466_v39  ;;  %v11406_v58 = vmul.f32 0.04, %v11278_v33 }
 0x712   : > { %11531 = vst [vmem:[%s15013_s24 + $0xb0] sm:$0xff] %v11467_v27  ;;  %v11468_v32 = vsel %vm11340_vm7, %v11276_v61, %v11404_v0  ;;  %vm11343_vm10 = vcmp.gt.f32.partialorder %v11279_v55, 0.0  ;;  %v11407_v5 = vmul.f32 0.04, %v11279_v55  ;;  %v11283_v46 = vld [vmem:[#allocation2 + $0xf0] sm:$0xff]  ;;  %vm11344_vm11 = vcmp.gt.f32.partialorder %v11280_v31, 0.0 }
 0x713   : > { %11532 = vst [vmem:[%s15013_s24 + $0xb8] sm:$0xff] %v11468_v32  ;;  %v11469_v9 = vsel %vm11341_vm8, %v11277_v54, %v11405_v2  ;;  %v11408_v35 = vmul.f32 0.04, %v11280_v31  ;;  %vm11345_vm12 = vcmp.gt.f32.partialorder %v11281_v34, 0.0  ;;  %v11284_v42 = vld [vmem:[#allocation2 + $0x8] sm:$0xff]  ;;  %v11470_v3 = vsel %vm11342_vm9, %v11278_v33, %v11406_v58  ;;  %v11286_v40 = vld [vmem:[#allocation2 + $0x1d0] sm:$0xff] }
 0x714   : > { %v11285_v45 = vld [vmem:[#allocation2 + $0x148] sm:$0xff]  ;;  %11533 = vst [vmem:[%s15013_s24 + $0xc0] sm:$0xff] %v11469_v9  ;;  %v11471_v51 = vsel %vm11343_vm10, %v11279_v55, %v11407_v5  ;;  %v11409_v53 = vmul.f32 0.04, %v11281_v34  ;;  %vm11346_vm13 = vcmp.gt.f32.partialorder %v11282_v25, 0.0  ;;  %11534 = vst [vmem:[%s15013_s24 + $0xc8] sm:$0xff] %v11470_v3 }
 0x715   : > { %11535 = vst [vmem:[%s15013_s24 + $0xd0] sm:$0xff] %v11471_v51  ;;  %v11472_v59 = vsel %vm11344_vm11, %v11280_v31, %v11408_v35  ;;  %v11410_v18 = vmul.f32 0.04, %v11282_v25  ;;  %vm11347_vm14 = vcmp.gt.f32.partialorder %v11283_v46, 0.0  ;;  %v11411_v36 = vmul.f32 0.04, %v11283_v46 }
 0x716   : > { %v11287_v52 = vld [vmem:[#allocation2 + $0x100] sm:$0xff]  ;;  %11536 = vst [vmem:[%s15013_s24 + $0xd8] sm:$0xff] %v11472_v59  ;;  %v11473_v41 = vsel %vm11345_vm12, %v11281_v34, %v11409_v53  ;;  %vm11348_vm15 = vcmp.gt.f32.partialorder %v11284_v42, 0.0  ;;  %v11412_v48 = vmul.f32 0.04, %v11284_v42  ;;  %vm11349_vm0 = vcmp.gt.f32.partialorder %v11285_v45, 0.0 }
 0x717   : > { %v11288_v37 = vld [vmem:[#allocation2 + $0xc8] sm:$0xff]  ;;  %v11289_v44 = vld [vmem:[#allocation2 + $0x40] sm:$0xff]  ;;  %11537 = vst [vmem:[%s15013_s24 + $0xe0] sm:$0xff] %v11473_v41  ;;  %v11474_v47 = vsel %vm11346_vm13, %v11282_v25, %v11410_v18  ;;  %v11475_v62 = vsel %vm11347_vm14, %v11283_v46, %v11411_v36  ;;  %v11413_v11 = vmul.f32 0.04, %v11285_v45  ;;  %vm11350_vm1 = vcmp.gt.f32.partialorder %v11286_v40, 0.0 }
 0x718   : > { %v11290_v26 = vld [vmem:[#allocation2 + $0x1f8] sm:$0xff]  ;;  %11538 = vst [vmem:[%s15013_s24 + $0xe8] sm:$0xff] %v11474_v47  ;;  %11539 = vst [vmem:[%s15013_s24 + $0xf0] sm:$0xff] %v11475_v62  ;;  %v11476_v7 = vsel %vm11348_vm15, %v11284_v42, %v11412_v48  ;;  %v11414_v23 = vmul.f32 0.04, %v11286_v40  ;;  %vm11351_vm2 = vcmp.gt.f32.partialorder %v11287_v52, 0.0 }
 0x719   : > { %v11415_v24 = vmul.f32 0.04, %v11287_v52  ;;  %v11291_v6 = vld [vmem:[#allocation2 + $0x20] sm:$0xff]  ;;  %11540 = vst [vmem:[%s15013_s24 + $0xf8] sm:$0xff] %v11476_v7  ;;  %v11477_v14 = vsel %vm11349_vm0, %v11285_v45, %v11413_v11  ;;  %vm11352_vm3 = vcmp.gt.f32.partialorder %v11288_v37, 0.0  ;;  %vm11353_vm4 = vcmp.gt.f32.partialorder %v11289_v44, 0.0 }
 0x71a   : > { %v11416_v57 = vmul.f32 0.04, %v11288_v37  ;;  %v11292_v43 = vld [vmem:[#allocation2 + $0x128] sm:$0xff]  ;;  %v11293_v1 = vld [vmem:[#allocation2 + $0x1a0] sm:$0xff]  ;;  %11541 = vst [vmem:[%s15013_s24 + $0x100] sm:$0xff] %v11477_v14  ;;  %v11478_v8 = vsel %vm11350_vm1, %v11286_v40, %v11414_v23  ;;  %vm11354_vm5 = vcmp.gt.f32.partialorder %v11290_v26, 0.0 }
 0x71b   : > { %v11479_v19 = vsel %vm11351_vm2, %v11287_v52, %v11415_v24  ;;  %v11417_v28 = vmul.f32 0.04, %v11289_v44  ;;  %v11294_v63 = vld [vmem:[#allocation2 + $0x1f0] sm:$0xff]  ;;  %11542 = vst [vmem:[%s15013_s24 + $0x108] sm:$0xff] %v11478_v8  ;;  %v11418_v20 = vmul.f32 0.04, %v11290_v26 }
 0x71c   : > { %11543 = vst [vmem:[%s15013_s24 + $0x110] sm:$0xff] %v11479_v19  ;;  %v11480_v13 = vsel %vm11352_vm3, %v11288_v37, %v11416_v57  ;;  %vm11355_vm6 = vcmp.gt.f32.partialorder %v11291_v6, 0.0  ;;  %v11419_v30 = vmul.f32 0.04, %v11291_v6  ;;  %v11295_v10 = vld [vmem:[#allocation2 + $0xe8] sm:$0xff]  ;;  %vm11356_vm7 = vcmp.gt.f32.partialorder %v11292_v43, 0.0 }
 0x71d   : > { %11544 = vst [vmem:[%s15013_s24 + $0x118] sm:$0xff] %v11480_v13  ;;  %v11481_v56 = vsel %vm11353_vm4, %v11289_v44, %v11417_v28  ;;  %v11420_v21 = vmul.f32 0.04, %v11292_v43  ;;  %vm11357_vm8 = vcmp.gt.f32.partialorder %v11293_v1, 0.0  ;;  %v11296_v4 = vld [vmem:[#allocation2 + $0x78] sm:$0xff]  ;;  %v11297_v15 = vld [vmem:[#allocation2 + $0x70] sm:$0xff]  ;;  %v11482_v60 = vsel %vm11354_vm5, %v11290_v26, %v11418_v20 }
 0x71e   : > { %11545 = vst [vmem:[%s15013_s24 + $0x120] sm:$0xff] %v11481_v56  ;;  %v11483_v50 = vsel %vm11355_vm6, %v11291_v6, %v11419_v30  ;;  %v11421_v61 = vmul.f32 0.04, %v11293_v1  ;;  %vm11358_vm9 = vcmp.gt.f32.partialorder %v11294_v63, 0.0  ;;  %v11298_v54 = vld [vmem:[#allocation2 + $0x90] sm:$0xff]  ;;  %11546 = vst [vmem:[%s15013_s24 + $0x128] sm:$0xff] %v11482_v60 }
 0x71f   : > { %11547 = vst [vmem:[%s15013_s24 + $0x130] sm:$0xff] %v11483_v50  ;;  %v11484_v12 = vsel %vm11356_vm7, %v11292_v43, %v11420_v21  ;;  %v11422_v22 = vmul.f32 0.04, %v11294_v63  ;;  %vm11359_vm10 = vcmp.gt.f32.partialorder %v11295_v10, 0.0  ;;  %v11423_v17 = vmul.f32 0.04, %v11295_v10 }
 0x720   : > { %v11299_v33 = vld [vmem:[#allocation2 + $0x1d8] sm:$0xff]  ;;  %11548 = vst [vmem:[%s15013_s24 + $0x138] sm:$0xff] %v11484_v12  ;;  %v11485_v29 = vsel %vm11357_vm8, %v11293_v1, %v11421_v61  ;;  %vm11360_vm11 = vcmp.gt.f32.partialorder %v11296_v4, 0.0  ;;  %v11424_v49 = vmul.f32 0.04, %v11296_v4  ;;  %vm11361_vm12 = vcmp.gt.f32.partialorder %v11297_v15, 0.0 }
 0x721   : > { %v11300_v16 = vld [vmem:[#allocation2 + $0xd0] sm:$0xff]  ;;  %v11301_v55 = vld [vmem:[#allocation2 + $0xb8] sm:$0xff]  ;;  %11549 = vst [vmem:[%s15013_s24 + $0x140] sm:$0xff] %v11485_v29  ;;  %v11486_v38 = vsel %vm11358_vm9, %v11294_v63, %v11422_v22  ;;  %v11487_v0 = vsel %vm11359_vm10, %v11295_v10, %v11423_v17  ;;  %v11425_v31 = vmul.f32 0.04, %v11297_v15  ;;  %vm11362_vm13 = vcmp.gt.f32.partialorder %v11298_v54, 0.0 }
 0x722   : > { %v11302_v34 = vld [vmem:[#allocation2 + $0x88] sm:$0xff]  ;;  %11550 = vst [vmem:[%s15013_s24 + $0x148] sm:$0xff] %v11486_v38  ;;  %11551 = vst [vmem:[%s15013_s24 + $0x150] sm:$0xff] %v11487_v0  ;;  %v11488_v39 = vsel %vm11360_vm11, %v11296_v4, %v11424_v49  ;;  %v11426_v27 = vmul.f32 0.04, %v11298_v54  ;;  %vm11363_vm14 = vcmp.gt.f32.partialorder %v11299_v33, 0.0 }
 0x723   : > { %v11427_v2 = vmul.f32 0.04, %v11299_v33  ;;  %v11303_v25 = vld [vmem:[#allocation2 + $0xa8] sm:$0xff]  ;;  %11552 = vst [vmem:[%s15013_s24 + $0x158] sm:$0xff] %v11488_v39  ;;  %v11489_v32 = vsel %vm11361_vm12, %v11297_v15, %v11425_v31  ;;  %vm11364_vm15 = vcmp.gt.f32.partialorder %v11300_v16, 0.0  ;;  %vm11365_vm0 = vcmp.gt.f32.partialorder %v11301_v55, 0.0 }
 0x724   : > { %v11428_v58 = vmul.f32 0.04, %v11300_v16  ;;  %v11304_v5 = vld [vmem:[#allocation2 + $0x1c8] sm:$0xff]  ;;  %v11305_v46 = vld [vmem:[#allocation2 + $0x170] sm:$0xff]  ;;  %11553 = vst [vmem:[%s15013_s24 + $0x160] sm:$0xff] %v11489_v32  ;;  %v11490_v9 = vsel %vm11362_vm13, %v11298_v54, %v11426_v27  ;;  %vm11366_vm1 = vcmp.gt.f32.partialorder %v11302_v34, 0.0 }
 0x725   : > { %v11491_v35 = vsel %vm11363_vm14, %v11299_v33, %v11427_v2  ;;  %v11429_v42 = vmul.f32 0.04, %v11301_v55  ;;  %v11306_v45 = vld [vmem:[#allocation2 + $0x178] sm:$0xff]  ;;  %11554 = vst [vmem:[%s15013_s24 + $0x168] sm:$0xff] %v11490_v9  ;;  %v11430_v51 = vmul.f32 0.04, %v11302_v34 }
 0x726   : > { %11555 = vst [vmem:[%s15013_s24 + $0x170] sm:$0xff] %v11491_v35  ;;  %v11492_v3 = vsel %vm11364_vm15, %v11300_v16, %v11428_v58  ;;  %vm11367_vm2 = vcmp.gt.f32.partialorder %v11303_v25, 0.0  ;;  %v11431_v53 = vmul.f32 0.04, %v11303_v25  ;;  %v11307_v40 = vld [vmem:[#allocation2 + $0x68] sm:$0xff]  ;;  %vm11368_vm3 = vcmp.gt.f32.partialorder %v11304_v5, 0.0 }
 0x727   : > { %11556 = vst [vmem:[%s15013_s24 + $0x178] sm:$0xff] %v11492_v3  ;;  %v11493_v59 = vsel %vm11365_vm0, %v11301_v55, %v11429_v42  ;;  %v11432_v18 = vmul.f32 0.04, %v11304_v5  ;;  %vm11369_vm4 = vcmp.gt.f32.partialorder %v11305_v46, 0.0  ;;  %v11308_v36 = vld [vmem:[#allocation2 + $0x190] sm:$0xff]  ;;  %v11309_v52 = vld [vmem:[#allocation2 + $0x198] sm:$0xff]  ;;  %v11494_v41 = vsel %vm11366_vm1, %v11302_v34, %v11430_v51 }
 0x728   : > { %11557 = vst [vmem:[%s15013_s24 + $0x180] sm:$0xff] %v11493_v59  ;;  %v11495_v48 = vsel %vm11367_vm2, %v11303_v25, %v11431_v53  ;;  %v11433_v37 = vmul.f32 0.04, %v11305_v46  ;;  %vm11370_vm5 = vcmp.gt.f32.partialorder %v11306_v45, 0.0  ;;  %v11310_v44 = vld [vmem:[#allocation2 + $0x38] sm:$0xff]  ;;  %11558 = vst [vmem:[%s15013_s24 + $0x188] sm:$0xff] %v11494_v41 }
 0x729   : > { %11559 = vst [vmem:[%s15013_s24 + $0x190] sm:$0xff] %v11495_v48  ;;  %v11496_v47 = vsel %vm11368_vm3, %v11304_v5, %v11432_v18  ;;  %v11434_v62 = vmul.f32 0.04, %v11306_v45  ;;  %vm11371_vm6 = vcmp.gt.f32.partialorder %v11307_v40, 0.0  ;;  %v11435_v11 = vmul.f32 0.04, %v11307_v40 }
 0x72a   : > { %v11311_v26 = vld [vmem:[#allocation2 + $0xc0] sm:$0xff]  ;;  %11560 = vst [vmem:[%s15013_s24 + $0x198] sm:$0xff] %v11496_v47  ;;  %v11497_v7 = vsel %vm11369_vm4, %v11305_v46, %v11433_v37  ;;  %vm11372_vm7 = vcmp.gt.f32.partialorder %v11308_v36, 0.0  ;;  %v11436_v23 = vmul.f32 0.04, %v11308_v36  ;;  %vm11373_vm8 = vcmp.gt.f32.partialorder %v11309_v52, 0.0 }
 0x72b   : > { %v11312_v24 = vld [vmem:[#allocation2 + $0x1c0] sm:$0xff]  ;;  %v11313_v6 = vld [vmem:[#allocation2 + $0x158] sm:$0xff]  ;;  %11561 = vst [vmem:[%s15013_s24 + $0x1a0] sm:$0xff] %v11497_v7  ;;  %v11498_v14 = vsel %vm11370_vm5, %v11306_v45, %v11434_v62  ;;  %v11499_v57 = vsel %vm11371_vm6, %v11307_v40, %v11435_v11  ;;  %v11437_v43 = vmul.f32 0.04, %v11309_v52  ;;  %vm11374_vm9 = vcmp.gt.f32.partialorder %v11310_v44, 0.0 }
 0x72c   : > { %v11314_v1 = vld [vmem:[#allocation2 + $0x10] sm:$0xff]  ;;  %11562 = vst [vmem:[%s15013_s24 + $0x1a8] sm:$0xff] %v11498_v14  ;;  %11563 = vst [vmem:[%s15013_s24 + $0x1b0] sm:$0xff] %v11499_v57  ;;  %v11500_v8 = vsel %vm11372_vm7, %v11308_v36, %v11436_v23  ;;  %v11438_v19 = vmul.f32 0.04, %v11310_v44  ;;  %vm11375_vm10 = vcmp.gt.f32.partialorder %v11311_v26, 0.0 }
 0x72d   : > { %v11439_v28 = vmul.f32 0.04, %v11311_v26  ;;  %v11315_v63 = vld [vmem:[#allocation2 + $0x58] sm:$0xff]  ;;  %11564 = vst [vmem:[%s15013_s24 + $0x1b8] sm:$0xff] %v11500_v8  ;;  %v11501_v13 = vsel %vm11373_vm8, %v11309_v52, %v11437_v43  ;;  %vm11376_vm11 = vcmp.gt.f32.partialorder %v11312_v24, 0.0  ;;  %vm11377_vm12 = vcmp.gt.f32.partialorder %v11313_v6, 0.0 }
 0x72e   : > { %v11440_v20 = vmul.f32 0.04, %v11312_v24  ;;  %v11316_v30 = vld [vmem:[#allocation2 + $0xa0] sm:$0xff]  ;;  %11565 = vst [vmem:[%s15013_s24 + $0x1c0] sm:$0xff] %v11501_v13  ;;  %v11502_v10 = vsel %vm11374_vm9, %v11310_v44, %v11438_v19  ;;  %v11441_v21 = vmul.f32 0.04, %v11313_v6 }
 0x72f   : > { %v11503_v56 = vsel %vm11375_vm10, %v11311_v26, %v11439_v28  ;;  %vm11378_vm13 = vcmp.gt.f32.partialorder %v11314_v1, 0.0  ;;  %11566 = vst [vmem:[%s15013_s24 + $0x1c8] sm:$0xff] %v11502_v10  ;;  %v11442_v15 = vmul.f32 0.04, %v11314_v1  ;;  %vm11379_vm14 = vcmp.gt.f32.partialorder %v11315_v63, 0.0 }
 0x730   : > { %11567 = vst [vmem:[%s15013_s24 + $0x1d0] sm:$0xff] %v11503_v56  ;;  %v11504_v4 = vsel %vm11376_vm11, %v11312_v24, %v11440_v20  ;;  %v11443_v60 = vmul.f32 0.04, %v11315_v63  ;;  %v11505_v50 = vsel %vm11377_vm12, %v11313_v6, %v11441_v21  ;;  %vm11380_vm15 = vcmp.gt.f32.partialorder %v11316_v30, 0.0 }
 0x731   : > { %11568 = vst [vmem:[%s15013_s24 + $0x1d8] sm:$0xff] %v11504_v4  ;;  %v11444_v61 = vmul.f32 0.04, %v11316_v30  ;;  %11569 = vst [vmem:[%s15013_s24 + $0x1e0] sm:$0xff] %v11505_v50  ;;  %v11506_v54 = vsel %vm11378_vm13, %v11314_v1, %v11442_v15 }
 0x732   : > { %v11507_v12 = vsel %vm11379_vm14, %v11315_v63, %v11443_v60  ;;  %11570 = vst [vmem:[%s15013_s24 + $0x1e8] sm:$0xff] %v11506_v54 }
 0x733   : > { %11571 = vst [vmem:[%s15013_s24 + $0x1f0] sm:$0xff] %v11507_v12  ;;  %v11508_v22 = vsel %vm11380_vm15, %v11316_v30, %v11444_v61 }
 0x734   : > { %11572 = vst [vmem:[%s15013_s24 + $0x1f8] sm:$0xff] %v11508_v22 }
 0x735 PF: > { %s13603_s15 = sshll.u32 %s14798_s16, 13  ;;  %s11587_s8 = sshll.u32 %s15013_s24, 4  ;;  %s17008_s8 = int_to_ptr.vmem [resolvable:$true] %s11587_s8 }
 0x736   : > { %s17005_s30 = scalar_lea.hbm %s17072_s2, %s13603_s15  ;;  %s11574_s21 = scalar_lea.sflag [#allocation5], %s14995_s7 }
 0x737   : > { %s14686_s28 = scalar_lea.vmem %s17008_s8, 8192  ;;  %s14820_s18 = smov [#allocation8]  }
 0x738   : > { %p14687_p13 = scmp.ne.s32.totalorder %s17008_s8, %s14686_s28  ;;  %s14690_s17 = sshll.u32 %s14820_s18, 4  ;;  %s14691_s17 = int_to_ptr.vmem [resolvable:$false] %s14690_s17 }
 0x739   : > { %s14692_s16 = scalar_lea.vmem %s14691_s17, 16384  ;;  %p14693_p1 = scmp.lt.s32.totalorder %s17008_s8, %s14691_s17 }
 0x73a   : > { %p14688_p10 = pnand %p14687_p13, %p14914_p8  ;;  %p14694_p3 = scmp.lt.s32.totalorder %s14692_s16, %s14686_s28 }
 0x73c   : > { %p14689_p0 = pneg %p14688_p10  ;;  %p14695_p2 = por %p14694_p3, %p14693_p1 }
 0x73e   : > { %p14696_p5 = pnand %p14695_p2, %p14689_p0 }
 0x740   : > { %14699 = shalt.err (!%p14696_p5)
}
 0x741   : > { %s14700_s9 = scalar_lea.hbm %s17005_s30, 8192  ;;  %s14704_s4 = scalar_lea.hbm %s17072_s2, 16384 }
 0x742   : > { %p14701_p11 = scmp.ne.s32.totalorder %s17005_s30, %s14700_s9  ;;  %p14705_p12 = scmp.lt.s32.totalorder %s17005_s30, %s17072_s2 }
 0x743   : > { %p14706_p9 = scmp.lt.s32.totalorder %s14704_s4, %s14700_s9 }
 0x744   : > { %p14702_p4 = pnand %p14701_p11, %p14914_p8 }
 0x745   : > { %p14707_p6 = por %p14706_p9, %p14705_p12 }
 0x746   : > { %p14703_p7 = pneg %p14702_p4 }
 0x748   : > { %p14708_p13 = pnand %p14707_p6, %p14703_p7 }
 0x74a   : > { %14711 = shalt.err (!%p14708_p13)
}
 0x74b   : > { %s14821_s24 = smov 128   ;;  %s14822_s25 = smov 8  }
 0x74c   : > { %13646 = dma.vmem_to_hbm [thread:$0]  (%p14914_p8), %s17008_s8, 8192, %s17005_s30, %s11574_s21, %s14821_s24, %s14821_s24, %s14822_s25  }
 0x74d PF: > { %p13660_p10 = scmp.ge.s32.totalorder %s14810_s19, 2  ;;  %s11602_s6 = sand.u32 1, %s14782_s12  }
 0x74e   : > { %p17099_p0 = scmp.ne.s32.totalorder %s17084_s27, 0  ;;  %s11603_s15 = scalar_lea.sflag [#allocation5], %s11602_s6 }
 0x750   : > { %p13656_p1 = pnand %p13660_p10, %p17099_p0 }
 0x752   : > { %p13657_p3 = pneg %p13656_p1 }
 0x754   : > { %14765 = dma.done.wait (%p13657_p3), %s11603_s15, 8192  }
 0x755   : > { %14767 = vsyncadd (%p13657_p3), %s11603_s15, 4294959104  ;;  %s21_s19 = sadd.s32 1, %s14810_s19   ;;  %s17100_s26 = sld [smem:[#allocation16_spill]] }
 0x756   : > { %p18_p2 = scmp.ge.s32.totalorder %s21_s19, 24   ;;  %s17101_s15 = sld [smem:[#allocation12_spill]] }
 0x757   : > { %s17102_s16 = sld [smem:[#allocation13_spill]]  ;;  %s17105_s9 = smov %s14774_s10 }
 0x758   : > { %s17103_s17 = sld [smem:[#allocation14_spill]]  ;;  %s17106_s10 = smov %s14778_s11 }
 0x759   : > { %s17104_s18 = sld [smem:[#allocation15_spill]]  ;;  %s17108_s12 = smov %s14786_s13 }
 0x75a   : > { %s17109_s13 = smov %s14790_s14  ;;  %s17110_s14 = smov %s14983_s3 }
 0x75b   : > { %s17107_s11 = smov %s17100_s26  ;;  %20 = sbr.rel (!%p18_p2) target bundleno = 13 (0xd), region = 115 }
 0x760   :  { %11608 = vsyncpa [#allocation4], 1 }
 0x761   :  { %11610 = vsyncpa [#allocation4 + $0x1], 1 }
 0x762   :  { %11611 = vsyncpa [#allocation7], 1 }
 0x763   :  { %11613 = vsyncpa [#allocation7 + $0x1], 1 }
 0x764   :  { %11614 = vsyncpa [#allocation5], 1 }
 0x765   :  { %11616 = vsyncpa [#allocation5 + $0x1], 1 }

</bundles_post_ra>
